<compile_context>
chip_gen: v7x
topology: tpu7x:2x2x1
jax: 0.10.0
libtpu: 0.0.40
codegen_flags: <defaults>
</compile_context>

<pallas_src>
import jax
import jax.numpy as jnp
from jax import lax
from jax.experimental import pallas as pl
from jax.experimental.pallas import tpu as pltpu

BN_EPS = 1e-3


def _stride_and_projection(cin, cout, down_sampling, down_sampling_temporal):
    if down_sampling_temporal is None:
        down_sampling_temporal = down_sampling
    if down_sampling:
        stride = (2, 2, 2) if down_sampling_temporal else (1, 2, 2)
    else:
        stride = (1, 1, 1)
    has_projection = (cout != cin) or down_sampling
    return stride, has_projection


def _fold_bn(gamma, beta, mean, var, eps=BN_EPS):
    # TODO(synk): training-mode BatchNorm (batch statistics) not implemented;
    # eval-mode running stats folded into a per-channel affine.
    scale = gamma / jnp.sqrt(var + eps)
    bias = beta - mean * scale
    return (scale.reshape(1, -1).astype(jnp.float32),
            bias.reshape(1, -1).astype(jnp.float32))


def _conv_w_to_taps(w, dtype):
    # PyTorch layout (Cout, Cin, kt, kh, kw) -> (27, Cin, Cout), channels-last.
    cout, cin = w.shape[0], w.shape[1]
    return jnp.transpose(w, (2, 3, 4, 1, 0)).reshape(27, cin, cout).astype(dtype)


def _make_basic_block_kernel(t_o, h_o, w_o, stride, has_projection):
    st, sh, sw = stride
    m = t_o * h_o * w_o
    strided = stride != (1, 1, 1)

    def _window(vol, kt, kh, kw):
        # vol: padded (T+2, H+2, W+2, C) value; returns the (t_o, h_o, w_o, C)
        # strided tap window at offset (kt, kh, kw).
        win = vol[kt:kt + st * (t_o - 1) + 1,
                  kh:kh + sh * (h_o - 1) + 1,
                  kw:kw + sw * (w_o - 1) + 1, :]
        if strided:
            win = win[::st, ::sh, ::sw, :]
        return win

    def kernel(*refs):
        if has_projection:
            (x_ref, w1_ref, s1_ref, b1_ref, w2_ref, s2_ref, b2_ref,
             w3_ref, s3_ref, b3_ref, o_ref, h1p_ref) = refs
        else:
            (x_ref, w1_ref, s1_ref, b1_ref, w2_ref, s2_ref, b2_ref,
             o_ref, h1p_ref) = refs
            w3_ref = s3_ref = b3_ref = None

        cin = x_ref.shape[-1]
        cout = o_ref.shape[-1]

        # ---- conv1 (3x3x3, stride s) + folded BN1 + ReLU -------------------
        xv = x_ref[0]                                  # (T+2, H+2, W+2, Cin) bf16
        acc1 = jnp.zeros((m, cout), jnp.float32)
        for kt in range(3):
            for kh in range(3):
                for kw in range(3):
                    win = _window(xv, kt, kh, kw).reshape(m, cin)
                    acc1 = acc1 + jnp.dot(win, w1_ref[kt * 9 + kh * 3 + kw],
                                          preferred_element_type=jnp.float32)
        h1 = jnp.maximum(acc1 * s1_ref[...] + b1_ref[...], 0.0)   # (m, Cout) f32

        # ---- re-pad intermediate into VMEM scratch (zero halo) -------------
        h1p_ref[...] = jnp.zeros_like(h1p_ref)
        h1p_ref[1:t_o + 1, 1:h_o + 1, 1:w_o + 1, :] = (
            h1.reshape(t_o, h_o, w_o, cout).astype(h1p_ref.dtype))

        # ---- conv2 (3x3x3, stride 1) + folded BN2 ---------------------------
        hv = h1p_ref[...]                              # (t_o+2, h_o+2, w_o+2, Cout)
        acc2 = jnp.zeros((m, cout), jnp.float32)
        for kt in range(3):
            for kh in range(3):
                for kw in range(3):
                    win = hv[kt:kt + t_o, kh:kh + h_o, kw:kw + w_o, :]
                    acc2 = acc2 + jnp.dot(win.reshape(m, cout),
                                          w2_ref[kt * 9 + kh * 3 + kw],
                                          preferred_element_type=jnp.float32)
        out = acc2 * s2_ref[...] + b2_ref[...]

        # ---- shortcut --------------------------------------------------------
        # Center tap (1,1,1) of the padded volume == strided subsample of x.
        if has_projection:
            xs = _window(xv, 1, 1, 1).reshape(m, cin)
            identity = jnp.dot(xs, w3_ref[...], preferred_element_type=jnp.float32)
            identity = identity * s3_ref[...] + b3_ref[...]
        else:
            identity = _window(xv, 1, 1, 1).reshape(m, cout).astype(jnp.float32)

        out = jnp.maximum(out + identity, 0.0)
        o_ref[...] = out.reshape(1, t_o, h_o, w_o, cout).astype(o_ref.dtype)

    return kernel


def basic_block_forward(x, params, *, down_sampling=False,
                        down_sampling_temporal=None,
                        compute_dtype=jnp.bfloat16):
    """x: (N, Cin, T, H, W) NCTHW (PyTorch layout). Returns (N, Cout, T', H', W')."""
    # TODO(synk): is_real_3d=False / block_type='2.5d' conv factorizations and the
    # with_bn=False (conv-bias) variant are not implemented here.
    n, cin, t, h, w = x.shape
    cout = params["conv1_w"].shape[0]
    stride, has_projection = _stride_and_projection(
        cin, cout, down_sampling, down_sampling_temporal)
    st, sh, sw = stride
    t_o = (t - 1) // st + 1
    h_o = (h - 1) // sh + 1
    w_o = (w - 1) // sw + 1

    # Channels-last, bf16 in HBM; conv1's pad=1 halo added once here.
    x_cl = jnp.transpose(x, (0, 2, 3, 4, 1)).astype(compute_dtype)
    x_pad = jnp.pad(x_cl, ((0, 0), (1, 1), (1, 1), (1, 1), (0, 0)))

    w1_taps = _conv_w_to_taps(params["conv1_w"], compute_dtype)
    w2_taps = _conv_w_to_taps(params["conv2_w"], compute_dtype)
    s1, b1 = _fold_bn(params["bn1_gamma"], params["bn1_beta"],
                      params["bn1_mean"], params["bn1_var"])
    s2, b2 = _fold_bn(params["bn2_gamma"], params["bn2_beta"],
                      params["bn2_mean"], params["bn2_var"])

    inputs = [x_pad, w1_taps, s1, b1, w2_taps, s2, b2]
    in_specs = [
        pl.BlockSpec((1, t + 2, h + 2, w + 2, cin), lambda i: (i, 0, 0, 0, 0)),
        pl.BlockSpec((27, cin, cout), lambda i: (0, 0, 0)),
        pl.BlockSpec((1, cout), lambda i: (0, 0)),
        pl.BlockSpec((1, cout), lambda i: (0, 0)),
        pl.BlockSpec((27, cout, cout), lambda i: (0, 0, 0)),
        pl.BlockSpec((1, cout), lambda i: (0, 0)),
        pl.BlockSpec((1, cout), lambda i: (0, 0)),
    ]
    if has_projection:
        w3_mat = jnp.transpose(params["conv3_w"][:, :, 0, 0, 0],
                               (1, 0)).astype(compute_dtype)
        s3, b3 = _fold_bn(params["bn3_gamma"], params["bn3_beta"],
                          params["bn3_mean"], params["bn3_var"])
        inputs += [w3_mat, s3, b3]
        in_specs += [
            pl.BlockSpec((cin, cout), lambda i: (0, 0)),
            pl.BlockSpec((1, cout), lambda i: (0, 0)),
            pl.BlockSpec((1, cout), lambda i: (0, 0)),
        ]

    kernel = _make_basic_block_kernel(t_o, h_o, w_o, stride, has_projection)

    # VMEM budget note: per grid step ~= 2x bf16 padded-input block (double
    # buffered) + 2x bf16 output block + bf16 scratch + weights. For production
    # shapes (e.g. C=256, 56x56 frames) tile the temporal axis (2-frame halo)
    # and/or raise pltpu.CompilerParams(vmem_limit_bytes=...) — v7x has only
    # 64 MiB physical / 32 MiB scoped, v5e 16 MiB scoped by default.
    out_cl = pl.pallas_call(
        kernel,
        out_shape=jax.ShapeDtypeStruct((n, t_o, h_o, w_o, cout), compute_dtype),
        grid_spec=pltpu.PrefetchScalarGridSpec(
            num_scalar_prefetch=0,
            grid=(n,),
            in_specs=in_specs,
            out_specs=pl.BlockSpec((1, t_o, h_o, w_o, cout),
                                   lambda i: (i, 0, 0, 0, 0)),
            scratch_shapes=[
                pltpu.VMEM((t_o + 2, h_o + 2, w_o + 2, cout), compute_dtype)],
        ),
        compiler_params=pltpu.CompilerParams(
            dimension_semantics=("parallel",)),
    )(*inputs)

    return jnp.transpose(out_cl, (0, 4, 1, 2, 3))   # back to NCTHW


# ---------------------------- pure-JAX reference ----------------------------
def basic_block_reference(x, params, *, down_sampling=False,
                          down_sampling_temporal=None):
    cin = x.shape[1]
    cout = params["conv1_w"].shape[0]
    stride, has_projection = _stride_and_projection(
        cin, cout, down_sampling, down_sampling_temporal)
    xf = x.astype(jnp.float32)

    def conv3d(inp, wgt, strides, pad):
        return lax.conv_general_dilated(
            inp, wgt.astype(jnp.float32), window_strides=strides,
            padding=[(p, p) for p in pad],
            dimension_numbers=("NCDHW", "OIDHW", "NCDHW"))

    def bn(y, prefix):
        scale = params[prefix + "_gamma"] / jnp.sqrt(params[prefix + "_var"] + BN_EPS)
        bias = params[prefix + "_beta"] - params[prefix + "_mean"] * scale
        shp = (1, -1, 1, 1, 1)
        return y * scale.reshape(shp) + bias.reshape(shp)

    out = jax.nn.relu(bn(conv3d(xf, params["conv1_w"], stride, (1, 1, 1)), "bn1"))
    out = bn(conv3d(out, params["conv2_w"], (1, 1, 1), (1, 1, 1)), "bn2")
    if has_projection:
        identity = bn(conv3d(xf, params["conv3_w"], stride, (0, 0, 0)), "bn3")
    else:
        identity = xf
    return jax.nn.relu(out + identity)


def init_basic_block_params(key, input_filters, num_filters, *,
                            down_sampling=False, weight_dtype=jnp.bfloat16):
    ks = jax.random.split(key, 6)

    def conv_w(k, co, ci, ksize):
        fan_in = ci * ksize[0] * ksize[1] * ksize[2]
        std = (2.0 / fan_in) ** 0.5
        return (std * jax.random.normal(k, (co, ci) + ksize,
                                        jnp.float32)).astype(weight_dtype)

    def bn_params(k):
        kg, kb, km, kv = jax.random.split(k, 4)
        return (1.0 + 0.1 * jax.random.normal(kg, (num_filters,), jnp.float32),
                0.1 * jax.random.normal(kb, (num_filters,), jnp.float32),
                0.1 * jax.random.normal(km, (num_filters,), jnp.float32),
                0.5 + jax.random.uniform(kv, (num_filters,), jnp.float32))

    p = {"conv1_w": conv_w(ks[0], num_filters, input_filters, (3, 3, 3)),
         "conv2_w": conv_w(ks[2], num_filters, num_filters, (3, 3, 3))}
    p["bn1_gamma"], p["bn1_beta"], p["bn1_mean"], p["bn1_var"] = bn_params(ks[1])
    p["bn2_gamma"], p["bn2_beta"], p["bn2_mean"], p["bn2_var"] = bn_params(ks[3])
    if num_filters != input_filters or down_sampling:
        p["conv3_w"] = conv_w(ks[4], num_filters, input_filters, (1, 1, 1))
        p["bn3_gamma"], p["bn3_beta"], p["bn3_mean"], p["bn3_var"] = bn_params(ks[5])
    return p


if __name__ == "__main__":
    key = jax.random.PRNGKey(0)
    k_x, k_p1, k_p2 = jax.random.split(key, 3)

    # Small shapes consistent with the module: N=2, Cin=16, T=4, H=W=8.
    N, CIN, T, H, W = 2, 16, 4, 8, 8
    x = jax.random.normal(k_x, (N, CIN, T, H, W), jnp.float32).astype(jnp.bfloat16)

    # TODO(synk): the down_sampling (stride-2) path is plumbed through the
    # kernel but not exercised in this smoke test.
    configs = [
        ("identity_shortcut", CIN, k_p1),        # num_filters == input_filters
        ("projection_shortcut", 2 * CIN, k_p2),  # channel change -> conv3 + bn3
    ]

    for name, num_filters, kp in configs:
        params = init_basic_block_params(kp, CIN, num_filters, down_sampling=False)
        out = basic_block_forward(x, params, down_sampling=False)
        out = jax.block_until_ready(out)
        ref = basic_block_reference(x, params, down_sampling=False)
        assert out.shape == ref.shape, (name, out.shape, ref.shape)
        max_err = float(jnp.max(jnp.abs(out.astype(jnp.float32) - ref)))
        scale = float(jnp.max(jnp.abs(ref))) + 1e-6
        assert max_err <= 3e-2 * scale + 3e-2, (name, max_err, scale)

    print("KERNEL_OK")
</pallas_src>

<mosaic_0001>
module attributes {stable_mosaic.version = 11 : i64} {
  func.func @kernel(%arg0: i32, %arg1: memref<1x6x10x10x16xbf16, #tpu.memory_space<vmem>>, %arg2: memref<27x16x16xbf16, #tpu.memory_space<vmem>>, %arg3: memref<1x16xf32, #tpu.memory_space<vmem>>, %arg4: memref<1x16xf32, #tpu.memory_space<vmem>>, %arg5: memref<27x16x16xbf16, #tpu.memory_space<vmem>>, %arg6: memref<1x16xf32, #tpu.memory_space<vmem>>, %arg7: memref<1x16xf32, #tpu.memory_space<vmem>>, %arg8: memref<1x4x8x8x16xbf16, #tpu.memory_space<vmem>>, %arg9: memref<6x10x10x16xbf16, #tpu.memory_space<vmem>>) attributes {dimension_semantics = [#tpu.dimension_semantics<parallel>], iteration_bounds = array<i64: 2>, scalar_prefetch = 0 : i64, scratch_operands = 1 : i64, tpu.core_type = #tpu.core_type<tc>, window_params = [{transform_indices = @transform_0, window_bounds = array<i64: 1, 6, 10, 10, 16>}, {pipeline_mode = #tpu.pipeline_mode<synchronous>, transform_indices = @transform_1, window_bounds = array<i64: 27, 16, 16>}, {pipeline_mode = #tpu.pipeline_mode<synchronous>, transform_indices = @transform_2, window_bounds = array<i64: 1, 16>}, {pipeline_mode = #tpu.pipeline_mode<synchronous>, transform_indices = @transform_3, window_bounds = array<i64: 1, 16>}, {pipeline_mode = #tpu.pipeline_mode<synchronous>, transform_indices = @transform_4, window_bounds = array<i64: 27, 16, 16>}, {pipeline_mode = #tpu.pipeline_mode<synchronous>, transform_indices = @transform_5, window_bounds = array<i64: 1, 16>}, {pipeline_mode = #tpu.pipeline_mode<synchronous>, transform_indices = @transform_6, window_bounds = array<i64: 1, 16>}, {transform_indices = @transform_7, window_bounds = array<i64: 1, 4, 8, 8, 16>}]} {
    %c0 = arith.constant 0 : index
    %c0_0 = arith.constant 0 : index
    %c0_1 = arith.constant 0 : index
    %c0_2 = arith.constant 0 : index
    %c0_3 = arith.constant 0 : index
    %0 = vector.load %arg1[%c0, %c0_0, %c0_1, %c0_2, %c0_3] : memref<1x6x10x10x16xbf16, #tpu.memory_space<vmem>>, vector<1x6x10x10x16xbf16>
    %1 = vector.shape_cast %0 : vector<1x6x10x10x16xbf16> to vector<6x10x10x16xbf16>
    %cst = arith.constant 0.000000e+00 : f32
    %2 = vector.broadcast %cst : f32 to vector<256x16xf32>
    %3 = vector.extract_strided_slice %1 {offsets = [0, 0, 0, 0], sizes = [4, 8, 8, 16], strides = [1, 1, 1, 1]} : vector<6x10x10x16xbf16> to vector<4x8x8x16xbf16>
    %4 = vector.shape_cast %3 : vector<4x8x8x16xbf16> to vector<256x16xbf16>
    %c0_4 = arith.constant 0 : index
    %c0_5 = arith.constant 0 : index
    %c0_6 = arith.constant 0 : index
    %5 = vector.load %arg2[%c0_4, %c0_5, %c0_6] : memref<27x16x16xbf16, #tpu.memory_space<vmem>>, vector<1x16x16xbf16>
    %6 = vector.shape_cast %5 : vector<1x16x16xbf16> to vector<16x16xbf16>
    %cst_7 = arith.constant dense<0.000000e+00> : vector<256x16xf32>
    %7 = tpu.matmul %4, %6, %cst_7 {dimension_numbers = #tpu.dot_dimension_numbers<[1], [0], [0], [1], [0, 0, 1, 1], [], []>} : vector<256x16xbf16>, vector<16x16xbf16>, vector<256x16xf32> -> vector<256x16xf32>
    %8 = arith.addf %2, %7 : vector<256x16xf32>
    %9 = vector.extract_strided_slice %1 {offsets = [0, 0, 1, 0], sizes = [4, 8, 8, 16], strides = [1, 1, 1, 1]} : vector<6x10x10x16xbf16> to vector<4x8x8x16xbf16>
    %10 = vector.shape_cast %9 : vector<4x8x8x16xbf16> to vector<256x16xbf16>
    %c1 = arith.constant 1 : index
    %c0_8 = arith.constant 0 : index
    %c0_9 = arith.constant 0 : index
    %11 = vector.load %arg2[%c1, %c0_8, %c0_9] : memref<27x16x16xbf16, #tpu.memory_space<vmem>>, vector<1x16x16xbf16>
    %12 = vector.shape_cast %11 : vector<1x16x16xbf16> to vector<16x16xbf16>
    %cst_10 = arith.constant dense<0.000000e+00> : vector<256x16xf32>
    %13 = tpu.matmul %10, %12, %cst_10 {dimension_numbers = #tpu.dot_dimension_numbers<[1], [0], [0], [1], [0, 0, 1, 1], [], []>} : vector<256x16xbf16>, vector<16x16xbf16>, vector<256x16xf32> -> vector<256x16xf32>
    %14 = arith.addf %8, %13 : vector<256x16xf32>
    %15 = vector.extract_strided_slice %1 {offsets = [0, 0, 2, 0], sizes = [4, 8, 8, 16], strides = [1, 1, 1, 1]} : vector<6x10x10x16xbf16> to vector<4x8x8x16xbf16>
    %16 = vector.shape_cast %15 : vector<4x8x8x16xbf16> to vector<256x16xbf16>
    %c2 = arith.constant 2 : index
    %c0_11 = arith.constant 0 : index
    %c0_12 = arith.constant 0 : index
    %17 = vector.load %arg2[%c2, %c0_11, %c0_12] : memref<27x16x16xbf16, #tpu.memory_space<vmem>>, vector<1x16x16xbf16>
    %18 = vector.shape_cast %17 : vector<1x16x16xbf16> to vector<16x16xbf16>
    %cst_13 = arith.constant dense<0.000000e+00> : vector<256x16xf32>
    %19 = tpu.matmul %16, %18, %cst_13 {dimension_numbers = #tpu.dot_dimension_numbers<[1], [0], [0], [1], [0, 0, 1, 1], [], []>} : vector<256x16xbf16>, vector<16x16xbf16>, vector<256x16xf32> -> vector<256x16xf32>
    %20 = arith.addf %14, %19 : vector<256x16xf32>
    %21 = vector.extract_strided_slice %1 {offsets = [0, 1, 0, 0], sizes = [4, 8, 8, 16], strides = [1, 1, 1, 1]} : vector<6x10x10x16xbf16> to vector<4x8x8x16xbf16>
    %22 = vector.shape_cast %21 : vector<4x8x8x16xbf16> to vector<256x16xbf16>
    %c3 = arith.constant 3 : index
    %c0_14 = arith.constant 0 : index
    %c0_15 = arith.constant 0 : index
    %23 = vector.load %arg2[%c3, %c0_14, %c0_15] : memref<27x16x16xbf16, #tpu.memory_space<vmem>>, vector<1x16x16xbf16>
    %24 = vector.shape_cast %23 : vector<1x16x16xbf16> to vector<16x16xbf16>
    %cst_16 = arith.constant dense<0.000000e+00> : vector<256x16xf32>
    %25 = tpu.matmul %22, %24, %cst_16 {dimension_numbers = #tpu.dot_dimension_numbers<[1], [0], [0], [1], [0, 0, 1, 1], [], []>} : vector<256x16xbf16>, vector<16x16xbf16>, vector<256x16xf32> -> vector<256x16xf32>
    %26 = arith.addf %20, %25 : vector<256x16xf32>
    %27 = vector.extract_strided_slice %1 {offsets = [0, 1, 1, 0], sizes = [4, 8, 8, 16], strides = [1, 1, 1, 1]} : vector<6x10x10x16xbf16> to vector<4x8x8x16xbf16>
    %28 = vector.shape_cast %27 : vector<4x8x8x16xbf16> to vector<256x16xbf16>
    %c4 = arith.constant 4 : index
    %c0_17 = arith.constant 0 : index
    %c0_18 = arith.constant 0 : index
    %29 = vector.load %arg2[%c4, %c0_17, %c0_18] : memref<27x16x16xbf16, #tpu.memory_space<vmem>>, vector<1x16x16xbf16>
    %30 = vector.shape_cast %29 : vector<1x16x16xbf16> to vector<16x16xbf16>
    %cst_19 = arith.constant dense<0.000000e+00> : vector<256x16xf32>
    %31 = tpu.matmul %28, %30, %cst_19 {dimension_numbers = #tpu.dot_dimension_numbers<[1], [0], [0], [1], [0, 0, 1, 1], [], []>} : vector<256x16xbf16>, vector<16x16xbf16>, vector<256x16xf32> -> vector<256x16xf32>
    %32 = arith.addf %26, %31 : vector<256x16xf32>
    %33 = vector.extract_strided_slice %1 {offsets = [0, 1, 2, 0], sizes = [4, 8, 8, 16], strides = [1, 1, 1, 1]} : vector<6x10x10x16xbf16> to vector<4x8x8x16xbf16>
    %34 = vector.shape_cast %33 : vector<4x8x8x16xbf16> to vector<256x16xbf16>
    %c5 = arith.constant 5 : index
    %c0_20 = arith.constant 0 : index
    %c0_21 = arith.constant 0 : index
    %35 = vector.load %arg2[%c5, %c0_20, %c0_21] : memref<27x16x16xbf16, #tpu.memory_space<vmem>>, vector<1x16x16xbf16>
    %36 = vector.shape_cast %35 : vector<1x16x16xbf16> to vector<16x16xbf16>
    %cst_22 = arith.constant dense<0.000000e+00> : vector<256x16xf32>
    %37 = tpu.matmul %34, %36, %cst_22 {dimension_numbers = #tpu.dot_dimension_numbers<[1], [0], [0], [1], [0, 0, 1, 1], [], []>} : vector<256x16xbf16>, vector<16x16xbf16>, vector<256x16xf32> -> vector<256x16xf32>
    %38 = arith.addf %32, %37 : vector<256x16xf32>
    %39 = vector.extract_strided_slice %1 {offsets = [0, 2, 0, 0], sizes = [4, 8, 8, 16], strides = [1, 1, 1, 1]} : vector<6x10x10x16xbf16> to vector<4x8x8x16xbf16>
    %40 = vector.shape_cast %39 : vector<4x8x8x16xbf16> to vector<256x16xbf16>
    %c6 = arith.constant 6 : index
    %c0_23 = arith.constant 0 : index
    %c0_24 = arith.constant 0 : index
    %41 = vector.load %arg2[%c6, %c0_23, %c0_24] : memref<27x16x16xbf16, #tpu.memory_space<vmem>>, vector<1x16x16xbf16>
    %42 = vector.shape_cast %41 : vector<1x16x16xbf16> to vector<16x16xbf16>
    %cst_25 = arith.constant dense<0.000000e+00> : vector<256x16xf32>
    %43 = tpu.matmul %40, %42, %cst_25 {dimension_numbers = #tpu.dot_dimension_numbers<[1], [0], [0], [1], [0, 0, 1, 1], [], []>} : vector<256x16xbf16>, vector<16x16xbf16>, vector<256x16xf32> -> vector<256x16xf32>
    %44 = arith.addf %38, %43 : vector<256x16xf32>
    %45 = vector.extract_strided_slice %1 {offsets = [0, 2, 1, 0], sizes = [4, 8, 8, 16], strides = [1, 1, 1, 1]} : vector<6x10x10x16xbf16> to vector<4x8x8x16xbf16>
    %46 = vector.shape_cast %45 : vector<4x8x8x16xbf16> to vector<256x16xbf16>
    %c7 = arith.constant 7 : index
    %c0_26 = arith.constant 0 : index
    %c0_27 = arith.constant 0 : index
    %47 = vector.load %arg2[%c7, %c0_26, %c0_27] : memref<27x16x16xbf16, #tpu.memory_space<vmem>>, vector<1x16x16xbf16>
    %48 = vector.shape_cast %47 : vector<1x16x16xbf16> to vector<16x16xbf16>
    %cst_28 = arith.constant dense<0.000000e+00> : vector<256x16xf32>
    %49 = tpu.matmul %46, %48, %cst_28 {dimension_numbers = #tpu.dot_dimension_numbers<[1], [0], [0], [1], [0, 0, 1, 1], [], []>} : vector<256x16xbf16>, vector<16x16xbf16>, vector<256x16xf32> -> vector<256x16xf32>
    %50 = arith.addf %44, %49 : vector<256x16xf32>
    %51 = vector.extract_strided_slice %1 {offsets = [0, 2, 2, 0], sizes = [4, 8, 8, 16], strides = [1, 1, 1, 1]} : vector<6x10x10x16xbf16> to vector<4x8x8x16xbf16>
    %52 = vector.shape_cast %51 : vector<4x8x8x16xbf16> to vector<256x16xbf16>
    %c8 = arith.constant 8 : index
    %c0_29 = arith.constant 0 : index
    %c0_30 = arith.constant 0 : index
    %53 = vector.load %arg2[%c8, %c0_29, %c0_30] : memref<27x16x16xbf16, #tpu.memory_space<vmem>>, vector<1x16x16xbf16>
    %54 = vector.shape_cast %53 : vector<1x16x16xbf16> to vector<16x16xbf16>
    %cst_31 = arith.constant dense<0.000000e+00> : vector<256x16xf32>
    %55 = tpu.matmul %52, %54, %cst_31 {dimension_numbers = #tpu.dot_dimension_numbers<[1], [0], [0], [1], [0, 0, 1, 1], [], []>} : vector<256x16xbf16>, vector<16x16xbf16>, vector<256x16xf32> -> vector<256x16xf32>
    %56 = arith.addf %50, %55 : vector<256x16xf32>
    %57 = vector.extract_strided_slice %1 {offsets = [1, 0, 0, 0], sizes = [4, 8, 8, 16], strides = [1, 1, 1, 1]} : vector<6x10x10x16xbf16> to vector<4x8x8x16xbf16>
    %58 = vector.shape_cast %57 : vector<4x8x8x16xbf16> to vector<256x16xbf16>
    %c9 = arith.constant 9 : index
    %c0_32 = arith.constant 0 : index
    %c0_33 = arith.constant 0 : index
    %59 = vector.load %arg2[%c9, %c0_32, %c0_33] : memref<27x16x16xbf16, #tpu.memory_space<vmem>>, vector<1x16x16xbf16>
    %60 = vector.shape_cast %59 : vector<1x16x16xbf16> to vector<16x16xbf16>
    %cst_34 = arith.constant dense<0.000000e+00> : vector<256x16xf32>
    %61 = tpu.matmul %58, %60, %cst_34 {dimension_numbers = #tpu.dot_dimension_numbers<[1], [0], [0], [1], [0, 0, 1, 1], [], []>} : vector<256x16xbf16>, vector<16x16xbf16>, vector<256x16xf32> -> vector<256x16xf32>
    %62 = arith.addf %56, %61 : vector<256x16xf32>
    %63 = vector.extract_strided_slice %1 {offsets = [1, 0, 1, 0], sizes = [4, 8, 8, 16], strides = [1, 1, 1, 1]} : vector<6x10x10x16xbf16> to vector<4x8x8x16xbf16>
    %64 = vector.shape_cast %63 : vector<4x8x8x16xbf16> to vector<256x16xbf16>
    %c10 = arith.constant 10 : index
    %c0_35 = arith.constant 0 : index
    %c0_36 = arith.constant 0 : index
    %65 = vector.load %arg2[%c10, %c0_35, %c0_36] : memref<27x16x16xbf16, #tpu.memory_space<vmem>>, vector<1x16x16xbf16>
    %66 = vector.shape_cast %65 : vector<1x16x16xbf16> to vector<16x16xbf16>
    %cst_37 = arith.constant dense<0.000000e+00> : vector<256x16xf32>
    %67 = tpu.matmul %64, %66, %cst_37 {dimension_numbers = #tpu.dot_dimension_numbers<[1], [0], [0], [1], [0, 0, 1, 1], [], []>} : vector<256x16xbf16>, vector<16x16xbf16>, vector<256x16xf32> -> vector<256x16xf32>
    %68 = arith.addf %62, %67 : vector<256x16xf32>
    %69 = vector.extract_strided_slice %1 {offsets = [1, 0, 2, 0], sizes = [4, 8, 8, 16], strides = [1, 1, 1, 1]} : vector<6x10x10x16xbf16> to vector<4x8x8x16xbf16>
    %70 = vector.shape_cast %69 : vector<4x8x8x16xbf16> to vector<256x16xbf16>
    %c11 = arith.constant 11 : index
    %c0_38 = arith.constant 0 : index
    %c0_39 = arith.constant 0 : index
    %71 = vector.load %arg2[%c11, %c0_38, %c0_39] : memref<27x16x16xbf16, #tpu.memory_space<vmem>>, vector<1x16x16xbf16>
    %72 = vector.shape_cast %71 : vector<1x16x16xbf16> to vector<16x16xbf16>
    %cst_40 = arith.constant dense<0.000000e+00> : vector<256x16xf32>
    %73 = tpu.matmul %70, %72, %cst_40 {dimension_numbers = #tpu.dot_dimension_numbers<[1], [0], [0], [1], [0, 0, 1, 1], [], []>} : vector<256x16xbf16>, vector<16x16xbf16>, vector<256x16xf32> -> vector<256x16xf32>
    %74 = arith.addf %68, %73 : vector<256x16xf32>
    %75 = vector.extract_strided_slice %1 {offsets = [1, 1, 0, 0], sizes = [4, 8, 8, 16], strides = [1, 1, 1, 1]} : vector<6x10x10x16xbf16> to vector<4x8x8x16xbf16>
    %76 = vector.shape_cast %75 : vector<4x8x8x16xbf16> to vector<256x16xbf16>
    %c12 = arith.constant 12 : index
    %c0_41 = arith.constant 0 : index
    %c0_42 = arith.constant 0 : index
    %77 = vector.load %arg2[%c12, %c0_41, %c0_42] : memref<27x16x16xbf16, #tpu.memory_space<vmem>>, vector<1x16x16xbf16>
    %78 = vector.shape_cast %77 : vector<1x16x16xbf16> to vector<16x16xbf16>
    %cst_43 = arith.constant dense<0.000000e+00> : vector<256x16xf32>
    %79 = tpu.matmul %76, %78, %cst_43 {dimension_numbers = #tpu.dot_dimension_numbers<[1], [0], [0], [1], [0, 0, 1, 1], [], []>} : vector<256x16xbf16>, vector<16x16xbf16>, vector<256x16xf32> -> vector<256x16xf32>
    %80 = arith.addf %74, %79 : vector<256x16xf32>
    %81 = vector.extract_strided_slice %1 {offsets = [1, 1, 1, 0], sizes = [4, 8, 8, 16], strides = [1, 1, 1, 1]} : vector<6x10x10x16xbf16> to vector<4x8x8x16xbf16>
    %82 = vector.shape_cast %81 : vector<4x8x8x16xbf16> to vector<256x16xbf16>
    %c13 = arith.constant 13 : index
    %c0_44 = arith.constant 0 : index
    %c0_45 = arith.constant 0 : index
    %83 = vector.load %arg2[%c13, %c0_44, %c0_45] : memref<27x16x16xbf16, #tpu.memory_space<vmem>>, vector<1x16x16xbf16>
    %84 = vector.shape_cast %83 : vector<1x16x16xbf16> to vector<16x16xbf16>
    %cst_46 = arith.constant dense<0.000000e+00> : vector<256x16xf32>
    %85 = tpu.matmul %82, %84, %cst_46 {dimension_numbers = #tpu.dot_dimension_numbers<[1], [0], [0], [1], [0, 0, 1, 1], [], []>} : vector<256x16xbf16>, vector<16x16xbf16>, vector<256x16xf32> -> vector<256x16xf32>
    %86 = arith.addf %80, %85 : vector<256x16xf32>
    %87 = vector.extract_strided_slice %1 {offsets = [1, 1, 2, 0], sizes = [4, 8, 8, 16], strides = [1, 1, 1, 1]} : vector<6x10x10x16xbf16> to vector<4x8x8x16xbf16>
    %88 = vector.shape_cast %87 : vector<4x8x8x16xbf16> to vector<256x16xbf16>
    %c14 = arith.constant 14 : index
    %c0_47 = arith.constant 0 : index
    %c0_48 = arith.constant 0 : index
    %89 = vector.load %arg2[%c14, %c0_47, %c0_48] : memref<27x16x16xbf16, #tpu.memory_space<vmem>>, vector<1x16x16xbf16>
    %90 = vector.shape_cast %89 : vector<1x16x16xbf16> to vector<16x16xbf16>
    %cst_49 = arith.constant dense<0.000000e+00> : vector<256x16xf32>
    %91 = tpu.matmul %88, %90, %cst_49 {dimension_numbers = #tpu.dot_dimension_numbers<[1], [0], [0], [1], [0, 0, 1, 1], [], []>} : vector<256x16xbf16>, vector<16x16xbf16>, vector<256x16xf32> -> vector<256x16xf32>
    %92 = arith.addf %86, %91 : vector<256x16xf32>
    %93 = vector.extract_strided_slice %1 {offsets = [1, 2, 0, 0], sizes = [4, 8, 8, 16], strides = [1, 1, 1, 1]} : vector<6x10x10x16xbf16> to vector<4x8x8x16xbf16>
    %94 = vector.shape_cast %93 : vector<4x8x8x16xbf16> to vector<256x16xbf16>
    %c15 = arith.constant 15 : index
    %c0_50 = arith.constant 0 : index
    %c0_51 = arith.constant 0 : index
    %95 = vector.load %arg2[%c15, %c0_50, %c0_51] : memref<27x16x16xbf16, #tpu.memory_space<vmem>>, vector<1x16x16xbf16>
    %96 = vector.shape_cast %95 : vector<1x16x16xbf16> to vector<16x16xbf16>
    %cst_52 = arith.constant dense<0.000000e+00> : vector<256x16xf32>
    %97 = tpu.matmul %94, %96, %cst_52 {dimension_numbers = #tpu.dot_dimension_numbers<[1], [0], [0], [1], [0, 0, 1, 1], [], []>} : vector<256x16xbf16>, vector<16x16xbf16>, vector<256x16xf32> -> vector<256x16xf32>
    %98 = arith.addf %92, %97 : vector<256x16xf32>
    %99 = vector.extract_strided_slice %1 {offsets = [1, 2, 1, 0], sizes = [4, 8, 8, 16], strides = [1, 1, 1, 1]} : vector<6x10x10x16xbf16> to vector<4x8x8x16xbf16>
    %100 = vector.shape_cast %99 : vector<4x8x8x16xbf16> to vector<256x16xbf16>
    %c16 = arith.constant 16 : index
    %c0_53 = arith.constant 0 : index
    %c0_54 = arith.constant 0 : index
    %101 = vector.load %arg2[%c16, %c0_53, %c0_54] : memref<27x16x16xbf16, #tpu.memory_space<vmem>>, vector<1x16x16xbf16>
    %102 = vector.shape_cast %101 : vector<1x16x16xbf16> to vector<16x16xbf16>
    %cst_55 = arith.constant dense<0.000000e+00> : vector<256x16xf32>
    %103 = tpu.matmul %100, %102, %cst_55 {dimension_numbers = #tpu.dot_dimension_numbers<[1], [0], [0], [1], [0, 0, 1, 1], [], []>} : vector<256x16xbf16>, vector<16x16xbf16>, vector<256x16xf32> -> vector<256x16xf32>
    %104 = arith.addf %98, %103 : vector<256x16xf32>
    %105 = vector.extract_strided_slice %1 {offsets = [1, 2, 2, 0], sizes = [4, 8, 8, 16], strides = [1, 1, 1, 1]} : vector<6x10x10x16xbf16> to vector<4x8x8x16xbf16>
    %106 = vector.shape_cast %105 : vector<4x8x8x16xbf16> to vector<256x16xbf16>
    %c17 = arith.constant 17 : index
    %c0_56 = arith.constant 0 : index
    %c0_57 = arith.constant 0 : index
    %107 = vector.load %arg2[%c17, %c0_56, %c0_57] : memref<27x16x16xbf16, #tpu.memory_space<vmem>>, vector<1x16x16xbf16>
    %108 = vector.shape_cast %107 : vector<1x16x16xbf16> to vector<16x16xbf16>
    %cst_58 = arith.constant dense<0.000000e+00> : vector<256x16xf32>
    %109 = tpu.matmul %106, %108, %cst_58 {dimension_numbers = #tpu.dot_dimension_numbers<[1], [0], [0], [1], [0, 0, 1, 1], [], []>} : vector<256x16xbf16>, vector<16x16xbf16>, vector<256x16xf32> -> vector<256x16xf32>
    %110 = arith.addf %104, %109 : vector<256x16xf32>
    %111 = vector.extract_strided_slice %1 {offsets = [2, 0, 0, 0], sizes = [4, 8, 8, 16], strides = [1, 1, 1, 1]} : vector<6x10x10x16xbf16> to vector<4x8x8x16xbf16>
    %112 = vector.shape_cast %111 : vector<4x8x8x16xbf16> to vector<256x16xbf16>
    %c18 = arith.constant 18 : index
    %c0_59 = arith.constant 0 : index
    %c0_60 = arith.constant 0 : index
    %113 = vector.load %arg2[%c18, %c0_59, %c0_60] : memref<27x16x16xbf16, #tpu.memory_space<vmem>>, vector<1x16x16xbf16>
    %114 = vector.shape_cast %113 : vector<1x16x16xbf16> to vector<16x16xbf16>
    %cst_61 = arith.constant dense<0.000000e+00> : vector<256x16xf32>
    %115 = tpu.matmul %112, %114, %cst_61 {dimension_numbers = #tpu.dot_dimension_numbers<[1], [0], [0], [1], [0, 0, 1, 1], [], []>} : vector<256x16xbf16>, vector<16x16xbf16>, vector<256x16xf32> -> vector<256x16xf32>
    %116 = arith.addf %110, %115 : vector<256x16xf32>
    %117 = vector.extract_strided_slice %1 {offsets = [2, 0, 1, 0], sizes = [4, 8, 8, 16], strides = [1, 1, 1, 1]} : vector<6x10x10x16xbf16> to vector<4x8x8x16xbf16>
    %118 = vector.shape_cast %117 : vector<4x8x8x16xbf16> to vector<256x16xbf16>
    %c19 = arith.constant 19 : index
    %c0_62 = arith.constant 0 : index
    %c0_63 = arith.constant 0 : index
    %119 = vector.load %arg2[%c19, %c0_62, %c0_63] : memref<27x16x16xbf16, #tpu.memory_space<vmem>>, vector<1x16x16xbf16>
    %120 = vector.shape_cast %119 : vector<1x16x16xbf16> to vector<16x16xbf16>
    %cst_64 = arith.constant dense<0.000000e+00> : vector<256x16xf32>
    %121 = tpu.matmul %118, %120, %cst_64 {dimension_numbers = #tpu.dot_dimension_numbers<[1], [0], [0], [1], [0, 0, 1, 1], [], []>} : vector<256x16xbf16>, vector<16x16xbf16>, vector<256x16xf32> -> vector<256x16xf32>
    %122 = arith.addf %116, %121 : vector<256x16xf32>
    %123 = vector.extract_strided_slice %1 {offsets = [2, 0, 2, 0], sizes = [4, 8, 8, 16], strides = [1, 1, 1, 1]} : vector<6x10x10x16xbf16> to vector<4x8x8x16xbf16>
    %124 = vector.shape_cast %123 : vector<4x8x8x16xbf16> to vector<256x16xbf16>
    %c20 = arith.constant 20 : index
    %c0_65 = arith.constant 0 : index
    %c0_66 = arith.constant 0 : index
    %125 = vector.load %arg2[%c20, %c0_65, %c0_66] : memref<27x16x16xbf16, #tpu.memory_space<vmem>>, vector<1x16x16xbf16>
    %126 = vector.shape_cast %125 : vector<1x16x16xbf16> to vector<16x16xbf16>
    %cst_67 = arith.constant dense<0.000000e+00> : vector<256x16xf32>
    %127 = tpu.matmul %124, %126, %cst_67 {dimension_numbers = #tpu.dot_dimension_numbers<[1], [0], [0], [1], [0, 0, 1, 1], [], []>} : vector<256x16xbf16>, vector<16x16xbf16>, vector<256x16xf32> -> vector<256x16xf32>
    %128 = arith.addf %122, %127 : vector<256x16xf32>
    %129 = vector.extract_strided_slice %1 {offsets = [2, 1, 0, 0], sizes = [4, 8, 8, 16], strides = [1, 1, 1, 1]} : vector<6x10x10x16xbf16> to vector<4x8x8x16xbf16>
    %130 = vector.shape_cast %129 : vector<4x8x8x16xbf16> to vector<256x16xbf16>
    %c21 = arith.constant 21 : index
    %c0_68 = arith.constant 0 : index
    %c0_69 = arith.constant 0 : index
    %131 = vector.load %arg2[%c21, %c0_68, %c0_69] : memref<27x16x16xbf16, #tpu.memory_space<vmem>>, vector<1x16x16xbf16>
    %132 = vector.shape_cast %131 : vector<1x16x16xbf16> to vector<16x16xbf16>
    %cst_70 = arith.constant dense<0.000000e+00> : vector<256x16xf32>
    %133 = tpu.matmul %130, %132, %cst_70 {dimension_numbers = #tpu.dot_dimension_numbers<[1], [0], [0], [1], [0, 0, 1, 1], [], []>} : vector<256x16xbf16>, vector<16x16xbf16>, vector<256x16xf32> -> vector<256x16xf32>
    %134 = arith.addf %128, %133 : vector<256x16xf32>
    %135 = vector.extract_strided_slice %1 {offsets = [2, 1, 1, 0], sizes = [4, 8, 8, 16], strides = [1, 1, 1, 1]} : vector<6x10x10x16xbf16> to vector<4x8x8x16xbf16>
    %136 = vector.shape_cast %135 : vector<4x8x8x16xbf16> to vector<256x16xbf16>
    %c22 = arith.constant 22 : index
    %c0_71 = arith.constant 0 : index
    %c0_72 = arith.constant 0 : index
    %137 = vector.load %arg2[%c22, %c0_71, %c0_72] : memref<27x16x16xbf16, #tpu.memory_space<vmem>>, vector<1x16x16xbf16>
    %138 = vector.shape_cast %137 : vector<1x16x16xbf16> to vector<16x16xbf16>
    %cst_73 = arith.constant dense<0.000000e+00> : vector<256x16xf32>
    %139 = tpu.matmul %136, %138, %cst_73 {dimension_numbers = #tpu.dot_dimension_numbers<[1], [0], [0], [1], [0, 0, 1, 1], [], []>} : vector<256x16xbf16>, vector<16x16xbf16>, vector<256x16xf32> -> vector<256x16xf32>
    %140 = arith.addf %134, %139 : vector<256x16xf32>
    %141 = vector.extract_strided_slice %1 {offsets = [2, 1, 2, 0], sizes = [4, 8, 8, 16], strides = [1, 1, 1, 1]} : vector<6x10x10x16xbf16> to vector<4x8x8x16xbf16>
    %142 = vector.shape_cast %141 : vector<4x8x8x16xbf16> to vector<256x16xbf16>
    %c23 = arith.constant 23 : index
    %c0_74 = arith.constant 0 : index
    %c0_75 = arith.constant 0 : index
    %143 = vector.load %arg2[%c23, %c0_74, %c0_75] : memref<27x16x16xbf16, #tpu.memory_space<vmem>>, vector<1x16x16xbf16>
    %144 = vector.shape_cast %143 : vector<1x16x16xbf16> to vector<16x16xbf16>
    %cst_76 = arith.constant dense<0.000000e+00> : vector<256x16xf32>
    %145 = tpu.matmul %142, %144, %cst_76 {dimension_numbers = #tpu.dot_dimension_numbers<[1], [0], [0], [1], [0, 0, 1, 1], [], []>} : vector<256x16xbf16>, vector<16x16xbf16>, vector<256x16xf32> -> vector<256x16xf32>
    %146 = arith.addf %140, %145 : vector<256x16xf32>
    %147 = vector.extract_strided_slice %1 {offsets = [2, 2, 0, 0], sizes = [4, 8, 8, 16], strides = [1, 1, 1, 1]} : vector<6x10x10x16xbf16> to vector<4x8x8x16xbf16>
    %148 = vector.shape_cast %147 : vector<4x8x8x16xbf16> to vector<256x16xbf16>
    %c24 = arith.constant 24 : index
    %c0_77 = arith.constant 0 : index
    %c0_78 = arith.constant 0 : index
    %149 = vector.load %arg2[%c24, %c0_77, %c0_78] : memref<27x16x16xbf16, #tpu.memory_space<vmem>>, vector<1x16x16xbf16>
    %150 = vector.shape_cast %149 : vector<1x16x16xbf16> to vector<16x16xbf16>
    %cst_79 = arith.constant dense<0.000000e+00> : vector<256x16xf32>
    %151 = tpu.matmul %148, %150, %cst_79 {dimension_numbers = #tpu.dot_dimension_numbers<[1], [0], [0], [1], [0, 0, 1, 1], [], []>} : vector<256x16xbf16>, vector<16x16xbf16>, vector<256x16xf32> -> vector<256x16xf32>
    %152 = arith.addf %146, %151 : vector<256x16xf32>
    %153 = vector.extract_strided_slice %1 {offsets = [2, 2, 1, 0], sizes = [4, 8, 8, 16], strides = [1, 1, 1, 1]} : vector<6x10x10x16xbf16> to vector<4x8x8x16xbf16>
    %154 = vector.shape_cast %153 : vector<4x8x8x16xbf16> to vector<256x16xbf16>
    %c25 = arith.constant 25 : index
    %c0_80 = arith.constant 0 : index
    %c0_81 = arith.constant 0 : index
    %155 = vector.load %arg2[%c25, %c0_80, %c0_81] : memref<27x16x16xbf16, #tpu.memory_space<vmem>>, vector<1x16x16xbf16>
    %156 = vector.shape_cast %155 : vector<1x16x16xbf16> to vector<16x16xbf16>
    %cst_82 = arith.constant dense<0.000000e+00> : vector<256x16xf32>
    %157 = tpu.matmul %154, %156, %cst_82 {dimension_numbers = #tpu.dot_dimension_numbers<[1], [0], [0], [1], [0, 0, 1, 1], [], []>} : vector<256x16xbf16>, vector<16x16xbf16>, vector<256x16xf32> -> vector<256x16xf32>
    %158 = arith.addf %152, %157 : vector<256x16xf32>
    %159 = vector.extract_strided_slice %1 {offsets = [2, 2, 2, 0], sizes = [4, 8, 8, 16], strides = [1, 1, 1, 1]} : vector<6x10x10x16xbf16> to vector<4x8x8x16xbf16>
    %160 = vector.shape_cast %159 : vector<4x8x8x16xbf16> to vector<256x16xbf16>
    %c26 = arith.constant 26 : index
    %c0_83 = arith.constant 0 : index
    %c0_84 = arith.constant 0 : index
    %161 = vector.load %arg2[%c26, %c0_83, %c0_84] : memref<27x16x16xbf16, #tpu.memory_space<vmem>>, vector<1x16x16xbf16>
    %162 = vector.shape_cast %161 : vector<1x16x16xbf16> to vector<16x16xbf16>
    %cst_85 = arith.constant dense<0.000000e+00> : vector<256x16xf32>
    %163 = tpu.matmul %160, %162, %cst_85 {dimension_numbers = #tpu.dot_dimension_numbers<[1], [0], [0], [1], [0, 0, 1, 1], [], []>} : vector<256x16xbf16>, vector<16x16xbf16>, vector<256x16xf32> -> vector<256x16xf32>
    %164 = arith.addf %158, %163 : vector<256x16xf32>
    %c0_86 = arith.constant 0 : index
    %c0_87 = arith.constant 0 : index
    %165 = vector.load %arg3[%c0_86, %c0_87] : memref<1x16xf32, #tpu.memory_space<vmem>>, vector<1x16xf32>
    %166 = vector.broadcast %165 : vector<1x16xf32> to vector<256x16xf32>
    %167 = arith.mulf %164, %166 : vector<256x16xf32>
    %c0_88 = arith.constant 0 : index
    %c0_89 = arith.constant 0 : index
    %168 = vector.load %arg4[%c0_88, %c0_89] : memref<1x16xf32, #tpu.memory_space<vmem>>, vector<1x16xf32>
    %169 = vector.broadcast %168 : vector<1x16xf32> to vector<256x16xf32>
    %170 = arith.addf %167, %169 : vector<256x16xf32>
    %cst_90 = arith.constant 0.000000e+00 : f32
    %171 = vector.broadcast %cst_90 : f32 to vector<256x16xf32>
    %172 = arith.maximumf %170, %171 : vector<256x16xf32>
    %cst_91 = arith.constant 0.000000e+00 : bf16
    %173 = vector.broadcast %cst_91 : bf16 to vector<6x10x10x16xbf16>
    %c0_92 = arith.constant 0 : index
    %c0_93 = arith.constant 0 : index
    %c0_94 = arith.constant 0 : index
    %c0_95 = arith.constant 0 : index
    %174 = vector.load %arg9[%c0_92, %c0_93, %c0_94, %c0_95] : memref<6x10x10x16xbf16, #tpu.memory_space<vmem>>, vector<6x10x10x16xbf16>
    tpu.vector_store %arg9[%c0_92, %c0_93, %c0_94, %c0_95], %173 {strides = array<i32>} : memref<6x10x10x16xbf16, #tpu.memory_space<vmem>>, vector<6x10x10x16xbf16>,
    %175 = vector.shape_cast %172 : vector<256x16xf32> to vector<4x8x8x16xf32>
    %176 = arith.truncf %175 : vector<4x8x8x16xf32> to vector<4x8x8x16xbf16>
    %c1_96 = arith.constant 1 : index
    %c1_97 = arith.constant 1 : index
    %c1_98 = arith.constant 1 : index
    %c0_99 = arith.constant 0 : index
    %177 = vector.load %arg9[%c1_96, %c1_97, %c1_98, %c0_99] : memref<6x10x10x16xbf16, #tpu.memory_space<vmem>>, vector<4x8x8x16xbf16>
    tpu.vector_store %arg9[%c1_96, %c1_97, %c1_98, %c0_99], %176 {strides = array<i32>} : memref<6x10x10x16xbf16, #tpu.memory_space<vmem>>, vector<4x8x8x16xbf16>,
    %c0_100 = arith.constant 0 : index
    %c0_101 = arith.constant 0 : index
    %c0_102 = arith.constant 0 : index
    %c0_103 = arith.constant 0 : index
    %178 = vector.load %arg9[%c0_100, %c0_101, %c0_102, %c0_103] : memref<6x10x10x16xbf16, #tpu.memory_space<vmem>>, vector<6x10x10x16xbf16>
    %cst_104 = arith.constant 0.000000e+00 : f32
    %179 = vector.broadcast %cst_104 : f32 to vector<256x16xf32>
    %180 = vector.extract_strided_slice %178 {offsets = [0, 0, 0, 0], sizes = [4, 8, 8, 16], strides = [1, 1, 1, 1]} : vector<6x10x10x16xbf16> to vector<4x8x8x16xbf16>
    %181 = vector.shape_cast %180 : vector<4x8x8x16xbf16> to vector<256x16xbf16>
    %c0_105 = arith.constant 0 : index
    %c0_106 = arith.constant 0 : index
    %c0_107 = arith.constant 0 : index
    %182 = vector.load %arg5[%c0_105, %c0_106, %c0_107] : memref<27x16x16xbf16, #tpu.memory_space<vmem>>, vector<1x16x16xbf16>
    %183 = vector.shape_cast %182 : vector<1x16x16xbf16> to vector<16x16xbf16>
    %cst_108 = arith.constant dense<0.000000e+00> : vector<256x16xf32>
    %184 = tpu.matmul %181, %183, %cst_108 {dimension_numbers = #tpu.dot_dimension_numbers<[1], [0], [0], [1], [0, 0, 1, 1], [], []>} : vector<256x16xbf16>, vector<16x16xbf16>, vector<256x16xf32> -> vector<256x16xf32>
    %185 = arith.addf %179, %184 : vector<256x16xf32>
    %186 = vector.extract_strided_slice %178 {offsets = [0, 0, 1, 0], sizes = [4, 8, 8, 16], strides = [1, 1, 1, 1]} : vector<6x10x10x16xbf16> to vector<4x8x8x16xbf16>
    %187 = vector.shape_cast %186 : vector<4x8x8x16xbf16> to vector<256x16xbf16>
    %c1_109 = arith.constant 1 : index
    %c0_110 = arith.constant 0 : index
    %c0_111 = arith.constant 0 : index
    %188 = vector.load %arg5[%c1_109, %c0_110, %c0_111] : memref<27x16x16xbf16, #tpu.memory_space<vmem>>, vector<1x16x16xbf16>
    %189 = vector.shape_cast %188 : vector<1x16x16xbf16> to vector<16x16xbf16>
    %cst_112 = arith.constant dense<0.000000e+00> : vector<256x16xf32>
    %190 = tpu.matmul %187, %189, %cst_112 {dimension_numbers = #tpu.dot_dimension_numbers<[1], [0], [0], [1], [0, 0, 1, 1], [], []>} : vector<256x16xbf16>, vector<16x16xbf16>, vector<256x16xf32> -> vector<256x16xf32>
    %191 = arith.addf %185, %190 : vector<256x16xf32>
    %192 = vector.extract_strided_slice %178 {offsets = [0, 0, 2, 0], sizes = [4, 8, 8, 16], strides = [1, 1, 1, 1]} : vector<6x10x10x16xbf16> to vector<4x8x8x16xbf16>
    %193 = vector.shape_cast %192 : vector<4x8x8x16xbf16> to vector<256x16xbf16>
    %c2_113 = arith.constant 2 : index
    %c0_114 = arith.constant 0 : index
    %c0_115 = arith.constant 0 : index
    %194 = vector.load %arg5[%c2_113, %c0_114, %c0_115] : memref<27x16x16xbf16, #tpu.memory_space<vmem>>, vector<1x16x16xbf16>
    %195 = vector.shape_cast %194 : vector<1x16x16xbf16> to vector<16x16xbf16>
    %cst_116 = arith.constant dense<0.000000e+00> : vector<256x16xf32>
    %196 = tpu.matmul %193, %195, %cst_116 {dimension_numbers = #tpu.dot_dimension_numbers<[1], [0], [0], [1], [0, 0, 1, 1], [], []>} : vector<256x16xbf16>, vector<16x16xbf16>, vector<256x16xf32> -> vector<256x16xf32>
    %197 = arith.addf %191, %196 : vector<256x16xf32>
    %198 = vector.extract_strided_slice %178 {offsets = [0, 1, 0, 0], sizes = [4, 8, 8, 16], strides = [1, 1, 1, 1]} : vector<6x10x10x16xbf16> to vector<4x8x8x16xbf16>
    %199 = vector.shape_cast %198 : vector<4x8x8x16xbf16> to vector<256x16xbf16>
    %c3_117 = arith.constant 3 : index
    %c0_118 = arith.constant 0 : index
    %c0_119 = arith.constant 0 : index
    %200 = vector.load %arg5[%c3_117, %c0_118, %c0_119] : memref<27x16x16xbf16, #tpu.memory_space<vmem>>, vector<1x16x16xbf16>
    %201 = vector.shape_cast %200 : vector<1x16x16xbf16> to vector<16x16xbf16>
    %cst_120 = arith.constant dense<0.000000e+00> : vector<256x16xf32>
    %202 = tpu.matmul %199, %201, %cst_120 {dimension_numbers = #tpu.dot_dimension_numbers<[1], [0], [0], [1], [0, 0, 1, 1], [], []>} : vector<256x16xbf16>, vector<16x16xbf16>, vector<256x16xf32> -> vector<256x16xf32>
    %203 = arith.addf %197, %202 : vector<256x16xf32>
    %204 = vector.extract_strided_slice %178 {offsets = [0, 1, 1, 0], sizes = [4, 8, 8, 16], strides = [1, 1, 1, 1]} : vector<6x10x10x16xbf16> to vector<4x8x8x16xbf16>
    %205 = vector.shape_cast %204 : vector<4x8x8x16xbf16> to vector<256x16xbf16>
    %c4_121 = arith.constant 4 : index
    %c0_122 = arith.constant 0 : index
    %c0_123 = arith.constant 0 : index
    %206 = vector.load %arg5[%c4_121, %c0_122, %c0_123] : memref<27x16x16xbf16, #tpu.memory_space<vmem>>, vector<1x16x16xbf16>
    %207 = vector.shape_cast %206 : vector<1x16x16xbf16> to vector<16x16xbf16>
    %cst_124 = arith.constant dense<0.000000e+00> : vector<256x16xf32>
    %208 = tpu.matmul %205, %207, %cst_124 {dimension_numbers = #tpu.dot_dimension_numbers<[1], [0], [0], [1], [0, 0, 1, 1], [], []>} : vector<256x16xbf16>, vector<16x16xbf16>, vector<256x16xf32> -> vector<256x16xf32>
    %209 = arith.addf %203, %208 : vector<256x16xf32>
    %210 = vector.extract_strided_slice %178 {offsets = [0, 1, 2, 0], sizes = [4, 8, 8, 16], strides = [1, 1, 1, 1]} : vector<6x10x10x16xbf16> to vector<4x8x8x16xbf16>
    %211 = vector.shape_cast %210 : vector<4x8x8x16xbf16> to vector<256x16xbf16>
    %c5_125 = arith.constant 5 : index
    %c0_126 = arith.constant 0 : index
    %c0_127 = arith.constant 0 : index
    %212 = vector.load %arg5[%c5_125, %c0_126, %c0_127] : memref<27x16x16xbf16, #tpu.memory_space<vmem>>, vector<1x16x16xbf16>
    %213 = vector.shape_cast %212 : vector<1x16x16xbf16> to vector<16x16xbf16>
    %cst_128 = arith.constant dense<0.000000e+00> : vector<256x16xf32>
    %214 = tpu.matmul %211, %213, %cst_128 {dimension_numbers = #tpu.dot_dimension_numbers<[1], [0], [0], [1], [0, 0, 1, 1], [], []>} : vector<256x16xbf16>, vector<16x16xbf16>, vector<256x16xf32> -> vector<256x16xf32>
    %215 = arith.addf %209, %214 : vector<256x16xf32>
    %216 = vector.extract_strided_slice %178 {offsets = [0, 2, 0, 0], sizes = [4, 8, 8, 16], strides = [1, 1, 1, 1]} : vector<6x10x10x16xbf16> to vector<4x8x8x16xbf16>
    %217 = vector.shape_cast %216 : vector<4x8x8x16xbf16> to vector<256x16xbf16>
    %c6_129 = arith.constant 6 : index
    %c0_130 = arith.constant 0 : index
    %c0_131 = arith.constant 0 : index
    %218 = vector.load %arg5[%c6_129, %c0_130, %c0_131] : memref<27x16x16xbf16, #tpu.memory_space<vmem>>, vector<1x16x16xbf16>
    %219 = vector.shape_cast %218 : vector<1x16x16xbf16> to vector<16x16xbf16>
    %cst_132 = arith.constant dense<0.000000e+00> : vector<256x16xf32>
    %220 = tpu.matmul %217, %219, %cst_132 {dimension_numbers = #tpu.dot_dimension_numbers<[1], [0], [0], [1], [0, 0, 1, 1], [], []>} : vector<256x16xbf16>, vector<16x16xbf16>, vector<256x16xf32> -> vector<256x16xf32>
    %221 = arith.addf %215, %220 : vector<256x16xf32>
    %222 = vector.extract_strided_slice %178 {offsets = [0, 2, 1, 0], sizes = [4, 8, 8, 16], strides = [1, 1, 1, 1]} : vector<6x10x10x16xbf16> to vector<4x8x8x16xbf16>
    %223 = vector.shape_cast %222 : vector<4x8x8x16xbf16> to vector<256x16xbf16>
    %c7_133 = arith.constant 7 : index
    %c0_134 = arith.constant 0 : index
    %c0_135 = arith.constant 0 : index
    %224 = vector.load %arg5[%c7_133, %c0_134, %c0_135] : memref<27x16x16xbf16, #tpu.memory_space<vmem>>, vector<1x16x16xbf16>
    %225 = vector.shape_cast %224 : vector<1x16x16xbf16> to vector<16x16xbf16>
    %cst_136 = arith.constant dense<0.000000e+00> : vector<256x16xf32>
    %226 = tpu.matmul %223, %225, %cst_136 {dimension_numbers = #tpu.dot_dimension_numbers<[1], [0], [0], [1], [0, 0, 1, 1], [], []>} : vector<256x16xbf16>, vector<16x16xbf16>, vector<256x16xf32> -> vector<256x16xf32>
    %227 = arith.addf %221, %226 : vector<256x16xf32>
    %228 = vector.extract_strided_slice %178 {offsets = [0, 2, 2, 0], sizes = [4, 8, 8, 16], strides = [1, 1, 1, 1]} : vector<6x10x10x16xbf16> to vector<4x8x8x16xbf16>
    %229 = vector.shape_cast %228 : vector<4x8x8x16xbf16> to vector<256x16xbf16>
    %c8_137 = arith.constant 8 : index
    %c0_138 = arith.constant 0 : index
    %c0_139 = arith.constant 0 : index
    %230 = vector.load %arg5[%c8_137, %c0_138, %c0_139] : memref<27x16x16xbf16, #tpu.memory_space<vmem>>, vector<1x16x16xbf16>
    %231 = vector.shape_cast %230 : vector<1x16x16xbf16> to vector<16x16xbf16>
    %cst_140 = arith.constant dense<0.000000e+00> : vector<256x16xf32>
    %232 = tpu.matmul %229, %231, %cst_140 {dimension_numbers = #tpu.dot_dimension_numbers<[1], [0], [0], [1], [0, 0, 1, 1], [], []>} : vector<256x16xbf16>, vector<16x16xbf16>, vector<256x16xf32> -> vector<256x16xf32>
    %233 = arith.addf %227, %232 : vector<256x16xf32>
    %234 = vector.extract_strided_slice %178 {offsets = [1, 0, 0, 0], sizes = [4, 8, 8, 16], strides = [1, 1, 1, 1]} : vector<6x10x10x16xbf16> to vector<4x8x8x16xbf16>
    %235 = vector.shape_cast %234 : vector<4x8x8x16xbf16> to vector<256x16xbf16>
    %c9_141 = arith.constant 9 : index
    %c0_142 = arith.constant 0 : index
    %c0_143 = arith.constant 0 : index
    %236 = vector.load %arg5[%c9_141, %c0_142, %c0_143] : memref<27x16x16xbf16, #tpu.memory_space<vmem>>, vector<1x16x16xbf16>
    %237 = vector.shape_cast %236 : vector<1x16x16xbf16> to vector<16x16xbf16>
    %cst_144 = arith.constant dense<0.000000e+00> : vector<256x16xf32>
    %238 = tpu.matmul %235, %237, %cst_144 {dimension_numbers = #tpu.dot_dimension_numbers<[1], [0], [0], [1], [0, 0, 1, 1], [], []>} : vector<256x16xbf16>, vector<16x16xbf16>, vector<256x16xf32> -> vector<256x16xf32>
    %239 = arith.addf %233, %238 : vector<256x16xf32>
    %240 = vector.extract_strided_slice %178 {offsets = [1, 0, 1, 0], sizes = [4, 8, 8, 16], strides = [1, 1, 1, 1]} : vector<6x10x10x16xbf16> to vector<4x8x8x16xbf16>
    %241 = vector.shape_cast %240 : vector<4x8x8x16xbf16> to vector<256x16xbf16>
    %c10_145 = arith.constant 10 : index
    %c0_146 = arith.constant 0 : index
    %c0_147 = arith.constant 0 : index
    %242 = vector.load %arg5[%c10_145, %c0_146, %c0_147] : memref<27x16x16xbf16, #tpu.memory_space<vmem>>, vector<1x16x16xbf16>
    %243 = vector.shape_cast %242 : vector<1x16x16xbf16> to vector<16x16xbf16>
    %cst_148 = arith.constant dense<0.000000e+00> : vector<256x16xf32>
    %244 = tpu.matmul %241, %243, %cst_148 {dimension_numbers = #tpu.dot_dimension_numbers<[1], [0], [0], [1], [0, 0, 1, 1], [], []>} : vector<256x16xbf16>, vector<16x16xbf16>, vector<256x16xf32> -> vector<256x16xf32>
    %245 = arith.addf %239, %244 : vector<256x16xf32>
    %246 = vector.extract_strided_slice %178 {offsets = [1, 0, 2, 0], sizes = [4, 8, 8, 16], strides = [1, 1, 1, 1]} : vector<6x10x10x16xbf16> to vector<4x8x8x16xbf16>
    %247 = vector.shape_cast %246 : vector<4x8x8x16xbf16> to vector<256x16xbf16>
    %c11_149 = arith.constant 11 : index
    %c0_150 = arith.constant 0 : index
    %c0_151 = arith.constant 0 : index
    %248 = vector.load %arg5[%c11_149, %c0_150, %c0_151] : memref<27x16x16xbf16, #tpu.memory_space<vmem>>, vector<1x16x16xbf16>
    %249 = vector.shape_cast %248 : vector<1x16x16xbf16> to vector<16x16xbf16>
    %cst_152 = arith.constant dense<0.000000e+00> : vector<256x16xf32>
    %250 = tpu.matmul %247, %249, %cst_152 {dimension_numbers = #tpu.dot_dimension_numbers<[1], [0], [0], [1], [0, 0, 1, 1], [], []>} : vector<256x16xbf16>, vector<16x16xbf16>, vector<256x16xf32> -> vector<256x16xf32>
    %251 = arith.addf %245, %250 : vector<256x16xf32>
    %252 = vector.extract_strided_slice %178 {offsets = [1, 1, 0, 0], sizes = [4, 8, 8, 16], strides = [1, 1, 1, 1]} : vector<6x10x10x16xbf16> to vector<4x8x8x16xbf16>
    %253 = vector.shape_cast %252 : vector<4x8x8x16xbf16> to vector<256x16xbf16>
    %c12_153 = arith.constant 12 : index
    %c0_154 = arith.constant 0 : index
    %c0_155 = arith.constant 0 : index
    %254 = vector.load %arg5[%c12_153, %c0_154, %c0_155] : memref<27x16x16xbf16, #tpu.memory_space<vmem>>, vector<1x16x16xbf16>
    %255 = vector.shape_cast %254 : vector<1x16x16xbf16> to vector<16x16xbf16>
    %cst_156 = arith.constant dense<0.000000e+00> : vector<256x16xf32>
    %256 = tpu.matmul %253, %255, %cst_156 {dimension_numbers = #tpu.dot_dimension_numbers<[1], [0], [0], [1], [0, 0, 1, 1], [], []>} : vector<256x16xbf16>, vector<16x16xbf16>, vector<256x16xf32> -> vector<256x16xf32>
    %257 = arith.addf %251, %256 : vector<256x16xf32>
    %258 = vector.extract_strided_slice %178 {offsets = [1, 1, 1, 0], sizes = [4, 8, 8, 16], strides = [1, 1, 1, 1]} : vector<6x10x10x16xbf16> to vector<4x8x8x16xbf16>
    %259 = vector.shape_cast %258 : vector<4x8x8x16xbf16> to vector<256x16xbf16>
    %c13_157 = arith.constant 13 : index
    %c0_158 = arith.constant 0 : index
    %c0_159 = arith.constant 0 : index
    %260 = vector.load %arg5[%c13_157, %c0_158, %c0_159] : memref<27x16x16xbf16, #tpu.memory_space<vmem>>, vector<1x16x16xbf16>
    %261 = vector.shape_cast %260 : vector<1x16x16xbf16> to vector<16x16xbf16>
    %cst_160 = arith.constant dense<0.000000e+00> : vector<256x16xf32>
    %262 = tpu.matmul %259, %261, %cst_160 {dimension_numbers = #tpu.dot_dimension_numbers<[1], [0], [0], [1], [0, 0, 1, 1], [], []>} : vector<256x16xbf16>, vector<16x16xbf16>, vector<256x16xf32> -> vector<256x16xf32>
    %263 = arith.addf %257, %262 : vector<256x16xf32>
    %264 = vector.extract_strided_slice %178 {offsets = [1, 1, 2, 0], sizes = [4, 8, 8, 16], strides = [1, 1, 1, 1]} : vector<6x10x10x16xbf16> to vector<4x8x8x16xbf16>
    %265 = vector.shape_cast %264 : vector<4x8x8x16xbf16> to vector<256x16xbf16>
    %c14_161 = arith.constant 14 : index
    %c0_162 = arith.constant 0 : index
    %c0_163 = arith.constant 0 : index
    %266 = vector.load %arg5[%c14_161, %c0_162, %c0_163] : memref<27x16x16xbf16, #tpu.memory_space<vmem>>, vector<1x16x16xbf16>
    %267 = vector.shape_cast %266 : vector<1x16x16xbf16> to vector<16x16xbf16>
    %cst_164 = arith.constant dense<0.000000e+00> : vector<256x16xf32>
    %268 = tpu.matmul %265, %267, %cst_164 {dimension_numbers = #tpu.dot_dimension_numbers<[1], [0], [0], [1], [0, 0, 1, 1], [], []>} : vector<256x16xbf16>, vector<16x16xbf16>, vector<256x16xf32> -> vector<256x16xf32>
    %269 = arith.addf %263, %268 : vector<256x16xf32>
    %270 = vector.extract_strided_slice %178 {offsets = [1, 2, 0, 0], sizes = [4, 8, 8, 16], strides = [1, 1, 1, 1]} : vector<6x10x10x16xbf16> to vector<4x8x8x16xbf16>
    %271 = vector.shape_cast %270 : vector<4x8x8x16xbf16> to vector<256x16xbf16>
    %c15_165 = arith.constant 15 : index
    %c0_166 = arith.constant 0 : index
    %c0_167 = arith.constant 0 : index
    %272 = vector.load %arg5[%c15_165, %c0_166, %c0_167] : memref<27x16x16xbf16, #tpu.memory_space<vmem>>, vector<1x16x16xbf16>
    %273 = vector.shape_cast %272 : vector<1x16x16xbf16> to vector<16x16xbf16>
    %cst_168 = arith.constant dense<0.000000e+00> : vector<256x16xf32>
    %274 = tpu.matmul %271, %273, %cst_168 {dimension_numbers = #tpu.dot_dimension_numbers<[1], [0], [0], [1], [0, 0, 1, 1], [], []>} : vector<256x16xbf16>, vector<16x16xbf16>, vector<256x16xf32> -> vector<256x16xf32>
    %275 = arith.addf %269, %274 : vector<256x16xf32>
    %276 = vector.extract_strided_slice %178 {offsets = [1, 2, 1, 0], sizes = [4, 8, 8, 16], strides = [1, 1, 1, 1]} : vector<6x10x10x16xbf16> to vector<4x8x8x16xbf16>
    %277 = vector.shape_cast %276 : vector<4x8x8x16xbf16> to vector<256x16xbf16>
    %c16_169 = arith.constant 16 : index
    %c0_170 = arith.constant 0 : index
    %c0_171 = arith.constant 0 : index
    %278 = vector.load %arg5[%c16_169, %c0_170, %c0_171] : memref<27x16x16xbf16, #tpu.memory_space<vmem>>, vector<1x16x16xbf16>
    %279 = vector.shape_cast %278 : vector<1x16x16xbf16> to vector<16x16xbf16>
    %cst_172 = arith.constant dense<0.000000e+00> : vector<256x16xf32>
    %280 = tpu.matmul %277, %279, %cst_172 {dimension_numbers = #tpu.dot_dimension_numbers<[1], [0], [0], [1], [0, 0, 1, 1], [], []>} : vector<256x16xbf16>, vector<16x16xbf16>, vector<256x16xf32> -> vector<256x16xf32>
    %281 = arith.addf %275, %280 : vector<256x16xf32>
    %282 = vector.extract_strided_slice %178 {offsets = [1, 2, 2, 0], sizes = [4, 8, 8, 16], strides = [1, 1, 1, 1]} : vector<6x10x10x16xbf16> to vector<4x8x8x16xbf16>
    %283 = vector.shape_cast %282 : vector<4x8x8x16xbf16> to vector<256x16xbf16>
    %c17_173 = arith.constant 17 : index
    %c0_174 = arith.constant 0 : index
    %c0_175 = arith.constant 0 : index
    %284 = vector.load %arg5[%c17_173, %c0_174, %c0_175] : memref<27x16x16xbf16, #tpu.memory_space<vmem>>, vector<1x16x16xbf16>
    %285 = vector.shape_cast %284 : vector<1x16x16xbf16> to vector<16x16xbf16>
    %cst_176 = arith.constant dense<0.000000e+00> : vector<256x16xf32>
    %286 = tpu.matmul %283, %285, %cst_176 {dimension_numbers = #tpu.dot_dimension_numbers<[1], [0], [0], [1], [0, 0, 1, 1], [], []>} : vector<256x16xbf16>, vector<16x16xbf16>, vector<256x16xf32> -> vector<256x16xf32>
    %287 = arith.addf %281, %286 : vector<256x16xf32>
    %288 = vector.extract_strided_slice %178 {offsets = [2, 0, 0, 0], sizes = [4, 8, 8, 16], strides = [1, 1, 1, 1]} : vector<6x10x10x16xbf16> to vector<4x8x8x16xbf16>
    %289 = vector.shape_cast %288 : vector<4x8x8x16xbf16> to vector<256x16xbf16>
    %c18_177 = arith.constant 18 : index
    %c0_178 = arith.constant 0 : index
    %c0_179 = arith.constant 0 : index
    %290 = vector.load %arg5[%c18_177, %c0_178, %c0_179] : memref<27x16x16xbf16, #tpu.memory_space<vmem>>, vector<1x16x16xbf16>
    %291 = vector.shape_cast %290 : vector<1x16x16xbf16> to vector<16x16xbf16>
    %cst_180 = arith.constant dense<0.000000e+00> : vector<256x16xf32>
    %292 = tpu.matmul %289, %291, %cst_180 {dimension_numbers = #tpu.dot_dimension_numbers<[1], [0], [0], [1], [0, 0, 1, 1], [], []>} : vector<256x16xbf16>, vector<16x16xbf16>, vector<256x16xf32> -> vector<256x16xf32>
    %293 = arith.addf %287, %292 : vector<256x16xf32>
    %294 = vector.extract_strided_slice %178 {offsets = [2, 0, 1, 0], sizes = [4, 8, 8, 16], strides = [1, 1, 1, 1]} : vector<6x10x10x16xbf16> to vector<4x8x8x16xbf16>
    %295 = vector.shape_cast %294 : vector<4x8x8x16xbf16> to vector<256x16xbf16>
    %c19_181 = arith.constant 19 : index
    %c0_182 = arith.constant 0 : index
    %c0_183 = arith.constant 0 : index
    %296 = vector.load %arg5[%c19_181, %c0_182, %c0_183] : memref<27x16x16xbf16, #tpu.memory_space<vmem>>, vector<1x16x16xbf16>
    %297 = vector.shape_cast %296 : vector<1x16x16xbf16> to vector<16x16xbf16>
    %cst_184 = arith.constant dense<0.000000e+00> : vector<256x16xf32>
    %298 = tpu.matmul %295, %297, %cst_184 {dimension_numbers = #tpu.dot_dimension_numbers<[1], [0], [0], [1], [0, 0, 1, 1], [], []>} : vector<256x16xbf16>, vector<16x16xbf16>, vector<256x16xf32> -> vector<256x16xf32>
    %299 = arith.addf %293, %298 : vector<256x16xf32>
    %300 = vector.extract_strided_slice %178 {offsets = [2, 0, 2, 0], sizes = [4, 8, 8, 16], strides = [1, 1, 1, 1]} : vector<6x10x10x16xbf16> to vector<4x8x8x16xbf16>
    %301 = vector.shape_cast %300 : vector<4x8x8x16xbf16> to vector<256x16xbf16>
    %c20_185 = arith.constant 20 : index
    %c0_186 = arith.constant 0 : index
    %c0_187 = arith.constant 0 : index
    %302 = vector.load %arg5[%c20_185, %c0_186, %c0_187] : memref<27x16x16xbf16, #tpu.memory_space<vmem>>, vector<1x16x16xbf16>
    %303 = vector.shape_cast %302 : vector<1x16x16xbf16> to vector<16x16xbf16>
    %cst_188 = arith.constant dense<0.000000e+00> : vector<256x16xf32>
    %304 = tpu.matmul %301, %303, %cst_188 {dimension_numbers = #tpu.dot_dimension_numbers<[1], [0], [0], [1], [0, 0, 1, 1], [], []>} : vector<256x16xbf16>, vector<16x16xbf16>, vector<256x16xf32> -> vector<256x16xf32>
    %305 = arith.addf %299, %304 : vector<256x16xf32>
    %306 = vector.extract_strided_slice %178 {offsets = [2, 1, 0, 0], sizes = [4, 8, 8, 16], strides = [1, 1, 1, 1]} : vector<6x10x10x16xbf16> to vector<4x8x8x16xbf16>
    %307 = vector.shape_cast %306 : vector<4x8x8x16xbf16> to vector<256x16xbf16>
    %c21_189 = arith.constant 21 : index
    %c0_190 = arith.constant 0 : index
    %c0_191 = arith.constant 0 : index
    %308 = vector.load %arg5[%c21_189, %c0_190, %c0_191] : memref<27x16x16xbf16, #tpu.memory_space<vmem>>, vector<1x16x16xbf16>
    %309 = vector.shape_cast %308 : vector<1x16x16xbf16> to vector<16x16xbf16>
    %cst_192 = arith.constant dense<0.000000e+00> : vector<256x16xf32>
    %310 = tpu.matmul %307, %309, %cst_192 {dimension_numbers = #tpu.dot_dimension_numbers<[1], [0], [0], [1], [0, 0, 1, 1], [], []>} : vector<256x16xbf16>, vector<16x16xbf16>, vector<256x16xf32> -> vector<256x16xf32>
    %311 = arith.addf %305, %310 : vector<256x16xf32>
    %312 = vector.extract_strided_slice %178 {offsets = [2, 1, 1, 0], sizes = [4, 8, 8, 16], strides = [1, 1, 1, 1]} : vector<6x10x10x16xbf16> to vector<4x8x8x16xbf16>
    %313 = vector.shape_cast %312 : vector<4x8x8x16xbf16> to vector<256x16xbf16>
    %c22_193 = arith.constant 22 : index
    %c0_194 = arith.constant 0 : index
    %c0_195 = arith.constant 0 : index
    %314 = vector.load %arg5[%c22_193, %c0_194, %c0_195] : memref<27x16x16xbf16, #tpu.memory_space<vmem>>, vector<1x16x16xbf16>
    %315 = vector.shape_cast %314 : vector<1x16x16xbf16> to vector<16x16xbf16>
    %cst_196 = arith.constant dense<0.000000e+00> : vector<256x16xf32>
    %316 = tpu.matmul %313, %315, %cst_196 {dimension_numbers = #tpu.dot_dimension_numbers<[1], [0], [0], [1], [0, 0, 1, 1], [], []>} : vector<256x16xbf16>, vector<16x16xbf16>, vector<256x16xf32> -> vector<256x16xf32>
    %317 = arith.addf %311, %316 : vector<256x16xf32>
    %318 = vector.extract_strided_slice %178 {offsets = [2, 1, 2, 0], sizes = [4, 8, 8, 16], strides = [1, 1, 1, 1]} : vector<6x10x10x16xbf16> to vector<4x8x8x16xbf16>
    %319 = vector.shape_cast %318 : vector<4x8x8x16xbf16> to vector<256x16xbf16>
    %c23_197 = arith.constant 23 : index
    %c0_198 = arith.constant 0 : index
    %c0_199 = arith.constant 0 : index
    %320 = vector.load %arg5[%c23_197, %c0_198, %c0_199] : memref<27x16x16xbf16, #tpu.memory_space<vmem>>, vector<1x16x16xbf16>
    %321 = vector.shape_cast %320 : vector<1x16x16xbf16> to vector<16x16xbf16>
    %cst_200 = arith.constant dense<0.000000e+00> : vector<256x16xf32>
    %322 = tpu.matmul %319, %321, %cst_200 {dimension_numbers = #tpu.dot_dimension_numbers<[1], [0], [0], [1], [0, 0, 1, 1], [], []>} : vector<256x16xbf16>, vector<16x16xbf16>, vector<256x16xf32> -> vector<256x16xf32>
    %323 = arith.addf %317, %322 : vector<256x16xf32>
    %324 = vector.extract_strided_slice %178 {offsets = [2, 2, 0, 0], sizes = [4, 8, 8, 16], strides = [1, 1, 1, 1]} : vector<6x10x10x16xbf16> to vector<4x8x8x16xbf16>
    %325 = vector.shape_cast %324 : vector<4x8x8x16xbf16> to vector<256x16xbf16>
    %c24_201 = arith.constant 24 : index
    %c0_202 = arith.constant 0 : index
    %c0_203 = arith.constant 0 : index
    %326 = vector.load %arg5[%c24_201, %c0_202, %c0_203] : memref<27x16x16xbf16, #tpu.memory_space<vmem>>, vector<1x16x16xbf16>
    %327 = vector.shape_cast %326 : vector<1x16x16xbf16> to vector<16x16xbf16>
    %cst_204 = arith.constant dense<0.000000e+00> : vector<256x16xf32>
    %328 = tpu.matmul %325, %327, %cst_204 {dimension_numbers = #tpu.dot_dimension_numbers<[1], [0], [0], [1], [0, 0, 1, 1], [], []>} : vector<256x16xbf16>, vector<16x16xbf16>, vector<256x16xf32> -> vector<256x16xf32>
    %329 = arith.addf %323, %328 : vector<256x16xf32>
    %330 = vector.extract_strided_slice %178 {offsets = [2, 2, 1, 0], sizes = [4, 8, 8, 16], strides = [1, 1, 1, 1]} : vector<6x10x10x16xbf16> to vector<4x8x8x16xbf16>
    %331 = vector.shape_cast %330 : vector<4x8x8x16xbf16> to vector<256x16xbf16>
    %c25_205 = arith.constant 25 : index
    %c0_206 = arith.constant 0 : index
    %c0_207 = arith.constant 0 : index
    %332 = vector.load %arg5[%c25_205, %c0_206, %c0_207] : memref<27x16x16xbf16, #tpu.memory_space<vmem>>, vector<1x16x16xbf16>
    %333 = vector.shape_cast %332 : vector<1x16x16xbf16> to vector<16x16xbf16>
    %cst_208 = arith.constant dense<0.000000e+00> : vector<256x16xf32>
    %334 = tpu.matmul %331, %333, %cst_208 {dimension_numbers = #tpu.dot_dimension_numbers<[1], [0], [0], [1], [0, 0, 1, 1], [], []>} : vector<256x16xbf16>, vector<16x16xbf16>, vector<256x16xf32> -> vector<256x16xf32>
    %335 = arith.addf %329, %334 : vector<256x16xf32>
    %336 = vector.extract_strided_slice %178 {offsets = [2, 2, 2, 0], sizes = [4, 8, 8, 16], strides = [1, 1, 1, 1]} : vector<6x10x10x16xbf16> to vector<4x8x8x16xbf16>
    %337 = vector.shape_cast %336 : vector<4x8x8x16xbf16> to vector<256x16xbf16>
    %c26_209 = arith.constant 26 : index
    %c0_210 = arith.constant 0 : index
    %c0_211 = arith.constant 0 : index
    %338 = vector.load %arg5[%c26_209, %c0_210, %c0_211] : memref<27x16x16xbf16, #tpu.memory_space<vmem>>, vector<1x16x16xbf16>
    %339 = vector.shape_cast %338 : vector<1x16x16xbf16> to vector<16x16xbf16>
    %cst_212 = arith.constant dense<0.000000e+00> : vector<256x16xf32>
    %340 = tpu.matmul %337, %339, %cst_212 {dimension_numbers = #tpu.dot_dimension_numbers<[1], [0], [0], [1], [0, 0, 1, 1], [], []>} : vector<256x16xbf16>, vector<16x16xbf16>, vector<256x16xf32> -> vector<256x16xf32>
    %341 = arith.addf %335, %340 : vector<256x16xf32>
    %c0_213 = arith.constant 0 : index
    %c0_214 = arith.constant 0 : index
    %342 = vector.load %arg6[%c0_213, %c0_214] : memref<1x16xf32, #tpu.memory_space<vmem>>, vector<1x16xf32>
    %343 = vector.broadcast %342 : vector<1x16xf32> to vector<256x16xf32>
    %344 = arith.mulf %341, %343 : vector<256x16xf32>
    %c0_215 = arith.constant 0 : index
    %c0_216 = arith.constant 0 : index
    %345 = vector.load %arg7[%c0_215, %c0_216] : memref<1x16xf32, #tpu.memory_space<vmem>>, vector<1x16xf32>
    %346 = vector.broadcast %345 : vector<1x16xf32> to vector<256x16xf32>
    %347 = arith.addf %344, %346 : vector<256x16xf32>
    %348 = vector.extract_strided_slice %1 {offsets = [1, 1, 1, 0], sizes = [4, 8, 8, 16], strides = [1, 1, 1, 1]} : vector<6x10x10x16xbf16> to vector<4x8x8x16xbf16>
    %349 = vector.shape_cast %348 : vector<4x8x8x16xbf16> to vector<256x16xbf16>
    %350 = arith.extf %349 : vector<256x16xbf16> to vector<256x16xf32>
    %351 = arith.addf %347, %350 : vector<256x16xf32>
    %cst_217 = arith.constant 0.000000e+00 : f32
    %352 = vector.broadcast %cst_217 : f32 to vector<256x16xf32>
    %353 = arith.maximumf %351, %352 : vector<256x16xf32>
    %354 = vector.shape_cast %353 : vector<256x16xf32> to vector<1x4x8x8x16xf32>
    %355 = arith.truncf %354 : vector<1x4x8x8x16xf32> to vector<1x4x8x8x16xbf16>
    %c0_218 = arith.constant 0 : index
    %c0_219 = arith.constant 0 : index
    %c0_220 = arith.constant 0 : index
    %c0_221 = arith.constant 0 : index
    %c0_222 = arith.constant 0 : index
    %356 = vector.load %arg8[%c0_218, %c0_219, %c0_220, %c0_221, %c0_222] : memref<1x4x8x8x16xbf16, #tpu.memory_space<vmem>>, vector<1x4x8x8x16xbf16>
    tpu.vector_store %arg8[%c0_218, %c0_219, %c0_220, %c0_221, %c0_222], %355 {strides = array<i32>} : memref<1x4x8x8x16xbf16, #tpu.memory_space<vmem>>, vector<1x4x8x8x16xbf16>,
    return
  }
  func.func @transform_0(%arg0: i32) -> (i32, i32, i32, i32, i32) {
    %c0_i32 = arith.constant 0 : i32
    %c0_i32_0 = arith.constant 0 : i32
    %c0_i32_1 = arith.constant 0 : i32
    %c0_i32_2 = arith.constant 0 : i32
    %c0_i32_3 = arith.constant 0 : i32
    return %arg0, %c0_i32, %c0_i32_0, %c0_i32_1, %c0_i32_2 : i32, i32, i32, i32, i32
  }
  func.func @transform_1(%arg0: i32) -> (i32, i32, i32) {
    %c0_i32 = arith.constant 0 : i32
    %c0_i32_0 = arith.constant 0 : i32
    %c0_i32_1 = arith.constant 0 : i32
    %c0_i32_2 = arith.constant 0 : i32
    return %c0_i32, %c0_i32_0, %c0_i32_1 : i32, i32, i32
  }
  func.func @transform_2(%arg0: i32) -> (i32, i32) {
    %c0_i32 = arith.constant 0 : i32
    %c0_i32_0 = arith.constant 0 : i32
    %c0_i32_1 = arith.constant 0 : i32
    return %c0_i32, %c0_i32_0 : i32, i32
  }
  func.func @transform_3(%arg0: i32) -> (i32, i32) {
    %c0_i32 = arith.constant 0 : i32
    %c0_i32_0 = arith.constant 0 : i32
    %c0_i32_1 = arith.constant 0 : i32
    return %c0_i32, %c0_i32_0 : i32, i32
  }
  func.func @transform_4(%arg0: i32) -> (i32, i32, i32) {
    %c0_i32 = arith.constant 0 : i32
    %c0_i32_0 = arith.constant 0 : i32
    %c0_i32_1 = arith.constant 0 : i32
    %c0_i32_2 = arith.constant 0 : i32
    return %c0_i32, %c0_i32_0, %c0_i32_1 : i32, i32, i32
  }
  func.func @transform_5(%arg0: i32) -> (i32, i32) {
    %c0_i32 = arith.constant 0 : i32
    %c0_i32_0 = arith.constant 0 : i32
    %c0_i32_1 = arith.constant 0 : i32
    return %c0_i32, %c0_i32_0 : i32, i32
  }
  func.func @transform_6(%arg0: i32) -> (i32, i32) {
    %c0_i32 = arith.constant 0 : i32
    %c0_i32_0 = arith.constant 0 : i32
    %c0_i32_1 = arith.constant 0 : i32
    return %c0_i32, %c0_i32_0 : i32, i32
  }
  func.func @transform_7(%arg0: i32) -> (i32, i32, i32, i32, i32) {
    %c0_i32 = arith.constant 0 : i32
    %c0_i32_0 = arith.constant 0 : i32
    %c0_i32_1 = arith.constant 0 : i32
    %c0_i32_2 = arith.constant 0 : i32
    %c0_i32_3 = arith.constant 0 : i32
    return %arg0, %c0_i32, %c0_i32_0, %c0_i32_1, %c0_i32_2 : i32, i32, i32, i32, i32
  }
}

</mosaic_0001>

<bundles_post_ra>
// kernel: tpu_custom_call.1
= control target key start
LH: loop header
LB: loop body
LE: loop exit
PB: predicated region body
PF: predicated region fallthrough
CT: control target
= control target key end

     0   :  { %12 = vsyncpa [#allocation4], 0  ;;  %s28593_s0 = inlined_call_operand.vmem [shape: bf16[2,6,10,10,16], index: 0, kind: input, shape index: {}]   ;;  %s28594_s1 = inlined_call_operand.vmem [shape: bf16[27,16,16], index: 1, kind: input, shape index: {}]   ;;  %s28595_s2 = inlined_call_operand.vmem [shape: f32[1,16], index: 2, kind: input, shape index: {}]   ;;  %s28596_s3 = inlined_call_operand.vmem [shape: f32[1,16], index: 3, kind: input, shape index: {}]   ;;  %s28597_s4 = inlined_call_operand.vmem [shape: bf16[27,16,16], index: 4, kind: input, shape index: {}]   ;;  %s28598_s5 = inlined_call_operand.vmem [shape: f32[1,16], index: 5, kind: input, shape index: {}]   ;;  %s28599_s6 = inlined_call_operand.vmem [shape: f32[1,16], index: 6, kind: input, shape index: {}]   ;;  %s28600_s7 = inlined_call_operand.hbm [shape: bf16[2,4,8,8,16], index: 7, kind: output, shape index: {}]  }
   0x1   :  { %14 = vsyncpa [#allocation4 + $0x1], 0  ;;  %s22920_s24 = smov 0   ;;  %s22922_s25 = smov 0  }
   0x2   :  { %s22924_s26 = smov 0   ;;  %s22926_s27 = smov 0  }
   0x3 LB: > { %s22941_s28 = sadd.s32 4294967295, %s22874_s27   ;;  %s16584_s29 = sadd.s32 4294967294, %s22874_s27   ;;  %s22874_s27 = sphi %s22926_s27, %s29933_s27   ;;  %s22870_s26 = sphi %s22924_s26, %s29932_s26   ;;  %s22866_s25 = sphi %s22922_s25, %s29931_s25   ;;  %s22862_s24 = sphi %s22920_s24, %s29930_s24  }
   0x4   : > { %s22945_s30 = sadd.s32 1, %s22874_s27   ;;  %s179_s8 = sadd.s32 1, %s22870_s26 }
   0x5   : > { %s176_s9 = ssub.s32 %s22874_s27, %s22945_s30  ;;  %p189_p0 = scmp.ne.s32.totalorder %s22870_s26, %s22866_s25 }
   0x6   : > { %p177_p1 = scmp.eq.s32.totalorder %s176_s9, 0  ;;  %p190_p2 = scmp.eq.s32.totalorder %s22941_s28, 1 }
   0x7   : > { %p195_p3 = scmp.ne.s32.totalorder %s22866_s25, %s22862_s24  ;;  %p196_p4 = scmp.eq.s32.totalorder %s16584_s29, 1 }
   0x8   : > { %s22956_s10 = scalar_select %p177_p1, %s22870_s26, %s179_s8  }
   0x9   : > { %p22958_p5 = por %p190_p2, %p189_p0  ;;  %p22962_p6 = por %p196_p4, %p195_p3 }
   0xa   : > { %p16587_p7 = scmp.ge.s32.totalorder %s22874_s27, 1  ;;  %p240_p8 = scmp.lt.s32.totalorder %s22874_s27, 3 }
   0xc   : > { %p241_p9 = pnand %p16587_p7, %p240_p8 }
   0xe   : > { %244 = sbr.rel (%p241_p9) target bundleno = 3992 (0xf98), region = 48 }
  0x15   : > { %v22591_v0 = vld [vmem:[%s28594_s1 + $0x8] sm:$0xff]   ;;  %p272_p10 = scmp.lt.s32.totalorder %s22941_s28, 1  ;;  %v22976_v1 = vld [vmem:[%s28594_s1] sm:$0xff]   ;;  %vm400_vm0 = vsmask.f32 3328  ;;  %v29104_v32 = vmov 0 }
  0x16   : > { %19048 = vmatprep.subr.bf16.mxu0 %v22591_v0  ;;  %vm401_vm1 = vsmask.f32 7440  ;;  %vm908_vm3 = vcmask 130048   ;;  %vm1445_vm4 = vcmask 1042432   ;;  %vm1446_vm5 = vcmask 1046532   ;;  %s269_s17 = sand.u32 1, %s22866_s25  }
  0x17   : > { %s273_s15 = scalar_select %p272_p10, %s22941_s28, 1  ;;  %19049 = vmatpush3.bf16.msra.mxu0 %v22591_v0  ;;  %vm23014_vm2 = vmor %vm400_vm0, %vm401_vm1  ;;  %vm7964_vm7 = vcmask 125952   ;;  %vm7966_vm8 = vcmask 122880   ;;  %vm8536_vm9 = vsmask.f32 7938 }
  0x18   : > { %19082 = vmatprep.subr.bf16.mxu0 %v22976_v1  ;;  %v29105_v32 = vsel %vm23014_vm2, 4294967295, %v29104_v32  ;;  %vm23501_vm6 = vmor %vm1445_vm4, %vm1446_vm5  ;;  %vm8542_vm10 = vsmask.f32 256  ;;  %s18129_s19 = sshll.u32 %s22941_s28, 11  ;;  %s28552_s28 = scalar_lea.sflag [#allocation4], %s269_s17 }
  0x19   : > { %s22548_s18 = smul.u32 480, %s273_s15  ;;  %29106 = vst [vmem:[#allocation6_spill] sm:$0xff] %v29105_v32  ;;  %vm25878_vm11 = vmand %vm7964_vm7, %vm8536_vm9  ;;  %s28540_s29 = scalar_lea.hbm %s28600_s7, %s18129_s19 }
  0x1a   : > { %vm25885_vm12 = vmand %vm7966_vm8, %vm8542_vm10  ;;  %s22877_s9 = smov [#allocation3]  }
  0x1b   : > { %s22982_s21 = scalar_lea.vmem %s28593_s0, %s22548_s18  ;;  %s16588_s18 = sshll.u32 %s269_s17, 7 }
  0x1c   : > { %v22985_v2 = vld [vmem:[%s22982_s21] sm:$0xf]  ;;  %v279_v3 = vld [vmem:[%s22982_s21 + $0x4] sm:$0x1]  ;;  %v22989_v4 = vld [vmem:[%s22982_s21 + $0x8] sm:$0xf] }
  0x1d   : > { %v281_v5 = vld [vmem:[%s22982_s21 + $0xc] sm:$0x1]  ;;  %v22993_v6 = vld [vmem:[%s22982_s21 + $0x10] sm:$0xf]  ;;  %v283_v7 = vld [vmem:[%s22982_s21 + $0x14] sm:$0x1] }
  0x1e   : > { %v22997_v8 = vld [vmem:[%s22982_s21 + $0x18] sm:$0xf]  ;;  %v404_v9 = vshrl.u32 %v22985_v2, 16  ;;  %v407_v10 = vshll.u32 %v22985_v2, 16  ;;  %v413_v11 = vshll.u32 %v279_v3, 16  ;;  %v418_v12 = vshrl.u32 %v22989_v4, 16 }
  0x1f   : > { %v285_v13 = vld [vmem:[%s22982_s21 + $0x1c] sm:$0x1]  ;;  %v421_v14 = vshll.u32 %v22989_v4, 16  ;;  %v427_v15 = vshll.u32 %v281_v5, 16  ;;  %v432_v16 = vshrl.u32 %v22993_v6, 16  ;;  %v435_v17 = vshll.u32 %v22993_v6, 16 }
  0x20   : > { %v23007_v18 = vld [vmem:[%s22982_s21 + $0x20] sm:$0xf]  ;;  %v406_v19 = vrot.slane %v404_v9, 4  ;;  %v409_v20 = vrot.slane %v407_v10, 5  ;;  %v415_v21 = vrot.slane %v413_v11, 5  ;;  %v420_v22 = vrot.slane %v418_v12, 4 }
  0x21   : > { %v423_v23 = vrot.slane %v421_v14, 5  ;;  %v429_v24 = vrot.slane %v427_v15, 5  ;;  %v434_v25 = vrot.slane %v432_v16, 4  ;;  %v437_v26 = vrot.slane %v435_v17, 5  ;;  %v287_v31 = vld [vmem:[%s22982_s21 + $0x24] sm:$0x1] }
  0x22   : > { %v410_v27 = vor.u32 %v409_v20, %v406_v19  ;;  %v441_v28 = vshll.u32 %v283_v7, 16  ;;  %v446_v29 = vshrl.u32 %v22997_v8, 16  ;;  %v449_v30 = vshll.u32 %v22997_v8, 16  ;;  %v23027_v50 = vld [vmem:[%s22982_s21 + $0x28] sm:$0xf]  ;;  %v23062_v5 = vld [vmem:[%s28594_s1 + $0x10] sm:$0xff]  }
  0x23   : > { %v424_v33 = vor.u32 %v423_v23, %v420_v22  ;;  %v438_v34 = vor.u32 %v437_v26, %v434_v25  ;;  %v455_v35 = vshll.u32 %v285_v13, 16  ;;  %v460_v36 = vshrl.u32 %v23007_v18, 16  ;;  %v23035_v56 = vld [vmem:[%s22982_s21 + $0x2c] sm:$0x1]  ;;  %v23046_v61 = vld [vmem:[%s22982_s21 + $0x30] sm:$0xf] }
  0x24   : > { %v411_v37 = vrot.slane %v410_v27, 4  ;;  %v443_v38 = vrot.slane %v441_v28, 5  ;;  %v448_v39 = vrot.slane %v446_v29, 4  ;;  %v451_v40 = vrot.slane %v449_v30, 5  ;;  %v23049_v62 = vld [vmem:[%s22982_s21 + $0x34] sm:$0x1] }
  0x25   : > { %v425_v41 = vrot.slane %v424_v33, 4  ;;  %v439_v42 = vrot.slane %v438_v34, 4  ;;  %v457_v43 = vrot.slane %v455_v35, 5  ;;  %v462_v44 = vrot.slane %v460_v36, 4  ;;  %v23057_v3 = vld [vmem:[%s22982_s21 + $0x38] sm:$0xf] }
  0x26   : > { %v416_v45 = vsel %vm23014_vm2, %v411_v37, %v415_v21  ;;  %v452_v46 = vor.u32 %v451_v40, %v448_v39  ;;  %v463_v47 = vshll.u32 %v23007_v18, 16  ;;  %v469_v48 = vshll.u32 %v287_v31, 16  ;;  %v23068_v12 = vld [vmem:[%s22982_s21 + $0x3c] sm:$0x1]  ;;  %v23081_v21 = vld [vmem:[%s22982_s21 + $0x50] sm:$0xf] }
  0x27   : > { %v23024_v49 = vsel %vm23014_vm2, %v425_v41, %v429_v24  ;;  %v23031_v51 = vsel %vm23014_vm2, %v439_v42, %v443_v38  ;;  %v474_v60 = vshrl.u32 %v23027_v50, 16  ;;  %v477_v0 = vshll.u32 %v23027_v50, 16  ;;  %v23086_v26 = vld [vmem:[%s22982_s21 + $0x54] sm:$0x1]  ;;  %v23089_v27 = vld [vmem:[%s22982_s21 + $0x58] sm:$0xf] }
  0x28   : > { %29107 = vst [vmem:[#allocation7_spill] sm:$0xff] %v23024_v49  ;;  %29108 = vst [vmem:[#allocation8_spill] sm:$0xff] %v23031_v51  ;;  %v453_v52 = vrot.slane %v452_v46, 4  ;;  %v465_v53 = vrot.slane %v463_v47, 5  ;;  %v16592_v54 = vcombine.low %v416_v45, %v23024_v49  ;;  %v471_v55 = vrot.slane %v469_v48, 5  ;;  %s22816_s13 = sshll.u32 %s22877_s9, 4  ;;  %s22817_s13 = int_to_ptr.vmem [resolvable:$false] %s22816_s13 }
  0x29   : > { %v476_v9 = vrot.slane %v474_v60, 4  ;;  %v483_v10 = vshll.u32 %v23035_v56, 16  ;;  %v479_v11 = vrot.slane %v477_v0, 5  ;;  %v488_v13 = vshrl.u32 %v23046_v61, 16  ;;  %29112 = vst [vmem:[#allocation12_spill] sm:$0xff] %v23086_v26  ;;  %s22818_s14 = scalar_lea.vmem %s22817_s13, 4096 }
  0x2a   : > { %v23039_v57 = vsel %vm23014_vm2, %v453_v52, %v457_v43  ;;  %v466_v58 = vor.u32 %v465_v53, %v462_v44  ;;  %19050 = vmatprep.mubr.msk.bf16.mxu0 %vm908_vm3, %v16592_v54  ;;  %v491_v14 = vshll.u32 %v23046_v61, 16  ;;  %v497_v15 = vshll.u32 %v23049_v62, 16  ;;  %v23094_v34 = vld [vmem:[%s22982_s21 + $0x5c] sm:$0x1]  ;;  %v23101_v41 = vld [vmem:[%s22982_s21 + $0x60] sm:$0xf] }
  0x2b   : > { %29109 = vst [vmem:[#allocation9_spill] sm:$0xff] %v23039_v57  ;;  %v23053_v63 = vcombine.low %v23031_v51, %v23039_v57  ;;  %v485_v17 = vrot.slane %v483_v10, 5  ;;  %v502_v19 = vshrl.u32 %v23057_v3, 16  ;;  %v505_v20 = vshll.u32 %v23057_v3, 16  ;;  %29113 = vst [vmem:[#allocation13_spill] sm:$0xff] %v23094_v34 }
  0x2c   : > { %v467_v7 = vrot.slane %v466_v58, 4  ;;  %v480_v23 = vor.u32 %v479_v11, %v476_v9  ;;  %v490_v24 = vrot.slane %v488_v13, 4  ;;  %v493_v25 = vrot.slane %v491_v14, 5  ;;  %v23108_v46 = vld [vmem:[%s22982_s21 + $0x64] sm:$0x1] }
  0x2d   : > { %29110 = vst [vmem:[#allocation10_spill] sm:$0xff] %v23053_v63  ;;  %19051 = vmatmul.mubr.msk.bf16.vlgmr.msra.gmra.mrb[0].mxu0 %vm908_vm3, %v23053_v63  ;;  %v504_v28 = vrot.slane %v502_v19, 4  ;;  %v507_v29 = vrot.slane %v505_v20, 5  ;;  %v511_v30 = vshll.u32 %v23068_v12, 16  ;;  %v516_v35 = vshrl.u32 %v23081_v21, 16  ;;  %29115 = vst [vmem:[#allocation15_spill] sm:$0xff] %v23108_v46 }
  0x2e   : > { %v23075_v16 = vsel %vm23014_vm2, %v467_v7, %v471_v55  ;;  %19083 = vmatpush3.bf16.msra.mxu0 %v22976_v1  ;;  %v499_v1 = vrot.slane %v497_v15, 5  ;;  %v481_v31 = vrot.slane %v480_v23, 4  ;;  %v494_v33 = vor.u32 %v493_v25, %v490_v24  ;;  %v23121_v0 = vld [vmem:[%s22982_s21 + $0x68] sm:$0xf]  ;;  %v23130_v9 = vld [vmem:[%s22982_s21 + $0x6c] sm:$0x1] }
  0x2f   : > { %29111 = vst [vmem:[#allocation11_spill] sm:$0xff] %v23075_v16  ;;  %19116 = vmatprep.subr.bf16.mxu0 %v23062_v5  ;;  %v519_v36 = vshll.u32 %v23081_v21, 16  ;;  %v508_v37 = vor.u32 %v507_v29, %v504_v28  ;;  %v513_v38 = vrot.slane %v511_v30, 5  ;;  %v525_v39 = vshll.u32 %v23086_v26, 16  ;;  %29119 = vst [vmem:[#allocation19_spill] sm:$0xff] %v23130_v9 }
  0x30   : > { %v530_v40 = vshrl.u32 %v23089_v27, 16  ;;  %v23105_v42 = vsel %vm23014_vm2, %v481_v31, %v485_v17  ;;  %v495_v43 = vrot.slane %v494_v33, 4  ;;  %v518_v44 = vrot.slane %v516_v35, 4  ;;  %v23140_v20 = vld [vmem:[%s22982_s21 + $0x70] sm:$0xf] }
  0x31   : > { %29114 = vst [vmem:[#allocation14_spill] sm:$0xff] %v23105_v42  ;;  %v521_v45 = vrot.slane %v519_v36, 5  ;;  %v23112_v47 = vcombine.low %v23075_v16, %v23105_v42  ;;  %v509_v48 = vrot.slane %v508_v37, 4  ;;  %v527_v52 = vrot.slane %v525_v39, 5  ;;  %v23144_v28 = vld [vmem:[%s22982_s21 + $0x74] sm:$0x1] }
  0x32   : > { %v532_v53 = vrot.slane %v530_v40, 4  ;;  %v23116_v54 = vsel %vm23014_vm2, %v495_v43, %v499_v1  ;;  %v533_v58 = vshll.u32 %v23089_v27, 16  ;;  %v539_v60 = vshll.u32 %v23094_v34, 16  ;;  %29121 = vst [vmem:[#allocation21_spill] sm:$0xff] %v23144_v28  ;;  %v23153_v35 = vld [vmem:[%s22982_s21 + $0x78] sm:$0xf] }
  0x33   : > { %29116 = vst [vmem:[#allocation16_spill] sm:$0xff] %v23112_v47  ;;  %29117 = vst [vmem:[#allocation17_spill] sm:$0xff] %v23116_v54  ;;  %v522_v55 = vor.u32 %v521_v45, %v518_v44  ;;  %19054 = vmatprep.mubr.msk.bf16.mxu0 %vm908_vm3, %v23112_v47  ;;  %v23127_v7 = vsel %vm23014_vm2, %v509_v48, %v513_v38  ;;  %v544_v10 = vshrl.u32 %v23101_v41, 16  ;;  %v547_v11 = vshll.u32 %v23101_v41, 16  ;;  %v23158_v45 = vld [vmem:[%s22982_s21 + $0x7c] sm:$0x1] }
  0x34   : > { %29118 = vst [vmem:[#allocation18_spill] sm:$0xff] %v23127_v7  ;;  %v553_v13 = vshll.u32 %v23108_v46, 16  ;;  %v23137_v14 = vcombine.low %v23116_v54, %v23127_v7  ;;  %v535_v17 = vrot.slane %v533_v58, 5  ;;  %v541_v19 = vrot.slane %v539_v60, 5  ;;  %29122 = vst [vmem:[#allocation22_spill] sm:$0xff] %v23158_v45 }
  0x35   : > { %v523_v15 = vrot.slane %v522_v55, 4  ;;  %v546_v23 = vrot.slane %v544_v10, 4  ;;  %v549_v24 = vrot.slane %v547_v11, 5  ;;  %v558_v1 = vshrl.u32 %v23121_v0, 16  ;;  %v23163_v60 = vld [vmem:[%s22982_s21 + $0x80] sm:$0xf] }
  0x36   : > { %29120 = vst [vmem:[#allocation20_spill] sm:$0xff] %v23137_v14  ;;  %v555_v25 = vrot.slane %v553_v13, 5  ;;  %19055 = vmatmul.mubr.msk.bf16.gmra.mrb[4].mxu0 %vm908_vm3, %v23137_v14  ;;  %v536_v30 = vor.u32 %v535_v17, %v532_v53  ;;  %v561_v31 = vshll.u32 %v23121_v0, 16  ;;  %v567_v33 = vshll.u32 %v23130_v9, 16  ;;  %v23171_v17 = vld [vmem:[%s22982_s21 + $0x84] sm:$0x1] }
  0x37   : > { %v528_v29 = vsel %vm23014_vm2, %v523_v15, %v527_v52  ;;  %v550_v36 = vor.u32 %v549_v24, %v546_v23  ;;  %v560_v37 = vrot.slane %v558_v1, 4  ;;  %v572_v38 = vshrl.u32 %v23140_v20, 16  ;;  %29124 = vst [vmem:[#allocation24_spill] sm:$0xff] %v23171_v17  ;;  %v23174_v23 = vld [vmem:[%s22982_s21 + $0x88] sm:$0xf] }
  0x38   : > { %v575_v39 = vshll.u32 %v23140_v20, 16  ;;  %v537_v40 = vrot.slane %v536_v30, 4  ;;  %v563_v43 = vrot.slane %v561_v31, 5  ;;  %v569_v44 = vrot.slane %v567_v33, 5  ;;  %v23219_v59 = vld [vmem:[%s22982_s21 + $0xac] sm:$0x1] }
  0x39   : > { %v581_v48 = vshll.u32 %v23144_v28, 16  ;;  %v551_v52 = vrot.slane %v550_v36, 4  ;;  %v574_v53 = vrot.slane %v572_v38, 4  ;;  %v586_v58 = vshrl.u32 %v23153_v35, 16  ;;  %v23188_v38 = vld [vmem:[%s22982_s21 + $0x8c] sm:$0x1] }
  0x3a   : > { %v577_v55 = vrot.slane %v575_v39, 5  ;;  %v23167_v10 = vsel %vm23014_vm2, %v537_v40, %v541_v19  ;;  %v564_v11 = vor.u32 %v563_v43, %v560_v37  ;;  %v589_v15 = vshll.u32 %v23153_v35, 16  ;;  %29127 = vst [vmem:[#allocation27_spill] sm:$0xff] %v23188_v38  ;;  %29131 = vst [vmem:[#allocation31_spill] sm:$0xff] %v23219_v59  ;;  %v23237_v63 = vld [vmem:[%s22982_s21 + $0xb4] sm:$0x1] }
  0x3b   : > { %29123 = vst [vmem:[#allocation23_spill] sm:$0xff] %v23167_v10  ;;  %v583_v13 = vrot.slane %v581_v48, 5  ;;  %v23177_v24 = vcombine.low %v528_v29, %v23167_v10  ;;  %v23181_v1 = vsel %vm23014_vm2, %v551_v52, %v555_v25  ;;  %v588_v19 = vrot.slane %v586_v58, 4  ;;  %v23201_v58 = vld [vmem:[%s22982_s21 + $0xa4] sm:$0x1]  ;;  %29134 = vst [vmem:[#allocation34_spill] sm:$0xff] %v23237_v63 }
  0x3c   : > { %29126 = vst [vmem:[#allocation26_spill] sm:$0xff] %v23181_v1  ;;  %v578_v30 = vor.u32 %v577_v55, %v574_v53  ;;  %v565_v31 = vrot.slane %v564_v11, 4  ;;  %v591_v33 = vrot.slane %v589_v15, 5  ;;  %v595_v36 = vshll.u32 %v23158_v45, 16  ;;  %v23198_v55 = vld [vmem:[%s22982_s21 + $0xa0] sm:$0xf] }
  0x3d   : > { %29125 = vst [vmem:[#allocation25_spill] sm:$0xff] %v23177_v24  ;;  %v600_v37 = vshrl.u32 %v23163_v60, 16  ;;  %19058 = vmatprep.mubr.msk.bf16.mxu0 %vm908_vm3, %v23177_v24  ;;  %v603_v25 = vshll.u32 %v23163_v60, 16  ;;  %v609_v39 = vshll.u32 %v23171_v17, 16  ;;  %v614_v40 = vshrl.u32 %v23174_v23, 16 }
  0x3e   : > { %v579_v29 = vrot.slane %v578_v30, 4  ;;  %v23195_v43 = vsel %vm23014_vm2, %v565_v31, %v569_v44  ;;  %v592_v48 = vor.u32 %v591_v33, %v588_v19  ;;  %v597_v52 = vrot.slane %v595_v36, 5  ;;  %v23212_v44 = vld [vmem:[%s22982_s21 + $0xa8] sm:$0xf]  ;;  %v23260_v10 = vld [vmem:[%s22982_s21 + $0xc4] sm:$0x1] }
  0x3f   : > { %29128 = vst [vmem:[#allocation28_spill] sm:$0xff] %v23195_v43  ;;  %v602_v53 = vrot.slane %v600_v37, 4  ;;  %v23205_v11 = vcombine.low %v23181_v1, %v23195_v43  ;;  %v605_v30 = vrot.slane %v603_v25, 5  ;;  %v611_v22 = vrot.slane %v609_v39, 5  ;;  %29137 = vst [vmem:[#allocation37_spill] sm:$0xff] %v23260_v10 }
  0x40   : > { %v23209_v15 = vsel %vm23014_vm2, %v579_v29, %v583_v13  ;;  %v593_v19 = vrot.slane %v592_v48, 4  ;;  %v616_v31 = vrot.slane %v614_v40, 4  ;;  %v617_v33 = vshll.u32 %v23174_v23, 16  ;;  %v23278_v42 = vld [vmem:[%s22982_s21 + $0xcc] sm:$0x1] }
  0x41   : > { %29129 = vst [vmem:[#allocation29_spill] sm:$0xff] %v23205_v11  ;;  %29130 = vst [vmem:[#allocation30_spill] sm:$0xff] %v23209_v15  ;;  %v623_v36 = vshll.u32 %v23188_v38, 16  ;;  %19059 = vmatmul.mubr.msk.bf16.gmra.mrb[8].mxu0 %vm908_vm3, %v23205_v11  ;;  %v606_v37 = vor.u32 %v605_v30, %v602_v53  ;;  %v628_v13 = vshrl.u32 %v23198_v55, 16  ;;  %v631_v29 = vshll.u32 %v23198_v55, 16 }
  0x42   : > { %v637_v25 = vshll.u32 %v23201_v58, 16  ;;  %v23226_v39 = vsel %vm23014_vm2, %v593_v19, %v597_v52  ;;  %v619_v40 = vrot.slane %v617_v33, 5  ;;  %v642_v24 = vshrl.u32 %v23212_v44, 16  ;;  %v23230_v11 = vld [vmem:[%s22982_s21 + $0xb0] sm:$0xf]  ;;  %29140 = vst [vmem:[#allocation40_spill] sm:$0xff] %v23278_v42 }
  0x43   : > { %29132 = vst [vmem:[#allocation32_spill] sm:$0xff] %v23226_v39  ;;  %v625_v48 = vrot.slane %v623_v36, 5  ;;  %v23234_v53 = vcombine.low %v23209_v15, %v23226_v39  ;;  %v607_v30 = vrot.slane %v606_v37, 4  ;;  %v630_v14 = vrot.slane %v628_v13, 4  ;;  %v23241_v36 = vld [vmem:[%s22982_s21 + $0xb8] sm:$0xf] }
  0x44   : > { %v633_v47 = vrot.slane %v631_v29, 5  ;;  %v620_v43 = vor.u32 %v619_v40, %v616_v31  ;;  %v639_v52 = vrot.slane %v637_v25, 5  ;;  %v644_v19 = vrot.slane %v642_v24, 4  ;;  %v23251_v29 = vld [vmem:[%s22982_s21 + $0xbc] sm:$0x1] }
  0x45   : > { %29133 = vst [vmem:[#allocation33_spill] sm:$0xff] %v23234_v53  ;;  %v645_v33 = vshll.u32 %v23212_v44, 16  ;;  %19062 = vmatprep.mubr.msk.bf16.mxu0 %vm908_vm3, %v23234_v53  ;;  %v23247_v39 = vsel %vm23014_vm2, %v607_v30, %v611_v22  ;;  %v651_v13 = vshll.u32 %v23219_v59, 16  ;;  %29136 = vst [vmem:[#allocation36_spill] sm:$0xff] %v23251_v29  ;;  %v656_v31 = vshrl.u32 %v23230_v11, 16 }
  0x46   : > { %29135 = vst [vmem:[#allocation35_spill] sm:$0xff] %v23247_v39  ;;  %v634_v37 = vor.u32 %v633_v47, %v630_v14  ;;  %v23255_v25 = vld [vmem:[%s22982_s21 + $0xc0] sm:$0xf]  ;;  %v621_v24 = vrot.slane %v620_v43, 4  ;;  %v659_v15 = vshll.u32 %v23230_v11, 16  ;;  %v665_v53 = vshll.u32 %v23237_v63, 16 }
  0x47   : > { %v647_v40 = vrot.slane %v645_v33, 5  ;;  %v23263_v22 = vld [vmem:[%s22982_s21 + $0xc8] sm:$0xf]  ;;  %v653_v14 = vrot.slane %v651_v13, 5  ;;  %v658_v30 = vrot.slane %v656_v31, 4  ;;  %v670_v1 = vshrl.u32 %v23241_v36, 16 }
  0x48   : > { %v635_v47 = vrot.slane %v634_v37, 4  ;;  %v23268_v7 = vsel %vm23014_vm2, %v621_v24, %v625_v48  ;;  %v661_v33 = vrot.slane %v659_v15, 5  ;;  %v667_v16 = vrot.slane %v665_v53, 5  ;;  %v23283_v53 = vld [vmem:[%s22982_s21 + $0xd0] sm:$0xf] }
  0x49   : > { %29138 = vst [vmem:[#allocation38_spill] sm:$0xff] %v23268_v7  ;;  %v648_v43 = vor.u32 %v647_v40, %v644_v19  ;;  %v23272_v57 = vcombine.low %v23247_v39, %v23268_v7  ;;  %v672_v13 = vrot.slane %v670_v1, 4  ;;  %v673_v31 = vshll.u32 %v23241_v36, 16  ;;  %v23338_v17 = vld [vmem:[%s22982_s21 + $0xfc] sm:$0x1] }
  0x4a   : > { %v640_v37 = vsel %vm23014_vm2, %v635_v47, %v639_v52  ;;  %v662_v48 = vor.u32 %v661_v33, %v658_v30  ;;  %v679_v19 = vshll.u32 %v23251_v29, 16  ;;  %v684_v15 = vshrl.u32 %v23255_v25, 16  ;;  %v23291_v47 = vld [vmem:[%s22982_s21 + $0xd4] sm:$0x1]  ;;  %v23294_v30 = vld [vmem:[%s22982_s21 + $0xd8] sm:$0xf] }
  0x4b   : > { %29139 = vst [vmem:[#allocation39_spill] sm:$0xff] %v23272_v57  ;;  %v649_v54 = vrot.slane %v648_v43, 4  ;;  %19063 = vmatmul.mubr.msk.bf16.gmra.mrb[12].mxu0 %vm908_vm3, %v23272_v57  ;;  %v675_v24 = vrot.slane %v673_v31, 5  ;;  %v687_v40 = vshll.u32 %v23255_v25, 16  ;;  %v693_v1 = vshll.u32 %v23260_v10, 16  ;;  %29141 = vst [vmem:[#allocation41_spill] sm:$0xff] %v23291_v47 }
  0x4c   : > { %v698_v52 = vshrl.u32 %v23263_v22, 16  ;;  %v663_v33 = vrot.slane %v662_v48, 4  ;;  %v681_v7 = vrot.slane %v679_v19, 5  ;;  %v686_v57 = vrot.slane %v684_v15, 4  ;;  %v23310_v48 = vld [vmem:[%s22982_s21 + $0xdc] sm:$0x1] }
  0x4d   : > { %v23298_v43 = vsel %vm23014_vm2, %v649_v54, %v653_v14  ;;  %v676_v39 = vor.u32 %v675_v24, %v672_v13  ;;  %v689_v51 = vrot.slane %v687_v40, 5  ;;  %v695_v49 = vrot.slane %v693_v1, 5  ;;  %29145 = vst [vmem:[#allocation45_spill] sm:$0xff] %v23310_v48  ;;  %v23317_v24 = vld [vmem:[%s22982_s21 + $0xf0] sm:$0xf]  ;;  %29148 = vst [vmem:[#allocation48_spill] sm:$0xff] %v23338_v17 }
  0x4e   : > { %29142 = vst [vmem:[#allocation42_spill] sm:$0xff] %v23298_v43  ;;  %v23301_v31 = vcombine.low %v640_v37, %v23298_v43  ;;  %v23305_v10 = vsel %vm23014_vm2, %v663_v33, %v667_v16  ;;  %v700_v29 = vrot.slane %v698_v52, 4  ;;  %v701_v54 = vshll.u32 %v23263_v22, 16  ;;  %v23322_v33 = vld [vmem:[%s22982_s21 + $0xf4] sm:$0x1] }
  0x4f   : > { %29144 = vst [vmem:[#allocation44_spill] sm:$0xff] %v23305_v10  ;;  %v707_v14 = vshll.u32 %v23278_v42, 16  ;;  %v677_v37 = vrot.slane %v676_v39, 4  ;;  %v690_v13 = vor.u32 %v689_v51, %v686_v57  ;;  %v712_v19 = vshrl.u32 %v23283_v53, 16  ;;  %v23325_v43 = vld [vmem:[%s22982_s21 + $0xf8] sm:$0xf] }
  0x50   : > { %29143 = vst [vmem:[#allocation43_spill] sm:$0xff] %v23301_v31  ;;  %19066 = vmatprep.mubr.msk.bf16.mxu0 %vm908_vm3, %v23301_v31  ;;  %v715_v15 = vshll.u32 %v23283_v53, 16  ;;  %v703_v16 = vrot.slane %v701_v54, 5  ;;  %v721_v1 = vshll.u32 %v23291_v47, 16  ;;  %v726_v52 = vshrl.u32 %v23294_v30, 16 }
  0x51   : > { %v709_v40 = vrot.slane %v707_v14, 5  ;;  %v23329_v51 = vsel %vm23014_vm2, %v677_v37, %v681_v7  ;;  %v691_v57 = vrot.slane %v690_v13, 4  ;;  %v714_v39 = vrot.slane %v712_v19, 4  ;;  %v23341_v7 = vld [vmem:[%s22982_s21 + $0x100] sm:$0xf] }
  0x52   : > { %29146 = vst [vmem:[#allocation46_spill] sm:$0xff] %v23329_v51  ;;  %v717_v31 = vrot.slane %v715_v15, 5  ;;  %v23333_v54 = vcombine.low %v23305_v10, %v23329_v51  ;;  %v704_v14 = vor.u32 %v703_v16, %v700_v29  ;;  %v723_v47 = vrot.slane %v721_v1, 5  ;;  %v23352_v19 = vld [vmem:[%s22982_s21 + $0x104] sm:$0x1] }
  0x53   : > { %v728_v42 = vrot.slane %v726_v52, 4  ;;  %v729_v59 = vshll.u32 %v23294_v30, 16  ;;  %v735_v38 = vshll.u32 %v23310_v48, 16  ;;  %v23347_v37 = vsel %vm23014_vm2, %v691_v57, %v695_v49  ;;  %29150 = vst [vmem:[#allocation50_spill] sm:$0xff] %v23352_v19  ;;  %v23355_v15 = vld [vmem:[%s22982_s21 + $0x108] sm:$0xf] }
  0x54   : > { %29147 = vst [vmem:[#allocation47_spill] sm:$0xff] %v23333_v54  ;;  %v718_v63 = vor.u32 %v717_v31, %v714_v39  ;;  %19067 = vmatmul.mubr.msk.bf16.gmra.mrb[16].mxu0 %vm908_vm3, %v23333_v54  ;;  %29149 = vst [vmem:[#allocation49_spill] sm:$0xff] %v23347_v37  ;;  %v705_v13 = vrot.slane %v704_v14, 4  ;;  %v740_v29 = vshrl.u32 %v23317_v24, 16  ;;  %v743_v31 = vshll.u32 %v23317_v24, 16 }
  0x55   : > { %v731_v1 = vrot.slane %v729_v59, 5  ;;  %v749_v52 = vshll.u32 %v23322_v33, 16  ;;  %v754_v39 = vshrl.u32 %v23325_v43, 16  ;;  %v737_v57 = vrot.slane %v735_v38, 5  ;;  %v23374_v38 = vld [vmem:[%s22982_s21 + $0x10c] sm:$0x1] }
  0x56   : > { %v719_v16 = vrot.slane %v718_v63, 4  ;;  %v23361_v49 = vsel %vm23014_vm2, %v705_v13, %v709_v40  ;;  %v742_v14 = vrot.slane %v740_v29, 4  ;;  %v745_v54 = vrot.slane %v743_v31, 5  ;;  %29154 = vst [vmem:[#allocation54_spill] sm:$0xff] %v23374_v38  ;;  %v23378_v29 = vld [vmem:[%s22982_s21 + $0x110] sm:$0xf] }
  0x57   : > { %29151 = vst [vmem:[#allocation51_spill] sm:$0xff] %v23361_v49  ;;  %v23365_v51 = vcombine.low %v23347_v37, %v23361_v49  ;;  %v732_v63 = vor.u32 %v731_v1, %v728_v42  ;;  %v756_v10 = vrot.slane %v754_v39, 4  ;;  %v757_v45 = vshll.u32 %v23325_v43, 16  ;;  %v23389_v37 = vld [vmem:[%s22982_s21 + $0x114] sm:$0x1] }
  0x58   : > { %v23369_v59 = vsel %vm23014_vm2, %v719_v16, %v723_v47  ;;  %v746_v48 = vor.u32 %v745_v54, %v742_v14  ;;  %v763_v40 = vshll.u32 %v23338_v17, 16  ;;  %v768_v13 = vshrl.u32 %v23341_v7, 16  ;;  %v23386_v16 = vld [vmem:[%s22982_s21 + $0x118] sm:$0xf]  ;;  %29155 = vst [vmem:[#allocation55_spill] sm:$0xff] %v23389_v37 }
  0x59   : > { %29152 = vst [vmem:[#allocation52_spill] sm:$0xff] %v23365_v51  ;;  %29153 = vst [vmem:[#allocation53_spill] sm:$0xff] %v23369_v59  ;;  %19070 = vmatprep.mubr.msk.bf16.mxu0 %vm908_vm3, %v23365_v51  ;;  %v733_v31 = vrot.slane %v732_v63, 4  ;;  %v771_v47 = vshll.u32 %v23341_v7, 16  ;;  %v777_v42 = vshll.u32 %v23352_v19, 16  ;;  %v782_v54 = vshrl.u32 %v23355_v15, 16 }
  0x5a   : > { %v747_v1 = vrot.slane %v746_v48, 4  ;;  %v751_v39 = vrot.slane %v749_v52, 5  ;;  %v759_v14 = vrot.slane %v757_v45, 5  ;;  %v770_v49 = vrot.slane %v768_v13, 4  ;;  %v23402_v46 = vld [vmem:[%s22982_s21 + $0x11c] sm:$0x1] }
  0x5b   : > { %v23393_v51 = vsel %vm23014_vm2, %v733_v31, %v737_v57  ;;  %v765_v63 = vrot.slane %v763_v40, 5  ;;  %v773_v17 = vrot.slane %v771_v47, 5  ;;  %v779_v28 = vrot.slane %v777_v42, 5  ;;  %v23407_v31 = vld [vmem:[%s22982_s21 + $0x120] sm:$0xf] }
  0x5c   : > { %29156 = vst [vmem:[#allocation56_spill] sm:$0xff] %v23393_v51  ;;  %v23397_v19 = vcombine.low %v23369_v59, %v23393_v51  ;;  %v760_v9 = vor.u32 %v759_v14, %v756_v10  ;;  %v784_v48 = vrot.slane %v782_v54, 4  ;;  %v785_v45 = vshll.u32 %v23355_v15, 16 }
  0x5d   : > { %v774_v52 = vor.u32 %v773_v17, %v770_v49  ;;  %v791_v13 = vshll.u32 %v23374_v38, 16  ;;  %v796_v57 = vshrl.u32 %v23378_v29, 16  ;;  %v799_v40 = vshll.u32 %v23378_v29, 16  ;;  %v23415_v49 = vld [vmem:[%s22982_s21 + $0x128] sm:$0xf] }
  0x5e   : > { %29157 = vst [vmem:[#allocation57_spill] sm:$0xff] %v23397_v19  ;;  %19071 = vmatmul.mubr.msk.bf16.gmra.mrb[20].mxu0 %vm908_vm3, %v23397_v19  ;;  %v752_v10 = vsel %vm23014_vm2, %v747_v1, %v751_v39  ;;  %v761_v47 = vrot.slane %v760_v9, 4  ;;  %v787_v42 = vrot.slane %v785_v45, 5  ;;  %v810_v17 = vshrl.u32 %v23386_v16, 16  ;;  %v23419_v38 = vld [vmem:[%s22982_s21 + $0x124] sm:$0x1] }
  0x5f   : > { %v775_v54 = vrot.slane %v774_v52, 4  ;;  %v798_v14 = vrot.slane %v796_v57, 4  ;;  %v801_v51 = vrot.slane %v799_v40, 5  ;;  %v805_v59 = vshll.u32 %v23389_v37, 16  ;;  %v23434_v40 = vld [vmem:[%s22982_s21 + $0x12c] sm:$0x1] }
  0x60   : > { %v23423_v19 = vsel %vm23014_vm2, %v761_v47, %v765_v63  ;;  %v788_v34 = vor.u32 %v787_v42, %v784_v48  ;;  %v793_v1 = vrot.slane %v791_v13, 5  ;;  %v812_v9 = vrot.slane %v810_v17, 4 }
  0x61   : > { %29158 = vst [vmem:[#allocation58_spill] sm:$0xff] %v23423_v19  ;;  %v23426_v39 = vcombine.low %v752_v10, %v23423_v19  ;;  %v23430_v45 = vsel %vm23014_vm2, %v775_v54, %v779_v28  ;;  %v802_v52 = vor.u32 %v801_v51, %v798_v14  ;;  %v813_v57 = vshll.u32 %v23386_v16, 16 }
  0x62   : > { %29160 = vst [vmem:[#allocation60_spill] sm:$0xff] %v23430_v45  ;;  %v789_v37 = vrot.slane %v788_v34, 4  ;;  %v819_v26 = vshll.u32 %v23402_v46, 16  ;;  %v824_v63 = vshrl.u32 %v23407_v31, 16  ;;  %v827_v48 = vshll.u32 %v23407_v31, 16 }
  0x63   : > { %29159 = vst [vmem:[#allocation59_spill] sm:$0xff] %v23426_v39  ;;  %19074 = vmatprep.mubr.msk.bf16.mxu0 %vm908_vm3, %v23426_v39  ;;  %v803_v13 = vrot.slane %v802_v52, 4  ;;  %v807_v10 = vrot.slane %v805_v59, 5  ;;  %v815_v47 = vrot.slane %v813_v57, 5  ;;  %v838_v28 = vshrl.u32 %v23415_v49, 16 }
  0x64   : > { %v23444_v51 = vsel %vm23014_vm2, %v789_v37, %v793_v1  ;;  %v826_v42 = vrot.slane %v824_v63, 4  ;;  %v829_v34 = vrot.slane %v827_v48, 5  ;;  %v833_v17 = vshll.u32 %v23419_v38, 16 }
  0x65   : > { %29161 = vst [vmem:[#allocation61_spill] sm:$0xff] %v23444_v51  ;;  %v23449_v54 = vcombine.low %v23430_v45, %v23444_v51  ;;  %v816_v14 = vor.u32 %v815_v47, %v812_v9  ;;  %v821_v19 = vrot.slane %v819_v26, 5  ;;  %v840_v52 = vrot.slane %v838_v28, 4 }
  0x66   : > { %v830_v39 = vor.u32 %v829_v34, %v826_v42  ;;  %v841_v59 = vshll.u32 %v23415_v49, 16  ;;  %v847_v57 = vshll.u32 %v23434_v40, 16  ;;  %v23457_v37 = vsel %vm23014_vm2, %v803_v13, %v807_v10 }
  0x67   : > { %29162 = vst [vmem:[#allocation62_spill] sm:$0xff] %v23449_v54  ;;  %19075 = vmatmul.mubr.msk.bf16.gmra.mrb[24].mxu0 %vm908_vm3, %v23449_v54  ;;  %29163 = vst [vmem:[#allocation63_spill] sm:$0xff] %v23457_v37  ;;  %v817_v1 = vrot.slane %v816_v14, 4  ;;  %v835_v48 = vrot.slane %v833_v17, 5  ;;  %v1514_v42 = vrot.slane %v23201_v58, 5  ;;  %v29171_v34 = vmov 0 }
  0x68   : > { %v831_v63 = vrot.slane %v830_v39, 4  ;;  %v843_v51 = vrot.slane %v841_v59, 5  ;;  %v849_v45 = vrot.slane %v847_v57, 5  ;;  %v29172_v34 = vsel %vm23501_vm6, 4294967295, %v29171_v34  ;;  %v23616_v54 = vld [vmem:[%s22982_s21 + $0x18] sm:$0xf] }
  0x69   : > { %v23461_v26 = vsel %vm23014_vm2, %v817_v1, %v821_v19  ;;  %v16625_v19 = vcombine.low %v22985_v2, %v22989_v4  ;;  %v23497_v2 = vld [vmem:[%s28594_s1 + $0x18] sm:$0xff]   ;;  %v16674_v4 = vrot.slane %v23198_v55, 9  ;;  %29173 = vst [vmem:[#allocation71_spill] sm:$0xff] %v29172_v34  ;;  %v16682_v58 = vrot.slane %v23317_v24, 9 }
  0x6a   : > { %29164 = vst [vmem:[#allocation64_spill] sm:$0xff] %v23461_v26  ;;  %v23465_v9 = vcombine.low %v23457_v37, %v23461_v26  ;;  %v844_v47 = vor.u32 %v843_v51, %v840_v52  ;;  %v23471_v13 = vsel %vm23014_vm2, %v831_v63, %v835_v48  ;;  %v23488_v51 = vcombine.low %v22993_v6, %v22997_v8 }
  0x6b   : > { %29166 = vst [vmem:[#allocation66_spill] sm:$0xff] %v23471_v13  ;;  %v23512_v6 = vsel %vm23501_vm6, %v16674_v4, %v1514_v42  ;;  %v23517_v8 = vcombine.low %v23046_v61, %v23057_v3  ;;  %v23535_v14 = vcombine.low %v23101_v41, %v23121_v0  ;;  %v23539_v52 = vcombine.low %v23140_v20, %v23153_v35  ;;  %v22755_v42 = vld [vmem:[%s22982_s21] sm:$0xf] }
  0x6c   : > { %29165 = vst [vmem:[#allocation65_spill] sm:$0xff] %v23465_v9  ;;  %19078 = vmatprep.mubr.msk.bf16.mxu0 %vm908_vm3, %v23465_v9  ;;  %v845_v39 = vrot.slane %v844_v47, 4  ;;  %29169 = vst [vmem:[#allocation69_spill] sm:$0xff] %v23488_v51  ;;  %v23551_v59 = vcombine.low %v23198_v55, %v23212_v44  ;;  %v23559_v57 = vcombine.low %v23230_v11, %v23241_v36 }
  0x6d   : > { %29174 = vst [vmem:[#allocation72_spill] sm:$0xff] %v23517_v8  ;;  %29176 = vst [vmem:[#allocation74_spill] sm:$0xff] %v23535_v14  ;;  %v23563_v1 = vcombine.low %v23255_v25, %v23263_v22  ;;  %v23571_v55 = vcombine.low %v23283_v53, %v23294_v30  ;;  %v23575_v63 = vcombine.low %v23317_v24, %v23325_v43  ;;  %v22754_v24 = vld [vmem:[%s22982_s21 + $0xc] sm:$0x1] }
  0x6e   : > { %v23475_v10 = vsel %vm23014_vm2, %v845_v39, %v849_v45  ;;  %v23492_v45 = vcombine.low %v23007_v18, %v23027_v50  ;;  %v23521_v18 = vcombine.low %v23081_v21, %v23089_v27  ;;  %29177 = vst [vmem:[#allocation75_spill] sm:$0xff] %v23539_v52  ;;  %29179 = vst [vmem:[#allocation77_spill] sm:$0xff] %v23551_v59  ;;  %v22753_v39 = vld [vmem:[%s22982_s21 + $0x4] sm:$0x1]  ;;  %v1454_v4 = vrot.slane %v22754_v24, 5 }
  0x6f   : > { %29167 = vst [vmem:[#allocation67_spill] sm:$0xff] %v23475_v10  ;;  %v23481_v28 = vcombine.low %v23471_v13, %v23475_v10  ;;  %29180 = vst [vmem:[#allocation78_spill] sm:$0xff] %v23559_v57  ;;  %v23583_v48 = vcombine.low %v23341_v7, %v23355_v15  ;;  %v23587_v47 = vcombine.low %v23378_v29, %v23386_v16 }
  0x70   : > { %29170 = vst [vmem:[#allocation70_spill] sm:$0xff] %v23492_v45  ;;  %29175 = vst [vmem:[#allocation73_spill] sm:$0xff] %v23521_v18 }
  0x71   : > { %29168 = vst [vmem:[#allocation68_spill] sm:$0xff] %v23481_v28  ;;  %19079 = vmatmul.mubr.msk.bf16.gmra.mrb[28].mxu0 %vm908_vm3, %v23481_v28  ;;  %29181 = vst [vmem:[#allocation79_spill] sm:$0xff] %v23563_v1  ;;  %v22758_v28 = vld [vmem:[%s22982_s21 + $0x14] sm:$0x1] }
  0x72   : > { %19084 = vmatprep.mubr.msk.bf16.mxu0 %vm908_vm3, %v16625_v19  ;;  %29182 = vst [vmem:[#allocation80_spill] sm:$0xff] %v23571_v55  ;;  %29183 = vst [vmem:[#allocation81_spill] sm:$0xff] %v23575_v63  ;;  %v1450_v19 = vrot.slane %v22753_v39, 5  ;;  %v1458_v9 = vrot.slane %v22758_v28, 5 }
  0x73   : > { %29184 = vst [vmem:[#allocation82_spill] sm:$0xff] %v23583_v48  ;;  %29185 = vst [vmem:[#allocation83_spill] sm:$0xff] %v23587_v47 }
  0x79   : > { %19085 = vmatmul.mubr.msk.bf16.vlgmr.msra.gmra.mrb[0].mxu0 %vm908_vm3, %v23488_v51  ;;  %v1566_v51 = vrot.slane %v23402_v46, 5 }
  0x7a   : > { %19117 = vmatpush3.bf16.msra.mxu0 %v23062_v5  ;;  %19088 = vmatprep.mubr.msk.bf16.mxu0 %vm908_vm3, %v23492_v45  ;;  %v1546_v5 = vrot.slane %v23322_v33, 5  ;;  %v23547_v33 = vcombine.low %v23163_v60, %v23174_v23  ;;  %v16687_v45 = vrot.slane %v23386_v16, 9 }
  0x7b   : > { %19150 = vmatprep.subr.bf16.mxu0 %v23497_v2 }
  0x7c   : > { %v23529_v17 = vsel %vm23501_vm6, %v16682_v58, %v1546_v5  ;;  %29178 = vst [vmem:[#allocation76_spill] sm:$0xff] %v23547_v33  ;;  %v16658_v58 = vrot.slane %v22755_v42, 9  ;;  %v23593_v5 = vld [vmem:[%s22982_s21 + $0x8] sm:$0xf]  ;;  %v23607_v42 = vld [vmem:[%s22982_s21 + $0x10] sm:$0xf]  ;;  %v23853_v46 = vsel %vm23501_vm6, %v16687_v45, %v1566_v51 }
  0x7e   : > { %v1451_v39 = vsel %vm23501_vm6, %v16658_v58, %v1450_v19 }
  0x81   : > { %19089 = vmatmul.mubr.msk.bf16.gmra.mrb[4].mxu0 %vm908_vm3, %v23517_v8  ;;  %v16686_v8 = vrot.slane %v23378_v29, 9 }
  0x82   : > { %19092 = vmatprep.mubr.msk.bf16.mxu0 %vm908_vm3, %v23521_v18  ;;  %v23612_v18 = vcombine.low %v23407_v31, %v23415_v49 }
  0x84   : > { %29186 = vst [vmem:[#allocation84_spill] sm:$0xff] %v23612_v18 }
  0x89   : > { %19093 = vmatmul.mubr.msk.bf16.gmra.mrb[8].mxu0 %vm908_vm3, %v23535_v14  ;;  %v16685_v14 = vrot.slane %v23355_v15, 9 }
  0x8a   : > { %19096 = vmatprep.mubr.msk.bf16.mxu0 %vm908_vm3, %v23539_v52 }
  0x91   : > { %19097 = vmatmul.mubr.msk.bf16.gmra.mrb[12].mxu0 %vm908_vm3, %v23547_v33  ;;  %v1470_v33 = vrot.slane %v23035_v56, 5 }
  0x92   : > { %19100 = vmatprep.mubr.msk.bf16.mxu0 %vm908_vm3, %v23551_v59  ;;  %v16660_v59 = vrot.slane %v23607_v42, 9 }
  0x94   : > { %v23632_v28 = vsel %vm23501_vm6, %v16660_v59, %v1458_v9  ;;  %v16664_v9 = vrot.slane %v23046_v61, 9  ;;  %v23666_v61 = vld [vmem:[%s28594_s1 + $0x20] sm:$0xff]  }
  0x99   : > { %19101 = vmatmul.mubr.msk.bf16.gmra.mrb[16].mxu0 %vm908_vm3, %v23559_v57  ;;  %v16663_v57 = vrot.slane %v23027_v50, 9 }
  0x9a   : > { %19104 = vmatprep.mubr.msk.bf16.mxu0 %vm908_vm3, %v23563_v1 }
  0x9b   : > { %v23645_v50 = vsel %vm23501_vm6, %v16663_v57, %v1470_v33  ;;  %v29189_v33 = vld [vmem:[#allocation12_spill] sm:$0xff] }
  0x9c   : > { %v1482_v57 = vrot.slane %v29189_v33, 5 }
  0xa1   : > { %19105 = vmatmul.mubr.msk.bf16.gmra.mrb[20].mxu0 %vm908_vm3, %v23571_v55  ;;  %v22762_v55 = vld [vmem:[%s22982_s21 + $0x24] sm:$0x1] }
  0xa2   : > { %19108 = vmatprep.mubr.msk.bf16.mxu0 %vm908_vm3, %v23575_v63  ;;  %v16659_v63 = vrot.slane %v23593_v5, 9  ;;  %v1466_v1 = vrot.slane %v22762_v55, 5 }
  0xa4   : > { %v23604_v24 = vsel %vm23501_vm6, %v16659_v63, %v1454_v4  ;;  %v23622_v63 = vld [vmem:[%s22982_s21 + $0x20] sm:$0xf] }
  0xa5   : > { %v16692_v58 = vcombine.low %v1451_v39, %v23604_v24  ;;  %v16662_v4 = vrot.slane %v23622_v63, 9  ;;  %v16665_v39 = vrot.slane %v23057_v3, 9 }
  0xa7   : > { %v23641_v55 = vsel %vm23501_vm6, %v16662_v4, %v1466_v1  ;;  %v1478_v1 = vrot.slane %v23068_v12, 5  ;;  %v29190_v4 = vld [vmem:[#allocation13_spill] sm:$0xff] }
  0xa8   : > { %v23654_v59 = vcombine.low %v23641_v55, %v23645_v50 }
  0xa9   : > { %19109 = vmatmul.mubr.msk.bf16.gmra.mrb[24].mxu0 %vm908_vm3, %v23583_v48  ;;  %v22760_v48 = vld [vmem:[%s22982_s21 + $0x1c] sm:$0x1]  ;;  %v23679_v3 = vsel %vm23501_vm6, %v16665_v39, %v1478_v1  ;;  %v16669_v1 = vrot.slane %v23121_v0, 9 }
  0xaa   : > { %19112 = vmatprep.mubr.msk.bf16.mxu0 %vm908_vm3, %v23587_v47  ;;  %v16661_v47 = vrot.slane %v23616_v54, 9  ;;  %v1462_v19 = vrot.slane %v22760_v48, 5  ;;  %29188 = vst [vmem:[#allocation86_spill] sm:$0xff] %v23654_v59 }
  0xac   : > { %v23636_v48 = vsel %vm23501_vm6, %v16661_v47, %v1462_v19  ;;  %v1474_v47 = vrot.slane %v23049_v62, 5  ;;  %v16666_v19 = vrot.slane %v23081_v21, 9 }
  0xad   : > { %v23649_v56 = vcombine.low %v23632_v28, %v23636_v48 }
  0xae   : > { %v23675_v62 = vsel %vm23501_vm6, %v16664_v9, %v1474_v47  ;;  %v1483_v12 = vsel %vm23501_vm6, %v16666_v19, %v1482_v57  ;;  %v29193_v47 = vld [vmem:[#allocation15_spill] sm:$0xff]  ;;  %v29195_v57 = vld [vmem:[#allocation21_spill] sm:$0xff] }
  0xaf   : > { %29187 = vst [vmem:[#allocation85_spill] sm:$0xff] %v23649_v56  ;;  %v1490_v39 = vrot.slane %v29193_v47, 5  ;;  %v29194_v19 = vld [vmem:[#allocation19_spill] sm:$0xff]  ;;  %v29199_v47 = vld [vmem:[#allocation24_spill] sm:$0xff] }
  0xb0   : > { %v1494_v33 = vrot.slane %v29194_v19, 5  ;;  %v29200_v19 = vld [vmem:[#allocation27_spill] sm:$0xff] }
  0xb1   : > { %19113 = vmatmul.mubr.msk.bf16.gmra.mrb[28].mxu0 %vm908_vm3, %v23612_v18  ;;  %v1486_v18 = vrot.slane %v29190_v4, 5  ;;  %v16671_v4 = vrot.slane %v23153_v35, 9 }
  0xb2   : > { %19118 = vmatprep.mubr.msk.bf16.mxu0 %vm908_vm3, %v16692_v58  ;;  %v16667_v58 = vrot.slane %v23089_v27, 9  ;;  %v23690_v27 = vcombine.low %v23675_v62, %v23679_v3  ;;  %v23713_v0 = vsel %vm23501_vm6, %v16669_v1, %v1494_v33  ;;  %v16673_v1 = vrot.slane %v23174_v23, 9 }
  0xb3   : > { %v1510_v33 = vrot.slane %v29200_v19, 5 }
  0xb4   : > { %v23685_v21 = vsel %vm23501_vm6, %v16667_v58, %v1486_v18  ;;  %29191 = vst [vmem:[#allocation12_spill] sm:$0xff] %v23690_v27  ;;  %v16670_v18 = vrot.slane %v23140_v20, 9  ;;  %v1498_v58 = vrot.slane %v29195_v57, 5 }
  0xb5   : > { %v23694_v9 = vcombine.low %v1483_v12, %v23685_v21  ;;  %v16672_v12 = vrot.slane %v23163_v60, 9 }
  0xb6   : > { %v23717_v20 = vsel %vm23501_vm6, %v16670_v18, %v1498_v58  ;;  %v16675_v18 = vrot.slane %v23212_v44, 9  ;;  %v23747_v58 = vsel %vm23501_vm6, %v16673_v1, %v1510_v33  ;;  %v29205_v1 = vld [vmem:[#allocation36_spill] sm:$0xff] }
  0xb7   : > { %29192 = vst [vmem:[#allocation13_spill] sm:$0xff] %v23694_v9  ;;  %v1526_v33 = vrot.slane %v29205_v1, 5 }
  0xb9   : > { %19119 = vmatmul.mubr.msk.bf16.vlgmr.msra.gmra.mrb[0].mxu0 %vm908_vm3, %v23649_v56 }
  0xba   : > { %19151 = vmatpush3.bf16.msra.mxu0 %v23497_v2  ;;  %19122 = vmatprep.mubr.msk.bf16.mxu0 %vm908_vm3, %v23654_v59  ;;  %v16668_v2 = vrot.slane %v23101_v41, 9  ;;  %v29196_v59 = vld [vmem:[#allocation22_spill] sm:$0xff] }
  0xbb   : > { %19184 = vmatprep.subr.bf16.mxu0 %v23666_v61  ;;  %v1502_v56 = vrot.slane %v29196_v59, 5 }
  0xbc   : > { %v23709_v41 = vsel %vm23501_vm6, %v16668_v2, %v1490_v39  ;;  %v1506_v39 = vrot.slane %v29199_v47, 5  ;;  %v16676_v47 = vrot.slane %v23230_v11, 9 }
  0xbd   : > { %v23721_v35 = vsel %vm23501_vm6, %v16671_v4, %v1502_v56  ;;  %v23725_v59 = vcombine.low %v23709_v41, %v23713_v0  ;;  %v29201_v56 = vld [vmem:[#allocation31_spill] sm:$0xff] }
  0xbe   : > { %v23730_v2 = vcombine.low %v23717_v20, %v23721_v35  ;;  %v1518_v57 = vrot.slane %v29201_v56, 5  ;;  %v23743_v60 = vsel %vm23501_vm6, %v16672_v12, %v1506_v39  ;;  %v29204_v12 = vld [vmem:[#allocation34_spill] sm:$0xff]  ;;  %v16677_v56 = vrot.slane %v23241_v36, 9 }
  0xbf   : > { %29197 = vst [vmem:[#allocation15_spill] sm:$0xff] %v23725_v59  ;;  %v23755_v4 = vcombine.low %v23743_v60, %v23747_v58  ;;  %v1522_v39 = vrot.slane %v29204_v12, 5 }
  0xc0   : > { %29198 = vst [vmem:[#allocation19_spill] sm:$0xff] %v23730_v2  ;;  %v23751_v23 = vsel %vm23501_vm6, %v16675_v18, %v1518_v57  ;;  %v29206_v18 = vld [vmem:[#allocation37_spill] sm:$0xff]  ;;  %v23779_v12 = vsel %vm23501_vm6, %v16677_v56, %v1526_v33  ;;  %v16681_v33 = vrot.slane %v23294_v30, 9 }
  0xc1   : > { %19123 = vmatmul.mubr.msk.bf16.gmra.mrb[4].mxu0 %vm908_vm3, %v23690_v27  ;;  %29202 = vst [vmem:[#allocation21_spill] sm:$0xff] %v23755_v4  ;;  %v23760_v19 = vcombine.low %v23512_v6, %v23751_v23  ;;  %v1530_v57 = vrot.slane %v29206_v18, 5  ;;  %v23775_v6 = vsel %vm23501_vm6, %v16676_v47, %v1522_v39  ;;  %v29210_v39 = vld [vmem:[#allocation41_spill] sm:$0xff] }
  0xc2   : > { %19126 = vmatprep.mubr.msk.bf16.mxu0 %vm908_vm3, %v23694_v9  ;;  %v16678_v9 = vrot.slane %v23255_v25, 9  ;;  %v23791_v18 = vcombine.low %v23775_v6, %v23779_v12  ;;  %v1538_v56 = vrot.slane %v29210_v39, 5 }
  0xc3   : > { %29203 = vst [vmem:[#allocation22_spill] sm:$0xff] %v23760_v19 }
  0xc4   : > { %v23783_v1 = vsel %vm23501_vm6, %v16678_v9, %v1530_v57  ;;  %29208 = vst [vmem:[#allocation24_spill] sm:$0xff] %v23791_v18  ;;  %v29211_v9 = vld [vmem:[#allocation45_spill] sm:$0xff] }
  0xc5   : > { %v1542_v57 = vrot.slane %v29211_v9, 5 }
  0xc7   : > { %v23813_v39 = vsel %vm23501_vm6, %v16681_v33, %v1542_v57  ;;  %v29215_v33 = vld [vmem:[#allocation54_spill] sm:$0xff] }
  0xc8   : > { %v1558_v57 = vrot.slane %v29215_v33, 5 }
  0xc9   : > { %19127 = vmatmul.mubr.msk.bf16.gmra.mrb[8].mxu0 %vm908_vm3, %v23725_v59  ;;  %v29207_v59 = vld [vmem:[#allocation40_spill] sm:$0xff] }
  0xca   : > { %19130 = vmatprep.mubr.msk.bf16.mxu0 %vm908_vm3, %v23730_v2  ;;  %v16679_v2 = vrot.slane %v23263_v22, 9  ;;  %v1534_v27 = vrot.slane %v29207_v59, 5 }
  0xcc   : > { %v23787_v59 = vsel %vm23501_vm6, %v16679_v2, %v1534_v27  ;;  %v29212_v27 = vld [vmem:[#allocation48_spill] sm:$0xff] }
  0xcd   : > { %v23796_v47 = vcombine.low %v23783_v1, %v23787_v59  ;;  %v1550_v2 = vrot.slane %v29212_v27, 5 }
  0xcf   : > { %29209 = vst [vmem:[#allocation27_spill] sm:$0xff] %v23796_v47 }
  0xd1   : > { %19131 = vmatmul.mubr.msk.bf16.gmra.mrb[12].mxu0 %vm908_vm3, %v23755_v4  ;;  %v16683_v4 = vrot.slane %v23325_v43, 9 }
  0xd2   : > { %19134 = vmatprep.mubr.msk.bf16.mxu0 %vm908_vm3, %v23760_v19  ;;  %v16680_v19 = vrot.slane %v23283_v53, 9 }
  0xd3   : > { %v23817_v9 = vsel %vm23501_vm6, %v16683_v4, %v1550_v2  ;;  %v29216_v4 = vld [vmem:[#allocation55_spill] sm:$0xff] }
  0xd4   : > { %v23809_v52 = vsel %vm23501_vm6, %v16680_v19, %v1538_v56  ;;  %v29214_v19 = vld [vmem:[#allocation50_spill] sm:$0xff]  ;;  %v1562_v2 = vrot.slane %v29216_v4, 5 }
  0xd5   : > { %v23821_v27 = vcombine.low %v23809_v52, %v23813_v39  ;;  %v1554_v56 = vrot.slane %v29214_v19, 5  ;;  %v23845_v19 = vsel %vm23501_vm6, %v16685_v14, %v1558_v57  ;;  %v1574_v57 = vrot.slane %v23434_v40, 5 }
  0xd6   : > { %v23849_v33 = vsel %vm23501_vm6, %v16686_v8, %v1562_v2  ;;  %v16689_v8 = vrot.slane %v23415_v49, 9  ;;  %v16727_v40 = vcombine.low %v23593_v5, %v23607_v42  ;;  %v16728_v2 = vcombine.low %v23616_v54, %v23622_v63  ;;  %v23899_v5 = vld [vmem:[%s22982_s21 + $0x40] sm:$0xf]  ;;  %v22765_v54 = vld [vmem:[%s22982_s21 + $0x38] sm:$0xf] }
  0xd7   : > { %v23862_v14 = vcombine.low %v23849_v33, %v23853_v46  ;;  %v16730_v42 = vcombine.low %v22765_v54, %v23899_v5  ;;  %v22766_v63 = vld [vmem:[%s22982_s21 + $0x58] sm:$0xf]  ;;  %v23923_v54 = vld [vmem:[%s22982_s21 + $0x90] sm:$0xf] }
  0xd8   : > { %v23877_v45 = vsel %vm23501_vm6, %v16689_v8, %v1574_v57  ;;  %v22628_v57 = vld [vmem:[%s28594_s1 + $0x28] sm:$0xff]  }
  0xd9   : > { %19135 = vmatmul.mubr.msk.bf16.gmra.mrb[16].mxu0 %vm908_vm3, %v23791_v18  ;;  %v16684_v18 = vrot.slane %v23341_v7, 9 }
  0xda   : > { %19138 = vmatprep.mubr.msk.bf16.mxu0 %vm908_vm3, %v23796_v47  ;;  %v23826_v47 = vcombine.low %v23529_v17, %v23817_v9 }
  0xdb   : > { %v23841_v17 = vsel %vm23501_vm6, %v16684_v18, %v1554_v56  ;;  %v16688_v18 = vrot.slane %v23407_v31, 9  ;;  %v1570_v56 = vrot.slane %v23419_v38, 5 }
  0xdc   : > { %29213 = vst [vmem:[#allocation31_spill] sm:$0xff] %v23826_v47  ;;  %v23857_v4 = vcombine.low %v23841_v17, %v23845_v19 }
  0xdd   : > { %v23873_v51 = vsel %vm23501_vm6, %v16688_v18, %v1570_v56  ;;  %v22763_v18 = vld [vmem:[%s22982_s21 + $0x28] sm:$0xf]  ;;  %v22764_v56 = vld [vmem:[%s22982_s21 + $0x30] sm:$0xf] }
  0xde   : > { %v23881_v38 = vcombine.low %v23873_v51, %v23877_v45  ;;  %v16729_v8 = vcombine.low %v22763_v18, %v22764_v56 }
  0xe0   : > { %29217 = vst [vmem:[#allocation34_spill] sm:$0xff] %v23881_v38 }
  0xe1   : > { %19139 = vmatmul.mubr.msk.bf16.gmra.mrb[20].mxu0 %vm908_vm3, %v23821_v27 }
  0xe2   : > { %19142 = vmatprep.mubr.msk.bf16.mxu0 %vm908_vm3, %v23826_v47  ;;  %v22771_v47 = vld [vmem:[%s22982_s21 + $0x80] sm:$0xf] }
  0xe9   : > { %19143 = vmatmul.mubr.msk.bf16.gmra.mrb[24].mxu0 %vm908_vm3, %v23857_v4 }
  0xea   : > { %19146 = vmatprep.mubr.msk.bf16.mxu0 %vm908_vm3, %v23862_v14 }
  0xf1   : > { %19147 = vmatmul.mubr.msk.bf16.gmra.mrb[28].mxu0 %vm908_vm3, %v23881_v38 }
  0xf2   : > { %19152 = vmatprep.mubr.msk.bf16.mxu0 %vm908_vm3, %v16727_v40  ;;  %v22767_v40 = vld [vmem:[%s22982_s21 + $0x60] sm:$0xf] }
  0xf3   : > { %v23905_v18 = vcombine.low %v22766_v63, %v22767_v40  ;;  %v23931_v40 = vcombine.low %v23212_v44, %v23230_v11  ;;  %v23950_v11 = vld [vmem:[%s22982_s21 + $0xe0] sm:$0xf] }
  0xf4   : > { %v23954_v44 = vcombine.low %v23294_v30, %v23950_v11  ;;  %v2149_v30 = vshrl.u32 %v23899_v5, 16 }
  0xf5   : > { %29220 = vst [vmem:[#allocation40_spill] sm:$0xff] %v23931_v40 }
  0xf6   : > { %29223 = vst [vmem:[#allocation48_spill] sm:$0xff] %v23954_v44 }
  0xf9   : > { %19153 = vmatmul.mubr.msk.bf16.vlgmr.msra.gmra.mrb[0].mxu0 %vm908_vm3, %v16728_v2  ;;  %v22769_v2 = vld [vmem:[%s22982_s21 + $0x70] sm:$0xf] }
  0xfa   : > { %19185 = vmatpush3.bf16.msra.mxu0 %v23666_v61  ;;  %19156 = vmatprep.mubr.msk.bf16.mxu0 %vm908_vm3, %v16729_v8  ;;  %v22768_v61 = vld [vmem:[%s22982_s21 + $0x68] sm:$0xf]  ;;  %v22770_v8 = vld [vmem:[%s22982_s21 + $0x78] sm:$0xf] }
  0xfb   : > { %19218 = vmatprep.subr.bf16.mxu0 %v22628_v57  ;;  %v23912_v56 = vcombine.low %v22768_v61, %v22769_v2  ;;  %v23916_v38 = vcombine.low %v22770_v8, %v22771_v47  ;;  %v23939_v47 = vcombine.low %v23241_v36, %v23255_v25  ;;  %v23943_v61 = vcombine.low %v23263_v22, %v23283_v53  ;;  %v23977_v53 = vld [vmem:[%s22982_s21 + $0x130] sm:$0xf] }
  0xfc   : > { %v23958_v36 = vcombine.low %v23325_v43, %v23341_v7  ;;  %v23966_v25 = vcombine.low %v23355_v15, %v23378_v29  ;;  %v23970_v22 = vcombine.low %v23386_v16, %v23407_v31  ;;  %v2152_v43 = vshll.u32 %v23899_v5, 16  ;;  %v23986_v16 = vld [vmem:[%s22982_s21 + $0x44] sm:$0x1]  ;;  %v29228_v31 = vld [vmem:[#allocation7_spill] sm:$0xff]  ;;  %v29229_v2 = vld [vmem:[#allocation8_spill] sm:$0xff] }
  0xfd   : > { %29218 = vst [vmem:[#allocation36_spill] sm:$0xff] %v23916_v38  ;;  %29221 = vst [vmem:[#allocation41_spill] sm:$0xff] %v23939_v47  ;;  %v23983_v7 = vcombine.low %v23415_v49, %v23977_v53  ;;  %v2151_v15 = vrot.slane %v2149_v30, 4  ;;  %v29230_v8 = vcombine.low %v29228_v31, %v29229_v2  ;;  %v29237_v31 = vld [vmem:[#allocation26_spill] sm:$0xff]  ;;  %v24021_v2 = vld [vmem:[%s22982_s21 + $0x94] sm:$0x1] }
  0xfe   : > { %29222 = vst [vmem:[#allocation45_spill] sm:$0xff] %v23943_v61  ;;  %29224 = vst [vmem:[#allocation50_spill] sm:$0xff] %v23958_v36  ;;  %v2154_v29 = vrot.slane %v2152_v43, 5  ;;  %v24000_v43 = vld [vmem:[%s28594_s1 + $0x30] sm:$0xff]  }
  0xff   : > { %29225 = vst [vmem:[#allocation54_spill] sm:$0xff] %v23966_v25  ;;  %29226 = vst [vmem:[#allocation55_spill] sm:$0xff] %v23970_v22 }
 0x100   : > { %29227 = vst [vmem:[#allocation87_spill] sm:$0xff] %v23983_v7 }
 0x101   : > { %19157 = vmatmul.mubr.msk.bf16.gmra.mrb[4].mxu0 %vm908_vm3, %v16730_v42  ;;  %v22772_v42 = vld [vmem:[%s22982_s21 + $0x88] sm:$0xf] }
 0x102   : > { %19160 = vmatprep.mubr.msk.bf16.mxu0 %vm908_vm3, %v23905_v18  ;;  %v23927_v63 = vcombine.low %v22772_v42, %v23923_v54  ;;  %v2155_v42 = vor.u32 %v2154_v29, %v2151_v15 }
 0x104   : > { %29219 = vst [vmem:[#allocation37_spill] sm:$0xff] %v23927_v63 }
 0x109   : > { %19161 = vmatmul.mubr.msk.bf16.gmra.mrb[8].mxu0 %vm908_vm3, %v23912_v56 }
 0x10a   : > { %19164 = vmatprep.mubr.msk.bf16.mxu0 %vm908_vm3, %v23916_v38 }
 0x111   : > { %19165 = vmatmul.mubr.msk.bf16.gmra.mrb[12].mxu0 %vm908_vm3, %v23927_v63 }
 0x112   : > { %19168 = vmatprep.mubr.msk.bf16.mxu0 %vm908_vm3, %v23931_v40 }
 0x119   : > { %19169 = vmatmul.mubr.msk.bf16.gmra.mrb[16].mxu0 %vm908_vm3, %v23939_v47 }
 0x11a   : > { %19172 = vmatprep.mubr.msk.bf16.mxu0 %vm908_vm3, %v23943_v61  ;;  %v29234_v61 = vld [vmem:[#allocation11_spill] sm:$0xff] }
 0x121   : > { %19173 = vmatmul.mubr.msk.bf16.gmra.mrb[20].mxu0 %vm908_vm3, %v23954_v44  ;;  %v2156_v44 = vrot.slane %v2155_v42, 4  ;;  %v29240_v42 = vld [vmem:[#allocation30_spill] sm:$0xff] }
 0x122   : > { %19176 = vmatprep.mubr.msk.bf16.mxu0 %vm908_vm3, %v23958_v36  ;;  %v29232_v36 = vld [vmem:[#allocation14_spill] sm:$0xff] }
 0x129   : > { %19177 = vmatmul.mubr.msk.bf16.gmra.mrb[24].mxu0 %vm908_vm3, %v23966_v25  ;;  %v29231_v25 = vld [vmem:[#allocation17_spill] sm:$0xff] }
 0x12a   : > { %19180 = vmatprep.mubr.msk.bf16.mxu0 %vm908_vm3, %v23970_v22  ;;  %v2158_v22 = vshll.u32 %v23986_v16, 16  ;;  %v16764_v49 = vcombine.low %v29232_v36, %v29231_v25  ;;  %v2163_v36 = vshrl.u32 %v23923_v54, 16  ;;  %v2166_v25 = vshll.u32 %v23923_v54, 16 }
 0x12c   : > { %v2160_v30 = vrot.slane %v2158_v22, 5  ;;  %v29236_v22 = vld [vmem:[#allocation18_spill] sm:$0xff] }
 0x12e   : > { %v24009_v15 = vsel %vm23014_vm2, %v2156_v44, %v2160_v30 }
 0x12f   : > { %v16765_v29 = vcombine.low %v29236_v22, %v24009_v15  ;;  %v29243_v22 = vld [vmem:[#allocation35_spill] sm:$0xff] }
 0x131   : > { %19181 = vmatmul.mubr.msk.bf16.gmra.mrb[28].mxu0 %vm908_vm3, %v23983_v7  ;;  %v29233_v7 = vld [vmem:[#allocation9_spill] sm:$0xff] }
 0x132   : > { %19186 = vmatprep.mubr.msk.bf16.mxu0 %vm908_vm3, %v29230_v8  ;;  %v29235_v47 = vcombine.low %v29233_v7, %v29234_v61  ;;  %v29238_v61 = vld [vmem:[#allocation23_spill] sm:$0xff]  ;;  %v2172_v8 = vshll.u32 %v24021_v2, 16 }
 0x133   : > { %v24018_v7 = vcombine.low %v29238_v61, %v29237_v31  ;;  %v29244_v31 = vld [vmem:[#allocation32_spill] sm:$0xff] }
 0x134   : > { %v24033_v61 = vcombine.low %v29244_v31, %v29243_v22 }
 0x135   : > { %29239 = vst [vmem:[#allocation7_spill] sm:$0xff] %v24018_v7 }
 0x136   : > { %29245 = vst [vmem:[#allocation17_spill] sm:$0xff] %v24033_v61 }
 0x139   : > { %19187 = vmatmul.mubr.msk.bf16.vlgmr.msra.gmra.mrb[0].mxu0 %vm908_vm3, %v29235_v47  ;;  %v2168_v47 = vrot.slane %v2166_v25, 5  ;;  %v2174_v25 = vrot.slane %v2172_v8, 5  ;;  %v29250_v8 = vld [vmem:[#allocation42_spill] sm:$0xff] }
 0x13a   : > { %19219 = vmatpush3.bf16.msra.mxu0 %v22628_v57  ;;  %19190 = vmatprep.mubr.msk.bf16.mxu0 %vm908_vm3, %v16764_v49  ;;  %v2165_v57 = vrot.slane %v2163_v36, 4  ;;  %v29241_v49 = vld [vmem:[#allocation28_spill] sm:$0xff] }
 0x13b   : > { %19252 = vmatprep.subr.bf16.mxu0 %v24000_v43  ;;  %v24029_v30 = vcombine.low %v29241_v49, %v29240_v42  ;;  %v29247_v42 = vld [vmem:[#allocation38_spill] sm:$0xff] }
 0x13c   : > { %v2169_v44 = vor.u32 %v2168_v47, %v2165_v57  ;;  %v2177_v57 = vshrl.u32 %v23950_v11, 16  ;;  %v2180_v47 = vshll.u32 %v23950_v11, 16 }
 0x13d   : > { %29242 = vst [vmem:[#allocation8_spill] sm:$0xff] %v24029_v30 }
 0x13e   : > { %v2170_v36 = vrot.slane %v2169_v44, 4  ;;  %v29249_v44 = vld [vmem:[#allocation44_spill] sm:$0xff]  ;;  %v2179_v49 = vrot.slane %v2177_v57, 4 }
 0x13f   : > { %v24051_v31 = vcombine.low %v29250_v8, %v29249_v44  ;;  %v29255_v44 = vld [vmem:[#allocation53_spill] sm:$0xff]  ;;  %v29256_v8 = vld [vmem:[#allocation51_spill] sm:$0xff] }
 0x140   : > { %v24067_v57 = vcombine.low %v29256_v8, %v29255_v44 }
 0x141   : > { %19191 = vmatmul.mubr.msk.bf16.gmra.mrb[4].mxu0 %vm908_vm3, %v16765_v29  ;;  %v24041_v29 = vsel %vm23014_vm2, %v2170_v36, %v2174_v25  ;;  %29251 = vst [vmem:[#allocation11_spill] sm:$0xff] %v24051_v31 }
 0x142   : > { %19194 = vmatprep.mubr.msk.bf16.mxu0 %vm908_vm3, %v24018_v7  ;;  %29246 = vst [vmem:[#allocation14_spill] sm:$0xff] %v24041_v29  ;;  %v24047_v22 = vcombine.low %v29247_v42, %v24041_v29  ;;  %v24054_v7 = vld [vmem:[%s22982_s21 + $0xe4] sm:$0x1]  ;;  %v29252_v42 = vld [vmem:[#allocation49_spill] sm:$0xff]  ;;  %29257 = vst [vmem:[#allocation88_spill] sm:$0xff] %v24067_v57 }
 0x143   : > { %v2186_v25 = vshll.u32 %v24054_v7, 16 }
 0x144   : > { %29248 = vst [vmem:[#allocation9_spill] sm:$0xff] %v24047_v22 }
 0x145   : > { %v2188_v63 = vrot.slane %v2186_v25, 5  ;;  %v29262_v25 = vld [vmem:[#allocation58_spill] sm:$0xff] }
 0x149   : > { %19195 = vmatmul.mubr.msk.bf16.gmra.mrb[8].mxu0 %vm908_vm3, %v24029_v30  ;;  %v2182_v30 = vrot.slane %v2180_v47, 5 }
 0x14a   : > { %19198 = vmatprep.mubr.msk.bf16.mxu0 %vm908_vm3, %v24033_v61  ;;  %v29253_v61 = vld [vmem:[#allocation46_spill] sm:$0xff] }
 0x14b   : > { %v2183_v36 = vor.u32 %v2182_v30, %v2179_v49  ;;  %v24063_v40 = vcombine.low %v29253_v61, %v29252_v42  ;;  %v2191_v30 = vshrl.u32 %v23977_v53, 16  ;;  %v2194_v42 = vshll.u32 %v23977_v53, 16  ;;  %v29259_v61 = vld [vmem:[#allocation56_spill] sm:$0xff] }
 0x14d   : > { %29254 = vst [vmem:[#allocation18_spill] sm:$0xff] %v24063_v40  ;;  %v2184_v47 = vrot.slane %v2183_v36, 4  ;;  %v29261_v36 = vld [vmem:[#allocation60_spill] sm:$0xff] }
 0x14e   : > { %v24085_v8 = vcombine.low %v29262_v25, %v29261_v36 }
 0x14f   : > { %v24075_v49 = vsel %vm23014_vm2, %v2184_v47, %v2188_v63 }
 0x150   : > { %29258 = vst [vmem:[#allocation89_spill] sm:$0xff] %v24075_v49  ;;  %v24081_v44 = vcombine.low %v29259_v61, %v24075_v49  ;;  %29263 = vst [vmem:[#allocation91_spill] sm:$0xff] %v24085_v8  ;;  %v24098_v61 = vcombine.low %v23461_v26, %v23471_v13  ;;  %v22630_v13 = vld [vmem:[%s28594_s1 + $0x38] sm:$0xff]  }
 0x151   : > { %19199 = vmatmul.mubr.msk.bf16.gmra.mrb[12].mxu0 %vm908_vm3, %v24047_v22  ;;  %v355_v22 = vld [vmem:[%s22982_s21 + $0x134] sm:$0x1] }
 0x152   : > { %19202 = vmatprep.mubr.msk.bf16.mxu0 %vm908_vm3, %v24051_v31  ;;  %29260 = vst [vmem:[#allocation90_spill] sm:$0xff] %v24081_v44  ;;  %v2196_v31 = vrot.slane %v2194_v42, 5  ;;  %v2200_v47 = vshll.u32 %v355_v22, 16  ;;  %29266 = vst [vmem:[#allocation93_spill] sm:$0xff] %v24098_v61  ;;  %v16801_v42 = vcombine.low %v23604_v24, %v23632_v28 }
 0x159   : > { %19203 = vmatmul.mubr.msk.bf16.gmra.mrb[16].mxu0 %vm908_vm3, %v24063_v40  ;;  %v2193_v40 = vrot.slane %v2191_v30, 4  ;;  %v2202_v30 = vrot.slane %v2200_v47, 5  ;;  %v16803_v47 = vcombine.low %v23645_v50, %v23675_v62  ;;  %v24148_v50 = vcombine.low %v23721_v35, %v23743_v60 }
 0x15a   : > { %19206 = vmatprep.mubr.msk.bf16.mxu0 %vm908_vm3, %v24067_v57  ;;  %v29264_v57 = vld [vmem:[#allocation61_spill] sm:$0xff]  ;;  %v16796_v62 = vrot.slane %v23923_v54, 9  ;;  %v24178_v35 = vcombine.low %v23787_v59, %v23809_v52  ;;  %v16797_v60 = vrot.slane %v23950_v11, 9  ;;  %v24196_v52 = vcombine.low %v23817_v9, %v23841_v17 }
 0x15b   : > { %v2197_v63 = vor.u32 %v2196_v31, %v2193_v40  ;;  %v24094_v38 = vcombine.low %v29264_v57, %v23457_v37  ;;  %29270 = vst [vmem:[#allocation97_spill] sm:$0xff] %v24148_v50  ;;  %v16798_v59 = vrot.slane %v23977_v53, 9  ;;  %v29297_v37 = vld [vmem:[#allocation20_spill] sm:$0xff] }
 0x15c   : > { %29274 = vst [vmem:[#allocation101_spill] sm:$0xff] %v24178_v35  ;;  %29276 = vst [vmem:[#allocation103_spill] sm:$0xff] %v24196_v52 }
 0x15d   : > { %29265 = vst [vmem:[#allocation92_spill] sm:$0xff] %v24094_v38  ;;  %v2198_v36 = vrot.slane %v2197_v63, 4  ;;  %v16802_v63 = vcombine.low %v23636_v48, %v23641_v55  ;;  %v24137_v48 = vcombine.low %v23685_v21, %v23709_v41  ;;  %v24144_v55 = vcombine.low %v23713_v0, %v23717_v20 }
 0x15e   : > { %v24166_v0 = vcombine.low %v23751_v23, %v23775_v6  ;;  %v24174_v20 = vcombine.low %v23779_v12, %v23783_v1  ;;  %v24204_v12 = vcombine.low %v23845_v19, %v23849_v33  ;;  %v24208_v1 = vcombine.low %v23853_v46, %v23873_v51  ;;  %v29280_v19 = vld [vmem:[#allocation69_spill] sm:$0xff]  ;;  %v22635_v33 = vld [vmem:[%s28594_s1 + $0x40] sm:$0xff]   ;;  %v29282_v51 = vld [vmem:[#allocation72_spill] sm:$0xff] }
 0x15f   : > { %v24106_v40 = vsel %vm23014_vm2, %v2198_v36, %v2202_v30  ;;  %v16795_v36 = vrot.slane %v23899_v5, 9  ;;  %v2480_v30 = vrot.slane %v23986_v16, 5  ;;  %29269 = vst [vmem:[#allocation96_spill] sm:$0xff] %v24144_v55  ;;  %v29281_v46 = vld [vmem:[#allocation70_spill] sm:$0xff] }
 0x160   : > { %29267 = vst [vmem:[#allocation94_spill] sm:$0xff] %v24106_v40  ;;  %v24110_v31 = vcombine.low %v23475_v10, %v24106_v40  ;;  %29272 = vst [vmem:[#allocation99_spill] sm:$0xff] %v24166_v0 }
 0x161   : > { %19207 = vmatmul.mubr.msk.bf16.gmra.mrb[20].mxu0 %vm908_vm3, %v24081_v44  ;;  %v24131_v24 = vsel %vm23501_vm6, %v16795_v36, %v2480_v30  ;;  %29273 = vst [vmem:[#allocation100_spill] sm:$0xff] %v24174_v20  ;;  %29277 = vst [vmem:[#allocation104_spill] sm:$0xff] %v24204_v12  ;;  %v29292_v30 = vld [vmem:[#allocation83_spill] sm:$0xff] }
 0x162   : > { %19210 = vmatprep.mubr.msk.bf16.mxu0 %vm908_vm3, %v24085_v8  ;;  %29268 = vst [vmem:[#allocation95_spill] sm:$0xff] %v24110_v31  ;;  %v16804_v28 = vcombine.low %v23679_v3, %v24131_v24  ;;  %v2484_v3 = vrot.slane %v24021_v2, 5  ;;  %29278 = vst [vmem:[#allocation105_spill] sm:$0xff] %v24208_v1  ;;  %v29285_v2 = vld [vmem:[#allocation76_spill] sm:$0xff] }
 0x164   : > { %v24158_v21 = vsel %vm23501_vm6, %v16796_v62, %v2484_v3  ;;  %v29293_v3 = vld [vmem:[#allocation84_spill] sm:$0xff] }
 0x165   : > { %v24162_v41 = vcombine.low %v23747_v58, %v24158_v21  ;;  %v2488_v58 = vrot.slane %v24054_v7, 5  ;;  %v29284_v7 = vld [vmem:[#allocation75_spill] sm:$0xff] }
 0x167   : > { %29271 = vst [vmem:[#allocation98_spill] sm:$0xff] %v24162_v41  ;;  %v24188_v23 = vsel %vm23501_vm6, %v16797_v60, %v2488_v58  ;;  %v24279_v60 = vld [vmem:[%s22982_s21 + $0x138] sm:$0xf] }
 0x168   : > { %v24192_v6 = vcombine.low %v23813_v39, %v24188_v23  ;;  %v2492_v39 = vrot.slane %v355_v22, 5 }
 0x169   : > { %19211 = vmatmul.mubr.msk.bf16.gmra.mrb[24].mxu0 %vm908_vm3, %v24094_v38 }
 0x16a   : > { %19214 = vmatprep.mubr.msk.bf16.mxu0 %vm908_vm3, %v24098_v61  ;;  %29275 = vst [vmem:[#allocation102_spill] sm:$0xff] %v24192_v6  ;;  %v24217_v9 = vsel %vm23501_vm6, %v16798_v59, %v2492_v39  ;;  %v24286_v39 = vld [vmem:[%s22982_s21 + $0x4c] sm:$0x1] }
 0x16b   : > { %v24221_v17 = vcombine.low %v23877_v45, %v24217_v9  ;;  %v24235_v45 = vld [vmem:[%s22982_s21 + $0x48] sm:$0xf] }
 0x16c   : > { %v16836_v16 = vcombine.low %v23899_v5, %v24235_v45  ;;  %v29287_v5 = vld [vmem:[#allocation78_spill] sm:$0xff]  ;;  %v2994_v62 = vshll.u32 %v24235_v45, 16 }
 0x16d   : > { %29279 = vst [vmem:[#allocation106_spill] sm:$0xff] %v24221_v17 }
 0x16e   : > { %v2996_v59 = vrot.slane %v2994_v62, 5 }
 0x171   : > { %19215 = vmatmul.mubr.msk.bf16.gmra.mrb[28].mxu0 %vm908_vm3, %v24110_v31 }
 0x172   : > { %19220 = vmatprep.mubr.msk.bf16.mxu0 %vm908_vm3, %v16801_v42  ;;  %v29288_v42 = vld [vmem:[#allocation79_spill] sm:$0xff] }
 0x179   : > { %19221 = vmatmul.mubr.msk.bf16.vlgmr.msra.gmra.mrb[0].mxu0 %vm908_vm3, %v16802_v63  ;;  %v29289_v63 = vld [vmem:[#allocation80_spill] sm:$0xff] }
 0x17a   : > { %19253 = vmatpush3.bf16.msra.mxu0 %v24000_v43  ;;  %19224 = vmatprep.mubr.msk.bf16.mxu0 %vm908_vm3, %v16803_v47  ;;  %v29283_v43 = vld [vmem:[#allocation74_spill] sm:$0xff]  ;;  %v24262_v47 = vld [vmem:[%s22982_s21 + $0xe8] sm:$0xf] }
 0x17b   : > { %19286 = vmatprep.subr.bf16.mxu0 %v22630_v13  ;;  %v24266_v36 = vcombine.low %v23950_v11, %v24262_v47  ;;  %v24283_v11 = vcombine.low %v23977_v53, %v24279_v60  ;;  %v22636_v53 = vld [vmem:[%s28594_s1 + $0x48] sm:$0xff]  }
 0x17d   : > { %29290 = vst [vmem:[#allocation70_spill] sm:$0xff] %v24266_v36  ;;  %29294 = vst [vmem:[#allocation72_spill] sm:$0xff] %v24283_v11 }
 0x181   : > { %19225 = vmatmul.mubr.msk.bf16.gmra.mrb[4].mxu0 %vm908_vm3, %v16804_v28  ;;  %v2991_v28 = vshrl.u32 %v24235_v45, 16 }
 0x182   : > { %19228 = vmatprep.mubr.msk.bf16.mxu0 %vm908_vm3, %v24137_v48 }
 0x183   : > { %v2993_v58 = vrot.slane %v2991_v28, 4  ;;  %v29296_v28 = vld [vmem:[#allocation16_spill] sm:$0xff] }
 0x189   : > { %19229 = vmatmul.mubr.msk.bf16.gmra.mrb[8].mxu0 %vm908_vm3, %v24144_v55 }
 0x18a   : > { %19232 = vmatprep.mubr.msk.bf16.mxu0 %vm908_vm3, %v24148_v50 }
 0x191   : > { %19233 = vmatmul.mubr.msk.bf16.gmra.mrb[12].mxu0 %vm908_vm3, %v24162_v41 }
 0x192   : > { %19236 = vmatprep.mubr.msk.bf16.mxu0 %vm908_vm3, %v24166_v0  ;;  %v24536_v0 = vld [vmem:[%s22982_s21 + $0x164] sm:$0x1] }
 0x199   : > { %19237 = vmatmul.mubr.msk.bf16.gmra.mrb[16].mxu0 %vm908_vm3, %v24174_v20 }
 0x19a   : > { %19240 = vmatprep.mubr.msk.bf16.mxu0 %vm908_vm3, %v24178_v35 }
 0x1a1   : > { %19241 = vmatmul.mubr.msk.bf16.gmra.mrb[20].mxu0 %vm908_vm3, %v24192_v6 }
 0x1a2   : > { %19244 = vmatprep.mubr.msk.bf16.mxu0 %vm908_vm3, %v24196_v52  ;;  %v29307_v52 = vld [vmem:[#allocation65_spill] sm:$0xff] }
 0x1a9   : > { %19245 = vmatmul.mubr.msk.bf16.gmra.mrb[24].mxu0 %vm908_vm3, %v24204_v12 }
 0x1aa   : > { %19248 = vmatprep.mubr.msk.bf16.mxu0 %vm908_vm3, %v24208_v1 }
 0x1b1   : > { %19249 = vmatmul.mubr.msk.bf16.gmra.mrb[28].mxu0 %vm908_vm3, %v24221_v17  ;;  %v29303_v17 = vld [vmem:[#allocation52_spill] sm:$0xff] }
 0x1b2   : > { %19254 = vmatprep.mubr.msk.bf16.mxu0 %vm908_vm3, %v29280_v19  ;;  %v29295_v19 = vld [vmem:[#allocation10_spill] sm:$0xff] }
 0x1b9   : > { %19255 = vmatmul.mubr.msk.bf16.vlgmr.msra.gmra.mrb[0].mxu0 %vm908_vm3, %v29281_v46  ;;  %v2997_v46 = vor.u32 %v2996_v59, %v2993_v58 }
 0x1ba   : > { %19287 = vmatpush3.bf16.msra.mxu0 %v22630_v13  ;;  %19258 = vmatprep.mubr.msk.bf16.mxu0 %vm908_vm3, %v29282_v51  ;;  %v24247_v13 = vld [vmem:[%s22982_s21 + $0x98] sm:$0xf]  ;;  %v3000_v51 = vshll.u32 %v24286_v39, 16 }
 0x1bb   : > { %19320 = vmatprep.subr.bf16.mxu0 %v22635_v33  ;;  %v24251_v22 = vcombine.low %v23923_v54, %v24247_v13  ;;  %v29291_v54 = vld [vmem:[#allocation82_spill] sm:$0xff]  ;;  %v3005_v62 = vshrl.u32 %v24247_v13, 16  ;;  %v3008_v10 = vshll.u32 %v24247_v13, 16 }
 0x1bc   : > { %v3002_v26 = vrot.slane %v3000_v51, 5  ;;  %v317_v51 = vld [vmem:[%s22982_s21 + $0x9c] sm:$0x1] }
 0x1bd   : > { %29286 = vst [vmem:[#allocation69_spill] sm:$0xff] %v24251_v22 }
 0x1c1   : > { %19259 = vmatmul.mubr.msk.bf16.gmra.mrb[4].mxu0 %vm908_vm3, %v16836_v16  ;;  %v2998_v16 = vrot.slane %v2997_v46, 4  ;;  %v3010_v46 = vrot.slane %v3008_v10, 5 }
 0x1c2   : > { %19262 = vmatprep.mubr.msk.bf16.mxu0 %vm908_vm3, %v29283_v43 }
 0x1c3   : > { %v3003_v58 = vsel %vm23014_vm2, %v2998_v16, %v3002_v26  ;;  %v3019_v26 = vshrl.u32 %v24262_v47, 16  ;;  %v29300_v16 = vld [vmem:[#allocation39_spill] sm:$0xff] }
 0x1c4   : > { %v16859_v59 = vcombine.low %v24009_v15, %v3003_v58  ;;  %v3022_v15 = vshll.u32 %v24262_v47, 16 }
 0x1c5   : > { %v3021_v58 = vrot.slane %v3019_v26, 4  ;;  %v29304_v26 = vld [vmem:[#allocation57_spill] sm:$0xff] }
 0x1c9   : > { %19263 = vmatmul.mubr.msk.bf16.gmra.mrb[8].mxu0 %vm908_vm3, %v29284_v7 }
 0x1ca   : > { %19266 = vmatprep.mubr.msk.bf16.mxu0 %vm908_vm3, %v29285_v2 }
 0x1d1   : > { %19267 = vmatmul.mubr.msk.bf16.gmra.mrb[12].mxu0 %vm908_vm3, %v24251_v22 }
 0x1d2   : > { %19270 = vmatprep.mubr.msk.bf16.mxu0 %vm908_vm3, %v29287_v5 }
 0x1d9   : > { %19271 = vmatmul.mubr.msk.bf16.gmra.mrb[16].mxu0 %vm908_vm3, %v29288_v42 }
 0x1da   : > { %19274 = vmatprep.mubr.msk.bf16.mxu0 %vm908_vm3, %v29289_v63 }
 0x1e1   : > { %19275 = vmatmul.mubr.msk.bf16.gmra.mrb[20].mxu0 %vm908_vm3, %v24266_v36 }
 0x1e2   : > { %19278 = vmatprep.mubr.msk.bf16.mxu0 %vm908_vm3, %v29291_v54 }
 0x1e9   : > { %19279 = vmatmul.mubr.msk.bf16.gmra.mrb[24].mxu0 %vm908_vm3, %v29292_v30 }
 0x1ea   : > { %19282 = vmatprep.mubr.msk.bf16.mxu0 %vm908_vm3, %v29293_v3 }
 0x1f1   : > { %19283 = vmatmul.mubr.msk.bf16.gmra.mrb[28].mxu0 %vm908_vm3, %v24283_v11 }
 0x1f2   : > { %19288 = vmatprep.mubr.msk.bf16.mxu0 %vm908_vm3, %v29295_v19  ;;  %v3007_v19 = vrot.slane %v3005_v62, 4 }
 0x1f4   : > { %v3011_v25 = vor.u32 %v3010_v46, %v3007_v19  ;;  %v29302_v19 = vld [vmem:[#allocation47_spill] sm:$0xff] }
 0x1f6   : > { %v3012_v57 = vrot.slane %v3011_v25, 4  ;;  %v337_v25 = vld [vmem:[%s22982_s21 + $0xec] sm:$0x1] }
 0x1f9   : > { %19289 = vmatmul.mubr.msk.bf16.vlgmr.msra.gmra.mrb[0].mxu0 %vm908_vm3, %v29296_v28  ;;  %v29298_v28 = vld [vmem:[#allocation29_spill] sm:$0xff] }
 0x1fa   : > { %19321 = vmatpush3.bf16.msra.mxu0 %v22635_v33  ;;  %19292 = vmatprep.mubr.msk.bf16.mxu0 %vm908_vm3, %v29297_v37  ;;  %v3014_v33 = vshll.u32 %v317_v51, 16  ;;  %v29299_v37 = vld [vmem:[#allocation33_spill] sm:$0xff] }
 0x1fb   : > { %19354 = vmatprep.subr.bf16.mxu0 %v22636_v53 }
 0x1fc   : > { %v3016_v11 = vrot.slane %v3014_v33, 5  ;;  %v3028_v33 = vshll.u32 %v337_v25, 16 }
 0x1fe   : > { %v3017_v10 = vsel %vm23014_vm2, %v3012_v57, %v3016_v11  ;;  %v3030_v22 = vrot.slane %v3028_v33, 5  ;;  %v3033_v57 = vshrl.u32 %v24279_v60, 16  ;;  %v3036_v11 = vshll.u32 %v24279_v60, 16  ;;  %v29306_v33 = vld [vmem:[#allocation62_spill] sm:$0xff] }
 0x1ff   : > { %v24318_v62 = vcombine.low %v24041_v29, %v3017_v10 }
 0x201   : > { %19293 = vmatmul.mubr.msk.bf16.gmra.mrb[4].mxu0 %vm908_vm3, %v16859_v59  ;;  %29301 = vst [vmem:[#allocation10_spill] sm:$0xff] %v24318_v62  ;;  %v3024_v59 = vrot.slane %v3022_v15, 5 }
 0x202   : > { %19296 = vmatprep.mubr.msk.bf16.mxu0 %vm908_vm3, %v29298_v28 }
 0x203   : > { %v3025_v46 = vor.u32 %v3024_v59, %v3021_v58  ;;  %v3035_v58 = vrot.slane %v3033_v57, 4  ;;  %v3038_v59 = vrot.slane %v3036_v11, 5  ;;  %v29310_v11 = vld [vmem:[#allocation85_spill] sm:$0xff] }
 0x205   : > { %v3026_v36 = vrot.slane %v3025_v46, 4  ;;  %v357_v46 = vld [vmem:[%s22982_s21 + $0x13c] sm:$0x1]  ;;  %v3039_v29 = vor.u32 %v3038_v59, %v3035_v58  ;;  %v29311_v58 = vld [vmem:[#allocation86_spill] sm:$0xff] }
 0x207   : > { %v3031_v15 = vsel %vm23014_vm2, %v3026_v36, %v3030_v22  ;;  %v3040_v1 = vrot.slane %v3039_v29, 4  ;;  %v29308_v22 = vld [vmem:[#allocation68_spill] sm:$0xff]  ;;  %v16880_v29 = vrot.slane %v24235_v45, 9  ;;  %v29313_v45 = vld [vmem:[#allocation15_spill] sm:$0xff] }
 0x208   : > { %v24334_v10 = vcombine.low %v24075_v49, %v3031_v15  ;;  %v22637_v15 = vld [vmem:[%s28594_s1 + $0x50] sm:$0xff]  }
 0x209   : > { %19297 = vmatmul.mubr.msk.bf16.gmra.mrb[8].mxu0 %vm908_vm3, %v29299_v37 }
 0x20a   : > { %19300 = vmatprep.mubr.msk.bf16.mxu0 %vm908_vm3, %v29300_v16  ;;  %29305 = vst [vmem:[#allocation16_spill] sm:$0xff] %v24334_v10 }
 0x211   : > { %19301 = vmatmul.mubr.msk.bf16.gmra.mrb[12].mxu0 %vm908_vm3, %v24318_v62  ;;  %v3042_v62 = vshll.u32 %v357_v46, 16 }
 0x212   : > { %19304 = vmatprep.mubr.msk.bf16.mxu0 %vm908_vm3, %v29302_v19 }
 0x213   : > { %v3044_v12 = vrot.slane %v3042_v62, 5  ;;  %v3274_v62 = vrot.slane %v24286_v39, 5  ;;  %v16881_v39 = vrot.slane %v24247_v13, 9  ;;  %v16882_v13 = vrot.slane %v24262_v47, 9 }
 0x214   : > { %v16883_v47 = vrot.slane %v24279_v60, 9  ;;  %v22642_v60 = vld [vmem:[%s28594_s1 + $0x58] sm:$0xff]  }
 0x215   : > { %v3045_v36 = vsel %vm23014_vm2, %v3040_v1, %v3044_v12  ;;  %v29312_v12 = vld [vmem:[#allocation12_spill] sm:$0xff]  ;;  %v3275_v1 = vsel %vm23501_vm6, %v16880_v29, %v3274_v62 }
 0x216   : > { %v24348_v57 = vcombine.low %v24106_v40, %v3045_v36  ;;  %v16886_v59 = vcombine.low %v24131_v24, %v3275_v1  ;;  %v3278_v36 = vrot.slane %v317_v51, 5  ;;  %v29317_v24 = vld [vmem:[#allocation24_spill] sm:$0xff]  ;;  %v3282_v51 = vrot.slane %v337_v25, 5  ;;  %v29320_v1 = vld [vmem:[#allocation34_spill] sm:$0xff]  ;;  %v24476_v40 = vld [vmem:[%s22982_s21 + $0x178] sm:$0xf] }
 0x217   : > { %v3286_v25 = vrot.slane %v357_v46, 5  ;;  %v29324_v46 = vld [vmem:[#allocation81_spill] sm:$0xff] }
 0x218   : > { %29309 = vst [vmem:[#allocation20_spill] sm:$0xff] %v24348_v57  ;;  %v3279_v29 = vsel %vm23501_vm6, %v16881_v39, %v3278_v36  ;;  %v29322_v39 = vld [vmem:[#allocation73_spill] sm:$0xff]  ;;  %v24438_v36 = vld [vmem:[%s22982_s21 + $0x148] sm:$0xf] }
 0x219   : > { %19305 = vmatmul.mubr.msk.bf16.gmra.mrb[16].mxu0 %vm908_vm3, %v29303_v17  ;;  %v24377_v62 = vcombine.low %v24158_v21, %v3279_v29 }
 0x21a   : > { %19308 = vmatprep.mubr.msk.bf16.mxu0 %vm908_vm3, %v29304_v26 }
 0x21b   : > { %29316 = vst [vmem:[#allocation85_spill] sm:$0xff] %v24377_v62 }
 0x221   : > { %19309 = vmatmul.mubr.msk.bf16.gmra.mrb[20].mxu0 %vm908_vm3, %v24334_v10 }
 0x222   : > { %19312 = vmatprep.mubr.msk.bf16.mxu0 %vm908_vm3, %v29306_v33 }
 0x229   : > { %19313 = vmatmul.mubr.msk.bf16.gmra.mrb[24].mxu0 %vm908_vm3, %v29307_v52 }
 0x22a   : > { %19316 = vmatprep.mubr.msk.bf16.mxu0 %vm908_vm3, %v29308_v22 }
 0x231   : > { %19317 = vmatmul.mubr.msk.bf16.gmra.mrb[28].mxu0 %vm908_vm3, %v24348_v57 }
 0x232   : > { %19322 = vmatprep.mubr.msk.bf16.mxu0 %vm908_vm3, %v29310_v11  ;;  %v29314_v11 = vld [vmem:[#allocation19_spill] sm:$0xff] }
 0x239   : > { %19323 = vmatmul.mubr.msk.bf16.vlgmr.msra.gmra.mrb[0].mxu0 %vm908_vm3, %v29311_v58  ;;  %v29318_v58 = vld [vmem:[#allocation27_spill] sm:$0xff] }
 0x23a   : > { %19355 = vmatpush3.bf16.msra.mxu0 %v22636_v53  ;;  %19326 = vmatprep.mubr.msk.bf16.mxu0 %vm908_vm3, %v29312_v12  ;;  %v29315_v53 = vld [vmem:[#allocation21_spill] sm:$0xff]  ;;  %v3283_v12 = vsel %vm23501_vm6, %v16882_v13, %v3282_v51  ;;  %v24449_v13 = vld [vmem:[%s22982_s21 + $0x150] sm:$0xf] }
 0x23b   : > { %19388 = vmatprep.subr.bf16.mxu0 %v22637_v15  ;;  %v24391_v21 = vcombine.low %v24188_v23, %v3283_v12  ;;  %v24452_v51 = vld [vmem:[%s22982_s21 + $0x158] sm:$0xf]  ;;  %v24455_v12 = vld [vmem:[%s22982_s21 + $0x160] sm:$0xf] }
 0x23d   : > { %29319 = vst [vmem:[#allocation86_spill] sm:$0xff] %v24391_v21 }
 0x241   : > { %19327 = vmatmul.mubr.msk.bf16.gmra.mrb[4].mxu0 %vm908_vm3, %v16886_v59  ;;  %v3287_v59 = vsel %vm23501_vm6, %v16883_v47, %v3286_v25  ;;  %v24458_v47 = vld [vmem:[%s22982_s21 + $0x168] sm:$0xf]  ;;  %v24462_v25 = vcombine.low %v24449_v13, %v24452_v51 }
 0x242   : > { %19330 = vmatprep.mubr.msk.bf16.mxu0 %vm908_vm3, %v29313_v45  ;;  %v24405_v23 = vcombine.low %v24217_v9, %v3287_v59  ;;  %v29323_v9 = vld [vmem:[#allocation77_spill] sm:$0xff]  ;;  %v24466_v59 = vcombine.low %v24455_v12, %v24458_v47 }
 0x243   : > { %29326 = vst [vmem:[#allocation19_spill] sm:$0xff] %v24462_v25 }
 0x244   : > { %29321 = vst [vmem:[#allocation12_spill] sm:$0xff] %v24405_v23  ;;  %29327 = vst [vmem:[#allocation21_spill] sm:$0xff] %v24466_v59 }
 0x249   : > { %19331 = vmatmul.mubr.msk.bf16.gmra.mrb[8].mxu0 %vm908_vm3, %v29314_v11 }
 0x24a   : > { %19334 = vmatprep.mubr.msk.bf16.mxu0 %vm908_vm3, %v29315_v53 }
 0x251   : > { %19335 = vmatmul.mubr.msk.bf16.gmra.mrb[12].mxu0 %vm908_vm3, %v24377_v62 }
 0x252   : > { %19338 = vmatprep.mubr.msk.bf16.mxu0 %vm908_vm3, %v29317_v24 }
 0x259   : > { %19339 = vmatmul.mubr.msk.bf16.gmra.mrb[16].mxu0 %vm908_vm3, %v29318_v58 }
 0x25a   : > { %19342 = vmatprep.mubr.msk.bf16.mxu0 %vm908_vm3, %v23821_v27 }
 0x261   : > { %19343 = vmatmul.mubr.msk.bf16.gmra.mrb[20].mxu0 %vm908_vm3, %v24391_v21  ;;  %v3762_v21 = vshll.u32 %v24438_v36, 16 }
 0x262   : > { %19346 = vmatprep.mubr.msk.bf16.mxu0 %vm908_vm3, %v23857_v4 }
 0x269   : > { %19347 = vmatmul.mubr.msk.bf16.gmra.mrb[24].mxu0 %vm908_vm3, %v23862_v14 }
 0x26a   : > { %19350 = vmatprep.mubr.msk.bf16.mxu0 %vm908_vm3, %v29320_v1 }
 0x271   : > { %19351 = vmatmul.mubr.msk.bf16.gmra.mrb[28].mxu0 %vm908_vm3, %v24405_v23 }
 0x272   : > { %19356 = vmatprep.mubr.msk.bf16.mxu0 %vm908_vm3, %v29322_v39  ;;  %v24473_v39 = vld [vmem:[%s22982_s21 + $0x170] sm:$0xf] }
 0x273   : > { %v24480_v49 = vcombine.low %v24473_v39, %v24476_v40 }
 0x275   : > { %29328 = vst [vmem:[#allocation24_spill] sm:$0xff] %v24480_v49 }
 0x279   : > { %19357 = vmatmul.mubr.msk.bf16.vlgmr.msra.gmra.mrb[0].mxu0 %vm908_vm3, %v29283_v43 }
 0x27a   : > { %19389 = vmatpush3.bf16.msra.mxu0 %v22637_v15  ;;  %19360 = vmatprep.mubr.msk.bf16.mxu0 %vm908_vm3, %v29284_v7  ;;  %v24435_v15 = vld [vmem:[%s22982_s21 + $0x140] sm:$0xf] }
 0x27b   : > { %19422 = vmatprep.subr.bf16.mxu0 %v22642_v60  ;;  %v24442_v29 = vcombine.low %v24435_v15, %v24438_v36  ;;  %v3748_v23 = vshll.u32 %v24435_v15, 16 }
 0x27d   : > { %29325 = vst [vmem:[#allocation15_spill] sm:$0xff] %v24442_v29  ;;  %v3750_v57 = vrot.slane %v3748_v23, 5 }
 0x281   : > { %19361 = vmatmul.mubr.msk.bf16.gmra.mrb[4].mxu0 %vm908_vm3, %v29285_v2  ;;  %v24529_v2 = vld [vmem:[%s22982_s21 + $0x154] sm:$0x1] }
 0x282   : > { %19364 = vmatprep.mubr.msk.bf16.mxu0 %vm908_vm3, %v29323_v9  ;;  %v3745_v9 = vshrl.u32 %v24435_v15, 16 }
 0x284   : > { %v3747_v62 = vrot.slane %v3745_v9, 4 }
 0x289   : > { %19365 = vmatmul.mubr.msk.bf16.gmra.mrb[8].mxu0 %vm908_vm3, %v29287_v5 }
 0x28a   : > { %19368 = vmatprep.mubr.msk.bf16.mxu0 %vm908_vm3, %v29288_v42 }
 0x291   : > { %19369 = vmatmul.mubr.msk.bf16.gmra.mrb[12].mxu0 %vm908_vm3, %v29289_v63 }
 0x292   : > { %19372 = vmatprep.mubr.msk.bf16.mxu0 %vm908_vm3, %v29324_v46  ;;  %v24489_v46 = vld [vmem:[%s28594_s1 + $0x60] sm:$0xff]  }
 0x299   : > { %19373 = vmatmul.mubr.msk.bf16.gmra.mrb[16].mxu0 %vm908_vm3, %v29291_v54  ;;  %v3818_v54 = vshll.u32 %v24458_v47, 16 }
 0x29a   : > { %19376 = vmatprep.mubr.msk.bf16.mxu0 %vm908_vm3, %v29292_v30  ;;  %v3815_v30 = vshrl.u32 %v24458_v47, 16 }
 0x29b   : > { %v3820_v35 = vrot.slane %v3818_v54, 5 }
 0x29c   : > { %v3817_v6 = vrot.slane %v3815_v30, 4  ;;  %v3829_v30 = vshrl.u32 %v24473_v39, 16 }
 0x2a1   : > { %19377 = vmatmul.mubr.msk.bf16.gmra.mrb[20].mxu0 %vm908_vm3, %v29293_v3  ;;  %v3804_v3 = vshll.u32 %v24455_v12, 16 }
 0x2a2   : > { %19380 = vmatprep.mubr.msk.bf16.mxu0 %vm908_vm3, %v24442_v29  ;;  %v29329_v29 = vld [vmem:[#allocation25_spill] sm:$0xff] }
 0x2a3   : > { %v3806_v43 = vrot.slane %v3804_v3, 5 }
 0x2a9   : > { %19381 = vmatmul.mubr.msk.bf16.gmra.mrb[24].mxu0 %vm908_vm3, %v24462_v25  ;;  %v3801_v25 = vshrl.u32 %v24455_v12, 16 }
 0x2aa   : > { %19384 = vmatprep.mubr.msk.bf16.mxu0 %vm908_vm3, %v24466_v59  ;;  %v3790_v59 = vshll.u32 %v24452_v51, 16 }
 0x2ab   : > { %v3803_v7 = vrot.slane %v3801_v25, 4  ;;  %v3843_v25 = vshrl.u32 %v24476_v40, 16 }
 0x2ad   : > { %v3845_v41 = vrot.slane %v3843_v25, 4 }
 0x2b1   : > { %19385 = vmatmul.mubr.msk.bf16.gmra.mrb[28].mxu0 %vm908_vm3, %v24480_v49  ;;  %v3776_v49 = vshll.u32 %v24449_v13, 16 }
 0x2b2   : > { %19390 = vmatprep.mubr.msk.bf16.mxu0 %vm908_vm3, %v29329_v29  ;;  %v29330_v29 = vld [vmem:[#allocation43_spill] sm:$0xff] }
 0x2b9   : > { %19391 = vmatmul.mubr.msk.bf16.vlgmr.msra.gmra.mrb[0].mxu0 %vm908_vm3, %v29298_v28  ;;  %v3773_v28 = vshrl.u32 %v24449_v13, 16 }
 0x2ba   : > { %19423 = vmatpush3.bf16.msra.mxu0 %v22642_v60  ;;  %19394 = vmatprep.mubr.msk.bf16.mxu0 %vm908_vm3, %v29299_v37  ;;  %v3759_v60 = vshrl.u32 %v24438_v36, 16  ;;  %v24509_v37 = vld [vmem:[%s22982_s21 + $0x144] sm:$0x1] }
 0x2bb   : > { %19456 = vmatprep.subr.bf16.mxu0 %v24489_v46  ;;  %v3754_v23 = vshll.u32 %v24509_v37, 16 }
 0x2bc   : > { %v3761_v10 = vrot.slane %v3759_v60, 4  ;;  %v29331_v60 = vld [vmem:[#allocation59_spill] sm:$0xff] }
 0x2bd   : > { %v3756_v63 = vrot.slane %v3754_v23, 5  ;;  %v3810_v23 = vshll.u32 %v24536_v0, 16 }
 0x2c1   : > { %19395 = vmatmul.mubr.msk.bf16.gmra.mrb[4].mxu0 %vm908_vm3, %v29300_v16  ;;  %v3764_v16 = vrot.slane %v3762_v21, 5 }
 0x2c2   : > { %19398 = vmatprep.mubr.msk.bf16.mxu0 %vm908_vm3, %v29330_v29  ;;  %v24512_v29 = vld [vmem:[%s22982_s21 + $0x14c] sm:$0x1] }
 0x2c3   : > { %v3765_v21 = vor.u32 %v3764_v16, %v3761_v10  ;;  %v3768_v9 = vshll.u32 %v24512_v29, 16  ;;  %v3792_v16 = vrot.slane %v3790_v59, 5  ;;  %v3846_v59 = vshll.u32 %v24476_v40, 16 }
 0x2c5   : > { %v3766_v42 = vrot.slane %v3765_v21, 4  ;;  %v3770_v5 = vrot.slane %v3768_v9, 5  ;;  %v3848_v50 = vrot.slane %v3846_v59, 5 }
 0x2c9   : > { %19399 = vmatmul.mubr.msk.bf16.gmra.mrb[8].mxu0 %vm908_vm3, %v29302_v19  ;;  %v3787_v19 = vshrl.u32 %v24452_v51, 16 }
 0x2ca   : > { %19402 = vmatprep.mubr.msk.bf16.mxu0 %vm908_vm3, %v29303_v17  ;;  %v3751_v17 = vor.u32 %v3750_v57, %v3747_v62  ;;  %v3778_v57 = vrot.slane %v3776_v49, 5  ;;  %v24539_v49 = vld [vmem:[%s22982_s21 + $0x16c] sm:$0x1] }
 0x2cb   : > { %v3789_v62 = vrot.slane %v3787_v19, 4  ;;  %v24547_v19 = vsel %vm23014_vm2, %v3766_v42, %v3770_v5  ;;  %v3821_v5 = vor.u32 %v3820_v35, %v3817_v6  ;;  %v3824_v42 = vshll.u32 %v24539_v49, 16  ;;  %v24565_v6 = vld [vmem:[%s22982_s21 + $0x17c] sm:$0x1] }
 0x2cc   : > { %v3752_v10 = vrot.slane %v3751_v17, 4  ;;  %29332 = vst [vmem:[#allocation27_spill] sm:$0xff] %v24547_v19 }
 0x2cd   : > { %v3793_v3 = vor.u32 %v3792_v16, %v3789_v62  ;;  %v3822_v55 = vrot.slane %v3821_v5, 4  ;;  %v3826_v35 = vrot.slane %v3824_v42, 5  ;;  %v29341_v42 = vld [vmem:[#allocation13_spill] sm:$0xff] }
 0x2ce   : > { %v3757_v17 = vsel %vm23014_vm2, %v3752_v10, %v3756_v63  ;;  %v3807_v63 = vor.u32 %v3806_v43, %v3803_v7  ;;  %v24562_v10 = vld [vmem:[%s22982_s21 + $0x174] sm:$0x1]  ;;  %v3812_v7 = vrot.slane %v3810_v23, 5 }
 0x2cf   : > { %v24559_v9 = vcombine.low %v3757_v17, %v24547_v19  ;;  %v3794_v62 = vrot.slane %v3793_v3, 4  ;;  %v24587_v25 = vsel %vm23014_vm2, %v3822_v55, %v3826_v35 }
 0x2d0   : > { %v3808_v43 = vrot.slane %v3807_v63, 4  ;;  %29336 = vst [vmem:[#allocation107_spill] sm:$0xff] %v24587_v25 }
 0x2d1   : > { %19403 = vmatmul.mubr.msk.bf16.gmra.mrb[12].mxu0 %vm908_vm3, %v29304_v26  ;;  %v3775_v26 = vrot.slane %v3773_v28, 4  ;;  %v3782_v28 = vshll.u32 %v24529_v2, 16 }
 0x2d2   : > { %19406 = vmatprep.mubr.msk.bf16.mxu0 %vm908_vm3, %v29331_v60  ;;  %v24532_v60 = vld [vmem:[%s22982_s21 + $0x15c] sm:$0x1] }
 0x2d3   : > { %v3779_v20 = vor.u32 %v3778_v57, %v3775_v26  ;;  %v3796_v54 = vshll.u32 %v24532_v60, 16  ;;  %v3832_v26 = vshll.u32 %v24473_v39, 16  ;;  %v3784_v57 = vrot.slane %v3782_v28, 5 }
 0x2d4   : > { %v3838_v28 = vshll.u32 %v24562_v10, 16 }
 0x2d5   : > { %v3780_v21 = vrot.slane %v3779_v20, 4  ;;  %v3798_v16 = vrot.slane %v3796_v54, 5  ;;  %v3849_v54 = vor.u32 %v3848_v50, %v3845_v41 }
 0x2d6   : > { %v3840_v63 = vrot.slane %v3838_v28, 5 }
 0x2d7   : > { %v24571_v20 = vsel %vm23014_vm2, %v3780_v21, %v3784_v57  ;;  %v24578_v17 = vsel %vm23014_vm2, %v3794_v62, %v3798_v16  ;;  %v3850_v41 = vrot.slane %v3849_v54, 4  ;;  %v22644_v21 = vld [vmem:[%s28594_s1 + $0x68] sm:$0xff]   ;;  %v29342_v57 = vld [vmem:[#allocation22_spill] sm:$0xff]  ;;  %v16953_v62 = vrot.slane %v24435_v15, 9 }
 0x2d8   : > { %29333 = vst [vmem:[#allocation34_spill] sm:$0xff] %v24571_v20  ;;  %29334 = vst [vmem:[#allocation73_spill] sm:$0xff] %v24578_v17  ;;  %v24591_v59 = vcombine.low %v24571_v20, %v24578_v17  ;;  %v4092_v16 = vrot.slane %v24509_v37, 5  ;;  %v16955_v15 = vrot.slane %v24449_v13, 9  ;;  %v4104_v54 = vrot.slane %v24532_v60, 5 }
 0x2d9   : > { %19407 = vmatmul.mubr.msk.bf16.gmra.mrb[16].mxu0 %vm908_vm3, %v29306_v33  ;;  %v3834_v33 = vrot.slane %v3832_v26, 5  ;;  %v24583_v26 = vsel %vm23014_vm2, %v3808_v43, %v3812_v7  ;;  %v16954_v43 = vrot.slane %v24438_v36, 9  ;;  %v4096_v7 = vrot.slane %v24512_v29, 5 }
 0x2da   : > { %19410 = vmatprep.mubr.msk.bf16.mxu0 %vm908_vm3, %v29307_v52  ;;  %v3831_v52 = vrot.slane %v3829_v30, 4  ;;  %v3852_v30 = vshll.u32 %v24565_v6, 16  ;;  %29335 = vst [vmem:[#allocation25_spill] sm:$0xff] %v24583_v26  ;;  %29337 = vst [vmem:[#allocation108_spill] sm:$0xff] %v24591_v59  ;;  %v24595_v23 = vcombine.low %v24583_v26, %v24587_v25  ;;  %v4093_v35 = vsel %vm23501_vm6, %v16953_v62, %v4092_v16 }
 0x2db   : > { %v24649_v28 = vsel %vm23501_vm6, %v16954_v43, %v4096_v7  ;;  %v4100_v29 = vrot.slane %v24529_v2, 5  ;;  %v4116_v16 = vrot.slane %v24562_v10, 5  ;;  %v16960_v43 = vrot.slane %v24476_v40, 9 }
 0x2dc   : > { %v3835_v3 = vor.u32 %v3834_v33, %v3831_v52  ;;  %29338 = vst [vmem:[#allocation109_spill] sm:$0xff] %v24595_v23  ;;  %v3854_v52 = vrot.slane %v3852_v30, 5  ;;  %v24653_v37 = vcombine.low %v4093_v35, %v24649_v28  ;;  %v16957_v30 = vrot.slane %v24455_v12, 9 }
 0x2dd   : > { %v24668_v2 = vsel %vm23501_vm6, %v16955_v15, %v4100_v29  ;;  %v4120_v7 = vrot.slane %v24565_v6, 5  ;;  %v22649_v6 = vld [vmem:[%s28594_s1 + $0x70] sm:$0xff]  }
 0x2de   : > { %v3836_v50 = vrot.slane %v3835_v3, 4  ;;  %v24607_v33 = vsel %vm23014_vm2, %v3850_v41, %v3854_v52  ;;  %v16956_v3 = vrot.slane %v24452_v51, 9  ;;  %v4112_v41 = vrot.slane %v24539_v49, 5  ;;  %v29344_v29 = vld [vmem:[#allocation36_spill] sm:$0xff] }
 0x2df   : > { %29340 = vst [vmem:[#allocation111_spill] sm:$0xff] %v24607_v33  ;;  %v24704_v15 = vsel %vm23501_vm6, %v16960_v43, %v4120_v7  ;;  %v24751_v43 = vcombine.low %v24458_v47, %v24473_v39  ;;  %v29362_v7 = vld [vmem:[#allocation11_spill] sm:$0xff] }
 0x2e0   : > { %v24603_v55 = vsel %vm23014_vm2, %v3836_v50, %v3840_v63  ;;  %v4108_v63 = vrot.slane %v24536_v0, 5  ;;  %v16958_v50 = vrot.slane %v24458_v47, 9  ;;  %v24672_v60 = vsel %vm23501_vm6, %v16956_v3, %v4104_v54  ;;  %v29345_v3 = vld [vmem:[#allocation37_spill] sm:$0xff]  ;;  %v29346_v54 = vld [vmem:[#allocation40_spill] sm:$0xff] }
 0x2e1   : > { %19411 = vmatmul.mubr.msk.bf16.gmra.mrb[20].mxu0 %vm908_vm3, %v29308_v22  ;;  %29339 = vst [vmem:[#allocation110_spill] sm:$0xff] %v24603_v55  ;;  %v24611_v5 = vcombine.low %v24603_v55, %v24607_v33  ;;  %v24684_v52 = vcombine.low %v24668_v2, %v24672_v60  ;;  %v29359_v47 = vld [vmem:[#allocation8_spill] sm:$0xff] }
 0x2e2   : > { %19414 = vmatprep.mubr.msk.bf16.mxu0 %vm908_vm3, %v24559_v9  ;;  %v24676_v0 = vsel %vm23501_vm6, %v16957_v30, %v4108_v63  ;;  %v24680_v49 = vsel %vm23501_vm6, %v16958_v50, %v4112_v41  ;;  %v29348_v30 = vld [vmem:[#allocation45_spill] sm:$0xff]  ;;  %v29349_v63 = vld [vmem:[#allocation48_spill] sm:$0xff]  ;;  %v29352_v50 = vld [vmem:[#allocation55_spill] sm:$0xff]  ;;  %v24739_v41 = vcombine.low %v24438_v36, %v24449_v13 }
 0x2e3   : > { %v24689_v62 = vcombine.low %v24676_v0, %v24680_v49  ;;  %v24758_v36 = vld [vmem:[%s22982_s21 + $0x180] sm:$0xf] }
 0x2e4   : > { %29353 = vst [vmem:[#allocation13_spill] sm:$0xff] %v24739_v41  ;;  %v24762_v13 = vcombine.low %v24476_v40, %v24758_v36  ;;  %v29361_v40 = vld [vmem:[#allocation9_spill] sm:$0xff] }
 0x2e6   : > { %29357 = vst [vmem:[#allocation36_spill] sm:$0xff] %v24762_v13 }
 0x2e9   : > { %19415 = vmatmul.mubr.msk.bf16.gmra.mrb[24].mxu0 %vm908_vm3, %v24591_v59 }
 0x2ea   : > { %19418 = vmatprep.mubr.msk.bf16.mxu0 %vm908_vm3, %v24595_v23 }
 0x2f1   : > { %19419 = vmatmul.mubr.msk.bf16.gmra.mrb[28].mxu0 %vm908_vm3, %v24611_v5 }
 0x2f2   : > { %19424 = vmatprep.mubr.msk.bf16.mxu0 %vm908_vm3, %v29341_v42  ;;  %v16959_v42 = vrot.slane %v24473_v39, 9  ;;  %v29360_v39 = vld [vmem:[#allocation17_spill] sm:$0xff] }
 0x2f4   : > { %v24700_v35 = vsel %vm23501_vm6, %v16959_v42, %v4116_v16  ;;  %v29354_v42 = vld [vmem:[#allocation87_spill] sm:$0xff]  ;;  %v24747_v16 = vcombine.low %v24452_v51, %v24455_v12  ;;  %v22650_v12 = vld [vmem:[%s28594_s1 + $0x78] sm:$0xff]  }
 0x2f5   : > { %v24708_v10 = vcombine.low %v24700_v35, %v24704_v15  ;;  %v29358_v51 = vld [vmem:[#allocation7_spill] sm:$0xff] }
 0x2f6   : > { %29355 = vst [vmem:[#allocation22_spill] sm:$0xff] %v24747_v16 }
 0x2f9   : > { %19425 = vmatmul.mubr.msk.bf16.vlgmr.msra.gmra.mrb[0].mxu0 %vm908_vm3, %v29313_v45 }
 0x2fa   : > { %19457 = vmatpush3.bf16.msra.mxu0 %v24489_v46  ;;  %19428 = vmatprep.mubr.msk.bf16.mxu0 %vm908_vm3, %v29314_v11  ;;  %v29343_v46 = vld [vmem:[#allocation31_spill] sm:$0xff] }
 0x2fb   : > { %19490 = vmatprep.subr.bf16.mxu0 %v22644_v21  ;;  %29356 = vst [vmem:[#allocation31_spill] sm:$0xff] %v24751_v43 }
 0x301   : > { %19429 = vmatmul.mubr.msk.bf16.gmra.mrb[4].mxu0 %vm908_vm3, %v29315_v53 }
 0x302   : > { %19432 = vmatprep.mubr.msk.bf16.mxu0 %vm908_vm3, %v29342_v57 }
 0x309   : > { %19433 = vmatmul.mubr.msk.bf16.gmra.mrb[8].mxu0 %vm908_vm3, %v29317_v24 }
 0x30a   : > { %19436 = vmatprep.mubr.msk.bf16.mxu0 %vm908_vm3, %v29318_v58 }
 0x311   : > { %19437 = vmatmul.mubr.msk.bf16.gmra.mrb[12].mxu0 %vm908_vm3, %v23821_v27 }
 0x312   : > { %19440 = vmatprep.mubr.msk.bf16.mxu0 %vm908_vm3, %v29343_v46 }
 0x319   : > { %19441 = vmatmul.mubr.msk.bf16.gmra.mrb[16].mxu0 %vm908_vm3, %v23857_v4 }
 0x31a   : > { %19444 = vmatprep.mubr.msk.bf16.mxu0 %vm908_vm3, %v23862_v14 }
 0x321   : > { %19445 = vmatmul.mubr.msk.bf16.gmra.mrb[20].mxu0 %vm908_vm3, %v29320_v1 }
 0x322   : > { %19448 = vmatprep.mubr.msk.bf16.mxu0 %vm908_vm3, %v24653_v37 }
 0x329   : > { %19449 = vmatmul.mubr.msk.bf16.gmra.mrb[24].mxu0 %vm908_vm3, %v24684_v52 }
 0x32a   : > { %19452 = vmatprep.mubr.msk.bf16.mxu0 %vm908_vm3, %v24689_v62 }
 0x331   : > { %19453 = vmatmul.mubr.msk.bf16.gmra.mrb[28].mxu0 %vm908_vm3, %v24708_v10 }
 0x332   : > { %19458 = vmatprep.mubr.msk.bf16.mxu0 %vm908_vm3, %v23905_v18  ;;  %v29347_v18 = vld [vmem:[#allocation41_spill] sm:$0xff] }
 0x339   : > { %19459 = vmatmul.mubr.msk.bf16.vlgmr.msra.gmra.mrb[0].mxu0 %vm908_vm3, %v23912_v56  ;;  %v29350_v56 = vld [vmem:[#allocation50_spill] sm:$0xff] }
 0x33a   : > { %19491 = vmatpush3.bf16.msra.mxu0 %v22644_v21  ;;  %19462 = vmatprep.mubr.msk.bf16.mxu0 %vm908_vm3, %v29344_v29  ;;  %v29351_v21 = vld [vmem:[#allocation54_spill] sm:$0xff] }
 0x33b   : > { %19524 = vmatprep.subr.bf16.mxu0 %v22649_v6  ;;  %v29363_v29 = vld [vmem:[#allocation18_spill] sm:$0xff] }
 0x341   : > { %19463 = vmatmul.mubr.msk.bf16.gmra.mrb[4].mxu0 %vm908_vm3, %v29345_v3  ;;  %v29364_v3 = vld [vmem:[#allocation88_spill] sm:$0xff] }
 0x342   : > { %19466 = vmatprep.mubr.msk.bf16.mxu0 %vm908_vm3, %v29346_v54 }
 0x349   : > { %19467 = vmatmul.mubr.msk.bf16.gmra.mrb[8].mxu0 %vm908_vm3, %v29347_v18 }
 0x34a   : > { %19470 = vmatprep.mubr.msk.bf16.mxu0 %vm908_vm3, %v29348_v30 }
 0x351   : > { %19471 = vmatmul.mubr.msk.bf16.gmra.mrb[12].mxu0 %vm908_vm3, %v29349_v63 }
 0x352   : > { %19474 = vmatprep.mubr.msk.bf16.mxu0 %vm908_vm3, %v29350_v56 }
 0x359   : > { %19475 = vmatmul.mubr.msk.bf16.gmra.mrb[16].mxu0 %vm908_vm3, %v29351_v21 }
 0x35a   : > { %19478 = vmatprep.mubr.msk.bf16.mxu0 %vm908_vm3, %v29352_v50 }
 0x361   : > { %19479 = vmatmul.mubr.msk.bf16.gmra.mrb[20].mxu0 %vm908_vm3, %v29354_v42 }
 0x362   : > { %19482 = vmatprep.mubr.msk.bf16.mxu0 %vm908_vm3, %v24739_v41  ;;  %v25124_v41 = vld [vmem:[%s22982_s21 + $0x1b4] sm:$0x1] }
 0x369   : > { %19483 = vmatmul.mubr.msk.bf16.gmra.mrb[24].mxu0 %vm908_vm3, %v24747_v16 }
 0x36a   : > { %19486 = vmatprep.mubr.msk.bf16.mxu0 %vm908_vm3, %v24751_v43 }
 0x371   : > { %19487 = vmatmul.mubr.msk.bf16.gmra.mrb[28].mxu0 %vm908_vm3, %v24762_v13 }
 0x372   : > { %19492 = vmatprep.mubr.msk.bf16.mxu0 %vm908_vm3, %v29358_v51  ;;  %v4572_v51 = vshll.u32 %v24758_v36, 16 }
 0x379   : > { %19493 = vmatmul.mubr.msk.bf16.vlgmr.msra.gmra.mrb[0].mxu0 %vm908_vm3, %v29359_v47  ;;  %v24795_v47 = vcombine.low %v24547_v19, %v24571_v20  ;;  %v24863_v19 = vcombine.low %v24680_v49, %v24700_v35  ;;  %v29388_v49 = vld [vmem:[#allocation69_spill] sm:$0xff]  ;;  %v29389_v35 = vld [vmem:[#allocation78_spill] sm:$0xff] }
 0x37a   : > { %19525 = vmatpush3.bf16.msra.mxu0 %v22649_v6  ;;  %19496 = vmatprep.mubr.msk.bf16.mxu0 %vm908_vm3, %v29360_v39  ;;  %v4569_v6 = vshrl.u32 %v24758_v36, 16 }
 0x37b   : > { %19558 = vmatprep.subr.bf16.mxu0 %v22650_v12  ;;  %29365 = vst [vmem:[#allocation37_spill] sm:$0xff] %v24795_v47  ;;  %29383 = vst [vmem:[#allocation17_spill] sm:$0xff] %v24863_v19 }
 0x37c   : > { %v4571_v39 = vrot.slane %v4569_v6, 4 }
 0x381   : > { %19497 = vmatmul.mubr.msk.bf16.gmra.mrb[4].mxu0 %vm908_vm3, %v29361_v40  ;;  %v4574_v40 = vrot.slane %v4572_v51, 5 }
 0x382   : > { %19500 = vmatprep.mubr.msk.bf16.mxu0 %vm908_vm3, %v29362_v7 }
 0x389   : > { %19501 = vmatmul.mubr.msk.bf16.gmra.mrb[8].mxu0 %vm908_vm3, %v29363_v29 }
 0x38a   : > { %19504 = vmatprep.mubr.msk.bf16.mxu0 %vm908_vm3, %v29364_v3  ;;  %v24808_v3 = vcombine.low %v24587_v25, %v24603_v55  ;;  %v29374_v55 = vld [vmem:[#allocation100_spill] sm:$0xff]  ;;  %v29376_v25 = vld [vmem:[#allocation102_spill] sm:$0xff] }
 0x38c   : > { %29367 = vst [vmem:[#allocation41_spill] sm:$0xff] %v24808_v3 }
 0x391   : > { %19505 = vmatmul.mubr.msk.bf16.gmra.mrb[12].mxu0 %vm908_vm3, %v24081_v44  ;;  %v375_v44 = vld [vmem:[%s22982_s21 + $0x184] sm:$0x1] }
 0x392   : > { %19508 = vmatprep.mubr.msk.bf16.mxu0 %vm908_vm3, %v24085_v8  ;;  %v4578_v8 = vshll.u32 %v375_v44, 16 }
 0x394   : > { %v4580_v6 = vrot.slane %v4578_v8, 5  ;;  %v29370_v8 = vld [vmem:[#allocation96_spill] sm:$0xff] }
 0x399   : > { %19509 = vmatmul.mubr.msk.bf16.gmra.mrb[16].mxu0 %vm908_vm3, %v24094_v38  ;;  %v4575_v38 = vor.u32 %v4574_v40, %v4571_v39  ;;  %v29372_v40 = vld [vmem:[#allocation98_spill] sm:$0xff] }
 0x39a   : > { %19512 = vmatprep.mubr.msk.bf16.mxu0 %vm908_vm3, %v24098_v61  ;;  %v24804_v61 = vcombine.low %v24578_v17, %v24583_v26  ;;  %v24859_v26 = vcombine.low %v24672_v60, %v24676_v0  ;;  %v17030_v17 = vrot.slane %v24758_v36, 9  ;;  %v29385_v60 = vld [vmem:[#allocation74_spill] sm:$0xff]  ;;  %v29386_v0 = vld [vmem:[#allocation75_spill] sm:$0xff] }
 0x39b   : > { %v4576_v20 = vrot.slane %v4575_v38, 4  ;;  %v22651_v38 = vld [vmem:[%s28594_s1 + $0x80] sm:$0xff]  }
 0x39c   : > { %29366 = vst [vmem:[#allocation40_spill] sm:$0xff] %v24804_v61  ;;  %29382 = vst [vmem:[#allocation8_spill] sm:$0xff] %v24859_v26 }
 0x39d   : > { %v24816_v51 = vsel %vm23014_vm2, %v4576_v20, %v4580_v6  ;;  %v29371_v20 = vld [vmem:[#allocation97_spill] sm:$0xff]  ;;  %v29373_v6 = vld [vmem:[#allocation99_spill] sm:$0xff] }
 0x39e   : > { %29368 = vst [vmem:[#allocation45_spill] sm:$0xff] %v24816_v51  ;;  %v24820_v39 = vcombine.low %v24607_v33, %v24816_v51  ;;  %v29381_v33 = vld [vmem:[#allocation106_spill] sm:$0xff] }
 0x3a0   : > { %29369 = vst [vmem:[#allocation48_spill] sm:$0xff] %v24820_v39 }
 0x3a1   : > { %19513 = vmatmul.mubr.msk.bf16.gmra.mrb[20].mxu0 %vm908_vm3, %v24110_v31 }
 0x3a2   : > { %19516 = vmatprep.mubr.msk.bf16.mxu0 %vm908_vm3, %v24795_v47 }
 0x3a9   : > { %19517 = vmatmul.mubr.msk.bf16.gmra.mrb[24].mxu0 %vm908_vm3, %v24804_v61 }
 0x3aa   : > { %19520 = vmatprep.mubr.msk.bf16.mxu0 %vm908_vm3, %v24808_v3  ;;  %v29411_v3 = vld [vmem:[#allocation20_spill] sm:$0xff] }
 0x3b1   : > { %19521 = vmatmul.mubr.msk.bf16.gmra.mrb[28].mxu0 %vm908_vm3, %v24820_v39  ;;  %v377_v39 = vld [vmem:[%s22982_s21 + $0x18c] sm:$0x1] }
 0x3b2   : > { %19526 = vmatprep.mubr.msk.bf16.mxu0 %vm908_vm3, %v24137_v48  ;;  %v29375_v48 = vld [vmem:[#allocation101_spill] sm:$0xff]  ;;  %v5275_v61 = vshll.u32 %v377_v39, 16 }
 0x3b4   : > { %v5277_v31 = vrot.slane %v5275_v61, 5  ;;  %v22655_v61 = vld [vmem:[%s28594_s1 + $0x98] sm:$0xff]  }
 0x3b9   : > { %19527 = vmatmul.mubr.msk.bf16.vlgmr.msra.gmra.mrb[0].mxu0 %vm908_vm3, %v29370_v8  ;;  %v29378_v8 = vld [vmem:[#allocation104_spill] sm:$0xff] }
 0x3ba   : > { %19559 = vmatpush3.bf16.msra.mxu0 %v22650_v12  ;;  %19530 = vmatprep.mubr.msk.bf16.mxu0 %vm908_vm3, %v29371_v20  ;;  %v29377_v12 = vld [vmem:[#allocation103_spill] sm:$0xff]  ;;  %v29379_v20 = vld [vmem:[#allocation105_spill] sm:$0xff] }
 0x3bb   : > { %19592 = vmatprep.subr.bf16.mxu0 %v22651_v38 }
 0x3c1   : > { %19531 = vmatmul.mubr.msk.bf16.gmra.mrb[4].mxu0 %vm908_vm3, %v29372_v40  ;;  %v24851_v40 = vcombine.low %v24649_v28, %v24668_v2 }
 0x3c2   : > { %19534 = vmatprep.mubr.msk.bf16.mxu0 %vm908_vm3, %v29373_v6 }
 0x3c3   : > { %29380 = vst [vmem:[#allocation7_spill] sm:$0xff] %v24851_v40 }
 0x3c9   : > { %19535 = vmatmul.mubr.msk.bf16.gmra.mrb[8].mxu0 %vm908_vm3, %v29374_v55 }
 0x3ca   : > { %19538 = vmatprep.mubr.msk.bf16.mxu0 %vm908_vm3, %v29375_v48  ;;  %v29408_v48 = vld [vmem:[#allocation16_spill] sm:$0xff] }
 0x3d1   : > { %19539 = vmatmul.mubr.msk.bf16.gmra.mrb[12].mxu0 %vm908_vm3, %v29376_v25  ;;  %v29407_v25 = vld [vmem:[#allocation57_spill] sm:$0xff] }
 0x3d2   : > { %19542 = vmatprep.mubr.msk.bf16.mxu0 %vm908_vm3, %v29377_v12  ;;  %v29403_v12 = vld [vmem:[#allocation39_spill] sm:$0xff] }
 0x3d9   : > { %19543 = vmatmul.mubr.msk.bf16.gmra.mrb[16].mxu0 %vm908_vm3, %v29378_v8  ;;  %v29402_v8 = vld [vmem:[#allocation33_spill] sm:$0xff] }
 0x3da   : > { %19546 = vmatprep.mubr.msk.bf16.mxu0 %vm908_vm3, %v29379_v20  ;;  %v4836_v20 = vrot.slane %v375_v44, 5  ;;  %v22653_v44 = vld [vmem:[%s28594_s1 + $0x88] sm:$0xff]  }
 0x3dc   : > { %v24872_v28 = vsel %vm23501_vm6, %v17030_v17, %v4836_v20  ;;  %v29387_v17 = vld [vmem:[#allocation76_spill] sm:$0xff] }
 0x3dd   : > { %v24876_v2 = vcombine.low %v24704_v15, %v24872_v28  ;;  %v29390_v15 = vld [vmem:[#allocation79_spill] sm:$0xff]  ;;  %v29391_v20 = vld [vmem:[#allocation80_spill] sm:$0xff] }
 0x3df   : > { %29384 = vst [vmem:[#allocation9_spill] sm:$0xff] %v24876_v2 }
 0x3e1   : > { %19547 = vmatmul.mubr.msk.bf16.gmra.mrb[20].mxu0 %vm908_vm3, %v29381_v33  ;;  %v29401_v33 = vld [vmem:[#allocation29_spill] sm:$0xff] }
 0x3e2   : > { %19550 = vmatprep.mubr.msk.bf16.mxu0 %vm908_vm3, %v24851_v40 }
 0x3e9   : > { %19551 = vmatmul.mubr.msk.bf16.gmra.mrb[24].mxu0 %vm908_vm3, %v24859_v26  ;;  %v29399_v26 = vld [vmem:[#allocation24_spill] sm:$0xff] }
 0x3ea   : > { %19554 = vmatprep.mubr.msk.bf16.mxu0 %vm908_vm3, %v24863_v19  ;;  %v29398_v19 = vld [vmem:[#allocation21_spill] sm:$0xff] }
 0x3f1   : > { %19555 = vmatmul.mubr.msk.bf16.gmra.mrb[28].mxu0 %vm908_vm3, %v24876_v2  ;;  %v29397_v2 = vld [vmem:[#allocation19_spill] sm:$0xff] }
 0x3f2   : > { %19560 = vmatprep.mubr.msk.bf16.mxu0 %vm908_vm3, %v29385_v60  ;;  %v29392_v60 = vld [vmem:[#allocation70_spill] sm:$0xff] }
 0x3f9   : > { %19561 = vmatmul.mubr.msk.bf16.vlgmr.msra.gmra.mrb[0].mxu0 %vm908_vm3, %v29386_v0  ;;  %v29394_v0 = vld [vmem:[#allocation83_spill] sm:$0xff] }
 0x3fa   : > { %19593 = vmatpush3.bf16.msra.mxu0 %v22651_v38  ;;  %19564 = vmatprep.mubr.msk.bf16.mxu0 %vm908_vm3, %v29387_v17  ;;  %v29393_v38 = vld [vmem:[#allocation82_spill] sm:$0xff]  ;;  %v29395_v17 = vld [vmem:[#allocation84_spill] sm:$0xff] }
 0x3fb   : > { %19626 = vmatprep.subr.bf16.mxu0 %v22653_v44 }
 0x401   : > { %19565 = vmatmul.mubr.msk.bf16.gmra.mrb[4].mxu0 %vm908_vm3, %v29388_v49  ;;  %v29396_v49 = vld [vmem:[#allocation72_spill] sm:$0xff] }
 0x402   : > { %19568 = vmatprep.mubr.msk.bf16.mxu0 %vm908_vm3, %v29389_v35 }
 0x409   : > { %19569 = vmatmul.mubr.msk.bf16.gmra.mrb[8].mxu0 %vm908_vm3, %v29390_v15 }
 0x40a   : > { %19572 = vmatprep.mubr.msk.bf16.mxu0 %vm908_vm3, %v29391_v20 }
 0x411   : > { %19573 = vmatmul.mubr.msk.bf16.gmra.mrb[12].mxu0 %vm908_vm3, %v29392_v60  ;;  %v376_v60 = vld [vmem:[%s22982_s21 + $0x188] sm:$0xf] }
 0x412   : > { %19576 = vmatprep.mubr.msk.bf16.mxu0 %vm908_vm3, %v29393_v38  ;;  %v24915_v40 = vcombine.low %v24758_v36, %v376_v60  ;;  %v29404_v36 = vld [vmem:[#allocation10_spill] sm:$0xff] }
 0x414   : > { %29400 = vst [vmem:[#allocation96_spill] sm:$0xff] %v24915_v40 }
 0x419   : > { %19577 = vmatmul.mubr.msk.bf16.gmra.mrb[16].mxu0 %vm908_vm3, %v29394_v0 }
 0x41a   : > { %19580 = vmatprep.mubr.msk.bf16.mxu0 %vm908_vm3, %v29395_v17 }
 0x421   : > { %19581 = vmatmul.mubr.msk.bf16.gmra.mrb[20].mxu0 %vm908_vm3, %v29396_v49  ;;  %v22654_v49 = vld [vmem:[%s28594_s1 + $0x90] sm:$0xff]  }
 0x422   : > { %19584 = vmatprep.mubr.msk.bf16.mxu0 %vm908_vm3, %v29397_v2 }
 0x429   : > { %19585 = vmatmul.mubr.msk.bf16.gmra.mrb[24].mxu0 %vm908_vm3, %v29398_v19 }
 0x42a   : > { %19588 = vmatprep.mubr.msk.bf16.mxu0 %vm908_vm3, %v29399_v26 }
 0x431   : > { %19589 = vmatmul.mubr.msk.bf16.gmra.mrb[28].mxu0 %vm908_vm3, %v24915_v40  ;;  %v29405_v40 = vld [vmem:[#allocation47_spill] sm:$0xff] }
 0x432   : > { %19594 = vmatprep.mubr.msk.bf16.mxu0 %vm908_vm3, %v29401_v33  ;;  %v29406_v33 = vld [vmem:[#allocation52_spill] sm:$0xff] }
 0x439   : > { %19595 = vmatmul.mubr.msk.bf16.vlgmr.msra.gmra.mrb[0].mxu0 %vm908_vm3, %v29402_v8  ;;  %v29409_v8 = vld [vmem:[#allocation62_spill] sm:$0xff] }
 0x43a   : > { %19627 = vmatpush3.bf16.msra.mxu0 %v22653_v44  ;;  %19598 = vmatprep.mubr.msk.bf16.mxu0 %vm908_vm3, %v29403_v12  ;;  %v29410_v12 = vld [vmem:[#allocation65_spill] sm:$0xff]  ;;  %v5266_v44 = vshrl.u32 %v376_v60, 16 }
 0x43b   : > { %19660 = vmatprep.subr.bf16.mxu0 %v22654_v49 }
 0x43c   : > { %v5268_v55 = vrot.slane %v5266_v44, 4 }
 0x441   : > { %19599 = vmatmul.mubr.msk.bf16.gmra.mrb[4].mxu0 %vm908_vm3, %v29404_v36  ;;  %v5269_v36 = vshll.u32 %v376_v60, 16 }
 0x442   : > { %19602 = vmatprep.mubr.msk.bf16.mxu0 %vm908_vm3, %v29405_v40 }
 0x443   : > { %v5271_v6 = vrot.slane %v5269_v36, 5 }
 0x449   : > { %19603 = vmatmul.mubr.msk.bf16.gmra.mrb[8].mxu0 %vm908_vm3, %v29406_v33 }
 0x44a   : > { %19606 = vmatprep.mubr.msk.bf16.mxu0 %vm908_vm3, %v29407_v25 }
 0x451   : > { %19607 = vmatmul.mubr.msk.bf16.gmra.mrb[12].mxu0 %vm908_vm3, %v29408_v48  ;;  %v5272_v48 = vor.u32 %v5271_v6, %v5268_v55  ;;  %v5489_v55 = vrot.slane %v377_v39, 5  ;;  %v22660_v39 = vld [vmem:[%s28594_s1 + $0xa0] sm:$0xff]  }
 0x452   : > { %19610 = vmatprep.mubr.msk.bf16.mxu0 %vm908_vm3, %v29409_v8 }
 0x453   : > { %v5273_v47 = vrot.slane %v5272_v48, 4  ;;  %v29417_v48 = vld [vmem:[#allocation77_spill] sm:$0xff] }
 0x455   : > { %v5278_v44 = vsel %vm23014_vm2, %v5273_v47, %v5277_v31  ;;  %v29413_v31 = vld [vmem:[#allocation85_spill] sm:$0xff] }
 0x456   : > { %v24956_v36 = vcombine.low %v24816_v51, %v5278_v44  ;;  %v25029_v44 = vld [vmem:[%s22982_s21 + $0x198] sm:$0xf] }
 0x458   : > { %29412 = vst [vmem:[#allocation97_spill] sm:$0xff] %v24956_v36 }
 0x459   : > { %19611 = vmatmul.mubr.msk.bf16.gmra.mrb[16].mxu0 %vm908_vm3, %v29410_v12 }
 0x45a   : > { %19614 = vmatprep.mubr.msk.bf16.mxu0 %vm908_vm3, %v29308_v22 }
 0x461   : > { %19615 = vmatmul.mubr.msk.bf16.gmra.mrb[20].mxu0 %vm908_vm3, %v29411_v3  ;;  %v5950_v3 = vshll.u32 %v25029_v44, 16 }
 0x462   : > { %19618 = vmatprep.mubr.msk.bf16.mxu0 %vm908_vm3, %v24591_v59 }
 0x469   : > { %19619 = vmatmul.mubr.msk.bf16.gmra.mrb[24].mxu0 %vm908_vm3, %v24595_v23 }
 0x46a   : > { %19622 = vmatprep.mubr.msk.bf16.mxu0 %vm908_vm3, %v24611_v5 }
 0x471   : > { %19623 = vmatmul.mubr.msk.bf16.gmra.mrb[28].mxu0 %vm908_vm3, %v24956_v36 }
 0x472   : > { %19628 = vmatprep.mubr.msk.bf16.mxu0 %vm908_vm3, %v29313_v45  ;;  %v29414_v45 = vld [vmem:[#allocation86_spill] sm:$0xff] }
 0x479   : > { %19629 = vmatmul.mubr.msk.bf16.vlgmr.msra.gmra.mrb[0].mxu0 %vm908_vm3, %v29314_v11  ;;  %v29415_v11 = vld [vmem:[#allocation12_spill] sm:$0xff] }
 0x47a   : > { %19661 = vmatpush3.bf16.msra.mxu0 %v22654_v49  ;;  %19632 = vmatprep.mubr.msk.bf16.mxu0 %vm908_vm3, %v29315_v53  ;;  %v17094_v53 = vrot.slane %v376_v60, 9  ;;  %v29419_v60 = vld [vmem:[#allocation15_spill] sm:$0xff]  ;;  %v25026_v49 = vld [vmem:[%s22982_s21 + $0x190] sm:$0xf] }
 0x47b   : > { %19694 = vmatprep.subr.bf16.mxu0 %v22655_v61  ;;  %v5936_v36 = vshll.u32 %v25026_v49, 16 }
 0x47c   : > { %v5490_v47 = vsel %vm23501_vm6, %v17094_v53, %v5489_v55  ;;  %v25040_v53 = vld [vmem:[%s22982_s21 + $0x1a8] sm:$0xf]  ;;  %v25043_v55 = vld [vmem:[%s22982_s21 + $0x1b0] sm:$0xf] }
 0x47d   : > { %v24996_v6 = vcombine.low %v24872_v28, %v5490_v47  ;;  %v29418_v28 = vld [vmem:[#allocation81_spill] sm:$0xff] }
 0x47e   : > { %v25046_v47 = vld [vmem:[%s22982_s21 + $0x1b8] sm:$0xf] }
 0x47f   : > { %29416 = vst [vmem:[#allocation98_spill] sm:$0xff] %v24996_v6 }
 0x481   : > { %19633 = vmatmul.mubr.msk.bf16.gmra.mrb[4].mxu0 %vm908_vm3, %v29413_v31  ;;  %v25037_v31 = vld [vmem:[%s22982_s21 + $0x1a0] sm:$0xf] }
 0x482   : > { %19636 = vmatprep.mubr.msk.bf16.mxu0 %vm908_vm3, %v29317_v24 }
 0x489   : > { %19637 = vmatmul.mubr.msk.bf16.gmra.mrb[8].mxu0 %vm908_vm3, %v29318_v58 }
 0x48a   : > { %19640 = vmatprep.mubr.msk.bf16.mxu0 %vm908_vm3, %v23821_v27 }
 0x491   : > { %19641 = vmatmul.mubr.msk.bf16.gmra.mrb[12].mxu0 %vm908_vm3, %v29414_v45  ;;  %v5933_v45 = vshrl.u32 %v25026_v49, 16 }
 0x492   : > { %19644 = vmatprep.mubr.msk.bf16.mxu0 %vm908_vm3, %v23857_v4 }
 0x499   : > { %19645 = vmatmul.mubr.msk.bf16.gmra.mrb[16].mxu0 %vm908_vm3, %v23862_v14 }
 0x49a   : > { %19648 = vmatprep.mubr.msk.bf16.mxu0 %vm908_vm3, %v29320_v1 }
 0x4a1   : > { %19649 = vmatmul.mubr.msk.bf16.gmra.mrb[20].mxu0 %vm908_vm3, %v29415_v11  ;;  %v25077_v11 = vld [vmem:[%s28594_s1 + $0xa8] sm:$0xff]  }
 0x4a2   : > { %19652 = vmatprep.mubr.msk.bf16.mxu0 %vm908_vm3, %v24684_v52 }
 0x4a9   : > { %19653 = vmatmul.mubr.msk.bf16.gmra.mrb[24].mxu0 %vm908_vm3, %v24689_v62 }
 0x4aa   : > { %19656 = vmatprep.mubr.msk.bf16.mxu0 %vm908_vm3, %v24708_v10 }
 0x4b1   : > { %19657 = vmatmul.mubr.msk.bf16.gmra.mrb[28].mxu0 %vm908_vm3, %v24996_v6  ;;  %v29423_v6 = vld [vmem:[#allocation43_spill] sm:$0xff] }
 0x4b2   : > { %19662 = vmatprep.mubr.msk.bf16.mxu0 %vm908_vm3, %v29417_v48  ;;  %v25050_v48 = vcombine.low %v25037_v31, %v25040_v53 }
 0x4b4   : > { %29420 = vst [vmem:[#allocation74_spill] sm:$0xff] %v25050_v48 }
 0x4b9   : > { %19663 = vmatmul.mubr.msk.bf16.vlgmr.msra.gmra.mrb[0].mxu0 %vm908_vm3, %v29389_v35  ;;  %v25117_v35 = vld [vmem:[%s22982_s21 + $0x1a4] sm:$0x1] }
 0x4ba   : > { %19695 = vmatpush3.bf16.msra.mxu0 %v22655_v61  ;;  %19666 = vmatprep.mubr.msk.bf16.mxu0 %vm908_vm3, %v29390_v15  ;;  %v17117_v61 = vcombine.low %v25026_v49, %v25029_v44 }
 0x4bb   : > { %19728 = vmatprep.subr.bf16.mxu0 %v22660_v39 }
 0x4c1   : > { %19667 = vmatmul.mubr.msk.bf16.gmra.mrb[4].mxu0 %vm908_vm3, %v29391_v20 }
 0x4c2   : > { %19670 = vmatprep.mubr.msk.bf16.mxu0 %vm908_vm3, %v29418_v28  ;;  %v25054_v28 = vcombine.low %v25043_v55, %v25046_v47 }
 0x4c4   : > { %29421 = vst [vmem:[#allocation75_spill] sm:$0xff] %v25054_v28 }
 0x4c9   : > { %19671 = vmatmul.mubr.msk.bf16.gmra.mrb[8].mxu0 %vm908_vm3, %v29393_v38 }
 0x4ca   : > { %19674 = vmatprep.mubr.msk.bf16.mxu0 %vm908_vm3, %v29394_v0  ;;  %v6006_v0 = vshll.u32 %v25046_v47, 16 }
 0x4cc   : > { %v6008_v43 = vrot.slane %v6006_v0, 5 }
 0x4d1   : > { %19675 = vmatmul.mubr.msk.bf16.gmra.mrb[12].mxu0 %vm908_vm3, %v29395_v17  ;;  %v6003_v17 = vshrl.u32 %v25046_v47, 16 }
 0x4d2   : > { %19678 = vmatprep.mubr.msk.bf16.mxu0 %vm908_vm3, %v29419_v60  ;;  %v25061_v60 = vld [vmem:[%s22982_s21 + $0x1c0] sm:$0xf] }
 0x4d3   : > { %v6005_v13 = vrot.slane %v6003_v17, 4  ;;  %v6017_v0 = vshrl.u32 %v25061_v60, 16  ;;  %v6020_v17 = vshll.u32 %v25061_v60, 16 }
 0x4d9   : > { %19679 = vmatmul.mubr.msk.bf16.gmra.mrb[16].mxu0 %vm908_vm3, %v29397_v2  ;;  %v5992_v2 = vshll.u32 %v25043_v55, 16 }
 0x4da   : > { %19682 = vmatprep.mubr.msk.bf16.mxu0 %vm908_vm3, %v29398_v19  ;;  %v5978_v19 = vshll.u32 %v25040_v53, 16 }
 0x4db   : > { %v5994_v7 = vrot.slane %v5992_v2, 5 }
 0x4e1   : > { %19683 = vmatmul.mubr.msk.bf16.gmra.mrb[20].mxu0 %vm908_vm3, %v29399_v26  ;;  %v5964_v26 = vshll.u32 %v25037_v31, 16 }
 0x4e2   : > { %19686 = vmatprep.mubr.msk.bf16.mxu0 %vm908_vm3, %v17117_v61  ;;  %v25064_v61 = vld [vmem:[%s22982_s21 + $0x1c8] sm:$0xf] }
 0x4e3   : > { %v25068_v51 = vcombine.low %v25061_v60, %v25064_v61 }
 0x4e5   : > { %29422 = vst [vmem:[#allocation76_spill] sm:$0xff] %v25068_v51 }
 0x4e9   : > { %19687 = vmatmul.mubr.msk.bf16.gmra.mrb[24].mxu0 %vm908_vm3, %v25050_v48  ;;  %v5961_v48 = vshrl.u32 %v25037_v31, 16 }
 0x4ea   : > { %19690 = vmatprep.mubr.msk.bf16.mxu0 %vm908_vm3, %v25054_v28  ;;  %v25097_v28 = vld [vmem:[%s22982_s21 + $0x194] sm:$0x1] }
 0x4f1   : > { %19691 = vmatmul.mubr.msk.bf16.gmra.mrb[28].mxu0 %vm908_vm3, %v25068_v51  ;;  %v5952_v51 = vrot.slane %v5950_v3, 5 }
 0x4f2   : > { %19696 = vmatprep.mubr.msk.bf16.mxu0 %vm908_vm3, %v29423_v6  ;;  %v29424_v6 = vld [vmem:[#allocation59_spill] sm:$0xff] }
 0x4f9   : > { %19697 = vmatmul.mubr.msk.bf16.vlgmr.msra.gmra.mrb[0].mxu0 %vm908_vm3, %v29405_v40  ;;  %v5938_v40 = vrot.slane %v5936_v36, 5  ;;  %v5942_v36 = vshll.u32 %v25097_v28, 16 }
 0x4fa   : > { %19729 = vmatpush3.bf16.msra.mxu0 %v22660_v39  ;;  %19700 = vmatprep.mubr.msk.bf16.mxu0 %vm908_vm3, %v29406_v33  ;;  %v5947_v39 = vshrl.u32 %v25029_v44, 16  ;;  %v5935_v33 = vrot.slane %v5933_v45, 4 }
 0x4fb   : > { %19762 = vmatprep.subr.bf16.mxu0 %v25077_v11  ;;  %v5944_v38 = vrot.slane %v5942_v36, 5  ;;  %v6034_v36 = vshll.u32 %v25064_v61, 16 }
 0x4fd   : > { %v6036_v50 = vrot.slane %v6034_v36, 5 }
 0x501   : > { %19701 = vmatmul.mubr.msk.bf16.gmra.mrb[4].mxu0 %vm908_vm3, %v29407_v25  ;;  %v5949_v25 = vrot.slane %v5947_v39, 4  ;;  %v5989_v39 = vshrl.u32 %v25043_v55, 16 }
 0x502   : > { %19704 = vmatprep.mubr.msk.bf16.mxu0 %vm908_vm3, %v29424_v6  ;;  %v25100_v6 = vld [vmem:[%s22982_s21 + $0x19c] sm:$0x1] }
 0x503   : > { %v5953_v3 = vor.u32 %v5952_v51, %v5949_v25  ;;  %v5956_v45 = vshll.u32 %v25100_v6, 16  ;;  %v5980_v25 = vrot.slane %v5978_v19, 5  ;;  %v5991_v29 = vrot.slane %v5989_v39, 4 }
 0x505   : > { %v5954_v20 = vrot.slane %v5953_v3, 4  ;;  %v5958_v15 = vrot.slane %v5956_v45, 5  ;;  %v5998_v3 = vshll.u32 %v25124_v41, 16 }
 0x509   : > { %19705 = vmatmul.mubr.msk.bf16.gmra.mrb[8].mxu0 %vm908_vm3, %v29409_v8  ;;  %v5975_v8 = vshrl.u32 %v25040_v53, 16 }
 0x50a   : > { %19708 = vmatprep.mubr.msk.bf16.mxu0 %vm908_vm3, %v29410_v12  ;;  %v5939_v12 = vor.u32 %v5938_v40, %v5935_v33  ;;  %v5966_v40 = vrot.slane %v5964_v26, 5  ;;  %v25127_v26 = vld [vmem:[%s22982_s21 + $0x1bc] sm:$0x1] }
 0x50b   : > { %v5977_v33 = vrot.slane %v5975_v8, 4  ;;  %v25135_v8 = vsel %vm23014_vm2, %v5954_v20, %v5958_v15  ;;  %v6009_v15 = vor.u32 %v6008_v43, %v6005_v13  ;;  %v6012_v20 = vshll.u32 %v25127_v26, 16  ;;  %v25151_v43 = vld [vmem:[%s22982_s21 + $0x1cc] sm:$0x1] }
 0x50c   : > { %v5940_v51 = vrot.slane %v5939_v12, 4  ;;  %v6031_v12 = vshrl.u32 %v25064_v61, 16 }
 0x50d   : > { %v5981_v2 = vor.u32 %v5980_v25, %v5977_v33  ;;  %v6014_v56 = vrot.slane %v6012_v20, 5 }
 0x50e   : > { %v5945_v19 = vsel %vm23014_vm2, %v5940_v51, %v5944_v38  ;;  %v5995_v38 = vor.u32 %v5994_v7, %v5991_v29  ;;  %v25148_v51 = vld [vmem:[%s22982_s21 + $0x1c4] sm:$0x1]  ;;  %v6033_v42 = vrot.slane %v6031_v12, 4  ;;  %v6000_v7 = vrot.slane %v5998_v3, 5  ;;  %v22662_v3 = vld [vmem:[%s28594_s1 + $0xb0] sm:$0xff]  }
 0x50f   : > { %v17140_v39 = vcombine.low %v5945_v19, %v25135_v8  ;;  %v5982_v33 = vrot.slane %v5981_v2, 4  ;;  %v6010_v29 = vrot.slane %v6009_v15, 4  ;;  %v6026_v13 = vshll.u32 %v25148_v51, 16 }
 0x510   : > { %v5996_v21 = vrot.slane %v5995_v38, 4  ;;  %v6037_v2 = vor.u32 %v6036_v50, %v6033_v42  ;;  %v17162_v15 = vrot.slane %v25029_v44, 9 }
 0x511   : > { %19709 = vmatmul.mubr.msk.bf16.gmra.mrb[12].mxu0 %vm908_vm3, %v29308_v22  ;;  %v5963_v22 = vrot.slane %v5961_v48, 4  ;;  %v5970_v48 = vshll.u32 %v25117_v35, 16  ;;  %v6028_v36 = vrot.slane %v6026_v13, 5  ;;  %v17167_v13 = vrot.slane %v25061_v60, 9 }
 0x512   : > { %19712 = vmatprep.mubr.msk.bf16.mxu0 %vm908_vm3, %v24559_v9  ;;  %v25120_v9 = vld [vmem:[%s22982_s21 + $0x1ac] sm:$0x1] }
 0x513   : > { %v5967_v16 = vor.u32 %v5966_v40, %v5963_v22  ;;  %v5984_v22 = vshll.u32 %v25120_v9, 16  ;;  %v5972_v40 = vrot.slane %v5970_v48, 5 }
 0x515   : > { %v5968_v45 = vrot.slane %v5967_v16, 4  ;;  %v5986_v25 = vrot.slane %v5984_v22, 5  ;;  %v6040_v22 = vshll.u32 %v25151_v43, 16 }
 0x517   : > { %v25157_v16 = vsel %vm23014_vm2, %v5968_v45, %v5972_v40  ;;  %v25163_v48 = vsel %vm23014_vm2, %v5982_v33, %v5986_v25  ;;  %v6042_v50 = vrot.slane %v6040_v22, 5  ;;  %v6288_v45 = vrot.slane %v25117_v35, 5 }
 0x518   : > { %v25176_v12 = vcombine.low %v25157_v16, %v25163_v48  ;;  %v17165_v40 = vrot.slane %v25043_v55, 9  ;;  %v6296_v33 = vrot.slane %v25124_v41, 5  ;;  %v17166_v25 = vrot.slane %v25046_v47, 9 }
 0x519   : > { %19713 = vmatmul.mubr.msk.bf16.gmra.mrb[16].mxu0 %vm908_vm3, %v24591_v59  ;;  %v6022_v59 = vrot.slane %v6020_v17, 5  ;;  %v25172_v17 = vsel %vm23014_vm2, %v6010_v29, %v6014_v56  ;;  %v17168_v22 = vrot.slane %v25064_v61, 9 }
 0x51a   : > { %19716 = vmatprep.mubr.msk.bf16.mxu0 %vm908_vm3, %v24595_v23  ;;  %v6019_v23 = vrot.slane %v6017_v0, 4  ;;  %v25168_v0 = vsel %vm23014_vm2, %v5996_v21, %v6000_v7  ;;  %v6300_v7 = vrot.slane %v25127_v26, 5  ;;  %v25258_v41 = vsel %vm23501_vm6, %v17165_v40, %v6296_v33  ;;  %v29442_v40 = vld [vmem:[#allocation40_spill] sm:$0xff]  ;;  %v29443_v33 = vld [vmem:[#allocation41_spill] sm:$0xff] }
 0x51b   : > { %v25180_v38 = vcombine.low %v25168_v0, %v25172_v17 }
 0x51c   : > { %v6023_v19 = vor.u32 %v6022_v59, %v6019_v23  ;;  %v6038_v23 = vrot.slane %v6037_v2, 4  ;;  %v25262_v26 = vsel %vm23501_vm6, %v17166_v25, %v6300_v7  ;;  %v6304_v2 = vrot.slane %v25148_v51, 5 }
 0x51e   : > { %v6024_v59 = vrot.slane %v6023_v19, 4  ;;  %v25192_v21 = vsel %vm23014_vm2, %v6038_v23, %v6042_v50  ;;  %v25271_v19 = vcombine.low %v25258_v41, %v25262_v26  ;;  %v29425_v50 = vld [vmem:[#allocation50_spill] sm:$0xff] }
 0x520   : > { %v25188_v56 = vsel %vm23014_vm2, %v6024_v59, %v6028_v36  ;;  %v6308_v36 = vrot.slane %v25151_v43, 5  ;;  %v25282_v59 = vsel %vm23501_vm6, %v17167_v13, %v6304_v2  ;;  %v22667_v43 = vld [vmem:[%s28594_s1 + $0xb8] sm:$0xff]   ;;  %v17217_v13 = vcombine.low %v25135_v8, %v25157_v16 }
 0x521   : > { %19717 = vmatmul.mubr.msk.bf16.gmra.mrb[20].mxu0 %vm908_vm3, %v24611_v5  ;;  %v25196_v42 = vcombine.low %v25188_v56, %v25192_v21 }
 0x522   : > { %19720 = vmatprep.mubr.msk.bf16.mxu0 %vm908_vm3, %v17140_v39  ;;  %v6292_v39 = vrot.slane %v25120_v9, 5  ;;  %v25286_v23 = vsel %vm23501_vm6, %v17168_v22, %v6308_v36  ;;  %v395_v36 = vld [vmem:[%s22982_s21 + $0x1d4] sm:$0x1] }
 0x523   : > { %v25290_v51 = vcombine.low %v25282_v59, %v25286_v23 }
 0x529   : > { %19721 = vmatmul.mubr.msk.bf16.gmra.mrb[24].mxu0 %vm908_vm3, %v25176_v12 }
 0x52a   : > { %19724 = vmatprep.mubr.msk.bf16.mxu0 %vm908_vm3, %v25180_v38 }
 0x531   : > { %19725 = vmatmul.mubr.msk.bf16.gmra.mrb[28].mxu0 %vm908_vm3, %v25196_v42 }
 0x532   : > { %19730 = vmatprep.mubr.msk.bf16.mxu0 %vm908_vm3, %v29342_v57  ;;  %v17161_v57 = vrot.slane %v25026_v49, 9  ;;  %v17163_v49 = vrot.slane %v25037_v31, 9 }
 0x534   : > { %v25250_v35 = vsel %vm23501_vm6, %v17163_v49, %v6288_v45  ;;  %v25331_v49 = vld [vmem:[%s22982_s21 + $0x1d0] sm:$0xf]  ;;  %v29439_v45 = vld [vmem:[#allocation93_spill] sm:$0xff] }
 0x535   : > { %v6757_v25 = vshrl.u32 %v25331_v49, 16  ;;  %v6760_v7 = vshll.u32 %v25331_v49, 16 }
 0x537   : > { %v6759_v2 = vrot.slane %v6757_v25, 4  ;;  %v6762_v22 = vrot.slane %v6760_v7, 5  ;;  %v29466_v25 = vld [vmem:[#allocation21_spill] sm:$0xff]  ;;  %v29467_v7 = vld [vmem:[#allocation24_spill] sm:$0xff] }
 0x539   : > { %19731 = vmatmul.mubr.msk.bf16.vlgmr.msra.gmra.mrb[0].mxu0 %vm908_vm3, %v29317_v24 }
 0x53a   : > { %19763 = vmatpush3.bf16.msra.mxu0 %v25077_v11  ;;  %19734 = vmatprep.mubr.msk.bf16.mxu0 %vm908_vm3, %v29318_v58  ;;  %v6280_v11 = vrot.slane %v25097_v28, 5 }
 0x53b   : > { %19796 = vmatprep.subr.bf16.mxu0 %v22662_v3 }
 0x53c   : > { %v6281_v20 = vsel %vm23501_vm6, %v17161_v57, %v6280_v11  ;;  %v29427_v57 = vld [vmem:[#allocation55_spill] sm:$0xff] }
 0x53d   : > { %v29428_v11 = vld [vmem:[#allocation87_spill] sm:$0xff] }
 0x541   : > { %19735 = vmatmul.mubr.msk.bf16.gmra.mrb[4].mxu0 %vm908_vm3, %v23821_v27 }
 0x542   : > { %19738 = vmatprep.mubr.msk.bf16.mxu0 %vm908_vm3, %v29343_v46  ;;  %v6284_v46 = vrot.slane %v25100_v6, 5  ;;  %v17164_v6 = vrot.slane %v25040_v53, 9 }
 0x544   : > { %v25254_v9 = vsel %vm23501_vm6, %v17164_v6, %v6292_v39  ;;  %v29440_v6 = vld [vmem:[#allocation95_spill] sm:$0xff]  ;;  %v29441_v39 = vld [vmem:[#allocation37_spill] sm:$0xff] }
 0x545   : > { %v25266_v29 = vcombine.low %v25250_v35, %v25254_v9 }
 0x549   : > { %19739 = vmatmul.mubr.msk.bf16.gmra.mrb[8].mxu0 %vm908_vm3, %v23857_v4 }
 0x54a   : > { %19742 = vmatprep.mubr.msk.bf16.mxu0 %vm908_vm3, %v23862_v14 }
 0x551   : > { %19743 = vmatmul.mubr.msk.bf16.gmra.mrb[12].mxu0 %vm908_vm3, %v29320_v1 }
 0x552   : > { %19746 = vmatprep.mubr.msk.bf16.mxu0 %vm908_vm3, %v24653_v37  ;;  %v25234_v37 = vsel %vm23501_vm6, %v17162_v15, %v6284_v46  ;;  %v29432_v15 = vld [vmem:[#allocation36_spill] sm:$0xff]  ;;  %v17195_v46 = vcombine.low %v25040_v53, %v25043_v55  ;;  %v22668_v53 = vld [vmem:[%s28594_s1 + $0xc0] sm:$0xff]  }
 0x553   : > { %v17171_v28 = vcombine.low %v6281_v20, %v25234_v37  ;;  %v17196_v20 = vcombine.low %v25046_v47, %v25061_v60  ;;  %v29434_v55 = vld [vmem:[#allocation18_spill] sm:$0xff]  ;;  %v29435_v47 = vld [vmem:[#allocation88_spill] sm:$0xff] }
 0x554   : > { %v29436_v60 = vld [vmem:[#allocation90_spill] sm:$0xff] }
 0x559   : > { %19747 = vmatmul.mubr.msk.bf16.gmra.mrb[16].mxu0 %vm908_vm3, %v24684_v52 }
 0x55a   : > { %19750 = vmatprep.mubr.msk.bf16.mxu0 %vm908_vm3, %v24689_v62 }
 0x561   : > { %19751 = vmatmul.mubr.msk.bf16.gmra.mrb[20].mxu0 %vm908_vm3, %v24708_v10 }
 0x562   : > { %19754 = vmatprep.mubr.msk.bf16.mxu0 %vm908_vm3, %v17171_v28  ;;  %v29438_v28 = vld [vmem:[#allocation92_spill] sm:$0xff] }
 0x569   : > { %19755 = vmatmul.mubr.msk.bf16.gmra.mrb[24].mxu0 %vm908_vm3, %v25266_v29 }
 0x56a   : > { %19758 = vmatprep.mubr.msk.bf16.mxu0 %vm908_vm3, %v25271_v19 }
 0x571   : > { %19759 = vmatmul.mubr.msk.bf16.gmra.mrb[28].mxu0 %vm908_vm3, %v25290_v51 }
 0x572   : > { %19764 = vmatprep.mubr.msk.bf16.mxu0 %vm908_vm3, %v29346_v54  ;;  %v29426_v54 = vld [vmem:[#allocation54_spill] sm:$0xff] }
 0x579   : > { %19765 = vmatmul.mubr.msk.bf16.vlgmr.msra.gmra.mrb[0].mxu0 %vm908_vm3, %v29347_v18  ;;  %v29429_v18 = vld [vmem:[#allocation13_spill] sm:$0xff] }
 0x57a   : > { %19797 = vmatpush3.bf16.msra.mxu0 %v22662_v3  ;;  %19768 = vmatprep.mubr.msk.bf16.mxu0 %vm908_vm3, %v29348_v30  ;;  %v29430_v30 = vld [vmem:[#allocation22_spill] sm:$0xff]  ;;  %v29431_v3 = vld [vmem:[#allocation31_spill] sm:$0xff] }
 0x57b   : > { %19830 = vmatprep.subr.bf16.mxu0 %v22667_v43 }
 0x581   : > { %19769 = vmatmul.mubr.msk.bf16.gmra.mrb[4].mxu0 %vm908_vm3, %v29349_v63  ;;  %v17194_v63 = vcombine.low %v25029_v44, %v25037_v31  ;;  %v17197_v44 = vcombine.low %v25064_v61, %v25331_v49  ;;  %v29433_v31 = vld [vmem:[#allocation11_spill] sm:$0xff] }
 0x582   : > { %19772 = vmatprep.mubr.msk.bf16.mxu0 %vm908_vm3, %v29425_v50  ;;  %v29437_v61 = vld [vmem:[#allocation91_spill] sm:$0xff]  ;;  %v6763_v50 = vor.u32 %v6762_v22, %v6759_v2  ;;  %v29469_v2 = vld [vmem:[#allocation74_spill] sm:$0xff] }
 0x583   : > { %v29470_v22 = vld [vmem:[#allocation75_spill] sm:$0xff] }
 0x589   : > { %19773 = vmatmul.mubr.msk.bf16.gmra.mrb[8].mxu0 %vm908_vm3, %v29426_v54  ;;  %v6766_v54 = vshll.u32 %v395_v36, 16 }
 0x58a   : > { %19776 = vmatprep.mubr.msk.bf16.mxu0 %vm908_vm3, %v29427_v57  ;;  %v17218_v57 = vcombine.low %v25163_v48, %v25168_v0  ;;  %v22669_v48 = vld [vmem:[%s28594_s1 + $0xc8] sm:$0xff]   ;;  %v29446_v0 = vld [vmem:[#allocation100_spill] sm:$0xff] }
 0x591   : > { %19777 = vmatmul.mubr.msk.bf16.gmra.mrb[12].mxu0 %vm908_vm3, %v29428_v11  ;;  %v17219_v11 = vcombine.low %v25172_v17, %v25188_v56  ;;  %v29447_v17 = vld [vmem:[#allocation101_spill] sm:$0xff]  ;;  %v29448_v56 = vld [vmem:[#allocation102_spill] sm:$0xff] }
 0x592   : > { %19780 = vmatprep.mubr.msk.bf16.mxu0 %vm908_vm3, %v29429_v18  ;;  %v6764_v18 = vrot.slane %v6763_v50, 4 }
 0x599   : > { %19781 = vmatmul.mubr.msk.bf16.gmra.mrb[16].mxu0 %vm908_vm3, %v29430_v30  ;;  %v6768_v30 = vrot.slane %v6766_v54, 5  ;;  %v29472_v54 = vld [vmem:[#allocation47_spill] sm:$0xff] }
 0x59a   : > { %19784 = vmatprep.mubr.msk.bf16.mxu0 %vm908_vm3, %v29431_v3  ;;  %v29445_v3 = vld [vmem:[#allocation99_spill] sm:$0xff] }
 0x59b   : > { %v25377_v8 = vsel %vm23014_vm2, %v6764_v18, %v6768_v30  ;;  %v29475_v18 = vld [vmem:[#allocation16_spill] sm:$0xff]  ;;  %v29476_v30 = vld [vmem:[#allocation62_spill] sm:$0xff] }
 0x59c   : > { %v17220_v16 = vcombine.low %v25192_v21, %v25377_v8  ;;  %v29449_v21 = vld [vmem:[#allocation103_spill] sm:$0xff] }
 0x5a1   : > { %19785 = vmatmul.mubr.msk.bf16.gmra.mrb[20].mxu0 %vm908_vm3, %v29432_v15  ;;  %v29451_v15 = vld [vmem:[#allocation105_spill] sm:$0xff] }
 0x5a2   : > { %19788 = vmatprep.mubr.msk.bf16.mxu0 %vm908_vm3, %v17194_v63  ;;  %v29450_v63 = vld [vmem:[#allocation104_spill] sm:$0xff] }
 0x5a9   : > { %19789 = vmatmul.mubr.msk.bf16.gmra.mrb[24].mxu0 %vm908_vm3, %v17195_v46  ;;  %v29452_v46 = vld [vmem:[#allocation106_spill] sm:$0xff] }
 0x5aa   : > { %19792 = vmatprep.mubr.msk.bf16.mxu0 %vm908_vm3, %v17196_v20  ;;  %v29453_v20 = vld [vmem:[#allocation7_spill] sm:$0xff] }
 0x5b1   : > { %19793 = vmatmul.mubr.msk.bf16.gmra.mrb[28].mxu0 %vm908_vm3, %v17197_v44  ;;  %v29454_v44 = vld [vmem:[#allocation8_spill] sm:$0xff] }
 0x5b2   : > { %19798 = vmatprep.mubr.msk.bf16.mxu0 %vm908_vm3, %v29433_v31  ;;  %v29455_v31 = vld [vmem:[#allocation17_spill] sm:$0xff] }
 0x5b9   : > { %19799 = vmatmul.mubr.msk.bf16.vlgmr.msra.gmra.mrb[0].mxu0 %vm908_vm3, %v29434_v55  ;;  %v29456_v55 = vld [vmem:[#allocation9_spill] sm:$0xff] }
 0x5ba   : > { %19831 = vmatpush3.bf16.msra.mxu0 %v22667_v43  ;;  %19802 = vmatprep.mubr.msk.bf16.mxu0 %vm908_vm3, %v29435_v47  ;;  %v29444_v43 = vld [vmem:[#allocation48_spill] sm:$0xff]  ;;  %v17242_v47 = vcombine.low %v25254_v9, %v25258_v41  ;;  %v29457_v9 = vld [vmem:[#allocation78_spill] sm:$0xff] }
 0x5bb   : > { %19864 = vmatprep.subr.bf16.mxu0 %v22668_v53  ;;  %v22671_v41 = vld [vmem:[%s28594_s1 + $0xd0] sm:$0xff]  }
 0x5c1   : > { %19803 = vmatmul.mubr.msk.bf16.gmra.mrb[4].mxu0 %vm908_vm3, %v29436_v60  ;;  %v17243_v60 = vcombine.low %v25262_v26, %v25282_v59  ;;  %v29458_v26 = vld [vmem:[#allocation79_spill] sm:$0xff]  ;;  %v29459_v59 = vld [vmem:[#allocation80_spill] sm:$0xff] }
 0x5c2   : > { %19806 = vmatprep.mubr.msk.bf16.mxu0 %vm908_vm3, %v29437_v61  ;;  %v17238_v61 = vrot.slane %v25331_v49, 9 }
 0x5c9   : > { %19807 = vmatmul.mubr.msk.bf16.gmra.mrb[8].mxu0 %vm908_vm3, %v29438_v28  ;;  %v6992_v28 = vrot.slane %v395_v36, 5  ;;  %v29471_v36 = vld [vmem:[#allocation76_spill] sm:$0xff] }
 0x5ca   : > { %19810 = vmatprep.mubr.msk.bf16.mxu0 %vm908_vm3, %v29439_v45  ;;  %v29460_v45 = vld [vmem:[#allocation70_spill] sm:$0xff] }
 0x5d1   : > { %19811 = vmatmul.mubr.msk.bf16.gmra.mrb[12].mxu0 %vm908_vm3, %v29440_v6  ;;  %v29462_v6 = vld [vmem:[#allocation83_spill] sm:$0xff] }
 0x5d2   : > { %19814 = vmatprep.mubr.msk.bf16.mxu0 %vm908_vm3, %v29441_v39  ;;  %v29463_v39 = vld [vmem:[#allocation84_spill] sm:$0xff] }
 0x5d9   : > { %19815 = vmatmul.mubr.msk.bf16.gmra.mrb[16].mxu0 %vm908_vm3, %v29442_v40  ;;  %v29464_v40 = vld [vmem:[#allocation72_spill] sm:$0xff] }
 0x5da   : > { %19818 = vmatprep.mubr.msk.bf16.mxu0 %vm908_vm3, %v29443_v33  ;;  %v29465_v33 = vld [vmem:[#allocation19_spill] sm:$0xff] }
 0x5e1   : > { %19819 = vmatmul.mubr.msk.bf16.gmra.mrb[20].mxu0 %vm908_vm3, %v29444_v43  ;;  %v396_v43 = vld [vmem:[%s22982_s21 + $0x1d8] sm:$0xf] }
 0x5e2   : > { %19822 = vmatprep.mubr.msk.bf16.mxu0 %vm908_vm3, %v17217_v13  ;;  %v29468_v13 = vld [vmem:[#allocation96_spill] sm:$0xff]  ;;  %v17264_v50 = vcombine.low %v25331_v49, %v396_v43  ;;  %v29477_v49 = vld [vmem:[#allocation65_spill] sm:$0xff] }
 0x5e9   : > { %19823 = vmatmul.mubr.msk.bf16.gmra.mrb[24].mxu0 %vm908_vm3, %v17218_v57  ;;  %v29473_v57 = vld [vmem:[#allocation52_spill] sm:$0xff] }
 0x5ea   : > { %19826 = vmatprep.mubr.msk.bf16.mxu0 %vm908_vm3, %v17219_v11  ;;  %v29474_v11 = vld [vmem:[#allocation57_spill] sm:$0xff] }
 0x5f1   : > { %19827 = vmatmul.mubr.msk.bf16.gmra.mrb[28].mxu0 %vm908_vm3, %v17220_v16  ;;  %v29478_v16 = vld [vmem:[#allocation68_spill] sm:$0xff] }
 0x5f2   : > { %19832 = vmatprep.mubr.msk.bf16.mxu0 %vm908_vm3, %v29445_v3  ;;  %v29479_v3 = vld [vmem:[#allocation20_spill] sm:$0xff] }
 0x5f9   : > { %19833 = vmatmul.mubr.msk.bf16.vlgmr.msra.gmra.mrb[0].mxu0 %vm908_vm3, %v29446_v0  ;;  %v29481_v0 = vld [vmem:[#allocation109_spill] sm:$0xff] }
 0x5fa   : > { %19865 = vmatpush3.bf16.msra.mxu0 %v22668_v53  ;;  %19836 = vmatprep.mubr.msk.bf16.mxu0 %vm908_vm3, %v29447_v17  ;;  %v17241_v53 = vcombine.low %v25234_v37, %v25250_v35  ;;  %v25421_v37 = vsel %vm23501_vm6, %v17238_v61, %v6992_v28  ;;  %v7422_v17 = vshrl.u32 %v396_v43, 16 }
 0x5fb   : > { %19898 = vmatprep.subr.bf16.mxu0 %v22669_v48  ;;  %v17244_v35 = vcombine.low %v25286_v23, %v25421_v37  ;;  %v29461_v23 = vld [vmem:[#allocation82_spill] sm:$0xff] }
 0x601   : > { %19837 = vmatmul.mubr.msk.bf16.gmra.mrb[4].mxu0 %vm908_vm3, %v29448_v56  ;;  %v7425_v56 = vshll.u32 %v396_v43, 16 }
 0x602   : > { %19840 = vmatprep.mubr.msk.bf16.mxu0 %vm908_vm3, %v29449_v21  ;;  %v7424_v21 = vrot.slane %v7422_v17, 4 }
 0x609   : > { %19841 = vmatmul.mubr.msk.bf16.gmra.mrb[8].mxu0 %vm908_vm3, %v29450_v63  ;;  %v7427_v63 = vrot.slane %v7425_v56, 5 }
 0x60a   : > { %19844 = vmatprep.mubr.msk.bf16.mxu0 %vm908_vm3, %v29451_v15  ;;  %v397_v15 = vld [vmem:[%s22982_s21 + $0x1dc] sm:$0x1]  ;;  %s28395_s21 = scalar_lea.vmem [#allocation3], %s16588_s18 }
 0x60b   : > { %s16522_s20 = sshll.u32 %s28395_s21, 4  ;;  %s28542_s20 = int_to_ptr.vmem [resolvable:$true] %s16522_s20 }
 0x60c   : > { %s22812_s8 = scalar_lea.vmem %s28542_s20, 2048  ;;  %p22819_p0 = scmp.lt.s32.totalorder %s28542_s20, %s22817_s13 }
 0x60d   : > { %p22813_p11 = scmp.ne.s32.totalorder %s28542_s20, %s22812_s8  ;;  %p22820_p1 = scmp.lt.s32.totalorder %s22818_s14, %s22812_s8 }
 0x60f   : > { %p22814_p12 = pnand %p22813_p11, %p22958_p5  ;;  %p22821_p2 = por %p22820_p1, %p22819_p0 }
 0x611   : > { %19845 = vmatmul.mubr.msk.bf16.gmra.mrb[12].mxu0 %vm908_vm3, %v29452_v46  ;;  %v29482_v46 = vld [vmem:[#allocation97_spill] sm:$0xff]  ;;  %p22815_p13 = pneg %p22814_p12 }
 0x612   : > { %19848 = vmatprep.mubr.msk.bf16.mxu0 %vm908_vm3, %v29453_v20  ;;  %v7428_v20 = vor.u32 %v7427_v63, %v7424_v21 }
 0x613   : > { %p22822_p3 = pnand %p22821_p2, %p22815_p13 }
 0x619   : > { %19849 = vmatmul.mubr.msk.bf16.gmra.mrb[16].mxu0 %vm908_vm3, %v29454_v44  ;;  %v7431_v44 = vshll.u32 %v397_v15, 16 }
 0x61a   : > { %19852 = vmatprep.mubr.msk.bf16.mxu0 %vm908_vm3, %v29455_v31  ;;  %v7429_v31 = vrot.slane %v7428_v20, 4 }
 0x621   : > { %19853 = vmatmul.mubr.msk.bf16.gmra.mrb[20].mxu0 %vm908_vm3, %v29456_v55 }
 0x622   : > { %19856 = vmatprep.mubr.msk.bf16.mxu0 %vm908_vm3, %v17241_v53  ;;  %v7433_v53 = vrot.slane %v7431_v44, 5 }
 0x629   : > { %19857 = vmatmul.mubr.msk.bf16.gmra.mrb[24].mxu0 %vm908_vm3, %v17242_v47 }
 0x62a   : > { %19860 = vmatprep.mubr.msk.bf16.mxu0 %vm908_vm3, %v17243_v60 }
 0x631   : > { %19861 = vmatmul.mubr.msk.bf16.gmra.mrb[28].mxu0 %vm908_vm3, %v17244_v35 }
 0x632   : > { %19866 = vmatprep.mubr.msk.bf16.mxu0 %vm908_vm3, %v29457_v9 }
 0x639   : > { %19867 = vmatmul.mubr.msk.bf16.vlgmr.msra.gmra.mrb[0].mxu0 %vm908_vm3, %v29458_v26  ;;  %v22672_v26 = vld [vmem:[%s28597_s4 + $0x8] sm:$0xff]  }
 0x63a   : > { %19899 = vmatpush3.bf16.msra.mxu0 %v22669_v48  ;;  %19870 = vmatprep.mubr.msk.bf16.mxu0 %vm908_vm3, %v29459_v59  ;;  %v29480_v48 = vld [vmem:[#allocation108_spill] sm:$0xff] }
 0x63b   : > { %19932 = vmatprep.subr.bf16.mxu0 %v22671_v41  ;;  %19966 = vmatprep.subr.bf16.mxu1 %v22672_v26 }
 0x63c   : > { %19967 = vmatpush3.bf16.msra.mxu1 %v22672_v26 }
 0x641   : > { %19871 = vmatmul.mubr.msk.bf16.gmra.mrb[4].mxu0 %vm908_vm3, %v29460_v45 }
 0x642   : > { %19874 = vmatprep.mubr.msk.bf16.mxu0 %vm908_vm3, %v29461_v23 }
 0x649   : > { %19875 = vmatmul.mubr.msk.bf16.gmra.mrb[8].mxu0 %vm908_vm3, %v29462_v6 }
 0x64a   : > { %19878 = vmatprep.mubr.msk.bf16.mxu0 %vm908_vm3, %v29463_v39 }
 0x651   : > { %19879 = vmatmul.mubr.msk.bf16.gmra.mrb[12].mxu0 %vm908_vm3, %v29464_v40 }
 0x652   : > { %19882 = vmatprep.mubr.msk.bf16.mxu0 %vm908_vm3, %v29465_v33 }
 0x659   : > { %19883 = vmatmul.mubr.msk.bf16.gmra.mrb[16].mxu0 %vm908_vm3, %v29466_v25 }
 0x65a   : > { %19886 = vmatprep.mubr.msk.bf16.mxu0 %vm908_vm3, %v29467_v7 }
 0x661   : > { %19887 = vmatmul.mubr.msk.bf16.gmra.mrb[20].mxu0 %vm908_vm3, %v29468_v13 }
 0x662   : > { %19890 = vmatprep.mubr.msk.bf16.mxu0 %vm908_vm3, %v29469_v2 }
 0x669   : > { %19891 = vmatmul.mubr.msk.bf16.gmra.mrb[24].mxu0 %vm908_vm3, %v29470_v22 }
 0x66a   : > { %19894 = vmatprep.mubr.msk.bf16.mxu0 %vm908_vm3, %v29471_v36 }
 0x671   : > { %19895 = vmatmul.mubr.msk.bf16.gmra.mrb[28].mxu0 %vm908_vm3, %v17264_v50 }
 0x672   : > { %19900 = vmatprep.mubr.msk.bf16.mxu0 %vm908_vm3, %v29472_v54 }
 0x679   : > { %19901 = vmatmul.mubr.msk.bf16.vlgmr.msra.gmra.mrb[0].mxu0 %vm908_vm3, %v29473_v57 }
 0x67a   : > { %19933 = vmatpush3.bf16.msra.mxu0 %v22671_v41  ;;  %19904 = vmatprep.mubr.msk.bf16.mxu0 %vm908_vm3, %v29474_v11 }
 0x681   : > { %19905 = vmatmul.mubr.msk.bf16.gmra.mrb[4].mxu0 %vm908_vm3, %v29475_v18 }
 0x682   : > { %19908 = vmatprep.mubr.msk.bf16.mxu0 %vm908_vm3, %v29476_v30 }
 0x689   : > { %19909 = vmatmul.mubr.msk.bf16.gmra.mrb[8].mxu0 %vm908_vm3, %v29477_v49 }
 0x68a   : > { %19912 = vmatprep.mubr.msk.bf16.mxu0 %vm908_vm3, %v29478_v16 }
 0x691   : > { %19913 = vmatmul.mubr.msk.bf16.gmra.mrb[12].mxu0 %vm908_vm3, %v29479_v3 }
 0x692   : > { %19916 = vmatprep.mubr.msk.bf16.mxu0 %vm908_vm3, %v29480_v48 }
 0x699   : > { %19917 = vmatmul.mubr.msk.bf16.gmra.mrb[16].mxu0 %vm908_vm3, %v29481_v0 }
 0x69a   : > { %19920 = vmatprep.mubr.msk.bf16.mxu0 %vm908_vm3, %v24611_v5  ;;  %v7434_v5 = vsel %vm23014_vm2, %v7429_v31, %v7433_v53 }
 0x69b   : > { %v17284_v55 = vcombine.low %v25377_v8, %v7434_v5 }
 0x6a1   : > { %19921 = vmatmul.mubr.msk.bf16.gmra.mrb[20].mxu0 %vm908_vm3, %v29482_v46 }
 0x6a2   : > { %19924 = vmatprep.mubr.msk.bf16.mxu0 %vm908_vm3, %v25176_v12  ;;  %v29483_v12 = vld [vmem:[#allocation86_spill] sm:$0xff] }
 0x6a9   : > { %19925 = vmatmul.mubr.msk.bf16.gmra.mrb[24].mxu0 %vm908_vm3, %v25180_v38  ;;  %v29484_v38 = vld [vmem:[#allocation12_spill] sm:$0xff] }
 0x6aa   : > { %19928 = vmatprep.mubr.msk.bf16.mxu0 %vm908_vm3, %v25196_v42 }
 0x6b1   : > { %19929 = vmatmul.mubr.msk.bf16.gmra.mrb[28].mxu0 %vm908_vm3, %v17284_v55 }
 0x6b2   : > { %19934 = vmatprep.mubr.msk.bf16.mxu0 %vm908_vm3, %v29317_v24 }
 0x6b9   : > { %19935 = vmatmul.mubr.msk.bf16.vlgmr.msra.gmra.mrb[0].mxu0 %vm908_vm3, %v29318_v58 }
 0x6ba   : > { %19938 = vmatprep.mubr.msk.bf16.mxu0 %vm908_vm3, %v23821_v27  ;;  %v29485_v27 = vld [vmem:[#allocation98_spill] sm:$0xff] }
 0x6c1   : > { %19939 = vmatmul.mubr.msk.bf16.gmra.mrb[4].mxu0 %vm908_vm3, %v29483_v12 }
 0x6c2   : > { %19942 = vmatprep.mubr.msk.bf16.mxu0 %vm908_vm3, %v23857_v4  ;;  %v17302_v4 = vrot.slane %v396_v43, 9 }
 0x6c9   : > { %19943 = vmatmul.mubr.msk.bf16.gmra.mrb[8].mxu0 %vm908_vm3, %v23862_v14  ;;  %v7645_v14 = vrot.slane %v397_v15, 5 }
 0x6ca   : > { %19946 = vmatprep.mubr.msk.bf16.mxu0 %vm908_vm3, %v29320_v1  ;;  %v22876_v1 = vmov 0  }
 0x6cb   : > { %v7646_v24 = vsel %vm23501_vm6, %v17302_v4, %v7645_v14  ;;  %7992 = vst.msk [vmem:[#allocation2 + $0x68] sm:$0xf] %vm7964_vm7, %v22876_v1  ;;  %7965 = vst.msk [vmem:[#allocation2] sm:$0xf] %vm7964_vm7, %v22876_v1 }
 0x6cc   : > { %v17305_v58 = vcombine.low %v25421_v37, %v7646_v24  ;;  %7968 = vst.msk [vmem:[#allocation2 + $0x8] sm:$0xf] %vm7964_vm7, %v22876_v1  ;;  %7970 = vst.msk [vmem:[#allocation2 + $0x10] sm:$0xf] %vm7964_vm7, %v22876_v1 }
 0x6cd   : > { %7972 = vst.msk [vmem:[#allocation2 + $0x18] sm:$0xf] %vm7964_vm7, %v22876_v1  ;;  %7974 = vst.msk [vmem:[#allocation2 + $0x20] sm:$0xf] %vm7964_vm7, %v22876_v1 }
 0x6ce   : > { %7976 = vst.msk [vmem:[#allocation2 + $0x28] sm:$0xf] %vm7964_vm7, %v22876_v1  ;;  %7978 = vst.msk [vmem:[#allocation2 + $0x30] sm:$0xf] %vm7964_vm7, %v22876_v1 }
 0x6cf   : > { %7980 = vst.msk [vmem:[#allocation2 + $0x38] sm:$0xf] %vm7964_vm7, %v22876_v1  ;;  %7982 = vst.msk [vmem:[#allocation2 + $0x40] sm:$0xf] %vm7964_vm7, %v22876_v1 }
 0x6d0   : > { %7984 = vst.msk [vmem:[#allocation2 + $0x48] sm:$0xf] %vm7964_vm7, %v22876_v1  ;;  %7986 = vst.msk [vmem:[#allocation2 + $0x50] sm:$0xf] %vm7964_vm7, %v22876_v1 }
 0x6d1   : > { %19947 = vmatmul.mubr.msk.bf16.gmra.mrb[12].mxu0 %vm908_vm3, %v29484_v38  ;;  %7988 = vst.msk [vmem:[#allocation2 + $0x58] sm:$0xf] %vm7964_vm7, %v22876_v1  ;;  %7990 = vst.msk [vmem:[#allocation2 + $0x60] sm:$0xf] %vm7964_vm7, %v22876_v1 }
 0x6d2   : > { %19950 = vmatprep.mubr.msk.bf16.mxu0 %vm908_vm3, %v24684_v52  ;;  %7994 = vst.msk [vmem:[#allocation2 + $0x70] sm:$0xf] %vm7964_vm7, %v22876_v1  ;;  %7996 = vst.msk [vmem:[#allocation2 + $0x78] sm:$0xf] %vm7964_vm7, %v22876_v1  ;;  %v8733_v52 = vld [vmem:[#allocation2] sm:$0xf] }
 0x6d3   : > { %7998 = vst.msk [vmem:[#allocation2 + $0x80] sm:$0xf] %vm7964_vm7, %v22876_v1  ;;  %8000 = vst.msk [vmem:[#allocation2 + $0x88] sm:$0xf] %vm7964_vm7, %v22876_v1  ;;  %v8856_v42 = vshrl.u32 %v8733_v52, 16 }
 0x6d4   : > { %8002 = vst.msk [vmem:[#allocation2 + $0x90] sm:$0xf] %vm7964_vm7, %v22876_v1  ;;  %8004 = vst.msk [vmem:[#allocation2 + $0x98] sm:$0xf] %vm7964_vm7, %v22876_v1  ;;  %v8741_v22 = vld [vmem:[#allocation2 + $0x20] sm:$0xf] }
 0x6d5   : > { %8006 = vst.msk [vmem:[#allocation2 + $0xa0] sm:$0xf] %vm7964_vm7, %v22876_v1  ;;  %8008 = vst.msk [vmem:[#allocation2 + $0xa8] sm:$0xf] %vm7964_vm7, %v22876_v1  ;;  %v8858_v60 = vrot.slane %v8856_v42, 4  ;;  %v8912_v48 = vshrl.u32 %v8741_v22, 16 }
 0x6d6   : > { %8010 = vst.msk [vmem:[#allocation2 + $0xb0] sm:$0xf] %vm7964_vm7, %v22876_v1  ;;  %8012 = vst.msk [vmem:[#allocation2 + $0xb8] sm:$0xf] %vm7964_vm7, %v22876_v1  ;;  %v8915_v56 = vshll.u32 %v8741_v22, 16 }
 0x6d7   : > { %8014 = vst.msk [vmem:[#allocation2 + $0xc0] sm:$0xf] %vm7964_vm7, %v22876_v1  ;;  %8016 = vst.msk [vmem:[#allocation2 + $0xc8] sm:$0xf] %vm7964_vm7, %v22876_v1  ;;  %v8914_v20 = vrot.slane %v8912_v48, 4 }
 0x6d8   : > { %8018 = vst.msk [vmem:[#allocation2 + $0xd0] sm:$0xf] %vm7964_vm7, %v22876_v1  ;;  %8020 = vst.msk [vmem:[#allocation2 + $0xd8] sm:$0xf] %vm7964_vm7, %v22876_v1  ;;  %v8917_v44 = vrot.slane %v8915_v56, 5 }
 0x6d9   : > { %19951 = vmatmul.mubr.msk.bf16.gmra.mrb[16].mxu0 %vm908_vm3, %v24689_v62  ;;  %8022 = vst.msk [vmem:[#allocation2 + $0xe0] sm:$0xf] %vm7964_vm7, %v22876_v1  ;;  %8024 = vst.msk [vmem:[#allocation2 + $0xe8] sm:$0xf] %vm7964_vm7, %v22876_v1  ;;  %v8735_v62 = vld [vmem:[#allocation2 + $0x8] sm:$0xf] }
 0x6da   : > { %19954 = vmatprep.mubr.msk.bf16.mxu0 %vm908_vm3, %v24708_v10  ;;  %8026 = vst.msk [vmem:[#allocation2 + $0xf0] sm:$0xf] %vm7964_vm7, %v22876_v1  ;;  %8028 = vst.msk [vmem:[#allocation2 + $0xf8] sm:$0xf] %vm7964_vm7, %v22876_v1  ;;  %v8737_v10 = vld [vmem:[#allocation2 + $0x10] sm:$0xf] }
 0x6db   : > { %8030 = vst.msk [vmem:[#allocation2 + $0x100] sm:$0xf] %vm7964_vm7, %v22876_v1  ;;  %8032 = vst.msk [vmem:[#allocation2 + $0x108] sm:$0xf] %vm7964_vm7, %v22876_v1  ;;  %v8873_v8 = vshll.u32 %v8735_v62, 16  ;;  %v8884_v47 = vshrl.u32 %v8737_v10, 16 }
 0x6dc   : > { %8034 = vst.msk [vmem:[#allocation2 + $0x110] sm:$0xf] %vm7964_vm7, %v22876_v1  ;;  %8036 = vst.msk [vmem:[#allocation2 + $0x118] sm:$0xf] %vm7964_vm7, %v22876_v1  ;;  %v8887_v28 = vshll.u32 %v8737_v10, 16 }
 0x6dd   : > { %8038 = vst.msk [vmem:[#allocation2 + $0x120] sm:$0xf] %vm7964_vm7, %v22876_v1  ;;  %8040 = vst.msk [vmem:[#allocation2 + $0x128] sm:$0xf] %vm7964_vm7, %v22876_v1  ;;  %v8875_v41 = vrot.slane %v8873_v8, 5  ;;  %v8886_v7 = vrot.slane %v8884_v47, 4 }
 0x6de   : > { %8042 = vst.msk [vmem:[#allocation2 + $0x130] sm:$0xf] %vm7964_vm7, %v22876_v1  ;;  %8044 = vst.msk [vmem:[#allocation2 + $0x138] sm:$0xf] %vm7964_vm7, %v22876_v1  ;;  %v8889_v50 = vrot.slane %v8887_v28, 5 }
 0x6df   : > { %8046 = vst.msk [vmem:[#allocation2 + $0x140] sm:$0xf] %vm7964_vm7, %v22876_v1  ;;  %8048 = vst.msk [vmem:[#allocation2 + $0x148] sm:$0xf] %vm7964_vm7, %v22876_v1  ;;  %v8743_v53 = vld [vmem:[#allocation2 + $0x28] sm:$0xf] }
 0x6e0   : > { %8050 = vst.msk [vmem:[#allocation2 + $0x150] sm:$0xf] %vm7964_vm7, %v22876_v1  ;;  %8052 = vst.msk [vmem:[#allocation2 + $0x158] sm:$0xf] %vm7964_vm7, %v22876_v1  ;;  %v8890_v16 = vor.u32 %v8889_v50, %v8886_v7  ;;  %v8926_v55 = vshrl.u32 %v8743_v53, 16  ;;  %v8929_v14 = vshll.u32 %v8743_v53, 16 }
 0x6e1   : > { %19955 = vmatmul.mubr.msk.bf16.gmra.mrb[20].mxu0 %vm908_vm3, %v29485_v27  ;;  %8054 = vst.msk [vmem:[#allocation2 + $0x160] sm:$0xf] %vm7964_vm7, %v22876_v1  ;;  %8056 = vst.msk [vmem:[#allocation2 + $0x168] sm:$0xf] %vm7964_vm7, %v22876_v1  ;;  %v8745_v12 = vld [vmem:[#allocation2 + $0x30] sm:$0xf] }
 0x6e2   : > { %19958 = vmatprep.mubr.msk.bf16.mxu0 %vm908_vm3, %v25266_v29  ;;  %8058 = vst.msk [vmem:[#allocation2 + $0x170] sm:$0xf] %vm7964_vm7, %v22876_v1  ;;  %8060 = vst.msk [vmem:[#allocation2 + $0x178] sm:$0xf] %vm7964_vm7, %v22876_v1  ;;  %v8859_v29 = vshll.u32 %v8733_v52, 16  ;;  %v8891_v63 = vrot.slane %v8890_v16, 4 }
 0x6e3   : > { %8062 = vst.msk [vmem:[#allocation2 + $0x180] sm:$0xf] %vm7964_vm7, %v22876_v1  ;;  %8064 = vst.msk [vmem:[#allocation2 + $0x188] sm:$0xf] %vm7964_vm7, %v22876_v1  ;;  %v8940_v24 = vshrl.u32 %v8745_v12, 16  ;;  %v8943_v10 = vshll.u32 %v8745_v12, 16 }
 0x6e4   : > { %8066 = vst.msk [vmem:[#allocation2 + $0x190] sm:$0xf] %vm7964_vm7, %v22876_v1  ;;  %8068 = vst.msk [vmem:[#allocation2 + $0x198] sm:$0xf] %vm7964_vm7, %v22876_v1  ;;  %v8861_v61 = vrot.slane %v8859_v29, 5  ;;  %v8931_v42 = vrot.slane %v8929_v14, 5 }
 0x6e5   : > { %8070 = vst.msk [vmem:[#allocation2 + $0x1a0] sm:$0xf] %vm7964_vm7, %v22876_v1  ;;  %8072 = vst.msk [vmem:[#allocation2 + $0x1a8] sm:$0xf] %vm7964_vm7, %v22876_v1  ;;  %v8945_v8 = vrot.slane %v8943_v10, 5 }
 0x6e6   : > { %8074 = vst.msk [vmem:[#allocation2 + $0x1b0] sm:$0xf] %vm7964_vm7, %v22876_v1  ;;  %8076 = vst.msk [vmem:[#allocation2 + $0x1b8] sm:$0xf] %vm7964_vm7, %v22876_v1  ;;  %v8862_v45 = vor.u32 %v8861_v61, %v8858_v60 }
 0x6e7   : > { %8078 = vst.msk [vmem:[#allocation2 + $0x1c0] sm:$0xf] %vm7964_vm7, %v22876_v1  ;;  %8080 = vst.msk [vmem:[#allocation2 + $0x1c8] sm:$0xf] %vm7964_vm7, %v22876_v1 }
 0x6e8   : > { %8082 = vst.msk [vmem:[#allocation2 + $0x1d0] sm:$0xf] %vm7964_vm7, %v22876_v1  ;;  %8084 = vst.msk [vmem:[#allocation2 + $0x1d8] sm:$0xf] %vm7964_vm7, %v22876_v1  ;;  %v8863_v13 = vrot.slane %v8862_v45, 4 }
 0x6e9   : > { %19959 = vmatmul.mubr.msk.bf16.gmra.mrb[24].mxu0 %vm908_vm3, %v25271_v19  ;;  %7993 = vst.msk [vmem:[#allocation2 + $0x6c] sm:$0x1] %vm7966_vm8, %v22876_v1  ;;  %7967 = vst.msk [vmem:[#allocation2 + $0x4] sm:$0x1] %vm7966_vm8, %v22876_v1  ;;  %v8739_v19 = vld [vmem:[#allocation2 + $0x18] sm:$0xf] }
 0x6ea   : > { %19962 = vmatprep.mubr.msk.bf16.mxu0 %vm908_vm3, %v25290_v51  ;;  %7969 = vst.msk [vmem:[#allocation2 + $0xc] sm:$0x1] %vm7966_vm8, %v22876_v1  ;;  %7971 = vst.msk [vmem:[#allocation2 + $0x14] sm:$0x1] %vm7966_vm8, %v22876_v1  ;;  %v8870_v51 = vshrl.u32 %v8735_v62, 16  ;;  %v8898_v6 = vshrl.u32 %v8739_v19, 16 }
 0x6eb   : > { %7973 = vst.msk [vmem:[#allocation2 + $0x1c] sm:$0x1] %vm7966_vm8, %v22876_v1  ;;  %7975 = vst.msk [vmem:[#allocation2 + $0x24] sm:$0x1] %vm7966_vm8, %v22876_v1  ;;  %v8901_v39 = vshll.u32 %v8739_v19, 16 }
 0x6ec   : > { %7977 = vst.msk [vmem:[#allocation2 + $0x2c] sm:$0x1] %vm7966_vm8, %v22876_v1  ;;  %7979 = vst.msk [vmem:[#allocation2 + $0x34] sm:$0x1] %vm7966_vm8, %v22876_v1  ;;  %v8872_v9 = vrot.slane %v8870_v51, 4  ;;  %v8900_v11 = vrot.slane %v8898_v6, 4 }
 0x6ed   : > { %7981 = vst.msk [vmem:[#allocation2 + $0x3c] sm:$0x1] %vm7966_vm8, %v22876_v1  ;;  %7983 = vst.msk [vmem:[#allocation2 + $0x44] sm:$0x1] %vm7966_vm8, %v22876_v1  ;;  %v8903_v18 = vrot.slane %v8901_v39, 5  ;;  %v8942_v51 = vrot.slane %v8940_v24, 4 }
 0x6ee   : > { %7985 = vst.msk [vmem:[#allocation2 + $0x4c] sm:$0x1] %vm7966_vm8, %v22876_v1  ;;  %7987 = vst.msk [vmem:[#allocation2 + $0x54] sm:$0x1] %vm7966_vm8, %v22876_v1  ;;  %v8876_v33 = vor.u32 %v8875_v41, %v8872_v9  ;;  %v8747_v62 = vld [vmem:[#allocation2 + $0x38] sm:$0xf] }
 0x6ef   : > { %7989 = vst.msk [vmem:[#allocation2 + $0x5c] sm:$0x1] %vm7966_vm8, %v22876_v1  ;;  %7991 = vst.msk [vmem:[#allocation2 + $0x64] sm:$0x1] %vm7966_vm8, %v22876_v1  ;;  %v8904_v0 = vor.u32 %v8903_v18, %v8900_v11  ;;  %v8954_v60 = vshrl.u32 %v8747_v62, 16  ;;  %v8957_v61 = vshll.u32 %v8747_v62, 16  ;;  %v8946_v41 = vor.u32 %v8945_v8, %v8942_v51 }
 0x6f0   : > { %7995 = vst.msk [vmem:[#allocation2 + $0x74] sm:$0x1] %vm7966_vm8, %v22876_v1  ;;  %7997 = vst.msk [vmem:[#allocation2 + $0x7c] sm:$0x1] %vm7966_vm8, %v22876_v1  ;;  %v8734_v37 = vld [vmem:[#allocation2 + $0x4] sm:$0x1] }
 0x6f1   : > { %19963 = vmatmul.mubr.msk.bf16.gmra.mrb[28].mxu0 %vm908_vm3, %v17305_v58  ;;  %7999 = vst.msk [vmem:[#allocation2 + $0x84] sm:$0x1] %vm7966_vm8, %v22876_v1  ;;  %8001 = vst.msk [vmem:[#allocation2 + $0x8c] sm:$0x1] %vm7966_vm8, %v22876_v1  ;;  %v8736_v35 = vld [vmem:[#allocation2 + $0xc] sm:$0x1]  ;;  %v8918_v58 = vor.u32 %v8917_v44, %v8914_v20 }
 0x6f2   : > { %8003 = vst.msk [vmem:[#allocation2 + $0x94] sm:$0x1] %vm7966_vm8, %v22876_v1  ;;  %8005 = vst.msk [vmem:[#allocation2 + $0x9c] sm:$0x1] %vm7966_vm8, %v22876_v1  ;;  %v8738_v59 = vld [vmem:[#allocation2 + $0x14] sm:$0x1] }
 0x6f3   : > { %8007 = vst.msk [vmem:[#allocation2 + $0xa4] sm:$0x1] %vm7966_vm8, %v22876_v1  ;;  %8009 = vst.msk [vmem:[#allocation2 + $0xac] sm:$0x1] %vm7966_vm8, %v22876_v1  ;;  %v8865_v23 = vshll.u32 %v8734_v37, 16  ;;  %v8879_v25 = vshll.u32 %v8736_v35, 16 }
 0x6f4   : > { %8011 = vst.msk [vmem:[#allocation2 + $0xb4] sm:$0x1] %vm7966_vm8, %v22876_v1  ;;  %8013 = vst.msk [vmem:[#allocation2 + $0xbc] sm:$0x1] %vm7966_vm8, %v22876_v1  ;;  %v8740_v40 = vld [vmem:[#allocation2 + $0x1c] sm:$0x1] }
 0x6f5   : > { %8015 = vst.msk [vmem:[#allocation2 + $0xc4] sm:$0x1] %vm7966_vm8, %v22876_v1  ;;  %8017 = vst.msk [vmem:[#allocation2 + $0xcc] sm:$0x1] %vm7966_vm8, %v22876_v1  ;;  %v8867_v2 = vrot.slane %v8865_v23, 5  ;;  %v8877_v36 = vrot.slane %v8876_v33, 4 }
 0x6f6   : > { %8019 = vst.msk [vmem:[#allocation2 + $0xd4] sm:$0x1] %vm7966_vm8, %v22876_v1  ;;  %8021 = vst.msk [vmem:[#allocation2 + $0xdc] sm:$0x1] %vm7966_vm8, %v22876_v1  ;;  %v8881_v43 = vrot.slane %v8879_v25, 5  ;;  %v8893_v54 = vshll.u32 %v8738_v59, 16 }
 0x6f7   : > { %8023 = vst.msk [vmem:[#allocation2 + $0xe4] sm:$0x1] %vm7966_vm8, %v22876_v1  ;;  %8025 = vst.msk [vmem:[#allocation2 + $0xec] sm:$0x1] %vm7966_vm8, %v22876_v1  ;;  %v8868_v57 = vsel %vm23014_vm2, %v8863_v13, %v8867_v2  ;;  %v8907_v30 = vshll.u32 %v8740_v40, 16  ;;  %v8905_v46 = vrot.slane %v8904_v0, 4 }
 0x6f8   : > { %8027 = vst.msk [vmem:[#allocation2 + $0xf4] sm:$0x1] %vm7966_vm8, %v22876_v1  ;;  %8029 = vst.msk [vmem:[#allocation2 + $0xfc] sm:$0x1] %vm7966_vm8, %v22876_v1  ;;  %v25778_v49 = vsel %vm23014_vm2, %v8877_v36, %v8881_v43  ;;  %v8895_v3 = vrot.slane %v8893_v54, 5  ;;  %v8919_v28 = vrot.slane %v8918_v58, 4 }
 0x6f9   : > { %8031 = vst.msk [vmem:[#allocation2 + $0x104] sm:$0x1] %vm7966_vm8, %v22876_v1  ;;  %8033 = vst.msk [vmem:[#allocation2 + $0x10c] sm:$0x1] %vm7966_vm8, %v22876_v1  ;;  %v8909_v17 = vrot.slane %v8907_v30, 5  ;;  %v17359_v21 = vcombine.low %v8868_v57, %v25778_v49  ;;  %v8956_v26 = vrot.slane %v8954_v60, 4 }
 0x6fa   : > { %8035 = vst.msk [vmem:[#allocation2 + $0x114] sm:$0x1] %vm7966_vm8, %v22876_v1  ;;  %8037 = vst.msk [vmem:[#allocation2 + $0x11c] sm:$0x1] %vm7966_vm8, %v22876_v1  ;;  %v8742_v15 = vld [vmem:[#allocation2 + $0x24] sm:$0x1]  ;;  %v25784_v31 = vsel %vm23014_vm2, %v8891_v63, %v8895_v3 }
 0x6fb   : > { %8039 = vst.msk [vmem:[#allocation2 + $0x124] sm:$0x1] %vm7966_vm8, %v22876_v1  ;;  %8041 = vst.msk [vmem:[#allocation2 + $0x12c] sm:$0x1] %vm7966_vm8, %v22876_v1  ;;  %19968 = vmatprep.mubr.msk.bf16.mxu1 %vm908_vm3, %v17359_v21  ;;  %v25788_v5 = vsel %vm23014_vm2, %v8905_v46, %v8909_v17  ;;  %v8921_v38 = vshll.u32 %v8742_v15, 16  ;;  %v8959_v59 = vrot.slane %v8957_v61, 5 }
 0x6fc   : > { %8043 = vst.msk [vmem:[#allocation2 + $0x134] sm:$0x1] %vm7966_vm8, %v22876_v1  ;;  %8045 = vst.msk [vmem:[#allocation2 + $0x13c] sm:$0x1] %vm7966_vm8, %v22876_v1  ;;  %v25792_v27 = vcombine.low %v25784_v31, %v25788_v5  ;;  %v8744_v4 = vld [vmem:[#allocation2 + $0x2c] sm:$0x1] }
 0x6fd   : > { %8047 = vst.msk [vmem:[#allocation2 + $0x144] sm:$0x1] %vm7966_vm8, %v22876_v1  ;;  %8049 = vst.msk [vmem:[#allocation2 + $0x14c] sm:$0x1] %vm7966_vm8, %v22876_v1  ;;  %v8746_v52 = vld [vmem:[#allocation2 + $0x34] sm:$0x1]  ;;  %v8960_v40 = vor.u32 %v8959_v59, %v8956_v26 }
 0x6fe   : > { %8051 = vst.msk [vmem:[#allocation2 + $0x154] sm:$0x1] %vm7966_vm8, %v22876_v1  ;;  %8053 = vst.msk [vmem:[#allocation2 + $0x15c] sm:$0x1] %vm7966_vm8, %v22876_v1  ;;  %19969 = vmatmul.mubr.msk.bf16.vlgmr.msra.gmra.mrb[0].mxu1 %vm908_vm3, %v25792_v27  ;;  %v8935_v29 = vshll.u32 %v8744_v4, 16  ;;  %v8949_v47 = vshll.u32 %v8746_v52, 16 }
 0x6ff   : > { %8055 = vst.msk [vmem:[#allocation2 + $0x164] sm:$0x1] %vm7966_vm8, %v22876_v1  ;;  %8057 = vst.msk [vmem:[#allocation2 + $0x16c] sm:$0x1] %vm7966_vm8, %v22876_v1  ;;  %v8748_v19 = vld [vmem:[#allocation2 + $0x3c] sm:$0x1] }
 0x700   : > { %8059 = vst.msk [vmem:[#allocation2 + $0x174] sm:$0x1] %vm7966_vm8, %v22876_v1  ;;  %8061 = vst.msk [vmem:[#allocation2 + $0x17c] sm:$0x1] %vm7966_vm8, %v22876_v1  ;;  %v8923_v37 = vrot.slane %v8921_v38, 5  ;;  %v8963_v9 = vshll.u32 %v8748_v19, 16 }
 0x701   : > { %8063 = vst.msk [vmem:[#allocation2 + $0x184] sm:$0x1] %vm7966_vm8, %v22876_v1  ;;  %8065 = vst.msk [vmem:[#allocation2 + $0x18c] sm:$0x1] %vm7966_vm8, %v22876_v1  ;;  %v8937_v23 = vrot.slane %v8935_v29, 5  ;;  %v8951_v6 = vrot.slane %v8949_v47, 5 }
 0x702   : > { %8067 = vst.msk [vmem:[#allocation2 + $0x194] sm:$0x1] %vm7966_vm8, %v22876_v1  ;;  %8069 = vst.msk [vmem:[#allocation2 + $0x19c] sm:$0x1] %vm7966_vm8, %v22876_v1  ;;  %v8947_v39 = vrot.slane %v8946_v41, 4  ;;  %v25798_v33 = vsel %vm23014_vm2, %v8919_v28, %v8923_v37  ;;  %v22673_v25 = vld [vmem:[%s28597_s4] sm:$0xff]  }
 0x703   : > { %8071 = vst.msk [vmem:[#allocation2 + $0x1a4] sm:$0x1] %vm7966_vm8, %v22876_v1  ;;  %8073 = vst.msk [vmem:[#allocation2 + $0x1ac] sm:$0x1] %vm7966_vm8, %v22876_v1  ;;  %v8965_v7 = vrot.slane %v8963_v9, 5  ;;  %20000 = vmatprep.subr.bf16.mxu1 %v22673_v25  ;;  %v8961_v43 = vrot.slane %v8960_v40, 4 }
 0x704   : > { %8075 = vst.msk [vmem:[#allocation2 + $0x1b4] sm:$0x1] %vm7966_vm8, %v22876_v1  ;;  %8077 = vst.msk [vmem:[#allocation2 + $0x1bc] sm:$0x1] %vm7966_vm8, %v22876_v1  ;;  %v25813_v36 = vsel %vm23014_vm2, %v8947_v39, %v8951_v6  ;;  %20001 = vmatpush3.bf16.msra.mxu1 %v22673_v25  ;;  %v8753_v11 = vld [vmem:[#allocation2 + $0x50] sm:$0xf] }
 0x705   : > { %8079 = vst.msk [vmem:[#allocation2 + $0x1c4] sm:$0x1] %vm7966_vm8, %v22876_v1  ;;  %8081 = vst.msk [vmem:[#allocation2 + $0x1cc] sm:$0x1] %vm7966_vm8, %v22876_v1  ;;  %v25821_v54 = vsel %vm23014_vm2, %v8961_v43, %v8965_v7  ;;  %v8773_v18 = vld [vmem:[#allocation2 + $0xa0] sm:$0xf] }
 0x706   : > { %8083 = vst.msk [vmem:[#allocation2 + $0x1d4] sm:$0x1] %vm7966_vm8, %v22876_v1  ;;  %8085 = vst.msk [vmem:[#allocation2 + $0x1dc] sm:$0x1] %vm7966_vm8, %v22876_v1  ;;  %v8928_v1 = vrot.slane %v8926_v55, 4  ;;  %v25827_v57 = vcombine.low %v25813_v36, %v25821_v54  ;;  %v8968_v30 = vshrl.u32 %v8753_v11, 16 }
 0x707   : > { %29486 = vst [vmem:[#allocation69_spill] sm:$0xff] %v25778_v49  ;;  %29487 = vst [vmem:[#allocation29_spill] sm:$0xff] %v25784_v31  ;;  %v8971_v16 = vshll.u32 %v8753_v11, 16  ;;  %v9080_v3 = vshrl.u32 %v8773_v18, 16  ;;  %v9083_v48 = vshll.u32 %v8773_v18, 16 }
 0x708   : > { %29488 = vst [vmem:[#allocation33_spill] sm:$0xff] %v25788_v5  ;;  %29489 = vst [vmem:[#allocation39_spill] sm:$0xff] %v25792_v27  ;;  %v8932_v35 = vor.u32 %v8931_v42, %v8928_v1  ;;  %v8970_v0 = vrot.slane %v8968_v30, 4  ;;  %v8754_v63 = vld [vmem:[#allocation2 + $0x54] sm:$0x1] }
 0x709   : > { %29490 = vst [vmem:[#allocation10_spill] sm:$0xff] %v25798_v33  ;;  %29492 = vst [vmem:[#allocation77_spill] sm:$0xff] %v25813_v36  ;;  %v8973_v17 = vrot.slane %v8971_v16, 5  ;;  %v9082_v56 = vrot.slane %v9080_v3, 4  ;;  %v9085_v21 = vrot.slane %v9083_v48, 5  ;;  %v8977_v15 = vshll.u32 %v8754_v63, 16 }
 0x70a   : > { %v8933_v45 = vrot.slane %v8932_v35, 4  ;;  %29494 = vst [vmem:[#allocation15_spill] sm:$0xff] %v25821_v54  ;;  %29495 = vst [vmem:[#allocation43_spill] sm:$0xff] %v25827_v57  ;;  %v8774_v46 = vld [vmem:[#allocation2 + $0xa4] sm:$0x1] }
 0x70b   : > { %v25834_v20 = vld [vmem:[%s28595_s2] ss:$0 sm:$0xff]  ;;  %v8974_v44 = vor.u32 %v8973_v17, %v8970_v0  ;;  %v9086_v53 = vor.u32 %v9085_v21, %v9082_v56  ;;  %v9089_v55 = vshll.u32 %v8774_v46, 16  ;;  %v25842_v24 = vrot.slane %v8977_v15, 5  ;;  %v8793_v42 = vld [vmem:[#allocation2 + $0xf0] sm:$0xf] }
 0x70c   : > { %v25809_v22 = vsel %vm23014_vm2, %v8933_v45, %v8937_v23  ;;  %v25839_v38 = vld [vmem:[%s28596_s3] ss:$0 sm:$0xff]  ;;  %v9192_v8 = vshrl.u32 %v8793_v42, 16  ;;  %v9195_v47 = vshll.u32 %v8793_v42, 16  ;;  %v25869_v39 = vld [vmem:[#allocation2 + $0xf4] sm:$0x1] }
 0x70d   : > { %29491 = vst [vmem:[#allocation85_spill] sm:$0xff] %v25809_v22  ;;  %v25817_v50 = vcombine.low %v25798_v33, %v25809_v22  ;;  %v25845_v52 = vrot.slane %v8974_v44, 4  ;;  %v25847_v62 = vrot.slane %v9086_v53, 4  ;;  %v25849_v10 = vrot.slane %v9089_v55, 5  ;;  %v8553_v0 = vld [vmem:[#allocation2 + $0x68] sm:$0xf] }
 0x70e   : > { %v25856_v35 = vrot.slane %v9192_v8, 4  ;;  %v25858_v9 = vrot.slane %v9195_v47, 5  ;;  %v8556_v17 = vld [vmem:[#allocation2 + $0x6c] sm:$0x1]  ;;  %v8538_v55 = vld [vmem:[#allocation2 + $0x58] sm:$0xf] }
 0x70f   : > { %29493 = vst [vmem:[#allocation81_spill] sm:$0xff] %v25817_v50  ;;  %19972 = vmatprep.mubr.msk.bf16.mxu1 %vm908_vm3, %v25817_v50 }
 0x710   : > { %19973 = vmatmul.mubr.msk.bf16.gmra.mrb[4].mxu1 %vm908_vm3, %v25827_v57 }
 0x78c   : > { %v19936_v12 = vpop.f32.mrb[0].mxu0 }
 0x78d   : > { %v7863_v4 = vmul.f32 %v19936_v12, %v25834_v20  ;;  %v7695_v14 = vpop.f32.mrb[1].mxu0 }
 0x78e   : > { %v7861_v58 = vmul.f32 %v25834_v20, %v7695_v14  ;;  %v19937_v1 = vpop.f32.mrb[2].mxu0 }
 0x78f   : > { %v7902_v29 = vadd.f32 %v25839_v38, %v7863_v4  ;;  %v7864_v19 = vmul.f32 %v19937_v1, %v25834_v20  ;;  %v7698_v51 = vpop.f32.mrb[3].mxu0 }
 0x790   : > { %v7900_v60 = vadd.f32 %v25839_v38, %v7861_v58  ;;  %v7862_v61 = vmul.f32 %v25834_v20, %v7698_v51 }
 0x791   : > { %v7934_v28 = vmax.f32 %v7902_v29, 0.0  ;;  %v7903_v37 = vadd.f32 %v25839_v38, %v7864_v19  ;;  %v8544_v29 = vld [vmem:[#allocation2 + $0x5c] sm:$0x1] }
 0x792   : > { %v7932_v41 = vmax.f32 %v7900_v60, 0.0  ;;  %v7901_v26 = vadd.f32 %v25839_v38, %v7862_v61 }
 0x793   : > { %v18099_v59 = vpack.c.bf16 %v7934_v28, %v7934_v28  ;;  %v7935_v45 = vmax.f32 %v7903_v37, 0.0  ;;  %v8559_v28 = vld [vmem:[#allocation2 + $0x70] sm:$0xf] }
 0x794   : > { %v18097_v40 = vpack.c.bf16 %v7932_v41, %v7932_v41  ;;  %v7933_v25 = vmax.f32 %v7901_v26, 0.0  ;;  %v19940_v7 = vpop.f32.mrb[4].mxu0 }
 0x795   : > { %v8231_v18 = vshrl.u32 %v18099_v59, 16  ;;  %v8234_v30 = vshll.u32 %v18099_v59, 16  ;;  %v18100_v16 = vpack.c.bf16 %v7935_v45, %v7935_v45  ;;  %v7867_v3 = vmul.f32 %v19940_v7, %v25834_v20  ;;  %v7711_v48 = vpop.f32.mrb[5].mxu0  ;;  %v8562_v59 = vld [vmem:[#allocation2 + $0x74] sm:$0x1] }
 0x796   : > { %v8215_v56 = vshrl.u32 %v18097_v40, 16  ;;  %v8218_v21 = vshll.u32 %v18097_v40, 16  ;;  %v18098_v63 = vpack.c.bf16 %v7933_v25, %v7933_v25  ;;  %v7865_v15 = vmul.f32 %v25834_v20, %v7711_v48  ;;  %v19941_v46 = vpop.f32.mrb[6].mxu0  ;;  %v8550_v48 = vld [vmem:[#allocation2 + $0x64] sm:$0x1] }
 0x797   : > { %v8233_v44 = vrot.slane %v8231_v18, 7  ;;  %v8239_v12 = vshrl.u32 %v18100_v16, 16  ;;  %v8242_v4 = vshll.u32 %v18100_v16, 16  ;;  %v7906_v14 = vadd.f32 %v25839_v38, %v7867_v3  ;;  %v7714_v58 = vpop.f32.mrb[7].mxu0  ;;  %v8547_v3 = vld [vmem:[#allocation2 + $0x60] sm:$0xf] }
 0x798   : > { %v8217_v42 = vrot.slane %v8215_v56, 7  ;;  %v8223_v19 = vshrl.u32 %v18098_v63, 16  ;;  %v8226_v51 = vshll.u32 %v18098_v63, 16  ;;  %v7904_v8 = vadd.f32 %v25839_v38, %v7865_v15 }
 0x799   : > { %v8236_v47 = vor.u32 %v8234_v30, %v8233_v44  ;;  %v8237_v60 = vrot.slane %v8233_v44, 4  ;;  %v8241_v61 = vrot.slane %v8239_v12, 7  ;;  %v7938_v37 = vmax.f32 %v7906_v14, 0.0 }
 0x79a   : > { %v8220_v41 = vor.u32 %v8218_v21, %v8217_v42  ;;  %v8221_v26 = vrot.slane %v8217_v42, 4  ;;  %v8225_v45 = vrot.slane %v8223_v19, 7  ;;  %v7936_v40 = vmax.f32 %v7904_v8, 0.0 }
 0x79b   : > { %v8554_v25 = vsel %vm25878_vm11, %v8236_v47, %v8553_v0  ;;  %v8557_v7 = vsel %vm25885_vm12, %v8237_v60, %v8556_v17  ;;  %v8244_v18 = vor.u32 %v8242_v4, %v8241_v61  ;;  %v8245_v16 = vrot.slane %v8241_v61, 4 }
 0x79c   : > { %8555 = vst [vmem:[#allocation2 + $0x68] sm:$0xf] %v8554_v25  ;;  %8558 = vst [vmem:[#allocation2 + $0x6c] sm:$0x1] %v8557_v7  ;;  %v8539_v30 = vsel %vm25878_vm11, %v8220_v41, %v8538_v55  ;;  %v8545_v56 = vsel %vm25885_vm12, %v8221_v26, %v8544_v29  ;;  %v8228_v21 = vor.u32 %v8226_v51, %v8225_v45  ;;  %v8229_v63 = vrot.slane %v8225_v45, 4  ;;  %v19944_v15 = vpop.f32.mrb[8].mxu0 }
 0x79d   : > { %8540 = vst [vmem:[#allocation2 + $0x58] sm:$0xf] %v8539_v30  ;;  %8546 = vst [vmem:[#allocation2 + $0x5c] sm:$0x1] %v8545_v56  ;;  %v8560_v0 = vsel %vm25878_vm11, %v8244_v18, %v8559_v28  ;;  %v8563_v17 = vsel %vm25885_vm12, %v8245_v16, %v8562_v59  ;;  %v18103_v44 = vpack.c.bf16 %v7938_v37, %v7938_v37  ;;  %v7727_v4 = vpop.f32.mrb[9].mxu0 }
 0x79e   : > { %v18101_v12 = vpack.c.bf16 %v7936_v40, %v7936_v40  ;;  %8561 = vst [vmem:[#allocation2 + $0x70] sm:$0xf] %v8560_v0  ;;  %8564 = vst [vmem:[#allocation2 + $0x74] sm:$0x1] %v8563_v17  ;;  %v8548_v55 = vsel %vm25878_vm11, %v8228_v21, %v8547_v3  ;;  %v8551_v14 = vsel %vm25885_vm12, %v8229_v63, %v8550_v48  ;;  %v19945_v19 = vpop.f32.mrb[10].mxu0 }
 0x79f   : > { %v7868_v42 = vmul.f32 %v19941_v46, %v25834_v20  ;;  %v7866_v29 = vmul.f32 %v25834_v20, %v7714_v58  ;;  %8549 = vst [vmem:[#allocation2 + $0x60] sm:$0xf] %v8548_v55  ;;  %8552 = vst [vmem:[#allocation2 + $0x64] sm:$0x1] %v8551_v14  ;;  %v8263_v51 = vshrl.u32 %v18103_v44, 16  ;;  %v8266_v8 = vshll.u32 %v18103_v44, 16 }
 0x7a0   : > { %v8247_v47 = vshrl.u32 %v18101_v12, 16  ;;  %v8250_v60 = vshll.u32 %v18101_v12, 16  ;;  %v7730_v61 = vpop.f32.mrb[11].mxu0  ;;  %v7871_v41 = vmul.f32 %v19944_v15, %v25834_v20  ;;  %v7869_v26 = vmul.f32 %v25834_v20, %v7727_v4  ;;  %v8577_v46 = vld [vmem:[#allocation2 + $0x88] sm:$0xf]  ;;  %v22675_v55 = vld [vmem:[%s28597_s4 + $0x10] sm:$0xff]  }
 0x7a1   : > { %v7907_v28 = vadd.f32 %v25839_v38, %v7868_v42  ;;  %v7905_v37 = vadd.f32 %v25839_v38, %v7866_v29  ;;  %v8265_v59 = vrot.slane %v8263_v51, 7  ;;  %v8580_v45 = vld [vmem:[#allocation2 + $0x8c] sm:$0x1]  ;;  %v7872_v40 = vmul.f32 %v19945_v19, %v25834_v20  ;;  %v8565_v7 = vld [vmem:[#allocation2 + $0x78] sm:$0xf]  ;;  %20034 = vmatprep.subr.bf16.mxu1 %v22675_v55 }
 0x7a2   : > { %v8249_v58 = vrot.slane %v8247_v47, 7  ;;  %v7870_v25 = vmul.f32 %v25834_v20, %v7730_v61  ;;  %v8568_v18 = vld [vmem:[#allocation2 + $0x7c] sm:$0x1]  ;;  %v7910_v48 = vadd.f32 %v25839_v38, %v7871_v41  ;;  %v7908_v30 = vadd.f32 %v25839_v38, %v7869_v26 }
 0x7a3   : > { %v7939_v16 = vmax.f32 %v7907_v28, 0.0  ;;  %v7937_v3 = vmax.f32 %v7905_v37, 0.0  ;;  %v8268_v56 = vor.u32 %v8266_v8, %v8265_v59  ;;  %v8269_v21 = vrot.slane %v8265_v59, 4  ;;  %v8583_v37 = vld [vmem:[#allocation2 + $0x90] sm:$0xf] }
 0x7a4   : > { %v8252_v63 = vor.u32 %v8250_v60, %v8249_v58  ;;  %v8253_v15 = vrot.slane %v8249_v58, 4  ;;  %v7942_v44 = vmax.f32 %v7910_v48, 0.0  ;;  %v7940_v12 = vmax.f32 %v7908_v30, 0.0  ;;  %v19948_v4 = vpop.f32.mrb[12].mxu0  ;;  %v8574_v30 = vld [vmem:[#allocation2 + $0x84] sm:$0x1] }
 0x7a5   : > { %v18104_v0 = vpack.c.bf16 %v7939_v16, %v7939_v16  ;;  %v18102_v17 = vpack.c.bf16 %v7937_v3, %v7937_v3  ;;  %v8578_v14 = vsel %vm25878_vm11, %v8268_v56, %v8577_v46  ;;  %v8581_v42 = vsel %vm25885_vm12, %v8269_v21, %v8580_v45  ;;  %v7743_v51 = vpop.f32.mrb[13].mxu0  ;;  %v8571_v16 = vld [vmem:[#allocation2 + $0x80] sm:$0xf]  ;;  %v8604_v55 = vld [vmem:[#allocation2 + $0xbc] sm:$0x1] }
 0x7a6   : > { %v8566_v29 = vsel %vm25878_vm11, %v8252_v63, %v8565_v7  ;;  %v8569_v19 = vsel %vm25885_vm12, %v8253_v15, %v8568_v18  ;;  %8579 = vst [vmem:[#allocation2 + $0x88] sm:$0xf] %v8578_v14  ;;  %8582 = vst [vmem:[#allocation2 + $0x8c] sm:$0x1] %v8581_v42  ;;  %v25927_v28 = vpop.f32.mrb[14].mxu0  ;;  %v18107_v41 = vpack.c.bf16 %v7942_v44, %v7942_v44 }
 0x7a7   : > { %8567 = vst [vmem:[#allocation2 + $0x78] sm:$0xf] %v8566_v29  ;;  %8570 = vst [vmem:[#allocation2 + $0x7c] sm:$0x1] %v8569_v19  ;;  %v8271_v8 = vshrl.u32 %v18104_v0, 16  ;;  %v8274_v47 = vshll.u32 %v18104_v0, 16  ;;  %v18105_v26 = vpack.c.bf16 %v7940_v12, %v7940_v12  ;;  %v7911_v59 = vadd.f32 %v25839_v38, %v7872_v40 }
 0x7a8   : > { %v8255_v60 = vshrl.u32 %v18102_v17, 16  ;;  %v8258_v61 = vshll.u32 %v18102_v17, 16  ;;  %v7909_v46 = vadd.f32 %v25839_v38, %v7870_v25  ;;  %v7746_v45 = vpop.f32.mrb[15].mxu0  ;;  %v8586_v7 = vld [vmem:[#allocation2 + $0x94] sm:$0x1]  ;;  %v7875_v3 = vmul.f32 %v19948_v4, %v25834_v20 }
 0x7a9   : > { %v8273_v58 = vrot.slane %v8271_v8, 7  ;;  %v7873_v48 = vmul.f32 %v25834_v20, %v7743_v51  ;;  %v8295_v56 = vshrl.u32 %v18107_v41, 16  ;;  %v8298_v21 = vshll.u32 %v18107_v41, 16  ;;  %v8601_v12 = vld [vmem:[#allocation2 + $0xb8] sm:$0xf] }
 0x7aa   : > { %v8257_v18 = vrot.slane %v8255_v60, 7  ;;  %v8279_v63 = vshrl.u32 %v18105_v26, 16  ;;  %v8282_v15 = vshll.u32 %v18105_v26, 16  ;;  %v7943_v42 = vmax.f32 %v7911_v59, 0.0  ;;  %v8592_v60 = vld [vmem:[#allocation2 + $0xac] sm:$0x1] }
 0x7ab   : > { %v8276_v0 = vor.u32 %v8274_v47, %v8273_v58  ;;  %v8277_v17 = vrot.slane %v8273_v58, 4  ;;  %v8297_v25 = vrot.slane %v8295_v56, 7  ;;  %v7941_v29 = vmax.f32 %v7909_v46, 0.0  ;;  %v8589_v47 = vld [vmem:[#allocation2 + $0xa8] sm:$0xf] }
 0x7ac   : > { %v8260_v44 = vor.u32 %v8258_v61, %v8257_v18  ;;  %v8261_v40 = vrot.slane %v8257_v18, 4  ;;  %v8281_v14 = vrot.slane %v8279_v63, 7  ;;  %v19952_v61 = vpop.f32.mrb[16].mxu0  ;;  %v18108_v58 = vpack.c.bf16 %v7943_v42, %v7943_v42  ;;  %v8607_v42 = vld [vmem:[#allocation2 + $0xc0] sm:$0xf] }
 0x7ad   : > { %v8584_v4 = vsel %vm25878_vm11, %v8276_v0, %v8583_v37  ;;  %v8587_v19 = vsel %vm25885_vm12, %v8277_v17, %v8586_v7  ;;  %v8300_v41 = vor.u32 %v8298_v21, %v8297_v25  ;;  %v8301_v26 = vrot.slane %v8297_v25, 4  ;;  %v7759_v46 = vpop.f32.mrb[17].mxu0 }
 0x7ae   : > { %v8572_v51 = vsel %vm25878_vm11, %v8260_v44, %v8571_v16  ;;  %v8575_v8 = vsel %vm25885_vm12, %v8261_v40, %v8574_v30  ;;  %8585 = vst [vmem:[#allocation2 + $0x90] sm:$0xf] %v8584_v4  ;;  %8588 = vst [vmem:[#allocation2 + $0x94] sm:$0x1] %v8587_v19  ;;  %v8284_v59 = vor.u32 %v8282_v15, %v8281_v14  ;;  %v8285_v37 = vrot.slane %v8281_v14, 4  ;;  %v19953_v56 = vpop.f32.mrb[18].mxu0 }
 0x7af   : > { %8573 = vst [vmem:[#allocation2 + $0x80] sm:$0xf] %v8572_v51  ;;  %8576 = vst [vmem:[#allocation2 + $0x84] sm:$0x1] %v8575_v8  ;;  %v18106_v7 = vpack.c.bf16 %v7941_v29, %v7941_v29  ;;  %v7914_v18 = vadd.f32 %v25839_v38, %v7875_v3  ;;  %v7912_v16 = vadd.f32 %v25839_v38, %v7873_v48  ;;  %v7762_v0 = vpop.f32.mrb[19].mxu0  ;;  %v8303_v3 = vshrl.u32 %v18108_v58, 16 }
 0x7b0   : > { %v8602_v30 = vsel %vm25878_vm11, %v8300_v41, %v8601_v12  ;;  %v8605_v63 = vsel %vm25885_vm12, %v8301_v26, %v8604_v55  ;;  %v8590_v21 = vsel %vm25878_vm11, %v8284_v59, %v8589_v47  ;;  %v8593_v15 = vsel %vm25885_vm12, %v8285_v37, %v8592_v60  ;;  %v8610_v51 = vld [vmem:[#allocation2 + $0xc4] sm:$0x1]  ;;  %v8595_v8 = vld [vmem:[#allocation2 + $0xb0] sm:$0xf]  ;;  %v8598_v47 = vld [vmem:[#allocation2 + $0xb4] sm:$0x1] }
 0x7b1   : > { %8603 = vst [vmem:[#allocation2 + $0xb8] sm:$0xf] %v8602_v30  ;;  %8606 = vst [vmem:[#allocation2 + $0xbc] sm:$0x1] %v8605_v63  ;;  %v8306_v48 = vshll.u32 %v18108_v58, 16  ;;  %v8287_v17 = vshrl.u32 %v18106_v7, 16  ;;  %v7876_v25 = vmul.f32 %v25927_v28, %v25834_v20  ;;  %v7874_v55 = vmul.f32 %v25834_v20, %v7746_v45 }
 0x7b2   : > { %8591 = vst [vmem:[#allocation2 + $0xa8] sm:$0xf] %v8590_v21  ;;  %8594 = vst [vmem:[#allocation2 + $0xac] sm:$0x1] %v8593_v15  ;;  %v8290_v44 = vshll.u32 %v18106_v7, 16  ;;  %v7946_v40 = vmax.f32 %v7914_v18, 0.0  ;;  %v7879_v4 = vmul.f32 %v19952_v61, %v25834_v20  ;;  %v7877_v19 = vmul.f32 %v25834_v20, %v7759_v46 }
 0x7b3   : > { %v7944_v12 = vmax.f32 %v7912_v16, 0.0  ;;  %v8305_v14 = vrot.slane %v8303_v3, 7  ;;  %v8289_v29 = vrot.slane %v8287_v17, 7  ;;  %v7915_v26 = vadd.f32 %v25839_v38, %v7876_v25 }
 0x7b4   : > { %v18111_v60 = vpack.c.bf16 %v7946_v40, %v7946_v40  ;;  %v7913_v59 = vadd.f32 %v25839_v38, %v7874_v55  ;;  %v25958_v7 = vpop.f32.mrb[20].mxu0 }
 0x7b5   : > { %v18109_v41 = vpack.c.bf16 %v7944_v12, %v7944_v12  ;;  %v8308_v37 = vor.u32 %v8306_v48, %v8305_v14  ;;  %v8309_v28 = vrot.slane %v8305_v14, 4  ;;  %v8292_v58 = vor.u32 %v8290_v44, %v8289_v29  ;;  %v25960_v46 = vpop.f32.mrb[21].mxu0  ;;  %v8625_v48 = vld [vmem:[#allocation2 + $0xd8] sm:$0xf]  ;;  %v8628_v14 = vld [vmem:[#allocation2 + $0xdc] sm:$0x1] }
 0x7b6   : > { %v8293_v45 = vrot.slane %v8289_v29, 4  ;;  %v8327_v18 = vshrl.u32 %v18111_v60, 16  ;;  %v8330_v16 = vshll.u32 %v18111_v60, 16  ;;  %v25970_v17 = vpop.f32.mrb[22].mxu0  ;;  %v7947_v12 = vmax.f32 %v7915_v26, 0.0 }
 0x7b7   : > { %v8311_v61 = vshrl.u32 %v18109_v41, 16  ;;  %v8314_v30 = vshll.u32 %v18109_v41, 16  ;;  %v8608_v63 = vsel %vm25878_vm11, %v8308_v37, %v8607_v42  ;;  %v8611_v21 = vsel %vm25885_vm12, %v8309_v28, %v8610_v51  ;;  %v25972_v55 = vpop.f32.mrb[23].mxu0  ;;  %v8613_v42 = vld [vmem:[#allocation2 + $0xc8] sm:$0xf] }
 0x7b8   : > { %v8596_v15 = vsel %vm25878_vm11, %v8292_v58, %v8595_v8  ;;  %v8599_v3 = vsel %vm25885_vm12, %v8293_v45, %v8598_v47  ;;  %8609 = vst [vmem:[#allocation2 + $0xc0] sm:$0xf] %v8608_v63  ;;  %8612 = vst [vmem:[#allocation2 + $0xc4] sm:$0x1] %v8611_v21  ;;  %v8329_v44 = vrot.slane %v8327_v18, 7  ;;  %v7945_v25 = vmax.f32 %v7913_v59, 0.0 }
 0x7b9   : > { %8597 = vst [vmem:[#allocation2 + $0xb0] sm:$0xf] %v8596_v15  ;;  %8600 = vst [vmem:[#allocation2 + $0xb4] sm:$0x1] %v8599_v3  ;;  %v8313_v40 = vrot.slane %v8311_v61, 7  ;;  %v7918_v51 = vadd.f32 %v25839_v38, %v7879_v4  ;;  %v7916_v8 = vadd.f32 %v25839_v38, %v7877_v19  ;;  %v7880_v47 = vmul.f32 %v19953_v56, %v25834_v20 }
 0x7ba   : > { %v8616_v29 = vld [vmem:[#allocation2 + $0xcc] sm:$0x1]  ;;  %v7878_v60 = vmul.f32 %v25834_v20, %v7762_v0  ;;  %v8332_v41 = vor.u32 %v8330_v16, %v8329_v44  ;;  %v8333_v37 = vrot.slane %v8329_v44, 4  ;;  %v18112_v45 = vpack.c.bf16 %v7947_v12, %v7947_v12  ;;  %v8755_v0 = vld [vmem:[#allocation2 + $0x58] sm:$0xf] }
 0x7bb   : > { %v8316_v28 = vor.u32 %v8314_v30, %v8313_v40  ;;  %v8317_v58 = vrot.slane %v8313_v40, 4  ;;  %v18110_v26 = vpack.c.bf16 %v7945_v25, %v7945_v25  ;;  %v7950_v59 = vmax.f32 %v7918_v51, 0.0  ;;  %v8631_v3 = vld [vmem:[#allocation2 + $0xe0] sm:$0xf]  ;;  %v8619_v44 = vld [vmem:[#allocation2 + $0xd0] sm:$0xf] }
 0x7bc   : > { %v7948_v18 = vmax.f32 %v7916_v8, 0.0  ;;  %v8626_v61 = vsel %vm25878_vm11, %v8332_v41, %v8625_v48  ;;  %v8629_v4 = vsel %vm25885_vm12, %v8333_v37, %v8628_v14  ;;  %v8335_v16 = vshrl.u32 %v18112_v45, 16  ;;  %v25986_v15 = vpop.f32.mrb[24].mxu0  ;;  %v8634_v48 = vld [vmem:[#allocation2 + $0xe4] sm:$0x1] }
 0x7bd   : > { %v8614_v19 = vsel %vm25878_vm11, %v8316_v28, %v8613_v42  ;;  %v8617_v56 = vsel %vm25885_vm12, %v8317_v58, %v8616_v29  ;;  %8627 = vst [vmem:[#allocation2 + $0xd8] sm:$0xf] %v8626_v61  ;;  %8630 = vst [vmem:[#allocation2 + $0xdc] sm:$0x1] %v8629_v4  ;;  %v8338_v30 = vshll.u32 %v18112_v45, 16  ;;  %v8319_v63 = vshrl.u32 %v18110_v26, 16 }
 0x7be   : > { %8615 = vst [vmem:[#allocation2 + $0xc8] sm:$0xf] %v8614_v19  ;;  %8618 = vst [vmem:[#allocation2 + $0xcc] sm:$0x1] %v8617_v56  ;;  %v8322_v21 = vshll.u32 %v18110_v26, 16  ;;  %v18115_v12 = vpack.c.bf16 %v7950_v59, %v7950_v59  ;;  %v18113_v25 = vpack.c.bf16 %v7948_v18, %v7948_v18  ;;  %v7919_v14 = vadd.f32 %v25839_v38, %v7880_v47  ;;  %v25990_v29 = vpop.f32.mrb[25].mxu0 }
 0x7bf   : > { %v8622_v40 = vld [vmem:[#allocation2 + $0xd4] sm:$0x1]  ;;  %v7917_v42 = vadd.f32 %v25839_v38, %v7878_v60  ;;  %v8337_v51 = vrot.slane %v8335_v16, 7  ;;  %v8321_v8 = vrot.slane %v8319_v63, 7  ;;  %v8982_v41 = vshrl.u32 %v8755_v0, 16  ;;  %v25992_v28 = vpop.f32.mrb[26].mxu0 }
 0x7c0   : > { %v8985_v37 = vshll.u32 %v8755_v0, 16  ;;  %v8359_v58 = vshrl.u32 %v18115_v12, 16  ;;  %v8362_v45 = vshll.u32 %v18115_v12, 16  ;;  %v8343_v26 = vshrl.u32 %v18113_v25, 16  ;;  %v25994_v4 = vpop.f32.mrb[27].mxu0 }
 0x7c1   : > { %v8346_v61 = vshll.u32 %v18113_v25, 16  ;;  %v8340_v59 = vor.u32 %v8338_v30, %v8337_v51  ;;  %v8341_v18 = vrot.slane %v8337_v51, 4  ;;  %v8324_v19 = vor.u32 %v8322_v21, %v8321_v8  ;;  %v8649_v60 = vld [vmem:[#allocation2 + $0x108] sm:$0xf]  ;;  %v8652_v25 = vld [vmem:[#allocation2 + $0x10c] sm:$0x1] }
 0x7c2   : > { %v8325_v47 = vrot.slane %v8321_v8, 4  ;;  %v8361_v56 = vrot.slane %v8359_v58, 7  ;;  %v8345_v2 = vrot.slane %v8343_v26, 7  ;;  %v7951_v13 = vmax.f32 %v7919_v14, 0.0  ;;  %v8637_v21 = vld [vmem:[#allocation2 + $0xf8] sm:$0xf] }
 0x7c3   : > { %v7949_v16 = vmax.f32 %v7917_v42, 0.0  ;;  %v8632_v0 = vsel %vm25878_vm11, %v8340_v59, %v8631_v3  ;;  %v8635_v63 = vsel %vm25885_vm12, %v8341_v18, %v8634_v48  ;;  %v8620_v12 = vsel %vm25878_vm11, %v8324_v19, %v8619_v44  ;;  %v8640_v51 = vld [vmem:[#allocation2 + $0xfc] sm:$0x1]  ;;  %v8757_v44 = vld [vmem:[#allocation2 + $0x60] sm:$0xf] }
 0x7c4   : > { %v8623_v30 = vsel %vm25885_vm12, %v8325_v47, %v8622_v40  ;;  %8633 = vst [vmem:[#allocation2 + $0xe0] sm:$0xf] %v8632_v0  ;;  %8636 = vst [vmem:[#allocation2 + $0xe4] sm:$0x1] %v8635_v63  ;;  %v8364_v14 = vor.u32 %v8362_v45, %v8361_v56  ;;  %v8365_v42 = vrot.slane %v8361_v56, 4  ;;  %v8348_v8 = vor.u32 %v8346_v61, %v8345_v2  ;;  %v26004_v19 = vpop.f32.mrb[28].mxu0 }
 0x7c5   : > { %8621 = vst [vmem:[#allocation2 + $0xd0] sm:$0xf] %v8620_v12  ;;  %8624 = vst [vmem:[#allocation2 + $0xd4] sm:$0x1] %v8623_v30  ;;  %v8349_v3 = vrot.slane %v8345_v2, 4  ;;  %v18116_v26 = vpack.c.bf16 %v7951_v13, %v7951_v13  ;;  %v18114_v48 = vpack.c.bf16 %v7949_v16, %v7949_v16  ;;  %v8984_v59 = vrot.slane %v8982_v41, 4 }
 0x7c6   : > { %v8756_v58 = vld [vmem:[#allocation2 + $0x5c] sm:$0x1]  ;;  %v8987_v18 = vrot.slane %v8985_v37, 5  ;;  %v8650_v40 = vsel %vm25878_vm11, %v8364_v14, %v8649_v60  ;;  %v8653_v47 = vsel %vm25885_vm12, %v8365_v42, %v8652_v25  ;;  %v8638_v45 = vsel %vm25878_vm11, %v8348_v8, %v8637_v21  ;;  %v8758_v61 = vld [vmem:[#allocation2 + $0x64] sm:$0x1]  ;;  %v26014_v56 = vpop.f32.mrb[29].mxu0 }
 0x7c7   : > { %v8641_v2 = vsel %vm25885_vm12, %v8349_v3, %v8640_v51  ;;  %v8759_v13 = vld [vmem:[#allocation2 + $0x68] sm:$0xf]  ;;  %8651 = vst [vmem:[#allocation2 + $0x108] sm:$0xf] %v8650_v40  ;;  %8654 = vst [vmem:[#allocation2 + $0x10c] sm:$0x1] %v8653_v47 }
 0x7c8   : > { %8639 = vst [vmem:[#allocation2 + $0xf8] sm:$0xf] %v8638_v45  ;;  %8642 = vst [vmem:[#allocation2 + $0xfc] sm:$0x1] %v8641_v2  ;;  %v8367_v41 = vshrl.u32 %v18116_v26, 16  ;;  %v8370_v37 = vshll.u32 %v18116_v26, 16  ;;  %v8988_v30 = vor.u32 %v8987_v18, %v8984_v59 }
 0x7c9   : > { %v8351_v60 = vshrl.u32 %v18114_v48, 16  ;;  %v8354_v16 = vshll.u32 %v18114_v48, 16  ;;  %v26016_v0 = vpop.f32.mrb[30].mxu0  ;;  %v8655_v63 = vld [vmem:[#allocation2 + $0x110] sm:$0xf]  ;;  %v8991_v25 = vshll.u32 %v8756_v58, 16 }
 0x7ca   : > { %v8658_v12 = vld [vmem:[#allocation2 + $0x114] sm:$0x1]  ;;  %v8996_v21 = vshrl.u32 %v8757_v44, 16  ;;  %v8999_v51 = vshll.u32 %v8757_v44, 16  ;;  %v26018_v14 = vpop.f32.mrb[31].mxu0  ;;  %v8369_v42 = vrot.slane %v8367_v41, 7 }
 0x7cb   : > { %v8353_v8 = vrot.slane %v8351_v60, 7  ;;  %v8643_v3 = vld [vmem:[#allocation2 + $0x100] sm:$0xf]  ;;  %v9005_v40 = vshll.u32 %v8758_v61, 16  ;;  %v9010_v47 = vshrl.u32 %v8759_v13, 16  ;;  %v8989_v2 = vrot.slane %v8988_v30, 4 }
 0x7cc   : > { %v8646_v45 = vld [vmem:[#allocation2 + $0x104] sm:$0x1]  ;;  %v8993_v26 = vrot.slane %v8991_v25, 5  ;;  %v8998_v43 = vrot.slane %v8996_v21, 4  ;;  %v9001_v48 = vrot.slane %v8999_v51, 5  ;;  %v8372_v11 = vor.u32 %v8370_v37, %v8369_v42 }
 0x7cd   : > { %v8373_v6 = vrot.slane %v8369_v42, 4  ;;  %v8356_v23 = vor.u32 %v8354_v16, %v8353_v8  ;;  %v8357_v57 = vrot.slane %v8353_v8, 4  ;;  %v26020_v59 = vld [vmem:[#allocation2 + $0x6c] sm:$0x1]  ;;  %v9007_v44 = vrot.slane %v9005_v40, 5 }
 0x7ce   : > { %v26024_v58 = vsel %vm23014_vm2, %v8989_v2, %v8993_v26  ;;  %v9002_v18 = vor.u32 %v9001_v48, %v8998_v43  ;;  %v9012_v41 = vrot.slane %v9010_v47, 4  ;;  %v8656_v61 = vsel %vm25878_vm11, %v8372_v11, %v8655_v63  ;;  %v26034_v30 = vld [vmem:[#allocation2 + $0x70] sm:$0xf]  ;;  %v26053_v51 = vld [vmem:[#allocation2 + $0x74] sm:$0x1] }
 0x7cf   : > { %29500 = vst [vmem:[#allocation59_spill] sm:$0xff] %v26024_v58  ;;  %v8659_v60 = vsel %vm25885_vm12, %v8373_v6, %v8658_v12  ;;  %v8644_v37 = vsel %vm25878_vm11, %v8356_v23, %v8643_v3  ;;  %v8647_v16 = vsel %vm25885_vm12, %v8357_v57, %v8646_v45  ;;  %8657 = vst [vmem:[#allocation2 + $0x110] sm:$0xf] %v8656_v61  ;;  %v9013_v63 = vshll.u32 %v8759_v13, 16  ;;  %v26066_v8 = vld [vmem:[#allocation2 + $0x78] sm:$0xf] }
 0x7d0   : > { %8660 = vst [vmem:[#allocation2 + $0x114] sm:$0x1] %v8659_v60  ;;  %8645 = vst [vmem:[#allocation2 + $0x100] sm:$0xf] %v8644_v37  ;;  %v29501_v43 = vsel %vm23014_vm2, %v25845_v52, %v25842_v24  ;;  %v9003_v6 = vrot.slane %v9002_v18, 4  ;;  %v9019_v23 = vshll.u32 %v26020_v59, 16  ;;  %v7883_v57 = vmul.f32 %v25958_v7, %v25834_v20 }
 0x7d1   : > { %8648 = vst [vmem:[#allocation2 + $0x104] sm:$0x1] %v8647_v16  ;;  %v26042_v11 = vcombine.low %v29501_v43, %v26024_v58  ;;  %v7881_v12 = vmul.f32 %v25834_v20, %v25960_v46  ;;  %v7884_v25 = vmul.f32 %v25970_v17, %v25834_v20  ;;  %v7882_v21 = vmul.f32 %v25834_v20, %v25972_v55 }
 0x7d2   : > { %v26059_v24 = vsel %vm23014_vm2, %v9003_v6, %v9007_v44  ;;  %v9015_v52 = vrot.slane %v9013_v63, 5  ;;  %v9021_v7 = vrot.slane %v9019_v23, 5  ;;  %v9024_v13 = vshrl.u32 %v26034_v30, 16 }
 0x7d3   : > { %29502 = vst [vmem:[#allocation50_spill] sm:$0xff] %v26042_v11  ;;  %19976 = vmatprep.mubr.msk.bf16.mxu1 %vm908_vm3, %v26042_v11  ;;  %29503 = vst [vmem:[#allocation54_spill] sm:$0xff] %v26059_v24  ;;  %v7922_v46 = vadd.f32 %v25839_v38, %v7883_v57  ;;  %v7920_v17 = vadd.f32 %v25839_v38, %v7881_v12  ;;  %v7923_v42 = vadd.f32 %v25839_v38, %v7884_v25 }
 0x7d4   : > { %v7921_v55 = vadd.f32 %v25839_v38, %v7882_v21  ;;  %v9016_v3 = vor.u32 %v9015_v52, %v9012_v41  ;;  %v9026_v40 = vrot.slane %v9024_v13, 4  ;;  %v9027_v47 = vshll.u32 %v26034_v30, 16 }
 0x7d5   : > { %v9033_v45 = vshll.u32 %v26053_v51, 16  ;;  %v7954_v2 = vmax.f32 %v7922_v46, 0.0  ;;  %v7952_v26 = vmax.f32 %v7920_v17, 0.0  ;;  %v7955_v48 = vmax.f32 %v7923_v42, 0.0  ;;  %v26084_v46 = vld [vmem:[#allocation2 + $0x7c] sm:$0x1] }
 0x7d6   : > { %v7953_v18 = vmax.f32 %v7921_v55, 0.0  ;;  %v9017_v44 = vrot.slane %v9016_v3, 4  ;;  %v9029_v61 = vrot.slane %v9027_v47, 5  ;;  %v9038_v37 = vshrl.u32 %v26066_v8, 16  ;;  %v8673_v17 = vld [vmem:[#allocation2 + $0x128] sm:$0xf] }
 0x7d7   : > { %v26070_v60 = vrot.slane %v9033_v45, 5  ;;  %v18119_v16 = vpack.c.bf16 %v7954_v2, %v7954_v2  ;;  %v18117_v43 = vpack.c.bf16 %v7952_v26, %v7952_v26  ;;  %v18120_v6 = vpack.c.bf16 %v7955_v48, %v7955_v48  ;;  %v8676_v42 = vld [vmem:[#allocation2 + $0x12c] sm:$0x1]  ;;  %v8661_v3 = vld [vmem:[#allocation2 + $0x118] sm:$0xf] }
 0x7d8   : > { %v18118_v63 = vpack.c.bf16 %v7953_v18, %v7953_v18  ;;  %v26075_v41 = vsel %vm23014_vm2, %v9017_v44, %v9021_v7  ;;  %v9030_v23 = vor.u32 %v9029_v61, %v9026_v40  ;;  %v26077_v57 = vrot.slane %v9038_v37, 4  ;;  %v8664_v7 = vld [vmem:[#allocation2 + $0x11c] sm:$0x1]  ;;  %v8679_v48 = vld [vmem:[#allocation2 + $0x130] sm:$0xf] }
 0x7d9   : > { %29504 = vst [vmem:[#allocation55_spill] sm:$0xff] %v26075_v41  ;;  %v9041_v12 = vshll.u32 %v26066_v8, 16  ;;  %v26082_v25 = vcombine.low %v26059_v24, %v26075_v41  ;;  %v8391_v21 = vshrl.u32 %v18119_v16, 16  ;;  %v8394_v52 = vshll.u32 %v18119_v16, 16  ;;  %v8682_v37 = vld [vmem:[#allocation2 + $0x134] sm:$0x1] }
 0x7da   : > { %v8375_v13 = vshrl.u32 %v18117_v43, 16  ;;  %v8378_v55 = vshll.u32 %v18117_v43, 16  ;;  %v8399_v47 = vshrl.u32 %v18120_v6, 16  ;;  %v8402_v40 = vshll.u32 %v18120_v6, 16  ;;  %v8667_v6 = vld [vmem:[#allocation2 + $0x120] sm:$0xf] }
 0x7db   : > { %29505 = vst [vmem:[#allocation87_spill] sm:$0xff] %v26082_v25  ;;  %v8383_v45 = vshrl.u32 %v18118_v63, 16  ;;  %19977 = vmatmul.mubr.msk.bf16.gmra.mrb[8].mxu1 %vm908_vm3, %v26082_v25  ;;  %v8393_v2 = vrot.slane %v8391_v21, 7  ;;  %v8386_v18 = vshll.u32 %v18118_v63, 16  ;;  %v9031_v44 = vrot.slane %v9030_v23, 4 }
 0x7dc   : > { %v8377_v26 = vrot.slane %v8375_v13, 7  ;;  %v8401_v61 = vrot.slane %v8399_v47, 7  ;;  %v9043_v11 = vrot.slane %v9041_v12, 5  ;;  %v9047_v50 = vshll.u32 %v26084_v46, 16  ;;  %v8670_v24 = vld [vmem:[#allocation2 + $0x124] sm:$0x1] }
 0x7dd   : > { %v8385_v16 = vrot.slane %v8383_v45, 7  ;;  %v8396_v43 = vor.u32 %v8394_v52, %v8393_v2  ;;  %v8397_v27 = vrot.slane %v8393_v2, 4  ;;  %v26089_v13 = vld [vmem:[#allocation2 + $0x80] sm:$0xf]  ;;  %v26101_v47 = vld [vmem:[#allocation2 + $0x88] sm:$0xf] }
 0x7de   : > { %v8380_v41 = vor.u32 %v8378_v55, %v8377_v26  ;;  %v8381_v58 = vrot.slane %v8377_v26, 4  ;;  %v8404_v54 = vor.u32 %v8402_v40, %v8401_v61  ;;  %v8405_v33 = vrot.slane %v8401_v61, 4  ;;  %v26099_v55 = vld [vmem:[#allocation2 + $0x84] sm:$0x1] }
 0x7df   : > { %v8388_v25 = vor.u32 %v8386_v18, %v8385_v16  ;;  %v8389_v21 = vrot.slane %v8385_v16, 4  ;;  %v8674_v63 = vsel %vm25878_vm11, %v8396_v43, %v8673_v17  ;;  %v8677_v23 = vsel %vm25885_vm12, %v8397_v27, %v8676_v42  ;;  %v26111_v42 = vld [vmem:[#allocation2 + $0x8c] sm:$0x1] }
 0x7e0   : > { %v8662_v12 = vsel %vm25878_vm11, %v8380_v41, %v8661_v3  ;;  %v8665_v52 = vsel %vm25885_vm12, %v8381_v58, %v8664_v7  ;;  %8675 = vst [vmem:[#allocation2 + $0x128] sm:$0xf] %v8674_v63  ;;  %8678 = vst [vmem:[#allocation2 + $0x12c] sm:$0x1] %v8677_v23  ;;  %v8680_v17 = vsel %vm25878_vm11, %v8404_v54, %v8679_v48  ;;  %v9052_v7 = vshrl.u32 %v26089_v13, 16 }
 0x7e1   : > { %8663 = vst [vmem:[#allocation2 + $0x118] sm:$0xf] %v8662_v12  ;;  %8666 = vst [vmem:[#allocation2 + $0x11c] sm:$0x1] %v8665_v52  ;;  %v8683_v27 = vsel %vm25885_vm12, %v8405_v33, %v8682_v37  ;;  %v8668_v41 = vsel %vm25878_vm11, %v8388_v25, %v8667_v6  ;;  %v8671_v58 = vsel %vm25885_vm12, %v8389_v21, %v8670_v24  ;;  %v9049_v33 = vrot.slane %v9047_v50, 5 }
 0x7e2   : > { %29506 = vst [vmem:[#allocation13_spill] sm:$0xff] %v26111_v42  ;;  %8681 = vst [vmem:[#allocation2 + $0x130] sm:$0xf] %v8680_v17  ;;  %v26116_v3 = vsel %vm23014_vm2, %v9031_v44, %v26070_v60  ;;  %v9044_v54 = vor.u32 %v9043_v11, %v26077_v57  ;;  %v9055_v25 = vshll.u32 %v26089_v13, 16  ;;  %v9061_v24 = vshll.u32 %v26099_v55, 16 }
 0x7e3   : > { %8684 = vst [vmem:[#allocation2 + $0x134] sm:$0x1] %v8683_v27  ;;  %8669 = vst [vmem:[#allocation2 + $0x120] sm:$0xf] %v8668_v41  ;;  %v9066_v40 = vshrl.u32 %v26101_v47, 16  ;;  %v9069_v45 = vshll.u32 %v26101_v47, 16  ;;  %v7887_v60 = vmul.f32 %v25986_v15, %v25834_v20  ;;  %v7885_v43 = vmul.f32 %v25834_v20, %v25990_v29 }
 0x7e4   : > { %8672 = vst [vmem:[#allocation2 + $0x124] sm:$0x1] %v8671_v58  ;;  %29507 = vst [vmem:[#allocation22_spill] sm:$0xff] %v26116_v3  ;;  %v9045_v2 = vrot.slane %v9044_v54, 4  ;;  %v9054_v26 = vrot.slane %v9052_v7, 4  ;;  %v9075_v48 = vshll.u32 %v26111_v42, 16  ;;  %v7888_v63 = vmul.f32 %v25992_v28, %v25834_v20 }
 0x7e5   : > { %v9057_v18 = vrot.slane %v9055_v25, 5  ;;  %v9063_v11 = vrot.slane %v9061_v24, 5  ;;  %v9068_v50 = vrot.slane %v9066_v40, 4  ;;  %v9071_v57 = vrot.slane %v9069_v45, 5  ;;  %v26127_v44 = vld [vmem:[#allocation2 + $0xa8] sm:$0xf] }
 0x7e6   : > { %v26131_v61 = vsel %vm23014_vm2, %v9045_v2, %v9049_v33  ;;  %v9077_v37 = vrot.slane %v9075_v48, 5  ;;  %v7926_v16 = vadd.f32 %v25839_v38, %v7887_v60  ;;  %v7924_v12 = vadd.f32 %v25839_v38, %v7885_v43  ;;  %v26151_v7 = vld [vmem:[#allocation2 + $0xac] sm:$0x1]  ;;  %v26161_v45 = vld [vmem:[#allocation2 + $0xb0] sm:$0xf] }
 0x7e7   : > { %29508 = vst [vmem:[#allocation31_spill] sm:$0xff] %v26131_v61  ;;  %v26138_v6 = vcombine.low %v26116_v3, %v26131_v61  ;;  %v9058_v15 = vor.u32 %v9057_v18, %v9054_v26  ;;  %v9072_v21 = vor.u32 %v9071_v57, %v9068_v50  ;;  %v7886_v52 = vmul.f32 %v25834_v20, %v25994_v4  ;;  %v8697_v60 = vld [vmem:[#allocation2 + $0x158] sm:$0xf] }
 0x7e8   : > { %v7958_v23 = vmax.f32 %v7926_v16, 0.0  ;;  %v9094_v17 = vshrl.u32 %v26127_v44, 16  ;;  %v7927_v41 = vadd.f32 %v25839_v38, %v7888_v63  ;;  %v9097_v58 = vshll.u32 %v26127_v44, 16  ;;  %v8700_v16 = vld [vmem:[#allocation2 + $0x15c] sm:$0x1] }
 0x7e9   : > { %29509 = vst [vmem:[#allocation36_spill] sm:$0xff] %v26138_v6  ;;  %19980 = vmatprep.mubr.msk.bf16.mxu1 %vm908_vm3, %v26138_v6  ;;  %v9059_v29 = vrot.slane %v9058_v15, 4  ;;  %v9073_v27 = vrot.slane %v9072_v21, 4  ;;  %v7956_v33 = vmax.f32 %v7924_v12, 0.0  ;;  %v7925_v28 = vadd.f32 %v25839_v38, %v7886_v52  ;;  %v8685_v63 = vld [vmem:[#allocation2 + $0x148] sm:$0xf] }
 0x7ea   : > { %v18123_v54 = vpack.c.bf16 %v7958_v23, %v7958_v23  ;;  %v9096_v25 = vrot.slane %v9094_v17, 4  ;;  %v7959_v24 = vmax.f32 %v7927_v41, 0.0  ;;  %v9099_v40 = vrot.slane %v9097_v58, 5  ;;  %v8688_v58 = vld [vmem:[#allocation2 + $0x14c] sm:$0x1] }
 0x7eb   : > { %v26155_v20 = vsel %vm23014_vm2, %v9059_v29, %v9063_v11  ;;  %v26159_v4 = vsel %vm23014_vm2, %v9073_v27, %v9077_v37  ;;  %v18121_v48 = vpack.c.bf16 %v7956_v33, %v7956_v33  ;;  %v7957_v50 = vmax.f32 %v7925_v28, 0.0  ;;  %v8703_v28 = vld [vmem:[#allocation2 + $0x160] sm:$0xf] }
 0x7ec   : > { %29510 = vst [vmem:[#allocation11_spill] sm:$0xff] %v26155_v20  ;;  %29511 = vst [vmem:[#allocation18_spill] sm:$0xff] %v26159_v4  ;;  %v26165_v2 = vcombine.low %v26155_v20, %v26159_v4  ;;  %v8423_v38 = vshrl.u32 %v18123_v54, 16  ;;  %v8426_v26 = vshll.u32 %v18123_v54, 16  ;;  %v18124_v18 = vpack.c.bf16 %v7959_v24, %v7959_v24  ;;  %v26257_v4 = vld [vmem:[#allocation2 + $0xd0] sm:$0xf] }
 0x7ed   : > { %v9100_v11 = vor.u32 %v9099_v40, %v9096_v25  ;;  %v9103_v57 = vshll.u32 %v26151_v7, 16  ;;  %v8407_v43 = vshrl.u32 %v18121_v48, 16  ;;  %v8410_v15 = vshll.u32 %v18121_v48, 16  ;;  %29520 = vst [vmem:[#allocation37_spill] sm:$0xff] %v26257_v4 }
 0x7ee   : > { %29512 = vst [vmem:[#allocation88_spill] sm:$0xff] %v26165_v2  ;;  %19981 = vmatmul.mubr.msk.bf16.gmra.mrb[12].mxu1 %vm908_vm3, %v26165_v2  ;;  %v8425_v37 = vrot.slane %v8423_v38, 7  ;;  %v9108_v21 = vshrl.u32 %v26161_v45, 16  ;;  %v8431_v23 = vshrl.u32 %v18124_v18, 16  ;;  %v8434_v12 = vshll.u32 %v18124_v18, 16 }
 0x7ef   : > { %v18122_v52 = vpack.c.bf16 %v7957_v50, %v7957_v50  ;;  %v9101_v17 = vrot.slane %v9100_v11, 4  ;;  %v8409_v41 = vrot.slane %v8407_v43, 7  ;;  %v9105_v54 = vrot.slane %v9103_v57, 5  ;;  %v8706_v50 = vld [vmem:[#allocation2 + $0x164] sm:$0x1] }
 0x7f0   : > { %v8428_v29 = vor.u32 %v8426_v26, %v8425_v37  ;;  %v8429_v27 = vrot.slane %v8425_v37, 4  ;;  %v8433_v33 = vrot.slane %v8431_v23, 7  ;;  %v9110_v40 = vrot.slane %v9108_v21, 4  ;;  %v8691_v11 = vld [vmem:[#allocation2 + $0x150] sm:$0xf] }
 0x7f1   : > { %v8415_v25 = vshrl.u32 %v18122_v52, 16  ;;  %v8418_v24 = vshll.u32 %v18122_v52, 16  ;;  %v8412_v2 = vor.u32 %v8410_v15, %v8409_v41  ;;  %v8413_v18 = vrot.slane %v8409_v41, 4  ;;  %v26179_v21 = vld [vmem:[#allocation2 + $0xb4] sm:$0x1] }
 0x7f2   : > { %v8698_v38 = vsel %vm25878_vm11, %v8428_v29, %v8697_v60  ;;  %v8701_v48 = vsel %vm25885_vm12, %v8429_v27, %v8700_v16  ;;  %v8436_v26 = vor.u32 %v8434_v12, %v8433_v33  ;;  %v8437_v37 = vrot.slane %v8433_v33, 4  ;;  %v26181_v23 = vld [vmem:[#allocation2 + $0xb8] sm:$0xf]  ;;  %v8694_v15 = vld [vmem:[#allocation2 + $0x154] sm:$0x1] }
 0x7f3   : > { %8699 = vst [vmem:[#allocation2 + $0x158] sm:$0xf] %v8698_v38  ;;  %8702 = vst [vmem:[#allocation2 + $0x15c] sm:$0x1] %v8701_v48  ;;  %v8417_v57 = vrot.slane %v8415_v25, 7  ;;  %v26177_v43 = vsel %vm23014_vm2, %v9101_v17, %v9105_v54  ;;  %v8686_v60 = vsel %vm25878_vm11, %v8412_v2, %v8685_v63  ;;  %v8689_v16 = vsel %vm25885_vm12, %v8413_v18, %v8688_v58 }
 0x7f4   : > { %29513 = vst [vmem:[#allocation90_spill] sm:$0xff] %v26177_v43  ;;  %v29514_v12 = vsel %vm23014_vm2, %v25847_v62, %v25849_v10  ;;  %v26195_v17 = vld [vmem:[#allocation2 + $0xbc] sm:$0x1]  ;;  %v9111_v29 = vshll.u32 %v26161_v45, 16  ;;  %8687 = vst [vmem:[#allocation2 + $0x148] sm:$0xf] %v8686_v60  ;;  %v8704_v2 = vsel %vm25878_vm11, %v8436_v26, %v8703_v28  ;;  %v8707_v63 = vsel %vm25885_vm12, %v8437_v37, %v8706_v50 }
 0x7f5   : > { %v26193_v52 = vcombine.low %v29514_v12, %v26177_v43  ;;  %8690 = vst [vmem:[#allocation2 + $0x14c] sm:$0x1] %v8689_v16  ;;  %v8420_v27 = vor.u32 %v8418_v24, %v8417_v57  ;;  %v8421_v41 = vrot.slane %v8417_v57, 4  ;;  %8705 = vst [vmem:[#allocation2 + $0x160] sm:$0xf] %v8704_v2  ;;  %v9117_v10 = vshll.u32 %v26179_v21, 16 }
 0x7f6   : > { %8708 = vst [vmem:[#allocation2 + $0x164] sm:$0x1] %v8707_v63  ;;  %v9113_v62 = vrot.slane %v9111_v29, 5  ;;  %v9122_v58 = vshrl.u32 %v26181_v23, 16  ;;  %v9125_v54 = vshll.u32 %v26181_v23, 16  ;;  %v9131_v25 = vshll.u32 %v26195_v17, 16 }
 0x7f7   : > { %29515 = vst [vmem:[#allocation91_spill] sm:$0xff] %v26193_v52  ;;  %19984 = vmatprep.mubr.msk.bf16.mxu1 %vm908_vm3, %v26193_v52  ;;  %v8692_v33 = vsel %vm25878_vm11, %v8420_v27, %v8691_v11  ;;  %v8695_v28 = vsel %vm25885_vm12, %v8421_v41, %v8694_v15  ;;  %v22773_v24 = vld [vmem:[%s28595_s2] ss:$0 sm:$0xff]  ;;  %v9119_v50 = vrot.slane %v9117_v10, 5  ;;  %v26225_v41 = vld [vmem:[#allocation2 + $0xc4] sm:$0x1] }
 0x7f8   : > { %v7891_v38 = vmul.f32 %v22773_v24, %v26004_v19  ;;  %v26216_v48 = vld [vmem:[#allocation2 + $0xc0] sm:$0xf]  ;;  %8693 = vst [vmem:[#allocation2 + $0x150] sm:$0xf] %v8692_v33  ;;  %8696 = vst [vmem:[#allocation2 + $0x154] sm:$0x1] %v8695_v28  ;;  %v9114_v18 = vor.u32 %v9113_v62, %v9110_v40  ;;  %v7889_v16 = vmul.f32 %v22773_v24, %v26014_v56 }
 0x7f9   : > { %v9124_v26 = vrot.slane %v9122_v58, 4  ;;  %v9127_v37 = vrot.slane %v9125_v54, 5  ;;  %v9133_v11 = vrot.slane %v9131_v25, 5  ;;  %v22774_v57 = vld [vmem:[%s28596_s3] ss:$0 sm:$0xff]  ;;  %v7892_v15 = vmul.f32 %v22773_v24, %v26016_v0 }
 0x7fa   : > { %v7930_v60 = vadd.f32 %v22774_v57, %v7891_v38  ;;  %v9115_v12 = vrot.slane %v9114_v18, 4  ;;  %v7890_v29 = vmul.f32 %v22773_v24, %v26018_v14  ;;  %v9136_v2 = vshrl.u32 %v26216_v48, 16  ;;  %v26227_v62 = vld [vmem:[#allocation2 + $0xc8] sm:$0xf] }
 0x7fb   : > { %v9128_v19 = vor.u32 %v9127_v37, %v9124_v26  ;;  %v7928_v63 = vadd.f32 %v22774_v57, %v7889_v16  ;;  %v7931_v27 = vadd.f32 %v22774_v57, %v7892_v15  ;;  %v9139_v10 = vshll.u32 %v26216_v48, 16 }
 0x7fc   : > { %v7962_v40 = vmax.f32 %v7930_v60, 0.0  ;;  %v26232_v56 = vsel %vm23014_vm2, %v9115_v12, %v9119_v50  ;;  %v7929_v58 = vadd.f32 %v22774_v57, %v7890_v29  ;;  %v9138_v54 = vrot.slane %v9136_v2, 4  ;;  %v8721_v12 = vld [vmem:[#allocation2 + $0x178] sm:$0xf] }
 0x7fd   : > { %29516 = vst [vmem:[#allocation92_spill] sm:$0xff] %v26232_v56  ;;  %v9129_v0 = vrot.slane %v9128_v19, 4  ;;  %v7960_v14 = vmax.f32 %v7928_v63, 0.0  ;;  %v7963_v28 = vmax.f32 %v7931_v27, 0.0  ;;  %v9141_v25 = vrot.slane %v9139_v10, 5 }
 0x7fe   : > { %v18127_v33 = vpack.c.bf16 %v7962_v40, %v7962_v40  ;;  %v7961_v38 = vmax.f32 %v7929_v58, 0.0  ;;  %v9145_v18 = vshll.u32 %v26225_v41, 16  ;;  %v9150_v26 = vshrl.u32 %v26227_v62, 16  ;;  %v8724_v40 = vld [vmem:[#allocation2 + $0x17c] sm:$0x1] }
 0x7ff   : > { %v26236_v24 = vsel %vm23014_vm2, %v9129_v0, %v9133_v11  ;;  %v18125_v57 = vpack.c.bf16 %v7960_v14, %v7960_v14  ;;  %v29519_v60 = vshll.u32 %v25869_v39, 16  ;;  %v18128_v19 = vpack.c.bf16 %v7963_v28, %v7963_v28  ;;  %v8709_v0 = vld [vmem:[#allocation2 + $0x168] sm:$0xf]  ;;  %v8712_v58 = vld [vmem:[#allocation2 + $0x16c] sm:$0x1] }
 0x800   : > { %29517 = vst [vmem:[#allocation93_spill] sm:$0xff] %v26236_v24  ;;  %v26242_v50 = vcombine.low %v26232_v56, %v26236_v24  ;;  %v8455_v37 = vshrl.u32 %v18127_v33, 16  ;;  %v8458_v15 = vshll.u32 %v18127_v33, 16  ;;  %v18126_v11 = vpack.c.bf16 %v7961_v38, %v7961_v38  ;;  %v8727_v28 = vld [vmem:[#allocation2 + $0x180] sm:$0xf] }
 0x801   : > { %v26246_v16 = vrot.slane %v29519_v60, 5  ;;  %v9142_v29 = vor.u32 %v9141_v25, %v9138_v54  ;;  %v8439_v63 = vshrl.u32 %v18125_v57, 16  ;;  %v8442_v27 = vshll.u32 %v18125_v57, 16  ;;  %v8730_v38 = vld [vmem:[#allocation2 + $0x184] sm:$0x1] }
 0x802   : > { %29518 = vst [vmem:[#allocation95_spill] sm:$0xff] %v26242_v50  ;;  %19985 = vmatmul.mubr.msk.bf16.gmra.mrb[16].mxu1 %vm908_vm3, %v26242_v50  ;;  %v8457_v2 = vrot.slane %v8455_v37, 7  ;;  %v9147_v10 = vrot.slane %v9145_v18, 5  ;;  %v8463_v14 = vshrl.u32 %v18128_v19, 16  ;;  %v8466_v52 = vshll.u32 %v18128_v19, 16 }
 0x803   : > { %v8447_v39 = vshrl.u32 %v18126_v11, 16  ;;  %v9152_v60 = vrot.slane %v9150_v26, 4  ;;  %v8441_v24 = vrot.slane %v8439_v63, 7  ;;  %v8450_v54 = vshll.u32 %v18126_v11, 16  ;;  %v26250_v50 = vld [vmem:[#allocation2 + $0xcc] sm:$0x1] }
 0x804   : > { %v8460_v6 = vor.u32 %v8458_v15, %v8457_v2  ;;  %v8461_v33 = vrot.slane %v8457_v2, 4  ;;  %v8465_v25 = vrot.slane %v8463_v14, 7  ;;  %v9143_v37 = vrot.slane %v9142_v29, 4  ;;  %v8715_v2 = vld [vmem:[#allocation2 + $0x170] sm:$0xf] }
 0x805   : > { %v8449_v43 = vrot.slane %v8447_v39, 7  ;;  %v9153_v57 = vshll.u32 %v26227_v62, 16  ;;  %v8444_v26 = vor.u32 %v8442_v27, %v8441_v24  ;;  %v8445_v15 = vrot.slane %v8441_v24, 4  ;;  %v8718_v63 = vld [vmem:[#allocation2 + $0x174] sm:$0x1] }
 0x806   : > { %v8722_v18 = vsel %vm25878_vm11, %v8460_v6, %v8721_v12  ;;  %v8725_v19 = vsel %vm25885_vm12, %v8461_v33, %v8724_v40  ;;  %v8468_v11 = vor.u32 %v8466_v52, %v8465_v25  ;;  %v8469_v14 = vrot.slane %v8465_v25, 4  ;;  %v26259_v29 = vld [vmem:[#allocation2 + $0xd8] sm:$0xf]  ;;  %v26266_v27 = vld [vmem:[#allocation2 + $0xd4] sm:$0x1] }
 0x807   : > { %8723 = vst [vmem:[#allocation2 + $0x178] sm:$0xf] %v8722_v18  ;;  %8726 = vst [vmem:[#allocation2 + $0x17c] sm:$0x1] %v8725_v19  ;;  %v8452_v39 = vor.u32 %v8450_v54, %v8449_v43  ;;  %v8453_v56 = vrot.slane %v8449_v43, 4  ;;  %v8710_v6 = vsel %vm25878_vm11, %v8444_v26, %v8709_v0  ;;  %v8713_v12 = vsel %vm25885_vm12, %v8445_v15, %v8712_v58 }
 0x808   : > { %29521 = vst [vmem:[#allocation40_spill] sm:$0xff] %v26259_v29  ;;  %v9155_v40 = vrot.slane %v9153_v57, 5  ;;  %v9159_v24 = vshll.u32 %v26250_v50, 16  ;;  %v26268_v33 = vld [vmem:[#allocation2 + $0xdc] sm:$0x1]  ;;  %v8728_v43 = vsel %vm25878_vm11, %v8468_v11, %v8727_v28  ;;  %v8731_v52 = vsel %vm25885_vm12, %v8469_v14, %v8730_v38 }
 0x809   : > { %8711 = vst [vmem:[#allocation2 + $0x168] sm:$0xf] %v8710_v6  ;;  %8714 = vst [vmem:[#allocation2 + $0x16c] sm:$0x1] %v8713_v12  ;;  %v8716_v0 = vsel %vm25878_vm11, %v8452_v39, %v8715_v2  ;;  %v8719_v58 = vsel %vm25885_vm12, %v8453_v56, %v8718_v63  ;;  %v26280_v54 = vsel %vm23014_vm2, %v9143_v37, %v9147_v10  ;;  %v9164_v28 = vshrl.u32 %v26257_v4, 16 }
 0x80a   : > { %8729 = vst [vmem:[#allocation2 + $0x180] sm:$0xf] %v8728_v43  ;;  %8732 = vst [vmem:[#allocation2 + $0x184] sm:$0x1] %v8731_v52  ;;  %v9156_v25 = vor.u32 %v9155_v40, %v9152_v60  ;;  %v9167_v57 = vshll.u32 %v26257_v4, 16  ;;  %v9173_v38 = vshll.u32 %v26266_v27, 16  ;;  %v29523_v11 = vor.u32 %v25858_v9, %v25856_v35 }
 0x80b   : > { %8717 = vst [vmem:[#allocation2 + $0x170] sm:$0xf] %v8716_v0  ;;  %8720 = vst [vmem:[#allocation2 + $0x174] sm:$0x1] %v8719_v58  ;;  %v9178_v53 = vshrl.u32 %v26259_v29, 16  ;;  %v9181_v1 = vshll.u32 %v26259_v29, 16 }
 0x80c   : > { %29522 = vst [vmem:[#allocation41_spill] sm:$0xff] %v26280_v54  ;;  %v9187_v56 = vshll.u32 %v26268_v33, 16  ;;  %v26288_v18 = vld [vmem:[#allocation2 + $0xf8] sm:$0xf]  ;;  %v9157_v19 = vrot.slane %v9156_v25, 4  ;;  %v9161_v26 = vrot.slane %v9159_v24, 5 }
 0x80d   : > { %v9166_v15 = vrot.slane %v9164_v28, 4  ;;  %v9169_v10 = vrot.slane %v9167_v57, 5  ;;  %v26290_v37 = vld [vmem:[#allocation2 + $0xfc] sm:$0x1]  ;;  %v9175_v60 = vrot.slane %v9173_v38, 5  ;;  %v9180_v2 = vrot.slane %v9178_v53, 4 }
 0x80e   : > { %v9183_v63 = vrot.slane %v9181_v1, 5  ;;  %v9199_v14 = vrot.slane %v29523_v11, 4  ;;  %v26295_v39 = vld [vmem:[#allocation2 + $0x100] sm:$0xf]  ;;  %v26299_v6 = vsel %vm23014_vm2, %v9157_v19, %v9161_v26  ;;  %v9189_v40 = vrot.slane %v9187_v56, 5 }
 0x80f   : > { %v9170_v12 = vor.u32 %v9169_v10, %v9166_v15  ;;  %v9206_v24 = vshrl.u32 %v26288_v18, 16  ;;  %v26302_v43 = vld [vmem:[#allocation2 + $0x104] sm:$0x1]  ;;  %v26306_v52 = vcombine.low %v26280_v54, %v26299_v6  ;;  %v9209_v35 = vshll.u32 %v26288_v18, 16  ;;  %v26310_v58 = vld [vmem:[#allocation2 + $0x108] sm:$0xf] }
 0x810   : > { %v9184_v0 = vor.u32 %v9183_v63, %v9180_v2  ;;  %v9215_v9 = vshll.u32 %v26290_v37, 16  ;;  %v9220_v57 = vshrl.u32 %v26295_v39, 16  ;;  %v9223_v38 = vshll.u32 %v26295_v39, 16  ;;  %v26319_v19 = vld [vmem:[#allocation2 + $0x10c] sm:$0x1] }
 0x811   : > { %29524 = vst [vmem:[#allocation48_spill] sm:$0xff] %v26306_v52  ;;  %v9171_v25 = vrot.slane %v9170_v12, 4  ;;  %v9208_v28 = vrot.slane %v9206_v24, 4  ;;  %19988 = vmatprep.mubr.msk.bf16.mxu1 %vm908_vm3, %v26306_v52  ;;  %v9204_v1 = vsel %vm23014_vm2, %v9199_v14, %v26246_v16  ;;  %v9211_v56 = vrot.slane %v9209_v35, 5  ;;  %v26327_v11 = vld [vmem:[#allocation2 + $0x110] sm:$0xf] }
 0x812   : > { %v9185_v53 = vrot.slane %v9184_v0, 4  ;;  %v9229_v26 = vshll.u32 %v26302_v43, 16  ;;  %v9222_v10 = vrot.slane %v9220_v57, 4  ;;  %v9225_v2 = vrot.slane %v9223_v38, 5  ;;  %v26334_v0 = vld [vmem:[#allocation2 + $0x118] sm:$0xf] }
 0x813   : > { %v26324_v15 = vsel %vm23014_vm2, %v9171_v25, %v9175_v60  ;;  %v9234_v63 = vshrl.u32 %v26310_v58, 16  ;;  %v9212_v16 = vor.u32 %v9211_v56, %v9208_v28  ;;  %v9217_v14 = vrot.slane %v9215_v9, 5 }
 0x814   : > { %v26331_v12 = vsel %vm23014_vm2, %v9185_v53, %v9189_v40  ;;  %v9237_v24 = vshll.u32 %v26310_v58, 16  ;;  %v9226_v35 = vor.u32 %v9225_v2, %v9222_v10  ;;  %v9243_v57 = vshll.u32 %v26319_v19, 16  ;;  %v26345_v53 = vld [vmem:[#allocation2 + $0x114] sm:$0x1] }
 0x815   : > { %29525 = vst [vmem:[#allocation99_spill] sm:$0xff] %v26331_v12  ;;  %v26338_v60 = vcombine.low %v26324_v15, %v26331_v12  ;;  %v9236_v25 = vrot.slane %v9234_v63, 4  ;;  %v9213_v38 = vrot.slane %v9212_v16, 4  ;;  %v9248_v54 = vshrl.u32 %v26327_v11, 16  ;;  %v26354_v12 = vld [vmem:[#allocation2 + $0x128] sm:$0xf] }
 0x816   : > { %v9239_v52 = vrot.slane %v9237_v24, 5  ;;  %v9251_v40 = vshll.u32 %v26327_v11, 16  ;;  %v9227_v9 = vrot.slane %v9226_v35, 4  ;;  %v9231_v28 = vrot.slane %v9229_v26, 5  ;;  %v26352_v24 = vld [vmem:[#allocation2 + $0x120] sm:$0xf] }
 0x817   : > { %29526 = vst [vmem:[#allocation100_spill] sm:$0xff] %v26338_v60  ;;  %19989 = vmatmul.mubr.msk.bf16.gmra.mrb[20].mxu1 %vm908_vm3, %v26338_v60  ;;  %v9262_v56 = vshrl.u32 %v26334_v0, 16  ;;  %v26350_v10 = vsel %vm23014_vm2, %v9213_v38, %v9217_v14  ;;  %v9250_v63 = vrot.slane %v9248_v54, 4  ;;  %29528 = vst [vmem:[#allocation102_spill] sm:$0xff] %v26354_v12  ;;  %v9245_v35 = vrot.slane %v9243_v57, 5 }
 0x818   : > { %29527 = vst [vmem:[#allocation101_spill] sm:$0xff] %v26350_v10  ;;  %v9240_v2 = vor.u32 %v9239_v52, %v9236_v25  ;;  %v9253_v16 = vrot.slane %v9251_v40, 5  ;;  %v26357_v61 = vcombine.low %v9204_v1, %v26350_v10  ;;  %v26361_v26 = vsel %vm23014_vm2, %v9227_v9, %v9231_v28  ;;  %v26363_v60 = vld [vmem:[#allocation2 + $0x11c] sm:$0x1]  ;;  %v26366_v52 = vld [vmem:[#allocation2 + $0x124] sm:$0x1] }
 0x819   : > { %v9264_v38 = vrot.slane %v9262_v56, 4  ;;  %v9265_v54 = vshll.u32 %v26334_v0, 16  ;;  %v9257_v1 = vshll.u32 %v26345_v53, 16  ;;  %v9276_v25 = vshrl.u32 %v26352_v24, 16 }
 0x81a   : > { %29529 = vst [vmem:[#allocation103_spill] sm:$0xff] %v26357_v61  ;;  %v9241_v20 = vrot.slane %v9240_v2, 4  ;;  %v9254_v14 = vor.u32 %v9253_v16, %v9250_v63  ;;  %19992 = vmatprep.mubr.msk.bf16.mxu1 %vm908_vm3, %v26357_v61  ;;  %v9279_v40 = vshll.u32 %v26352_v24, 16  ;;  %v9290_v57 = vshrl.u32 %v26354_v12, 16  ;;  %v26383_v63 = vld [vmem:[#allocation2 + $0x12c] sm:$0x1] }
 0x81b   : > { %v9267_v28 = vrot.slane %v9265_v54, 5  ;;  %v9271_v56 = vshll.u32 %v26363_v60, 16  ;;  %v9278_v16 = vrot.slane %v9276_v25, 4  ;;  %v9285_v3 = vshll.u32 %v26366_v52, 16 }
 0x81c   : > { %v26376_v9 = vsel %vm23014_vm2, %v9241_v20, %v9245_v35  ;;  %v9281_v61 = vrot.slane %v9279_v40, 5  ;;  %v9255_v5 = vrot.slane %v9254_v14, 4  ;;  %v9292_v36 = vrot.slane %v9290_v57, 4  ;;  %v26430_v57 = vld [vmem:[#allocation2 + $0x8] sm:$0xf] }
 0x81d   : > { %29530 = vst [vmem:[#allocation104_spill] sm:$0xff] %v26376_v9  ;;  %v26381_v2 = vcombine.low %v26361_v26, %v26376_v9  ;;  %v9268_v22 = vor.u32 %v9267_v28, %v9264_v38  ;;  %v9293_v31 = vshll.u32 %v26354_v12, 16  ;;  %v9259_v20 = vrot.slane %v9257_v1, 5 }
 0x81e   : > { %v9282_v35 = vor.u32 %v9281_v61, %v9278_v16  ;;  %v9273_v49 = vrot.slane %v9271_v56, 5  ;;  %v9299_v9 = vshll.u32 %v26383_v63, 16  ;;  %v9287_v38 = vrot.slane %v9285_v3, 5  ;;  %v26441_v56 = vld [vmem:[#allocation2 + $0x10] sm:$0xf] }
 0x81f   : > { %29531 = vst [vmem:[#allocation105_spill] sm:$0xff] %v26381_v2  ;;  %19993 = vmatmul.mubr.msk.bf16.gmra.mrb[24].mxu1 %vm908_vm3, %v26381_v2  ;;  %v9269_v54 = vrot.slane %v9268_v22, 4  ;;  %v9295_v42 = vrot.slane %v9293_v31, 5  ;;  %v26392_v25 = vsel %vm23014_vm2, %v9255_v5, %v9259_v20  ;;  %v26408_v5 = vcombine.low %v26257_v4, %v26259_v29  ;;  %v26443_v16 = vld [vmem:[#allocation2 + $0x18] sm:$0xf] }
 0x820   : > { %v9283_v10 = vrot.slane %v9282_v35, 4  ;;  %v9301_v61 = vrot.slane %v9299_v9, 5  ;;  %v26447_v20 = vcombine.low %v26441_v56, %v26443_v16  ;;  %v26449_v35 = vld [vmem:[#allocation2 + $0x20] sm:$0xf]  ;;  %v17445_v2 = vrot.slane %v26216_v48, 9 }
 0x821   : > { %v26396_v14 = vsel %vm23014_vm2, %v9269_v54, %v9273_v49  ;;  %v9296_v40 = vor.u32 %v9295_v42, %v9292_v36  ;;  %29533 = vst [vmem:[#allocation7_spill] sm:$0xff] %v26408_v5  ;;  %v26414_v49 = vcombine.low %v26295_v39, %v26310_v58  ;;  %v26418_v36 = vcombine.low %v26327_v11, %v26334_v0  ;;  %v26451_v54 = vld [vmem:[#allocation2 + $0x28] sm:$0xf] }
 0x822   : > { %v26400_v1 = vcombine.low %v26392_v25, %v26396_v14  ;;  %v26404_v31 = vsel %vm23014_vm2, %v9283_v10, %v9287_v38  ;;  %v26422_v42 = vcombine.low %v26352_v24, %v26354_v12  ;;  %v26428_v10 = vld [vmem:[#allocation2] sm:$0xf]  ;;  %29539 = vst [vmem:[#allocation80_spill] sm:$0xff] %v26447_v20  ;;  %29540 = vst [vmem:[#allocation70_spill] sm:$0xff] %v26451_v54  ;;  %v17446_v32 = vrot.slane %v26227_v62, 9 }
 0x823   : > { %v9297_v22 = vrot.slane %v9296_v40, 4  ;;  %29534 = vst [vmem:[#allocation8_spill] sm:$0xff] %v26414_v49  ;;  %29535 = vst [vmem:[#allocation17_spill] sm:$0xff] %v26418_v36  ;;  %v17392_v9 = vcombine.low %v26428_v10, %v26430_v57  ;;  %v26455_v38 = vcombine.low %v26449_v35, %v26451_v54  ;;  %v26460_v40 = vld [vmem:[%s28597_s4 + $0x18] sm:$0xff]   ;;  %v9986_v54 = vrot.slane %v26266_v27, 5 }
 0x824   : > { %29532 = vst [vmem:[#allocation106_spill] sm:$0xff] %v26400_v1  ;;  %19996 = vmatprep.mubr.msk.bf16.mxu1 %vm908_vm3, %v26400_v1  ;;  %29536 = vst [vmem:[#allocation9_spill] sm:$0xff] %v26422_v42  ;;  %v9974_v1 = vrot.slane %v26195_v17, 5  ;;  %v17447_v42 = vrot.slane %v26257_v4, 9  ;;  %v17454_v4 = vrot.slane %v26334_v0, 9 }
 0x825   : > { %v26426_v3 = vsel %vm23014_vm2, %v9297_v22, %v9301_v61  ;;  %29541 = vst [vmem:[#allocation82_spill] sm:$0xff] %v26455_v38  ;;  %29542 = vst [vmem:[#allocation83_spill] sm:$0xff] %v26460_v40  ;;  %v22781_v22 = vld [vmem:[%s28597_s4 + $0x10] sm:$0xff]   ;;  %v17443_v61 = vrot.slane %v26161_v45, 9 }
 0x826   : > { %29537 = vst [vmem:[#allocation78_spill] sm:$0xff] %v26426_v3  ;;  %v26436_v28 = vcombine.low %v26404_v31, %v26426_v3  ;;  %v26477_v3 = vld [vmem:[#allocation2 + $0x38] sm:$0xf] }
 0x827   : > { %29544 = vst [vmem:[#allocation72_spill] sm:$0xff] %v26477_v3 }
 0x828   : > { %29538 = vst [vmem:[#allocation79_spill] sm:$0xff] %v26436_v28  ;;  %19997 = vmatmul.mubr.msk.bf16.gmra.mrb[28].mxu1 %vm908_vm3, %v26436_v28  ;;  %v17444_v28 = vrot.slane %v26181_v23, 9 }
 0x829   : > { %20002 = vmatprep.mubr.msk.bf16.mxu1 %vm908_vm3, %v17392_v9  ;;  %v9970_v9 = vrot.slane %v26179_v21, 5  ;;  %v9978_v21 = vrot.slane %v26225_v41, 5  ;;  %v9990_v41 = vrot.slane %v26268_v33, 5 }
 0x82a   : > { %v26491_v17 = vsel %vm23501_vm6, %v17444_v28, %v9974_v1  ;;  %v26520_v28 = vsel %vm23501_vm6, %v17447_v42, %v9986_v54  ;;  %v17451_v54 = vrot.slane %v26295_v39, 9 }
 0x830   : > { %20003 = vmatmul.mubr.msk.bf16.vlgmr.msra.gmra.mrb[0].mxu1 %vm908_vm3, %v26447_v20  ;;  %v26475_v20 = vld [vmem:[#allocation2 + $0x30] sm:$0xf] }
 0x831   : > { %20035 = vmatpush3.bf16.msra.mxu1 %v22781_v22  ;;  %20006 = vmatprep.mubr.msk.bf16.mxu1 %vm908_vm3, %v26455_v38  ;;  %29543 = vst [vmem:[#allocation84_spill] sm:$0xff] %v26475_v20  ;;  %v26481_v22 = vcombine.low %v26475_v20, %v26477_v3  ;;  %v26485_v38 = vsel %vm23501_vm6, %v17443_v61, %v9970_v9  ;;  %v17448_v61 = vrot.slane %v26259_v29, 9  ;;  %v26502_v9 = vld [vmem:[#allocation2 + $0x50] sm:$0xf]  ;;  %v26504_v20 = vld [vmem:[#allocation2 + $0x58] sm:$0xf] }
 0x832   : > { %20068 = vmatprep.subr.bf16.mxu1 %v26460_v40  ;;  %v9982_v40 = vrot.slane %v26250_v50, 5  ;;  %v26498_v3 = vcombine.low %v26485_v38, %v26491_v17  ;;  %29546 = vst [vmem:[#allocation21_spill] sm:$0xff] %v26504_v20  ;;  %v26508_v1 = vcombine.low %v26502_v9, %v26504_v20  ;;  %v26512_v50 = vsel %vm23501_vm6, %v17445_v2, %v9978_v21 }
 0x833   : > { %29545 = vst [vmem:[#allocation19_spill] sm:$0xff] %v26481_v22  ;;  %v26530_v29 = vsel %vm23501_vm6, %v17448_v61, %v9990_v41  ;;  %v17450_v2 = vrot.slane %v26288_v18, 9  ;;  %v17452_v61 = vrot.slane %v26310_v58, 9  ;;  %v10006_v41 = vrot.slane %v26319_v19, 5 }
 0x834   : > { %29547 = vst [vmem:[#allocation24_spill] sm:$0xff] %v26508_v1  ;;  %v26516_v27 = vsel %vm23501_vm6, %v17446_v32, %v9982_v40  ;;  %v9998_v32 = vrot.slane %v26290_v37, 5  ;;  %v26538_v42 = vcombine.low %v26520_v28, %v26530_v29  ;;  %v10002_v40 = vrot.slane %v26302_v43, 5 }
 0x835   : > { %v26526_v33 = vcombine.low %v26512_v50, %v26516_v27  ;;  %v17453_v37 = vrot.slane %v26327_v11, 9  ;;  %v26557_v43 = vsel %vm23501_vm6, %v17452_v61, %v10006_v41  ;;  %v10018_v19 = vrot.slane %v26366_v52, 5  ;;  %v26572_v61 = vld [vmem:[#allocation2 + $0x60] sm:$0xf]  ;;  %v26574_v41 = vld [vmem:[#allocation2 + $0x68] sm:$0xf] }
 0x836   : > { %29548 = vst [vmem:[#allocation96_spill] sm:$0xff] %v26538_v42  ;;  %v26544_v21 = vsel %vm23501_vm6, %v17450_v2, %v9998_v32  ;;  %v10014_v2 = vrot.slane %v26363_v60, 5  ;;  %v17455_v32 = vrot.slane %v26352_v24, 9  ;;  %29550 = vst [vmem:[#allocation75_spill] sm:$0xff] %v26572_v61  ;;  %v26578_v60 = vcombine.low %v26572_v61, %v26574_v41 }
 0x837   : > { %29551 = vst [vmem:[#allocation76_spill] sm:$0xff] %v26574_v41 }
 0x838   : > { %20007 = vmatmul.mubr.msk.bf16.gmra.mrb[4].mxu1 %vm908_vm3, %v26481_v22  ;;  %v10010_v22 = vrot.slane %v26345_v53, 5  ;;  %v17456_v53 = vrot.slane %v26354_v12, 9  ;;  %29552 = vst [vmem:[#allocation47_spill] sm:$0xff] %v26578_v60  ;;  %v26582_v52 = vsel %vm23501_vm6, %v17454_v4, %v10014_v2  ;;  %v17435_v2 = vrot.slane %v26572_v61, 9 }
 0x839   : > { %20010 = vmatprep.mubr.msk.bf16.mxu1 %vm908_vm3, %v26508_v1  ;;  %v26551_v1 = vsel %vm23501_vm6, %v17451_v54, %v10002_v40  ;;  %v10022_v40 = vrot.slane %v26383_v63, 5  ;;  %v17436_v61 = vrot.slane %v26574_v41, 9 }
 0x83a   : > { %v26564_v42 = vcombine.low %v26551_v1, %v26557_v43  ;;  %v26568_v54 = vsel %vm23501_vm6, %v17453_v37, %v10010_v22  ;;  %v26586_v22 = vsel %vm23501_vm6, %v17455_v32, %v10018_v19  ;;  %v26590_v37 = vcombine.low %v26034_v30, %v26066_v8  ;;  %v22788_v32 = vld [vmem:[#allocation2 + $0x64] sm:$0x1] }
 0x83b   : > { %v26594_v63 = vcombine.low %v26568_v54, %v26582_v52  ;;  %v26598_v12 = vsel %vm23501_vm6, %v17456_v53, %v10022_v40  ;;  %v9938_v19 = vrot.slane %v22788_v32, 5  ;;  %v26613_v53 = vcombine.low %v26288_v18, %v26295_v39  ;;  %v22789_v39 = vld [vmem:[#allocation2 + $0x5c] sm:$0x1] }
 0x83c   : > { %29549 = vst [vmem:[#allocation74_spill] sm:$0xff] %v26564_v42  ;;  %29553 = vst [vmem:[#allocation52_spill] sm:$0xff] %v26590_v37  ;;  %v26604_v4 = vcombine.low %v26586_v22, %v26598_v12  ;;  %v9946_v42 = vrot.slane %v26053_v51, 5  ;;  %v26617_v40 = vcombine.low %v26310_v58, %v26327_v11  ;;  %v9954_v32 = vrot.slane %v26099_v55, 5  ;;  %v26638_v55 = vld [vmem:[#allocation2 + $0xa0] sm:$0xf] }
 0x83d   : > { %29554 = vst [vmem:[#allocation57_spill] sm:$0xff] %v26594_v63  ;;  %v17437_v63 = vrot.slane %v26034_v30, 9  ;;  %29555 = vst [vmem:[#allocation16_spill] sm:$0xff] %v26613_v53  ;;  %v26627_v30 = vcombine.low %v26089_v13, %v26101_v47  ;;  %v17434_v51 = vrot.slane %v26504_v20, 9  ;;  %v9934_v53 = vrot.slane %v22789_v39, 5 }
 0x83e   : > { %29556 = vst [vmem:[#allocation62_spill] sm:$0xff] %v26617_v40  ;;  %v9942_v58 = vrot.slane %v26020_v59, 5  ;;  %v17438_v11 = vrot.slane %v26066_v8, 9  ;;  %v26646_v39 = vsel %vm23501_vm6, %v17435_v2, %v9938_v19  ;;  %v17442_v8 = vrot.slane %v26127_v44, 9 }
 0x83f   : > { %29558 = vst [vmem:[#allocation68_spill] sm:$0xff] %v26627_v30  ;;  %v26650_v59 = vsel %vm23501_vm6, %v17437_v63, %v9946_v42  ;;  %v26672_v42 = vld [vmem:[#allocation2 + $0x90] sm:$0xf] }
 0x840   : > { %20011 = vmatmul.mubr.msk.bf16.gmra.mrb[8].mxu1 %vm908_vm3, %v26578_v60  ;;  %v26621_v60 = vcombine.low %v26334_v0, %v26352_v24  ;;  %v9950_v0 = vrot.slane %v26084_v46, 5  ;;  %v26636_v24 = vcombine.low %v26299_v6, %v26324_v15  ;;  %v9966_v6 = vrot.slane %v26151_v7, 5  ;;  %v29561_v15 = vld [vmem:[#allocation101_spill] sm:$0xff]  ;;  %29565 = vst [vmem:[#allocation86_spill] sm:$0xff] %v26672_v42 }
 0x841   : > { %20014 = vmatprep.mubr.msk.bf16.mxu1 %vm908_vm3, %v26590_v37  ;;  %v17439_v37 = vrot.slane %v26089_v13, 9  ;;  %v26642_v13 = vcombine.low %v26638_v55, %v26127_v44  ;;  %v26670_v44 = vsel %vm23501_vm6, %v17434_v51, %v9934_v53  ;;  %v26676_v7 = vcombine.low %v26396_v14, %v26404_v31  ;;  %v29569_v31 = vld [vmem:[#allocation13_spill] sm:$0xff]  ;;  %v26710_v51 = vld [vmem:[#allocation2 + $0xe4] sm:$0x1] }
 0x842   : > { %29557 = vst [vmem:[#allocation65_spill] sm:$0xff] %v26621_v60  ;;  %29559 = vst [vmem:[#allocation20_spill] sm:$0xff] %v26636_v24  ;;  %v26660_v24 = vcombine.low %v29561_v15, %v26361_v26  ;;  %v29563_v60 = vld [vmem:[#allocation104_spill] sm:$0xff]  ;;  %v26682_v26 = vsel %vm23501_vm6, %v17436_v61, %v9942_v58  ;;  %v17440_v14 = vrot.slane %v26101_v47, 9  ;;  %v9958_v63 = vrot.slane %v29569_v31, 5 }
 0x843   : > { %29560 = vst [vmem:[#allocation108_spill] sm:$0xff] %v26642_v13  ;;  %v26655_v46 = vsel %vm23501_vm6, %v17439_v37, %v9954_v32  ;;  %v26664_v2 = vcombine.low %v29563_v60, %v26392_v25  ;;  %29566 = vst [vmem:[#allocation12_spill] sm:$0xff] %v26676_v7  ;;  %v26686_v25 = vsel %vm23501_vm6, %v17438_v11, %v9950_v0  ;;  %v26688_v60 = vld [vmem:[#allocation2 + $0x94] sm:$0x1]  ;;  %v26708_v32 = vld [vmem:[#allocation2 + $0xe0] sm:$0xf] }
 0x844   : > { %29562 = vst [vmem:[#allocation109_spill] sm:$0xff] %v26660_v24  ;;  %29567 = vst [vmem:[#allocation98_spill] sm:$0xff] %v26688_v60  ;;  %v26692_v37 = vcombine.low %v26670_v44, %v26646_v39  ;;  %v26698_v19 = vcombine.low %v26682_v26, %v26650_v59  ;;  %v26702_v61 = vcombine.low %v26686_v25, %v26655_v46  ;;  %v17563_v47 = vrot.slane %v26672_v42, 9  ;;  %v26728_v15 = vld [vmem:[#allocation2 + $0x134] sm:$0x1] }
 0x845   : > { %29564 = vst [vmem:[#allocation97_spill] sm:$0xff] %v26664_v2  ;;  %v26706_v53 = vsel %vm23501_vm6, %v17442_v8, %v9966_v6  ;;  %29572 = vst [vmem:[#allocation112_spill] sm:$0xff] %v26708_v32  ;;  %v10932_v58 = vrot.slane %v26688_v60, 5  ;;  %v26720_v0 = vcombine.low %v26491_v17, %v26512_v50  ;;  %v26724_v8 = vcombine.low %v26161_v45, %v26181_v23  ;;  %v26726_v6 = vld [vmem:[#allocation2 + $0x130] sm:$0xf] }
 0x846   : > { %29568 = vst [vmem:[#allocation101_spill] sm:$0xff] %v26692_v37  ;;  %29570 = vst [vmem:[#allocation104_spill] sm:$0xff] %v26698_v19  ;;  %v26716_v11 = vcombine.low %v26706_v53, %v26485_v38  ;;  %v26732_v31 = vcombine.low %v26516_v27, %v26520_v28  ;;  %v26736_v38 = vsel %vm23501_vm6, %v17440_v14, %v9958_v63  ;;  %v17564_v50 = vrot.slane %v26708_v32, 9  ;;  %v26848_v37 = vld [vmem:[#allocation2 + $0x14c] sm:$0x1] }
 0x847   : > { %29571 = vst [vmem:[#allocation13_spill] sm:$0xff] %v26702_v61  ;;  %29573 = vst [vmem:[#allocation113_spill] sm:$0xff] %v26710_v51  ;;  %v10933_v17 = vsel %vm23501_vm6, %v17563_v47, %v10932_v58  ;;  %v10936_v45 = vrot.slane %v26710_v51, 5  ;;  %v26744_v23 = vcombine.low %v26216_v48, %v26227_v62  ;;  %v26751_v27 = vcombine.low %v26544_v21, %v26551_v1  ;;  %v26777_v47 = vld [vmem:[#allocation2 + $0x98] sm:$0xf] }
 0x848   : > { %20015 = vmatmul.mubr.msk.bf16.gmra.mrb[12].mxu1 %vm908_vm3, %v26627_v30  ;;  %29574 = vst [vmem:[#allocation114_spill] sm:$0xff] %v26716_v11  ;;  %29575 = vst [vmem:[#allocation115_spill] sm:$0xff] %v26720_v0  ;;  %v26755_v28 = vcombine.low %v26557_v43, %v26568_v54  ;;  %v26763_v48 = vcombine.low %v26582_v52, %v26586_v22  ;;  %v17565_v62 = vrot.slane %v26726_v6, 9  ;;  %v10940_v63 = vrot.slane %v26728_v15, 5  ;;  %v26779_v52 = vld [vmem:[#allocation2 + $0x9c] sm:$0x1] }
 0x849   : > { %20018 = vmatprep.mubr.msk.bf16.mxu1 %vm908_vm3, %v26642_v13  ;;  %29576 = vst [vmem:[#allocation116_spill] sm:$0xff] %v26724_v8  ;;  %29577 = vst [vmem:[#allocation117_spill] sm:$0xff] %v26726_v6  ;;  %v26747_v13 = vcombine.low %v26736_v38, %v10933_v17  ;;  %v10937_v14 = vsel %vm23501_vm6, %v17564_v50, %v10936_v45  ;;  %v26781_v22 = vld [vmem:[#allocation2 + $0xe8] sm:$0xf]  ;;  %v26783_v58 = vld [vmem:[#allocation2 + $0x138] sm:$0xf] }
 0x84a   : > { %29578 = vst [vmem:[#allocation118_spill] sm:$0xff] %v26728_v15  ;;  %29579 = vst [vmem:[#allocation119_spill] sm:$0xff] %v26732_v31  ;;  %v26770_v1 = vcombine.low %v26530_v29, %v10937_v14  ;;  %v10941_v43 = vsel %vm23501_vm6, %v17565_v62, %v10940_v63  ;;  %v26785_v50 = vld [vmem:[#allocation2 + $0xec] sm:$0x1]  ;;  %v26787_v45 = vld [vmem:[#allocation2 + $0xf0] sm:$0xf] }
 0x84b   : > { %29580 = vst [vmem:[#allocation120_spill] sm:$0xff] %v26744_v23  ;;  %29581 = vst [vmem:[#allocation121_spill] sm:$0xff] %v26747_v13  ;;  %v26775_v54 = vcombine.low %v26598_v12, %v10941_v43  ;;  %v26791_v29 = vcombine.low %v26787_v45, %v26288_v18  ;;  %v26793_v62 = vld [vmem:[#allocation2 + $0x13c] sm:$0x1]  ;;  %v17648_v12 = vrot.slane %v26777_v47, 9  ;;  %v11726_v63 = vrot.slane %v26779_v52, 5 }
 0x84c   : > { %29582 = vst [vmem:[#allocation122_spill] sm:$0xff] %v26751_v27  ;;  %29583 = vst [vmem:[#allocation123_spill] sm:$0xff] %v26755_v28  ;;  %v17650_v30 = vrot.slane %v26783_v58, 9  ;;  %v22793_v28 = vld [vmem:[#allocation2 + $0xc] sm:$0x1]  ;;  %v29600_v11 = vld [vmem:[#allocation72_spill] sm:$0xff] }
 0x84d   : > { %29584 = vst [vmem:[#allocation124_spill] sm:$0xff] %v26763_v48  ;;  %29585 = vst [vmem:[#allocation125_spill] sm:$0xff] %v26770_v1  ;;  %v11727_v18 = vsel %vm23501_vm6, %v17648_v12, %v11726_v63  ;;  %v22798_v1 = vld [vmem:[#allocation2 + $0x34] sm:$0x1]  ;;  %v26845_v0 = vld [vmem:[#allocation2 + $0x160] sm:$0xf] }
 0x84e   : > { %29586 = vst [vmem:[#allocation126_spill] sm:$0xff] %v26775_v54  ;;  %29587 = vst [vmem:[#allocation127_spill] sm:$0xff] %v26777_v47  ;;  %v11734_v54 = vrot.slane %v26793_v62, 5  ;;  %v22792_v47 = vld [vmem:[#allocation2 + $0x4] sm:$0x1]  ;;  %v26807_v27 = vcombine.low %v10933_v17, %v11727_v18  ;;  %v17427_v17 = vrot.slane %v26441_v56, 9 }
 0x84f   : > { %29588 = vst [vmem:[#allocation128_spill] sm:$0xff] %v26779_v52  ;;  %29589 = vst [vmem:[#allocation129_spill] sm:$0xff] %v26781_v22  ;;  %v9898_v48 = vrot.slane %v22792_v47, 5  ;;  %v17425_v52 = vrot.slane %v26428_v10, 9  ;;  %v26821_v47 = vld [vmem:[#allocation2 + $0x150] sm:$0xf] }
 0x850   : > { %20019 = vmatmul.mubr.msk.bf16.gmra.mrb[16].mxu1 %vm908_vm3, %v26724_v8  ;;  %29590 = vst [vmem:[#allocation130_spill] sm:$0xff] %v26783_v58  ;;  %29591 = vst [vmem:[#allocation131_spill] sm:$0xff] %v26785_v50  ;;  %v11730_v8 = vrot.slane %v26785_v50, 5  ;;  %v17426_v50 = vrot.slane %v26430_v57, 9  ;;  %v11735_v12 = vsel %vm23501_vm6, %v17650_v30, %v11734_v54  ;;  %v12221_v54 = vshrl.u32 %v26821_v47, 16 }
 0x851   : > { %20022 = vmatprep.mubr.msk.bf16.mxu1 %vm908_vm3, %v26744_v23  ;;  %29592 = vst [vmem:[#allocation132_spill] sm:$0xff] %v26791_v29  ;;  %29593 = vst [vmem:[#allocation133_spill] sm:$0xff] %v26793_v62  ;;  %v17649_v23 = vrot.slane %v26781_v22, 9  ;;  %v26817_v63 = vcombine.low %v10941_v43, %v11735_v12  ;;  %v26819_v62 = vld [vmem:[#allocation2 + $0x148] sm:$0xf]  ;;  %v9899_v10 = vsel %vm23501_vm6, %v17425_v52, %v9898_v48  ;;  %v17428_v43 = vrot.slane %v26443_v16, 9 }
 0x852   : > { %29594 = vst [vmem:[#allocation134_spill] sm:$0xff] %v26807_v27  ;;  %v12207_v30 = vshrl.u32 %v26819_v62, 16  ;;  %v22795_v48 = vld [vmem:[#allocation2 + $0x1c] sm:$0x1]  ;;  %v29598_v12 = vld [vmem:[#allocation70_spill] sm:$0xff]  ;;  %v9922_v31 = vrot.slane %v22798_v1, 5 }
 0x853   : > { %29596 = vst [vmem:[#allocation136_spill] sm:$0xff] %v26817_v63  ;;  %v9910_v52 = vrot.slane %v22795_v48, 5  ;;  %v17430_v63 = vrot.slane %v29598_v12, 9  ;;  %v22797_v27 = vld [vmem:[#allocation2 + $0x2c] sm:$0x1]  ;;  %v17432_v48 = vrot.slane %v29600_v11, 9 }
 0x854   : > { %v9918_v58 = vrot.slane %v22797_v27, 5  ;;  %v22799_v13 = vld [vmem:[#allocation2 + $0x3c] sm:$0x1]  ;;  %v12209_v19 = vrot.slane %v12207_v30, 4  ;;  %v12223_v7 = vrot.slane %v12221_v54, 4  ;;  %v12249_v1 = vshrl.u32 %v26845_v0, 16 }
 0x855   : > { %v9926_v61 = vrot.slane %v22799_v13, 5  ;;  %v12252_v15 = vshll.u32 %v26845_v0, 16  ;;  %v26860_v13 = vsel %vm23501_vm6, %v17428_v43, %v9910_v52  ;;  %v29606_v54 = vld [vmem:[#allocation9_spill] sm:$0xff]  ;;  %v22800_v52 = vld [vmem:[#allocation2 + $0x54] sm:$0x1]  ;;  %v12544_v12 = vrot.slane %v26848_v37, 5 }
 0x856   : > { %29602 = vst [vmem:[#allocation138_spill] sm:$0xff] %v26860_v13  ;;  %v26889_v51 = vld [vmem:[#allocation2 + $0x15c] sm:$0x1]  ;;  %v8826_v11 = vld [vmem:[#allocation2 + $0x174] sm:$0x1] }
 0x857   : > { %v26880_v43 = vsel %vm23501_vm6, %v17432_v48, %v9926_v61  ;;  %v12251_v61 = vrot.slane %v12249_v1, 4  ;;  %v12254_v48 = vrot.slane %v12252_v15, 5 }
 0x858   : > { %20023 = vmatmul.mubr.msk.bf16.gmra.mrb[20].mxu1 %vm908_vm3, %v26408_v5  ;;  %v9902_v5 = vrot.slane %v22793_v28, 5  ;;  %v22794_v28 = vld [vmem:[#allocation2 + $0x14] sm:$0x1]  ;;  %29607 = vst [vmem:[#allocation142_spill] sm:$0xff] %v26880_v43 }
 0x859   : > { %20026 = vmatprep.mubr.msk.bf16.mxu1 %vm908_vm3, %v26791_v29  ;;  %v11731_v29 = vsel %vm23501_vm6, %v17649_v23, %v11730_v8  ;;  %v12210_v23 = vshll.u32 %v26819_v62, 16 }
 0x85a   : > { %v26813_v22 = vcombine.low %v10937_v14, %v11731_v29  ;;  %v26830_v8 = vsel %vm23501_vm6, %v17426_v50, %v9902_v5  ;;  %v9906_v14 = vrot.slane %v22794_v28, 5  ;;  %v12224_v29 = vshll.u32 %v26821_v47, 16  ;;  %v22796_v50 = vld [vmem:[#allocation2 + $0x24] sm:$0x1] }
 0x85b   : > { %29597 = vst [vmem:[#allocation137_spill] sm:$0xff] %v26830_v8  ;;  %v17429_v5 = vrot.slane %v26449_v35, 9  ;;  %v9914_v18 = vrot.slane %v22796_v50, 5  ;;  %v17459_v28 = vcombine.low %v9899_v10, %v26830_v8  ;;  %v12212_v50 = vrot.slane %v12210_v23, 5 }
 0x85c   : > { %29595 = vst [vmem:[#allocation135_spill] sm:$0xff] %v26813_v22  ;;  %v26841_v22 = vld [vmem:[#allocation2 + $0x158] sm:$0xf]  ;;  %v12226_v2 = vrot.slane %v12224_v29, 5  ;;  %v26854_v8 = vsel %vm23501_vm6, %v17427_v17, %v9906_v14  ;;  %v26868_v23 = vsel %vm23501_vm6, %v17430_v63, %v9918_v58  ;;  %v26874_v14 = vld [vmem:[#allocation2 + $0x170] sm:$0xf] }
 0x85d   : > { %v12235_v10 = vshrl.u32 %v26841_v22, 16  ;;  %v12238_v27 = vshll.u32 %v26841_v22, 16  ;;  %v26864_v30 = vsel %vm23501_vm6, %v17429_v5, %v9914_v18  ;;  %29604 = vst [vmem:[#allocation140_spill] sm:$0xff] %v26868_v23  ;;  %v17433_v29 = vrot.slane %v26502_v9, 9  ;;  %v26883_v18 = vld [vmem:[#allocation2 + $0x168] sm:$0xf] }
 0x85e   : > { %29603 = vst [vmem:[#allocation139_spill] sm:$0xff] %v26864_v30  ;;  %v9930_v5 = vrot.slane %v22800_v52, 5  ;;  %v12216_v58 = vshll.u32 %v26848_v37, 16  ;;  %v12227_v63 = vor.u32 %v12226_v2, %v12223_v7  ;;  %v12277_v9 = vshrl.u32 %v26874_v14, 16 }
 0x85f   : > { %v12237_v24 = vrot.slane %v12235_v10, 4  ;;  %v12280_v52 = vshll.u32 %v26874_v14, 16  ;;  %v26895_v60 = vcombine.low %v26854_v8, %v26860_v13  ;;  %v12263_v2 = vshrl.u32 %v26883_v18, 16  ;;  %v26911_v10 = vld [vmem:[#allocation2 + $0x144] sm:$0x1] }
 0x860   : > { %20027 = vmatmul.mubr.msk.bf16.gmra.mrb[24].mxu1 %vm908_vm3, %v26414_v49  ;;  %v29599_v49 = vld [vmem:[#allocation84_spill] sm:$0xff]  ;;  %v12266_v7 = vshll.u32 %v26883_v18, 16  ;;  %29608 = vst [vmem:[#allocation143_spill] sm:$0xff] %v26911_v10  ;;  %v12279_v6 = vrot.slane %v12277_v9, 4  ;;  %v12540_v41 = vrot.slane %v26911_v10, 5 }
 0x861   : > { %20030 = vmatprep.mubr.msk.bf16.mxu1 %vm908_vm3, %v26418_v36  ;;  %v17431_v36 = vrot.slane %v29599_v49, 9  ;;  %29601 = vst [vmem:[#allocation84_spill] sm:$0xff] %v26854_v8  ;;  %v8824_v8 = vld [vmem:[#allocation2 + $0x16c] sm:$0x1]  ;;  %v12282_v40 = vrot.slane %v12280_v52, 5 }
 0x862   : > { %v12268_v42 = vrot.slane %v12266_v7, 5  ;;  %v12272_v20 = vshll.u32 %v8824_v8, 16 }
 0x863   : > { %v26872_v17 = vsel %vm23501_vm6, %v17431_v36, %v9922_v31  ;;  %v12213_v36 = vor.u32 %v12212_v50, %v12209_v19  ;;  %v26887_v31 = vld [vmem:[#allocation2 + $0x154] sm:$0x1]  ;;  %v26899_v19 = vcombine.low %v26864_v30, %v26868_v23  ;;  %v9931_v50 = vsel %vm23501_vm6, %v17433_v29, %v9930_v5  ;;  %v8822_v23 = vld [vmem:[#allocation2 + $0x164] sm:$0x1] }
 0x864   : > { %29605 = vst [vmem:[#allocation141_spill] sm:$0xff] %v26872_v17  ;;  %v26907_v15 = vcombine.low %v26872_v17, %v26880_v43  ;;  %v12230_v1 = vshll.u32 %v26887_v31, 16  ;;  %v12244_v30 = vshll.u32 %v26889_v51, 16  ;;  %v26918_v43 = vld [vmem:[%s28597_s4 + $0x20] sm:$0xff]   ;;  %v12228_v17 = vrot.slane %v12227_v63, 4  ;;  %v29609_v63 = vld [vmem:[#allocation83_spill] sm:$0xff] }
 0x865   : > { %v12214_v13 = vrot.slane %v12213_v36, 4  ;;  %v12255_v29 = vor.u32 %v12254_v48, %v12251_v61  ;;  %v17721_v36 = vrot.slane %v26819_v62, 9  ;;  %v12258_v52 = vshll.u32 %v8822_v23, 16 }
 0x866   : > { %v12232_v9 = vrot.slane %v12230_v1, 5  ;;  %v12246_v48 = vrot.slane %v12244_v30, 5 }
 0x867   : > { %v12256_v1 = vrot.slane %v12255_v29, 4  ;;  %v12260_v30 = vrot.slane %v12258_v52, 5  ;;  %v12552_v29 = vrot.slane %v26889_v51, 5  ;;  %v12560_v52 = vrot.slane %v8824_v8, 5 }
 0x868   : > { %20031 = vmatmul.mubr.msk.bf16.gmra.mrb[28].mxu1 %vm908_vm3, %v29606_v54  ;;  %v12240_v54 = vrot.slane %v12238_v27, 5  ;;  %v12218_v27 = vrot.slane %v12216_v58, 5  ;;  %v12265_v58 = vrot.slane %v12263_v2, 4  ;;  %v12283_v2 = vor.u32 %v12282_v40, %v12279_v6 }
 0x869   : > { %20036 = vmatprep.mubr.msk.bf16.mxu1 %vm908_vm3, %v17459_v28  ;;  %v26901_v28 = vld [vmem:[#allocation2 + $0x140] sm:$0xf]  ;;  %v26939_v7 = vsel %vm23014_vm2, %v12228_v17, %v12232_v9  ;;  %v12274_v40 = vrot.slane %v12272_v20, 5 }
 0x86a   : > { %v12241_v32 = vor.u32 %v12240_v54, %v12237_v24  ;;  %v17720_v5 = vrot.slane %v26901_v28, 9  ;;  %v26930_v24 = vcombine.low %v9931_v50, %v26670_v44  ;;  %v26934_v61 = vsel %vm23014_vm2, %v12214_v13, %v12218_v27  ;;  %v29896_v54 = vld [vmem:[#allocation136_spill] sm:$0xff] }
 0x86b   : > { %v12269_v10 = vor.u32 %v12268_v42, %v12265_v58  ;;  %v12286_v44 = vshll.u32 %v8826_v11, 16  ;;  %v12545_v50 = vsel %vm23501_vm6, %v17721_v36, %v12544_v12  ;;  %v17722_v13 = vrot.slane %v26821_v47, 9  ;;  %v26952_v42 = vld [vmem:[#allocation2 + $0x178] sm:$0xf] }
 0x86c   : > { %29610 = vst [vmem:[#allocation83_spill] sm:$0xff] %v26930_v24  ;;  %v12242_v37 = vrot.slane %v12241_v32, 4  ;;  %v12548_v27 = vrot.slane %v26887_v31, 5  ;;  %v12284_v17 = vrot.slane %v12283_v2, 4  ;;  %v17723_v32 = vrot.slane %v26841_v22, 9 }
 0x86d   : > { %v26956_v12 = vsel %vm23014_vm2, %v12256_v1, %v12260_v30  ;;  %v12556_v58 = vrot.slane %v8822_v23, 5  ;;  %v17725_v31 = vrot.slane %v26883_v18, 9  ;;  %v12270_v36 = vrot.slane %v12269_v10, 4 }
 0x86e   : > { %v12549_v20 = vsel %vm23501_vm6, %v17722_v13, %v12548_v27  ;;  %v12288_v9 = vrot.slane %v12286_v44, 5  ;;  %v12553_v51 = vsel %vm23501_vm6, %v17723_v32, %v12552_v29  ;;  %v12564_v13 = vrot.slane %v8826_v11, 5 }
 0x86f   : > { %v26967_v2 = vcombine.low %v12549_v20, %v12553_v51  ;;  %v12561_v8 = vsel %vm23501_vm6, %v17725_v31, %v12560_v52  ;;  %v17727_v10 = vrot.slane %v26952_v42, 9  ;;  %v26984_v30 = vsel %vm23014_vm2, %v12242_v37, %v12246_v48 }
 0x870   : > { %20037 = vmatmul.mubr.msk.bf16.vlgmr.msra.gmra.mrb[0].mxu1 %vm908_vm3, %v26895_v60  ;;  %v26976_v23 = vsel %vm23014_vm2, %v12284_v17, %v12288_v9  ;;  %v26992_v17 = vcombine.low %v26819_v62, %v26821_v47  ;;  %v26996_v32 = vsel %vm23014_vm2, %v12270_v36, %v12274_v40  ;;  %v27002_v48 = vcombine.low %v26841_v22, %v26845_v0 }
 0x871   : > { %20069 = vmatpush3.bf16.msra.mxu1 %v29609_v63  ;;  %20040 = vmatprep.mubr.msk.bf16.mxu1 %vm908_vm3, %v26899_v19  ;;  %v12541_v63 = vsel %vm23501_vm6, %v17720_v5, %v12540_v41  ;;  %v17724_v41 = vrot.slane %v26845_v0, 9  ;;  %v26958_v5 = vld [vmem:[#allocation2 + $0x17c] sm:$0x1]  ;;  %29613 = vst [vmem:[#allocation144_spill] sm:$0xff] %v26967_v2  ;;  %29614 = vst [vmem:[#allocation145_spill] sm:$0xff] %v26976_v23  ;;  %v27006_v37 = vcombine.low %v26883_v18, %v26874_v14 }
 0x872   : > { %20102 = vmatprep.subr.bf16.mxu1 %v26918_v43  ;;  %v26946_v6 = vcombine.low %v12541_v63, %v12545_v50  ;;  %v17726_v63 = vrot.slane %v26874_v14, 9  ;;  %v12568_v44 = vrot.slane %v26958_v5, 5  ;;  %29616 = vst [vmem:[#allocation147_spill] sm:$0xff] %v26992_v17  ;;  %29617 = vst [vmem:[#allocation148_spill] sm:$0xff] %v27002_v48  ;;  %v27016_v40 = vcombine.low %v26934_v61, %v26939_v7 }
 0x873   : > { %v12557_v1 = vsel %vm23501_vm6, %v17724_v41, %v12556_v58  ;;  %29618 = vst [vmem:[#allocation149_spill] sm:$0xff] %v27006_v37  ;;  %v27008_v41 = vld [vmem:[#allocation2 + $0x180] sm:$0xf]  ;;  %v27010_v58 = vld [vmem:[#allocation2 + $0x184] sm:$0x1]  ;;  %v27020_v36 = vcombine.low %v26984_v30, %v26956_v12  ;;  %v27024_v9 = vcombine.low %v26996_v32, %v26976_v23  ;;  %v27028_v52 = vcombine.low %v26646_v39, %v26682_v26 }
 0x874   : > { %29612 = vst [vmem:[#allocation6_spill] sm:$0xff] %v26946_v6  ;;  %v26986_v27 = vcombine.low %v12557_v1, %v12561_v8  ;;  %v12565_v11 = vsel %vm23501_vm6, %v17726_v63, %v12564_v13  ;;  %v12569_v29 = vsel %vm23501_vm6, %v17727_v10, %v12568_v44  ;;  %29619 = vst [vmem:[#allocation150_spill] sm:$0xff] %v27008_v41  ;;  %v17797_v44 = vrot.slane %v27008_v41, 9  ;;  %v27038_v37 = vld [vmem:[#allocation2 + $0x188] sm:$0xf] }
 0x875   : > { %29620 = vst [vmem:[#allocation151_spill] sm:$0xff] %v27010_v58  ;;  %v27012_v31 = vcombine.low %v12565_v11, %v12569_v29  ;;  %29622 = vst [vmem:[#allocation153_spill] sm:$0xff] %v27016_v40  ;;  %v27030_v63 = vcombine.low %v12545_v50, %v12549_v20  ;;  %v27032_v13 = vcombine.low %v12553_v51, %v12557_v1  ;;  %v13252_v40 = vrot.slane %v27010_v58, 5  ;;  %v22801_v26 = vld [vmem:[#allocation2 + $0xa4] sm:$0x1]  ;;  %v29661_v58 = vld [vmem:[#allocation29_spill] sm:$0xff] }
 0x876   : > { %29615 = vst [vmem:[#allocation146_spill] sm:$0xff] %v26986_v27  ;;  %29623 = vst [vmem:[#allocation154_spill] sm:$0xff] %v27020_v36  ;;  %v27034_v10 = vcombine.low %v12561_v8, %v12565_v11  ;;  %v27040_v36 = vld [vmem:[#allocation2 + $0x18c] sm:$0x1]  ;;  %v17441_v39 = vrot.slane %v26638_v55, 9  ;;  %v9962_v50 = vrot.slane %v22801_v26, 5  ;;  %v27065_v11 = vcombine.low %v26655_v46, %v26736_v38 }
 0x877   : > { %29621 = vst [vmem:[#allocation152_spill] sm:$0xff] %v27012_v31  ;;  %29624 = vst [vmem:[#allocation155_spill] sm:$0xff] %v27024_v9  ;;  %v27044_v9 = vcombine.low %v26650_v59, %v26686_v25  ;;  %v13253_v20 = vsel %vm23501_vm6, %v17797_v44, %v13252_v40  ;;  %v17861_v1 = vrot.slane %v27038_v37, 9  ;;  %v13905_v59 = vrot.slane %v27040_v36, 5  ;;  %v22802_v44 = vld [vmem:[#allocation2 + $0xf4] sm:$0x1] }
 0x878   : > { %20041 = vmatmul.mubr.msk.bf16.gmra.mrb[4].mxu1 %vm908_vm3, %v26907_v15  ;;  %29625 = vst [vmem:[#allocation156_spill] sm:$0xff] %v27030_v63  ;;  %29626 = vst [vmem:[#allocation157_spill] sm:$0xff] %v27032_v13  ;;  %v27053_v51 = vcombine.low %v12569_v29, %v13253_v20  ;;  %v9963_v55 = vsel %vm23501_vm6, %v17441_v39, %v9962_v50  ;;  %v17449_v29 = vrot.slane %v26787_v45, 9  ;;  %v9994_v39 = vrot.slane %v22802_v44, 5  ;;  %v29634_v38 = vld [vmem:[#allocation96_spill] sm:$0xff]  ;;  %v29635_v26 = vld [vmem:[#allocation74_spill] sm:$0xff] }
 0x879   : > { %20044 = vmatprep.mubr.msk.bf16.mxu1 %vm908_vm3, %v26930_v24  ;;  %29627 = vst [vmem:[#allocation158_spill] sm:$0xff] %v27034_v10  ;;  %29628 = vst [vmem:[#allocation159_spill] sm:$0xff] %v27038_v37  ;;  %v13906_v25 = vsel %vm23501_vm6, %v17861_v1, %v13905_v59  ;;  %v27068_v40 = vcombine.low %v9963_v55, %v26706_v53  ;;  %v29636_v45 = vld [vmem:[#allocation57_spill] sm:$0xff]  ;;  %v17494_v50 = vcombine.low %v26430_v57, %v26441_v56  ;;  %v22709_v59 = vld [vmem:[%s28597_s4 + $0x28] sm:$0xff]  }
 0x87a   : > { %29629 = vst [vmem:[#allocation160_spill] sm:$0xff] %v27040_v36  ;;  %29630 = vst [vmem:[#allocation161_spill] sm:$0xff] %v27053_v51  ;;  %v27061_v8 = vcombine.low %v13253_v20, %v13906_v25  ;;  %v9995_v46 = vsel %vm23501_vm6, %v17449_v29, %v9994_v39  ;;  %v29637_v20 = vld [vmem:[#allocation70_spill] sm:$0xff]  ;;  %v29638_v56 = vld [vmem:[#allocation72_spill] sm:$0xff] }
 0x87b   : > { %29632 = vst [vmem:[#allocation163_spill] sm:$0xff] %v27068_v40  ;;  %v27082_v53 = vcombine.low %v9995_v46, %v26544_v21  ;;  %v17495_v21 = vcombine.low %v26443_v16, %v26449_v35  ;;  %v17496_v1 = vcombine.low %v29637_v20, %v29599_v49  ;;  %v27107_v57 = vld [vmem:[#allocation2 + $0x40] sm:$0xf]  ;;  %v29639_v16 = vld [vmem:[#allocation75_spill] sm:$0xff]  ;;  %v29640_v35 = vld [vmem:[#allocation21_spill] sm:$0xff] }
 0x87c   : > { %29631 = vst [vmem:[#allocation162_spill] sm:$0xff] %v27061_v8  ;;  %v17497_v25 = vcombine.low %v29638_v56, %v27107_v57  ;;  %v27113_v55 = vcombine.low %v29640_v35, %v29639_v16  ;;  %v22803_v49 = vld [vmem:[#allocation2 + $0x70] sm:$0xf]  ;;  %v22804_v44 = vld [vmem:[#allocation2 + $0x78] sm:$0xf]  ;;  %v29658_v51 = vld [vmem:[#allocation102_spill] sm:$0xff] }
 0x87d   : > { %29633 = vst [vmem:[#allocation164_spill] sm:$0xff] %v27082_v53  ;;  %v29642_v29 = vld [vmem:[#allocation76_spill] sm:$0xff]  ;;  %v22805_v39 = vld [vmem:[#allocation2 + $0x80] sm:$0xf]  ;;  %v22809_v16 = vld [vmem:[#allocation2 + $0xb8] sm:$0xf] }
 0x87e   : > { %29641 = vst [vmem:[#allocation96_spill] sm:$0xff] %v27113_v55  ;;  %v27121_v46 = vcombine.low %v22804_v44, %v22805_v39  ;;  %v22808_v56 = vld [vmem:[#allocation2 + $0xb0] sm:$0xf]  ;;  %v22810_v35 = vld [vmem:[#allocation2 + $0xc0] sm:$0xf]  ;;  %v29649_v44 = vld [vmem:[#allocation37_spill] sm:$0xff] }
 0x87f   : > { %v29654_v8 = vld [vmem:[#allocation16_spill] sm:$0xff]  ;;  %v27163_v13 = vld [vmem:[#allocation2 + $0x44] sm:$0x1]  ;;  %v29660_v63 = vld [vmem:[#allocation69_spill] sm:$0xff] }
 0x880   : > { %20045 = vmatmul.mubr.msk.bf16.gmra.mrb[8].mxu1 %vm908_vm3, %v27028_v52  ;;  %29644 = vst [vmem:[#allocation57_spill] sm:$0xff] %v27121_v46  ;;  %v29662_v41 = vcombine.low %v29660_v63, %v29661_v58  ;;  %v10606_v17 = vshll.u32 %v27163_v13, 16  ;;  %v29670_v63 = vld [vmem:[#allocation59_spill] sm:$0xff] }
 0x881   : > { %20048 = vmatprep.mubr.msk.bf16.mxu1 %vm908_vm3, %v27044_v9  ;;  %v29737_v6 = vld [vmem:[#allocation87_spill] sm:$0xff] }
 0x888   : > { %20049 = vmatmul.mubr.msk.bf16.gmra.mrb[12].mxu1 %vm908_vm3, %v27065_v11 }
 0x889   : > { %20052 = vmatprep.mubr.msk.bf16.mxu1 %vm908_vm3, %v27068_v40 }
 0x890   : > { %20053 = vmatmul.mubr.msk.bf16.gmra.mrb[16].mxu1 %vm908_vm3, %v26498_v3 }
 0x891   : > { %20056 = vmatprep.mubr.msk.bf16.mxu1 %vm908_vm3, %v26526_v33 }
 0x898   : > { %20057 = vmatmul.mubr.msk.bf16.gmra.mrb[20].mxu1 %vm908_vm3, %v29634_v38 }
 0x899   : > { %20060 = vmatprep.mubr.msk.bf16.mxu1 %vm908_vm3, %v27082_v53 }
 0x8a0   : > { %20061 = vmatmul.mubr.msk.bf16.gmra.mrb[24].mxu1 %vm908_vm3, %v29635_v26 }
 0x8a1   : > { %20064 = vmatprep.mubr.msk.bf16.mxu1 %vm908_vm3, %v29636_v45 }
 0x8a8   : > { %20065 = vmatmul.mubr.msk.bf16.gmra.mrb[28].mxu1 %vm908_vm3, %v26604_v4 }
 0x8a9   : > { %20070 = vmatprep.mubr.msk.bf16.mxu1 %vm908_vm3, %v17494_v50  ;;  %v22806_v50 = vld [vmem:[#allocation2 + $0x88] sm:$0xf] }
 0x8b0   : > { %20071 = vmatmul.mubr.msk.bf16.vlgmr.msra.gmra.mrb[0].mxu1 %vm908_vm3, %v17495_v21  ;;  %v29645_v21 = vld [vmem:[#allocation86_spill] sm:$0xff] }
 0x8b1   : > { %20103 = vmatpush3.bf16.msra.mxu1 %v26918_v43  ;;  %20074 = vmatprep.mubr.msk.bf16.mxu1 %vm908_vm3, %v17496_v1  ;;  %v27119_v43 = vcombine.low %v29642_v29, %v22803_v49  ;;  %v27128_v20 = vcombine.low %v22806_v50, %v29645_v21  ;;  %v22807_v1 = vld [vmem:[#allocation2 + $0xa8] sm:$0xf]  ;;  %v27136_v49 = vcombine.low %v22809_v16, %v22810_v35  ;;  %v29651_v50 = vld [vmem:[#allocation112_spill] sm:$0xff]  ;;  %v29655_v16 = vld [vmem:[#allocation62_spill] sm:$0xff] }
 0x8b2   : > { %20136 = vmatprep.subr.bf16.mxu1 %v22709_v59  ;;  %v22811_v29 = vld [vmem:[#allocation2 + $0xc8] sm:$0xf]  ;;  %v29656_v35 = vld [vmem:[#allocation65_spill] sm:$0xff] }
 0x8b3   : > { %29643 = vst [vmem:[#allocation74_spill] sm:$0xff] %v27119_v43  ;;  %29646 = vst [vmem:[#allocation70_spill] sm:$0xff] %v27128_v20  ;;  %v27139_v39 = vcombine.low %v22811_v29, %v29649_v44  ;;  %v10597_v29 = vshrl.u32 %v27107_v57, 16  ;;  %v10600_v44 = vshll.u32 %v27107_v57, 16 }
 0x8b4   : > { %29648 = vst [vmem:[#allocation75_spill] sm:$0xff] %v27136_v49 }
 0x8b5   : > { %29650 = vst [vmem:[#allocation21_spill] sm:$0xff] %v27139_v39  ;;  %v10599_v36 = vrot.slane %v10597_v29, 4  ;;  %v10602_v37 = vrot.slane %v10600_v44, 5  ;;  %v29664_v29 = vld [vmem:[#allocation85_spill] sm:$0xff] }
 0x8b7   : > { %v10603_v48 = vor.u32 %v10602_v37, %v10599_v36  ;;  %v29669_v36 = vld [vmem:[#allocation54_spill] sm:$0xff] }
 0x8b8   : > { %20075 = vmatmul.mubr.msk.bf16.gmra.mrb[4].mxu1 %vm908_vm3, %v17497_v25  ;;  %v27130_v25 = vcombine.low %v22807_v1, %v22808_v56  ;;  %v29652_v1 = vld [vmem:[#allocation40_spill] sm:$0xff] }
 0x8b9   : > { %20078 = vmatprep.mubr.msk.bf16.mxu1 %vm908_vm3, %v27113_v55  ;;  %v27147_v56 = vcombine.low %v29652_v1, %v29651_v50  ;;  %v29657_v1 = vld [vmem:[#allocation117_spill] sm:$0xff] }
 0x8ba   : > { %29647 = vst [vmem:[#allocation72_spill] sm:$0xff] %v27130_v25  ;;  %v27161_v10 = vcombine.low %v29658_v51, %v29657_v1  ;;  %v27177_v51 = vld [vmem:[%s28597_s4 + $0x30] sm:$0xff]  }
 0x8bb   : > { %29653 = vst [vmem:[#allocation76_spill] sm:$0xff] %v27147_v56 }
 0x8bc   : > { %29659 = vst [vmem:[#allocation86_spill] sm:$0xff] %v27161_v10 }
 0x8c0   : > { %20079 = vmatmul.mubr.msk.bf16.gmra.mrb[8].mxu1 %vm908_vm3, %v27119_v43  ;;  %v29734_v43 = vld [vmem:[#allocation39_spill] sm:$0xff] }
 0x8c1   : > { %20082 = vmatprep.mubr.msk.bf16.mxu1 %vm908_vm3, %v27121_v46 }
 0x8c8   : > { %20083 = vmatmul.mubr.msk.bf16.gmra.mrb[12].mxu1 %vm908_vm3, %v27128_v20 }
 0x8c9   : > { %20086 = vmatprep.mubr.msk.bf16.mxu1 %vm908_vm3, %v27130_v25 }
 0x8d0   : > { %20087 = vmatmul.mubr.msk.bf16.gmra.mrb[16].mxu1 %vm908_vm3, %v27136_v49  ;;  %v29676_v49 = vld [vmem:[#allocation11_spill] sm:$0xff] }
 0x8d1   : > { %20090 = vmatprep.mubr.msk.bf16.mxu1 %vm908_vm3, %v27139_v39 }
 0x8d8   : > { %20091 = vmatmul.mubr.msk.bf16.gmra.mrb[20].mxu1 %vm908_vm3, %v27147_v56  ;;  %v29665_v56 = vld [vmem:[#allocation33_spill] sm:$0xff] }
 0x8d9   : > { %20094 = vmatprep.mubr.msk.bf16.mxu1 %vm908_vm3, %v29654_v8  ;;  %v10608_v8 = vrot.slane %v10606_v17, 5  ;;  %v10611_v17 = vshrl.u32 %v29645_v21, 16 }
 0x8e0   : > { %20095 = vmatmul.mubr.msk.bf16.gmra.mrb[24].mxu1 %vm908_vm3, %v29655_v16  ;;  %v10604_v16 = vrot.slane %v10603_v48, 4  ;;  %v10614_v48 = vshll.u32 %v29645_v21, 16 }
 0x8e1   : > { %20098 = vmatprep.mubr.msk.bf16.mxu1 %vm908_vm3, %v29656_v35  ;;  %v29663_v35 = vld [vmem:[#allocation77_spill] sm:$0xff] }
 0x8e2   : > { %v17531_v44 = vcombine.low %v29664_v29, %v29663_v35  ;;  %v27186_v37 = vsel %vm23014_vm2, %v10604_v16, %v10608_v8  ;;  %v29673_v35 = vld [vmem:[#allocation22_spill] sm:$0xff]  ;;  %v29674_v29 = vld [vmem:[#allocation55_spill] sm:$0xff] }
 0x8e8   : > { %20099 = vmatmul.mubr.msk.bf16.gmra.mrb[28].mxu1 %vm908_vm3, %v27161_v10  ;;  %v29666_v10 = vld [vmem:[#allocation10_spill] sm:$0xff] }
 0x8e9   : > { %20104 = vmatprep.mubr.msk.bf16.mxu1 %vm908_vm3, %v29662_v41  ;;  %v29667_v39 = vcombine.low %v29665_v56, %v29666_v10  ;;  %v29668_v41 = vld [vmem:[#allocation15_spill] sm:$0xff]  ;;  %v27195_v10 = vcombine.low %v29670_v63, %v29669_v36  ;;  %v29672_v56 = vld [vmem:[#allocation98_spill] sm:$0xff]  ;;  %v10628_v63 = vshll.u32 %v29651_v50, 16 }
 0x8ea   : > { %v17532_v58 = vcombine.low %v29668_v41, %v27186_v37  ;;  %v10620_v16 = vshll.u32 %v29672_v56, 16  ;;  %v29677_v41 = vld [vmem:[#allocation31_spill] sm:$0xff] }
 0x8eb   : > { %29671 = vst [vmem:[#allocation37_spill] sm:$0xff] %v27195_v10  ;;  %v27207_v25 = vcombine.low %v29677_v41, %v29676_v49  ;;  %v29684_v41 = vld [vmem:[#allocation113_spill] sm:$0xff] }
 0x8ed   : > { %29678 = vst [vmem:[#allocation40_spill] sm:$0xff] %v27207_v25 }
 0x8f0   : > { %20105 = vmatmul.mubr.msk.bf16.vlgmr.msra.gmra.mrb[0].mxu1 %vm908_vm3, %v29667_v39  ;;  %v10616_v39 = vrot.slane %v10614_v48, 5 }
 0x8f1   : > { %20137 = vmatpush3.bf16.msra.mxu1 %v22709_v59  ;;  %20108 = vmatprep.mubr.msk.bf16.mxu1 %vm908_vm3, %v17531_v44  ;;  %v10613_v59 = vrot.slane %v10611_v17, 4  ;;  %v27203_v44 = vcombine.low %v29674_v29, %v29673_v35  ;;  %v10622_v17 = vrot.slane %v10620_v16, 5  ;;  %v10630_v29 = vrot.slane %v10628_v63, 5 }
 0x8f2   : > { %20170 = vmatprep.subr.bf16.mxu1 %v27177_v51 }
 0x8f3   : > { %v10617_v8 = vor.u32 %v10616_v39, %v10613_v59  ;;  %29675 = vst [vmem:[#allocation112_spill] sm:$0xff] %v27203_v44  ;;  %v29679_v59 = vld [vmem:[#allocation18_spill] sm:$0xff]  ;;  %v29681_v39 = vld [vmem:[#allocation92_spill] sm:$0xff] }
 0x8f5   : > { %v10618_v36 = vrot.slane %v10617_v8, 4  ;;  %v29682_v8 = vld [vmem:[#allocation90_spill] sm:$0xff] }
 0x8f6   : > { %v27225_v56 = vcombine.low %v29682_v8, %v29681_v39  ;;  %v29688_v39 = vld [vmem:[#allocation20_spill] sm:$0xff]  ;;  %v10639_v8 = vshrl.u32 %v29657_v1, 16 }
 0x8f7   : > { %v27215_v48 = vsel %vm23014_vm2, %v10618_v36, %v10622_v17  ;;  %v10634_v36 = vshll.u32 %v29684_v41, 16  ;;  %v29685_v17 = vld [vmem:[#allocation41_spill] sm:$0xff] }
 0x8f8   : > { %20109 = vmatmul.mubr.msk.bf16.gmra.mrb[4].mxu1 %vm908_vm3, %v17532_v58  ;;  %v10625_v58 = vshrl.u32 %v29651_v50, 16  ;;  %v27221_v49 = vcombine.low %v29679_v59, %v27215_v48  ;;  %29683 = vst [vmem:[#allocation102_spill] sm:$0xff] %v27225_v56 }
 0x8f9   : > { %20112 = vmatprep.mubr.msk.bf16.mxu1 %vm908_vm3, %v27195_v10 }
 0x8fa   : > { %29680 = vst [vmem:[#allocation117_spill] sm:$0xff] %v27221_v49  ;;  %v10627_v35 = vrot.slane %v10625_v58, 4  ;;  %v10636_v58 = vrot.slane %v10634_v36, 5 }
 0x8fc   : > { %v10631_v16 = vor.u32 %v10630_v29, %v10627_v35  ;;  %v10642_v35 = vshll.u32 %v29657_v1, 16  ;;  %v29689_v29 = vld [vmem:[#allocation99_spill] sm:$0xff] }
 0x8fe   : > { %v10632_v59 = vrot.slane %v10631_v16, 4  ;;  %v10641_v16 = vrot.slane %v10639_v8, 4  ;;  %v10644_v41 = vrot.slane %v10642_v35, 5  ;;  %v29695_v35 = vld [vmem:[#allocation84_spill] sm:$0xff] }
 0x900   : > { %20113 = vmatmul.mubr.msk.bf16.gmra.mrb[8].mxu1 %vm908_vm3, %v27203_v44  ;;  %v27242_v63 = vsel %vm23014_vm2, %v10632_v59, %v10636_v58  ;;  %v10645_v36 = vor.u32 %v10644_v41, %v10641_v16  ;;  %v29700_v41 = vld [vmem:[#allocation138_spill] sm:$0xff] }
 0x901   : > { %20116 = vmatprep.mubr.msk.bf16.mxu1 %vm908_vm3, %v27207_v25  ;;  %v29686_v25 = vld [vmem:[#allocation93_spill] sm:$0xff] }
 0x902   : > { %v27234_v44 = vcombine.low %v29686_v25, %v29685_v17  ;;  %v27248_v25 = vcombine.low %v29689_v29, %v27242_v63  ;;  %v29691_v17 = vld [vmem:[#allocation109_spill] sm:$0xff]  ;;  %v10646_v58 = vrot.slane %v10645_v36, 4 }
 0x904   : > { %29687 = vst [vmem:[#allocation69_spill] sm:$0xff] %v27234_v44  ;;  %29690 = vst [vmem:[#allocation29_spill] sm:$0xff] %v27248_v25 }
 0x908   : > { %20117 = vmatmul.mubr.msk.bf16.gmra.mrb[12].mxu1 %vm908_vm3, %v27221_v49 }
 0x909   : > { %20120 = vmatprep.mubr.msk.bf16.mxu1 %vm908_vm3, %v27225_v56  ;;  %v29694_v56 = vld [vmem:[#allocation12_spill] sm:$0xff] }
 0x910   : > { %20121 = vmatmul.mubr.msk.bf16.gmra.mrb[16].mxu1 %vm908_vm3, %v27234_v44  ;;  %v29693_v44 = vld [vmem:[#allocation97_spill] sm:$0xff] }
 0x911   : > { %20124 = vmatprep.mubr.msk.bf16.mxu1 %vm908_vm3, %v29688_v39  ;;  %v29692_v39 = vld [vmem:[#allocation118_spill] sm:$0xff] }
 0x912   : > { %v10648_v59 = vshll.u32 %v29692_v39, 16  ;;  %v29699_v39 = vld [vmem:[#allocation139_spill] sm:$0xff] }
 0x913   : > { %v17569_v36 = vcombine.low %v29700_v41, %v29699_v39  ;;  %v29706_v39 = vld [vmem:[#allocation13_spill] sm:$0xff]  ;;  %v29709_v41 = vld [vmem:[#allocation115_spill] sm:$0xff] }
 0x914   : > { %v10650_v29 = vrot.slane %v10648_v59, 5  ;;  %v29701_v59 = vld [vmem:[#allocation141_spill] sm:$0xff] }
 0x916   : > { %v27261_v8 = vsel %vm23014_vm2, %v10646_v58, %v10650_v29  ;;  %v17562_v58 = vrot.slane %v27107_v57, 9  ;;  %v10928_v29 = vrot.slane %v27163_v13, 5  ;;  %v29704_v13 = vld [vmem:[#allocation101_spill] sm:$0xff] }
 0x918   : > { %20125 = vmatmul.mubr.msk.bf16.gmra.mrb[20].mxu1 %vm908_vm3, %v27248_v25  ;;  %v29696_v25 = vld [vmem:[#allocation137_spill] sm:$0xff] }
 0x919   : > { %20128 = vmatprep.mubr.msk.bf16.mxu1 %vm908_vm3, %v29691_v17  ;;  %v17568_v49 = vcombine.low %v29696_v25, %v29695_v35  ;;  %v29697_v17 = vld [vmem:[#allocation78_spill] sm:$0xff]  ;;  %v22711_v25 = vld [vmem:[%s28597_s4 + $0x38] sm:$0xff]   ;;  %v29705_v35 = vld [vmem:[#allocation104_spill] sm:$0xff] }
 0x91a   : > { %v27267_v16 = vcombine.low %v29697_v17, %v27261_v8 }
 0x91c   : > { %29698 = vst [vmem:[#allocation77_spill] sm:$0xff] %v27267_v16 }
 0x920   : > { %20129 = vmatmul.mubr.msk.bf16.gmra.mrb[24].mxu1 %vm908_vm3, %v29693_v44 }
 0x921   : > { %20132 = vmatprep.mubr.msk.bf16.mxu1 %vm908_vm3, %v29694_v56  ;;  %v29702_v56 = vld [vmem:[#allocation140_spill] sm:$0xff] }
 0x922   : > { %v17570_v44 = vcombine.low %v29702_v56, %v29701_v59  ;;  %v29703_v56 = vld [vmem:[#allocation142_spill] sm:$0xff]  ;;  %v29711_v59 = vld [vmem:[#allocation125_spill] sm:$0xff] }
 0x923   : > { %v29803_v34 = vld [vmem:[#allocation77_spill] sm:$0xff] }
 0x928   : > { %20133 = vmatmul.mubr.msk.bf16.gmra.mrb[28].mxu1 %vm908_vm3, %v27267_v16  ;;  %v29731_v16 = vld [vmem:[#allocation9_spill] sm:$0xff] }
 0x929   : > { %20138 = vmatprep.mubr.msk.bf16.mxu1 %vm908_vm3, %v17568_v49  ;;  %v27286_v49 = vsel %vm23501_vm6, %v17562_v58, %v10928_v29  ;;  %v29712_v58 = vld [vmem:[#allocation122_spill] sm:$0xff]  ;;  %v29713_v29 = vld [vmem:[#allocation123_spill] sm:$0xff] }
 0x92a   : > { %v17571_v17 = vcombine.low %v29703_v56, %v27286_v49  ;;  %v29714_v56 = vld [vmem:[#allocation124_spill] sm:$0xff] }
 0x930   : > { %20139 = vmatmul.mubr.msk.bf16.vlgmr.msra.gmra.mrb[0].mxu1 %vm908_vm3, %v17569_v36  ;;  %v29710_v36 = vld [vmem:[#allocation119_spill] sm:$0xff] }
 0x931   : > { %20171 = vmatpush3.bf16.msra.mxu1 %v27177_v51  ;;  %20142 = vmatprep.mubr.msk.bf16.mxu1 %vm908_vm3, %v17570_v44  ;;  %v29707_v51 = vld [vmem:[#allocation121_spill] sm:$0xff]  ;;  %v29708_v44 = vld [vmem:[#allocation114_spill] sm:$0xff] }
 0x932   : > { %20204 = vmatprep.subr.bf16.mxu1 %v22711_v25 }
 0x938   : > { %20143 = vmatmul.mubr.msk.bf16.gmra.mrb[4].mxu1 %vm908_vm3, %v17571_v17  ;;  %v29715_v17 = vld [vmem:[#allocation126_spill] sm:$0xff] }
 0x939   : > { %20146 = vmatprep.mubr.msk.bf16.mxu1 %vm908_vm3, %v29704_v13 }
 0x940   : > { %20147 = vmatmul.mubr.msk.bf16.gmra.mrb[8].mxu1 %vm908_vm3, %v29705_v35 }
 0x941   : > { %20150 = vmatprep.mubr.msk.bf16.mxu1 %vm908_vm3, %v29706_v39 }
 0x948   : > { %20151 = vmatmul.mubr.msk.bf16.gmra.mrb[12].mxu1 %vm908_vm3, %v29707_v51  ;;  %v29727_v51 = vld [vmem:[#allocation129_spill] sm:$0xff] }
 0x949   : > { %20154 = vmatprep.mubr.msk.bf16.mxu1 %vm908_vm3, %v29708_v44  ;;  %v29716_v44 = vld [vmem:[#allocation80_spill] sm:$0xff]  ;;  %v27349_v39 = vcombine.low %v29651_v50, %v29727_v51  ;;  %v29732_v50 = vld [vmem:[#allocation130_spill] sm:$0xff] }
 0x94a   : > { %v27363_v46 = vcombine.low %v29657_v1, %v29732_v50  ;;  %v29736_v1 = vld [vmem:[#allocation43_spill] sm:$0xff] }
 0x94b   : > { %29728 = vst [vmem:[#allocation33_spill] sm:$0xff] %v27349_v39 }
 0x94c   : > { %29733 = vst [vmem:[#allocation10_spill] sm:$0xff] %v27363_v46 }
 0x950   : > { %20155 = vmatmul.mubr.msk.bf16.gmra.mrb[16].mxu1 %vm908_vm3, %v29709_v41  ;;  %v29721_v41 = vld [vmem:[#allocation68_spill] sm:$0xff] }
 0x951   : > { %20158 = vmatprep.mubr.msk.bf16.mxu1 %vm908_vm3, %v29710_v36  ;;  %v22716_v36 = vld [vmem:[%s28597_s4 + $0x40] sm:$0xff]  }
 0x958   : > { %20159 = vmatmul.mubr.msk.bf16.gmra.mrb[20].mxu1 %vm908_vm3, %v29711_v59  ;;  %v29717_v59 = vld [vmem:[#allocation82_spill] sm:$0xff] }
 0x959   : > { %20162 = vmatprep.mubr.msk.bf16.mxu1 %vm908_vm3, %v29712_v58  ;;  %v29718_v58 = vld [vmem:[#allocation19_spill] sm:$0xff] }
 0x960   : > { %20163 = vmatmul.mubr.msk.bf16.gmra.mrb[24].mxu1 %vm908_vm3, %v29713_v29  ;;  %v27324_v29 = vld [vmem:[#allocation2 + $0x48] sm:$0xf] }
 0x961   : > { %20166 = vmatprep.mubr.msk.bf16.mxu1 %vm908_vm3, %v29714_v56  ;;  %v29720_v56 = vld [vmem:[#allocation52_spill] sm:$0xff]  ;;  %v11439_v35 = vshrl.u32 %v27324_v29, 16  ;;  %v11442_v13 = vshll.u32 %v27324_v29, 16 }
 0x963   : > { %v11441_v10 = vrot.slane %v11439_v35, 4  ;;  %v11444_v20 = vrot.slane %v11442_v13, 5  ;;  %v22717_v13 = vld [vmem:[%s28597_s4 + $0x48] sm:$0xff]   ;;  %v29735_v35 = vld [vmem:[#allocation81_spill] sm:$0xff] }
 0x965   : > { %v11445_v55 = vor.u32 %v11444_v20, %v11441_v10 }
 0x967   : > { %v11446_v27 = vrot.slane %v11445_v55, 4 }
 0x968   : > { %20167 = vmatmul.mubr.msk.bf16.gmra.mrb[28].mxu1 %vm908_vm3, %v29715_v17  ;;  %v17603_v17 = vcombine.low %v27107_v57, %v27324_v29  ;;  %v29725_v57 = vld [vmem:[#allocation120_spill] sm:$0xff] }
 0x969   : > { %20172 = vmatprep.mubr.msk.bf16.mxu1 %vm908_vm3, %v29716_v44  ;;  %v29719_v44 = vld [vmem:[#allocation47_spill] sm:$0xff] }
 0x970   : > { %20173 = vmatmul.mubr.msk.bf16.vlgmr.msra.gmra.mrb[0].mxu1 %vm908_vm3, %v29717_v59 }
 0x971   : > { %20205 = vmatpush3.bf16.msra.mxu1 %v22711_v25  ;;  %20176 = vmatprep.mubr.msk.bf16.mxu1 %vm908_vm3, %v29718_v58  ;;  %v29722_v25 = vld [vmem:[#allocation127_spill] sm:$0xff]  ;;  %v29724_v58 = vld [vmem:[#allocation116_spill] sm:$0xff] }
 0x972   : > { %20238 = vmatprep.subr.bf16.mxu1 %v22716_v36  ;;  %v27337_v59 = vcombine.low %v29645_v21, %v29722_v25  ;;  %v29729_v21 = vld [vmem:[#allocation8_spill] sm:$0xff]  ;;  %v11456_v55 = vshll.u32 %v29722_v25, 16 }
 0x974   : > { %29723 = vst [vmem:[#allocation85_spill] sm:$0xff] %v27337_v59  ;;  %v11458_v10 = vrot.slane %v11456_v55, 5 }
 0x978   : > { %20177 = vmatmul.mubr.msk.bf16.gmra.mrb[4].mxu1 %vm908_vm3, %v17603_v17  ;;  %v29726_v17 = vld [vmem:[#allocation7_spill] sm:$0xff] }
 0x979   : > { %20180 = vmatprep.mubr.msk.bf16.mxu1 %vm908_vm3, %v29719_v44 }
 0x980   : > { %20181 = vmatmul.mubr.msk.bf16.gmra.mrb[8].mxu1 %vm908_vm3, %v29720_v56 }
 0x981   : > { %20184 = vmatprep.mubr.msk.bf16.mxu1 %vm908_vm3, %v29721_v41 }
 0x988   : > { %20185 = vmatmul.mubr.msk.bf16.gmra.mrb[12].mxu1 %vm908_vm3, %v27337_v59  ;;  %v29730_v59 = vld [vmem:[#allocation17_spill] sm:$0xff] }
 0x989   : > { %20188 = vmatprep.mubr.msk.bf16.mxu1 %vm908_vm3, %v29724_v58 }
 0x990   : > { %20189 = vmatmul.mubr.msk.bf16.gmra.mrb[16].mxu1 %vm908_vm3, %v29725_v57 }
 0x991   : > { %20192 = vmatprep.mubr.msk.bf16.mxu1 %vm908_vm3, %v29726_v17 }
 0x998   : > { %20193 = vmatmul.mubr.msk.bf16.gmra.mrb[20].mxu1 %vm908_vm3, %v27349_v39  ;;  %v27365_v39 = vld [vmem:[#allocation2 + $0x4c] sm:$0x1] }
 0x999   : > { %20196 = vmatprep.mubr.msk.bf16.mxu1 %vm908_vm3, %v29729_v21  ;;  %v11448_v31 = vshll.u32 %v27365_v39, 16 }
 0x99b   : > { %v11450_v2 = vrot.slane %v11448_v31, 5 }
 0x9a0   : > { %20197 = vmatmul.mubr.msk.bf16.gmra.mrb[24].mxu1 %vm908_vm3, %v29730_v59 }
 0x9a1   : > { %20200 = vmatprep.mubr.msk.bf16.mxu1 %vm908_vm3, %v29731_v16 }
 0x9a8   : > { %20201 = vmatmul.mubr.msk.bf16.gmra.mrb[28].mxu1 %vm908_vm3, %v27363_v46  ;;  %v11451_v46 = vsel %vm23014_vm2, %v11446_v27, %v11450_v2  ;;  %v29739_v2 = vld [vmem:[#allocation36_spill] sm:$0xff] }
 0x9a9   : > { %20206 = vmatprep.mubr.msk.bf16.mxu1 %vm908_vm3, %v29734_v43  ;;  %v11453_v43 = vshrl.u32 %v29722_v25, 16  ;;  %v17626_v31 = vcombine.low %v27186_v37, %v11451_v46  ;;  %v29740_v27 = vld [vmem:[#allocation88_spill] sm:$0xff]  ;;  %v11467_v46 = vshrl.u32 %v29727_v51, 16  ;;  %v11470_v37 = vshll.u32 %v29727_v51, 16 }
 0x9aa   : > { %v29744_v51 = vld [vmem:[#allocation48_spill] sm:$0xff] }
 0x9ab   : > { %v11455_v20 = vrot.slane %v11453_v43, 4  ;;  %v11469_v55 = vrot.slane %v11467_v46, 4 }
 0x9b0   : > { %20207 = vmatmul.mubr.msk.bf16.vlgmr.msra.gmra.mrb[0].mxu1 %vm908_vm3, %v29735_v35  ;;  %v29738_v35 = vld [vmem:[#allocation128_spill] sm:$0xff] }
 0x9b1   : > { %20239 = vmatpush3.bf16.msra.mxu1 %v22716_v36  ;;  %20210 = vmatprep.mubr.msk.bf16.mxu1 %vm908_vm3, %v29736_v1  ;;  %v11459_v36 = vor.u32 %v11458_v10, %v11455_v20  ;;  %v11462_v1 = vshll.u32 %v29738_v35, 16  ;;  %v29742_v20 = vld [vmem:[#allocation95_spill] sm:$0xff] }
 0x9b2   : > { %20272 = vmatprep.subr.bf16.mxu1 %v22717_v13 }
 0x9b3   : > { %v11460_v53 = vrot.slane %v11459_v36, 4  ;;  %v11464_v40 = vrot.slane %v11462_v1, 5  ;;  %v29743_v36 = vld [vmem:[#allocation131_spill] sm:$0xff] }
 0x9b4   : > { %v11476_v35 = vshll.u32 %v29743_v36, 16  ;;  %v29748_v36 = vld [vmem:[#allocation133_spill] sm:$0xff] }
 0x9b5   : > { %v11465_v25 = vsel %vm23014_vm2, %v11460_v53, %v11464_v40  ;;  %v29745_v40 = vld [vmem:[#allocation100_spill] sm:$0xff]  ;;  %v11481_v53 = vshrl.u32 %v29732_v50, 16 }
 0x9b6   : > { %v27397_v43 = vcombine.low %v27215_v48, %v11465_v25  ;;  %v11478_v24 = vrot.slane %v11476_v35, 5  ;;  %v11484_v48 = vshll.u32 %v29732_v50, 16  ;;  %v11490_v35 = vshll.u32 %v29748_v36, 16  ;;  %v29749_v50 = vld [vmem:[#allocation106_spill] sm:$0xff] }
 0x9b7   : > { %v11483_v25 = vrot.slane %v11481_v53, 4  ;;  %v17647_v53 = vrot.slane %v27324_v29, 9  ;;  %v29756_v29 = vld [vmem:[#allocation108_spill] sm:$0xff] }
 0x9b8   : > { %20211 = vmatmul.mubr.msk.bf16.gmra.mrb[4].mxu1 %vm908_vm3, %v17626_v31  ;;  %29741 = vst [vmem:[#allocation15_spill] sm:$0xff] %v27397_v43  ;;  %v11472_v31 = vrot.slane %v11470_v37, 5  ;;  %v11492_v23 = vrot.slane %v11490_v35, 5  ;;  %v29763_v35 = vld [vmem:[#allocation103_spill] sm:$0xff] }
 0x9b9   : > { %20214 = vmatprep.mubr.msk.bf16.mxu1 %vm908_vm3, %v29737_v6 }
 0x9ba   : > { %v11473_v10 = vor.u32 %v11472_v31, %v11469_v55  ;;  %v11486_v55 = vrot.slane %v11484_v48, 5  ;;  %v29747_v31 = vld [vmem:[#allocation105_spill] sm:$0xff]  ;;  %v11722_v48 = vrot.slane %v27365_v39, 5 }
 0x9bb   : > { %v22723_v39 = vld [vmem:[%s28597_s4 + $0x58] sm:$0xff]  }
 0x9bc   : > { %v11474_v1 = vrot.slane %v11473_v10, 4  ;;  %v11487_v10 = vor.u32 %v11486_v55, %v11483_v25  ;;  %v27505_v25 = vcombine.low %v26821_v47, %v26841_v22  ;;  %v27509_v55 = vcombine.low %v26845_v0, %v26883_v18  ;;  %v22724_v0 = vld [vmem:[%s28597_s4 + $0x60] sm:$0xff]   ;;  %v29762_v22 = vld [vmem:[#allocation91_spill] sm:$0xff] }
 0x9bd   : > { %v12193_v47 = vshrl.u32 %v26901_v28, 16 }
 0x9be   : > { %v11479_v46 = vsel %vm23014_vm2, %v11474_v1, %v11478_v24  ;;  %v29750_v24 = vld [vmem:[#allocation79_spill] sm:$0xff]  ;;  %29758 = vst [vmem:[#allocation98_spill] sm:$0xff] %v27505_v25  ;;  %29759 = vst [vmem:[#allocation22_spill] sm:$0xff] %v27509_v55 }
 0x9bf   : > { %v27413_v37 = vcombine.low %v27242_v63, %v11479_v46  ;;  %v22718_v46 = vld [vmem:[%s28597_s4 + $0x50] sm:$0xff]   ;;  %v12195_v18 = vrot.slane %v12193_v47, 4 }
 0x9c0   : > { %20215 = vmatmul.mubr.msk.bf16.gmra.mrb[8].mxu1 %vm908_vm3, %v29739_v2 }
 0x9c1   : > { %20218 = vmatprep.mubr.msk.bf16.mxu1 %vm908_vm3, %v29740_v27  ;;  %29746 = vst [vmem:[#allocation54_spill] sm:$0xff] %v27413_v37 }
 0x9c8   : > { %20219 = vmatmul.mubr.msk.bf16.gmra.mrb[12].mxu1 %vm908_vm3, %v27397_v43  ;;  %v11488_v43 = vrot.slane %v11487_v10, 4  ;;  %v29761_v10 = vld [vmem:[#allocation50_spill] sm:$0xff] }
 0x9c9   : > { %20222 = vmatprep.mubr.msk.bf16.mxu1 %vm908_vm3, %v29742_v20 }
 0x9ca   : > { %v11493_v63 = vsel %vm23014_vm2, %v11488_v43, %v11492_v23  ;;  %v11723_v23 = vsel %vm23501_vm6, %v17647_v53, %v11722_v48  ;;  %v27497_v43 = vcombine.low %v26901_v28, %v26819_v62  ;;  %v27517_v62 = vcombine.low %v26874_v14, %v26952_v42  ;;  %v29764_v53 = vld [vmem:[#allocation143_spill] sm:$0xff] }
 0x9cb   : > { %v27427_v1 = vcombine.low %v27261_v8, %v11493_v63  ;;  %v29754_v8 = vld [vmem:[#allocation136_spill] sm:$0xff]  ;;  %v12196_v14 = vshll.u32 %v26901_v28, 16  ;;  %v12202_v48 = vshll.u32 %v29764_v53, 16 }
 0x9cc   : > { %29760 = vst [vmem:[#allocation55_spill] sm:$0xff] %v27517_v62 }
 0x9cd   : > { %29751 = vst [vmem:[#allocation59_spill] sm:$0xff] %v27427_v1  ;;  %v12198_v36 = vrot.slane %v12196_v14, 5 }
 0x9cf   : > { %v12199_v63 = vor.u32 %v12198_v36, %v12195_v18  ;;  %v27562_v18 = vcombine.low %v26939_v7, %v26984_v30  ;;  %v27566_v36 = vcombine.low %v26956_v12, %v26996_v32  ;;  %v29767_v7 = vld [vmem:[#allocation145_spill] sm:$0xff]  ;;  %v29768_v12 = vld [vmem:[#allocation83_spill] sm:$0xff] }
 0x9d0   : > { %20223 = vmatmul.mubr.msk.bf16.gmra.mrb[16].mxu1 %vm908_vm3, %v29744_v51  ;;  %v29769_v32 = vld [vmem:[#allocation163_spill] sm:$0xff] }
 0x9d1   : > { %20226 = vmatprep.mubr.msk.bf16.mxu1 %vm908_vm3, %v29745_v40  ;;  %29765 = vst [vmem:[#allocation11_spill] sm:$0xff] %v27562_v18  ;;  %29766 = vst [vmem:[#allocation31_spill] sm:$0xff] %v27566_v36 }
 0x9d8   : > { %20227 = vmatmul.mubr.msk.bf16.gmra.mrb[20].mxu1 %vm908_vm3, %v27413_v37 }
 0x9d9   : > { %20230 = vmatprep.mubr.msk.bf16.mxu1 %vm908_vm3, %v29747_v31 }
 0x9e0   : > { %20231 = vmatmul.mubr.msk.bf16.gmra.mrb[24].mxu1 %vm908_vm3, %v29749_v50 }
 0x9e1   : > { %20234 = vmatprep.mubr.msk.bf16.mxu1 %vm908_vm3, %v29750_v24 }
 0x9e8   : > { %20235 = vmatmul.mubr.msk.bf16.gmra.mrb[28].mxu1 %vm908_vm3, %v27427_v1 }
 0x9e9   : > { %20240 = vmatprep.mubr.msk.bf16.mxu1 %vm908_vm3, %v26895_v60  ;;  %v17653_v60 = vcombine.low %v27286_v49, %v11723_v23  ;;  %v29755_v49 = vld [vmem:[#allocation24_spill] sm:$0xff]  ;;  %v12204_v23 = vrot.slane %v12202_v48, 5 }
 0x9f0   : > { %20241 = vmatmul.mubr.msk.bf16.vlgmr.msra.gmra.mrb[0].mxu1 %vm908_vm3, %v26899_v19  ;;  %v29752_v19 = vld [vmem:[#allocation134_spill] sm:$0xff] }
 0x9f1   : > { %20273 = vmatpush3.bf16.msra.mxu1 %v22717_v13  ;;  %20244 = vmatprep.mubr.msk.bf16.mxu1 %vm908_vm3, %v26907_v15  ;;  %v29753_v15 = vld [vmem:[#allocation135_spill] sm:$0xff]  ;;  %v29757_v13 = vld [vmem:[#allocation132_spill] sm:$0xff] }
 0x9f2   : > { %20306 = vmatprep.subr.bf16.mxu1 %v22718_v46 }
 0x9f8   : > { %20245 = vmatmul.mubr.msk.bf16.gmra.mrb[4].mxu1 %vm908_vm3, %v17653_v60  ;;  %v12291_v60 = vshrl.u32 %v26952_v42, 16 }
 0x9f9   : > { %20248 = vmatprep.mubr.msk.bf16.mxu1 %vm908_vm3, %v27028_v52 }
 0xa00   : > { %20249 = vmatmul.mubr.msk.bf16.gmra.mrb[8].mxu1 %vm908_vm3, %v27044_v9 }
 0xa01   : > { %20252 = vmatprep.mubr.msk.bf16.mxu1 %vm908_vm3, %v27065_v11 }
 0xa08   : > { %20253 = vmatmul.mubr.msk.bf16.gmra.mrb[12].mxu1 %vm908_vm3, %v29752_v19 }
 0xa09   : > { %20256 = vmatprep.mubr.msk.bf16.mxu1 %vm908_vm3, %v26498_v3 }
 0xa10   : > { %20257 = vmatmul.mubr.msk.bf16.gmra.mrb[16].mxu1 %vm908_vm3, %v26526_v33 }
 0xa11   : > { %20260 = vmatprep.mubr.msk.bf16.mxu1 %vm908_vm3, %v29634_v38 }
 0xa18   : > { %20261 = vmatmul.mubr.msk.bf16.gmra.mrb[20].mxu1 %vm908_vm3, %v29753_v15 }
 0xa19   : > { %20264 = vmatprep.mubr.msk.bf16.mxu1 %vm908_vm3, %v29635_v26 }
 0xa20   : > { %20265 = vmatmul.mubr.msk.bf16.gmra.mrb[24].mxu1 %vm908_vm3, %v29636_v45 }
 0xa21   : > { %20268 = vmatprep.mubr.msk.bf16.mxu1 %vm908_vm3, %v26604_v4 }
 0xa28   : > { %20269 = vmatmul.mubr.msk.bf16.gmra.mrb[28].mxu1 %vm908_vm3, %v29754_v8 }
 0xa29   : > { %20274 = vmatprep.mubr.msk.bf16.mxu1 %vm908_vm3, %v29755_v49  ;;  %v12294_v49 = vshll.u32 %v26952_v42, 16 }
 0xa2b   : > { %v12296_v47 = vrot.slane %v12294_v49, 5  ;;  %v29775_v49 = vld [vmem:[#allocation96_spill] sm:$0xff] }
 0xa30   : > { %20275 = vmatmul.mubr.msk.bf16.vlgmr.msra.gmra.mrb[0].mxu1 %vm908_vm3, %v29719_v44 }
 0xa31   : > { %20307 = vmatpush3.bf16.msra.mxu1 %v22718_v46  ;;  %20278 = vmatprep.mubr.msk.bf16.mxu1 %vm908_vm3, %v29720_v56  ;;  %v12200_v46 = vrot.slane %v12199_v63, 4 }
 0xa32   : > { %20340 = vmatprep.subr.bf16.mxu1 %v22723_v39 }
 0xa33   : > { %v12205_v28 = vsel %vm23014_vm2, %v12200_v46, %v12204_v23  ;;  %v29771_v46 = vld [vmem:[#allocation6_spill] sm:$0xff]  ;;  %v29772_v23 = vld [vmem:[#allocation144_spill] sm:$0xff] }
 0xa38   : > { %20279 = vmatmul.mubr.msk.bf16.gmra.mrb[4].mxu1 %vm908_vm3, %v29721_v41 }
 0xa39   : > { %20282 = vmatprep.mubr.msk.bf16.mxu1 %vm908_vm3, %v29756_v29 }
 0xa40   : > { %20283 = vmatmul.mubr.msk.bf16.gmra.mrb[8].mxu1 %vm908_vm3, %v29724_v58 }
 0xa41   : > { %20286 = vmatprep.mubr.msk.bf16.mxu1 %vm908_vm3, %v29725_v57 }
 0xa48   : > { %20287 = vmatmul.mubr.msk.bf16.gmra.mrb[12].mxu1 %vm908_vm3, %v29726_v17 }
 0xa49   : > { %20290 = vmatprep.mubr.msk.bf16.mxu1 %vm908_vm3, %v29757_v13 }
 0xa50   : > { %20291 = vmatmul.mubr.msk.bf16.gmra.mrb[16].mxu1 %vm908_vm3, %v29729_v21 }
 0xa51   : > { %20294 = vmatprep.mubr.msk.bf16.mxu1 %vm908_vm3, %v29730_v59 }
 0xa58   : > { %20295 = vmatmul.mubr.msk.bf16.gmra.mrb[20].mxu1 %vm908_vm3, %v29731_v16 }
 0xa59   : > { %20298 = vmatprep.mubr.msk.bf16.mxu1 %vm908_vm3, %v27497_v43 }
 0xa60   : > { %20299 = vmatmul.mubr.msk.bf16.gmra.mrb[24].mxu1 %vm908_vm3, %v27505_v25 }
 0xa61   : > { %20302 = vmatprep.mubr.msk.bf16.mxu1 %vm908_vm3, %v27509_v55 }
 0xa68   : > { %20303 = vmatmul.mubr.msk.bf16.gmra.mrb[28].mxu1 %vm908_vm3, %v27517_v62 }
 0xa69   : > { %20308 = vmatprep.mubr.msk.bf16.mxu1 %vm908_vm3, %v29761_v10  ;;  %v12293_v10 = vrot.slane %v12291_v60, 4  ;;  %v29774_v60 = vld [vmem:[#allocation152_spill] sm:$0xff] }
 0xa6b   : > { %v12297_v14 = vor.u32 %v12296_v47, %v12293_v10  ;;  %v22730_v10 = vld [vmem:[%s28597_s4 + $0x70] sm:$0xff]   ;;  %v29776_v47 = vld [vmem:[#allocation74_spill] sm:$0xff] }
 0xa6d   : > { %v12298_v63 = vrot.slane %v12297_v14, 4  ;;  %v29777_v14 = vld [vmem:[#allocation57_spill] sm:$0xff] }
 0xa70   : > { %20309 = vmatmul.mubr.msk.bf16.vlgmr.msra.gmra.mrb[0].mxu1 %vm908_vm3, %v29737_v6 }
 0xa71   : > { %20341 = vmatpush3.bf16.msra.mxu1 %v22723_v39  ;;  %20312 = vmatprep.mubr.msk.bf16.mxu1 %vm908_vm3, %v29739_v2  ;;  %v27554_v39 = vcombine.low %v12205_v28, %v26934_v61  ;;  %v12300_v61 = vshll.u32 %v26958_v5, 16  ;;  %v22725_v5 = vld [vmem:[%s28597_s4 + $0x68] sm:$0xff]   ;;  %v29773_v28 = vld [vmem:[#allocation146_spill] sm:$0xff] }
 0xa72   : > { %20374 = vmatprep.subr.bf16.mxu1 %v22724_v0 }
 0xa73   : > { %v12302_v53 = vrot.slane %v12300_v61, 5  ;;  %v29778_v61 = vld [vmem:[#allocation70_spill] sm:$0xff] }
 0xa75   : > { %v27575_v48 = vsel %vm23014_vm2, %v12298_v63, %v12302_v53  ;;  %v29779_v63 = vld [vmem:[#allocation72_spill] sm:$0xff]  ;;  %v29780_v53 = vld [vmem:[#allocation75_spill] sm:$0xff] }
 0xa76   : > { %v27579_v30 = vcombine.low %v29767_v7, %v27575_v48  ;;  %v29781_v7 = vld [vmem:[#allocation21_spill] sm:$0xff] }
 0xa78   : > { %20313 = vmatmul.mubr.msk.bf16.gmra.mrb[4].mxu1 %vm908_vm3, %v29740_v27 }
 0xa79   : > { %20316 = vmatprep.mubr.msk.bf16.mxu1 %vm908_vm3, %v29762_v22 }
 0xa80   : > { %20317 = vmatmul.mubr.msk.bf16.gmra.mrb[8].mxu1 %vm908_vm3, %v29742_v20 }
 0xa81   : > { %20320 = vmatprep.mubr.msk.bf16.mxu1 %vm908_vm3, %v29744_v51 }
 0xa88   : > { %20321 = vmatmul.mubr.msk.bf16.gmra.mrb[12].mxu1 %vm908_vm3, %v29745_v40 }
 0xa89   : > { %20324 = vmatprep.mubr.msk.bf16.mxu1 %vm908_vm3, %v29763_v35 }
 0xa90   : > { %20325 = vmatmul.mubr.msk.bf16.gmra.mrb[16].mxu1 %vm908_vm3, %v29747_v31 }
 0xa91   : > { %20328 = vmatprep.mubr.msk.bf16.mxu1 %vm908_vm3, %v29749_v50 }
 0xa98   : > { %20329 = vmatmul.mubr.msk.bf16.gmra.mrb[20].mxu1 %vm908_vm3, %v29750_v24 }
 0xa99   : > { %20332 = vmatprep.mubr.msk.bf16.mxu1 %vm908_vm3, %v27554_v39 }
 0xaa0   : > { %20333 = vmatmul.mubr.msk.bf16.gmra.mrb[24].mxu1 %vm908_vm3, %v27562_v18 }
 0xaa1   : > { %20336 = vmatprep.mubr.msk.bf16.mxu1 %vm908_vm3, %v27566_v36 }
 0xaa8   : > { %20337 = vmatmul.mubr.msk.bf16.gmra.mrb[28].mxu1 %vm908_vm3, %v27579_v30 }
 0xaa9   : > { %20342 = vmatprep.mubr.msk.bf16.mxu1 %vm908_vm3, %v29768_v12  ;;  %v29782_v12 = vld [vmem:[#allocation76_spill] sm:$0xff] }
 0xab0   : > { %20343 = vmatmul.mubr.msk.bf16.vlgmr.msra.gmra.mrb[0].mxu1 %vm908_vm3, %v27028_v52 }
 0xab1   : > { %20375 = vmatpush3.bf16.msra.mxu1 %v22724_v0  ;;  %20346 = vmatprep.mubr.msk.bf16.mxu1 %vm908_vm3, %v27044_v9  ;;  %v29770_v0 = vld [vmem:[#allocation164_spill] sm:$0xff] }
 0xab2   : > { %20408 = vmatprep.subr.bf16.mxu1 %v22725_v5 }
 0xab8   : > { %20347 = vmatmul.mubr.msk.bf16.gmra.mrb[4].mxu1 %vm908_vm3, %v27065_v11 }
 0xab9   : > { %20350 = vmatprep.mubr.msk.bf16.mxu1 %vm908_vm3, %v29769_v32 }
 0xac0   : > { %20351 = vmatmul.mubr.msk.bf16.gmra.mrb[8].mxu1 %vm908_vm3, %v26498_v3 }
 0xac1   : > { %20354 = vmatprep.mubr.msk.bf16.mxu1 %vm908_vm3, %v26526_v33 }
 0xac8   : > { %20355 = vmatmul.mubr.msk.bf16.gmra.mrb[12].mxu1 %vm908_vm3, %v29634_v38 }
 0xac9   : > { %20358 = vmatprep.mubr.msk.bf16.mxu1 %vm908_vm3, %v29770_v0 }
 0xad0   : > { %20359 = vmatmul.mubr.msk.bf16.gmra.mrb[16].mxu1 %vm908_vm3, %v29635_v26 }
 0xad1   : > { %20362 = vmatprep.mubr.msk.bf16.mxu1 %vm908_vm3, %v29636_v45 }
 0xad8   : > { %20363 = vmatmul.mubr.msk.bf16.gmra.mrb[20].mxu1 %vm908_vm3, %v26604_v4 }
 0xad9   : > { %20366 = vmatprep.mubr.msk.bf16.mxu1 %vm908_vm3, %v29771_v46 }
 0xae0   : > { %20367 = vmatmul.mubr.msk.bf16.gmra.mrb[24].mxu1 %vm908_vm3, %v29772_v23 }
 0xae1   : > { %20370 = vmatprep.mubr.msk.bf16.mxu1 %vm908_vm3, %v29773_v28 }
 0xae8   : > { %20371 = vmatmul.mubr.msk.bf16.gmra.mrb[28].mxu1 %vm908_vm3, %v29774_v60 }
 0xae9   : > { %20376 = vmatprep.mubr.msk.bf16.mxu1 %vm908_vm3, %v29775_v49  ;;  %v29784_v49 = vld [vmem:[#allocation62_spill] sm:$0xff] }
 0xaf0   : > { %20377 = vmatmul.mubr.msk.bf16.vlgmr.msra.gmra.mrb[0].mxu1 %vm908_vm3, %v29776_v47  ;;  %v29785_v47 = vld [vmem:[#allocation65_spill] sm:$0xff] }
 0xaf1   : > { %20409 = vmatpush3.bf16.msra.mxu1 %v22725_v5  ;;  %20380 = vmatprep.mubr.msk.bf16.mxu1 %vm908_vm3, %v29777_v14  ;;  %v29783_v5 = vld [vmem:[#allocation16_spill] sm:$0xff]  ;;  %v29786_v14 = vld [vmem:[#allocation86_spill] sm:$0xff] }
 0xaf2   : > { %20442 = vmatprep.subr.bf16.mxu1 %v22730_v10 }
 0xaf8   : > { %20381 = vmatmul.mubr.msk.bf16.gmra.mrb[4].mxu1 %vm908_vm3, %v29778_v61  ;;  %v29787_v61 = vld [vmem:[#allocation147_spill] sm:$0xff] }
 0xaf9   : > { %20384 = vmatprep.mubr.msk.bf16.mxu1 %vm908_vm3, %v29779_v63 }
 0xb00   : > { %20385 = vmatmul.mubr.msk.bf16.gmra.mrb[8].mxu1 %vm908_vm3, %v29780_v53  ;;  %v29788_v53 = vld [vmem:[#allocation148_spill] sm:$0xff] }
 0xb01   : > { %20388 = vmatprep.mubr.msk.bf16.mxu1 %vm908_vm3, %v29781_v7  ;;  %v29789_v7 = vld [vmem:[#allocation149_spill] sm:$0xff] }
 0xb08   : > { %20389 = vmatmul.mubr.msk.bf16.gmra.mrb[12].mxu1 %vm908_vm3, %v29782_v12  ;;  %v29790_v12 = vld [vmem:[#allocation150_spill] sm:$0xff] }
 0xb09   : > { %20392 = vmatprep.mubr.msk.bf16.mxu1 %vm908_vm3, %v29783_v5  ;;  %v27653_v5 = vcombine.low %v26952_v42, %v29790_v12  ;;  %v29795_v42 = vld [vmem:[#allocation117_spill] sm:$0xff] }
 0xb0b   : > { %29791 = vst [vmem:[#allocation18_spill] sm:$0xff] %v27653_v5 }
 0xb10   : > { %20393 = vmatmul.mubr.msk.bf16.gmra.mrb[16].mxu1 %vm908_vm3, %v29784_v49  ;;  %v29799_v49 = vld [vmem:[#allocation29_spill] sm:$0xff] }
 0xb11   : > { %20396 = vmatprep.mubr.msk.bf16.mxu1 %vm908_vm3, %v29785_v47  ;;  %v29792_v47 = vld [vmem:[#allocation37_spill] sm:$0xff] }
 0xb18   : > { %20397 = vmatmul.mubr.msk.bf16.gmra.mrb[20].mxu1 %vm908_vm3, %v29786_v14  ;;  %v29793_v14 = vld [vmem:[#allocation112_spill] sm:$0xff] }
 0xb19   : > { %20400 = vmatprep.mubr.msk.bf16.mxu1 %vm908_vm3, %v29787_v61  ;;  %v22731_v61 = vld [vmem:[%s28597_s4 + $0x78] sm:$0xff]  }
 0xb20   : > { %20401 = vmatmul.mubr.msk.bf16.gmra.mrb[24].mxu1 %vm908_vm3, %v29788_v53  ;;  %v29794_v53 = vld [vmem:[#allocation40_spill] sm:$0xff] }
 0xb21   : > { %20404 = vmatprep.mubr.msk.bf16.mxu1 %vm908_vm3, %v29789_v7  ;;  %v29796_v7 = vld [vmem:[#allocation102_spill] sm:$0xff] }
 0xb28   : > { %20405 = vmatmul.mubr.msk.bf16.gmra.mrb[28].mxu1 %vm908_vm3, %v27653_v5  ;;  %v29797_v5 = vld [vmem:[#allocation69_spill] sm:$0xff] }
 0xb29   : > { %20410 = vmatprep.mubr.msk.bf16.mxu1 %vm908_vm3, %v29792_v47  ;;  %v29798_v47 = vld [vmem:[#allocation20_spill] sm:$0xff] }
 0xb30   : > { %20411 = vmatmul.mubr.msk.bf16.vlgmr.msra.gmra.mrb[0].mxu1 %vm908_vm3, %v29793_v14  ;;  %v29802_v14 = vld [vmem:[#allocation12_spill] sm:$0xff] }
 0xb31   : > { %20443 = vmatpush3.bf16.msra.mxu1 %v22730_v10  ;;  %20414 = vmatprep.mubr.msk.bf16.mxu1 %vm908_vm3, %v29794_v53  ;;  %v29800_v10 = vld [vmem:[#allocation109_spill] sm:$0xff] }
 0xb32   : > { %20476 = vmatprep.subr.bf16.mxu1 %v22731_v61  ;;  %v29801_v53 = vld [vmem:[#allocation97_spill] sm:$0xff] }
 0xb38   : > { %20415 = vmatmul.mubr.msk.bf16.gmra.mrb[4].mxu1 %vm908_vm3, %v29795_v42  ;;  %v13017_v42 = vshrl.u32 %v29790_v12, 16 }
 0xb39   : > { %20418 = vmatprep.mubr.msk.bf16.mxu1 %vm908_vm3, %v29796_v7  ;;  %v13020_v7 = vshll.u32 %v29790_v12, 16 }
 0xb3b   : > { %v13022_v63 = vrot.slane %v13020_v7, 5 }
 0xb40   : > { %20419 = vmatmul.mubr.msk.bf16.gmra.mrb[8].mxu1 %vm908_vm3, %v29797_v5  ;;  %v13019_v5 = vrot.slane %v13017_v42, 4 }
 0xb41   : > { %20422 = vmatprep.mubr.msk.bf16.mxu1 %vm908_vm3, %v29798_v47  ;;  %v29804_v47 = vld [vmem:[#allocation153_spill] sm:$0xff] }
 0xb48   : > { %20423 = vmatmul.mubr.msk.bf16.gmra.mrb[12].mxu1 %vm908_vm3, %v29799_v49  ;;  %v13023_v49 = vor.u32 %v13022_v63, %v13019_v5  ;;  %v29808_v63 = vld [vmem:[#allocation101_spill] sm:$0xff]  ;;  %v22732_v5 = vld [vmem:[%s28597_s4 + $0x80] sm:$0xff]  }
 0xb49   : > { %20426 = vmatprep.mubr.msk.bf16.mxu1 %vm908_vm3, %v29800_v10  ;;  %v29805_v10 = vld [vmem:[#allocation151_spill] sm:$0xff] }
 0xb4a   : > { %v13026_v46 = vshll.u32 %v29805_v10, 16  ;;  %v13024_v0 = vrot.slane %v13023_v49, 4  ;;  %v29809_v49 = vld [vmem:[#allocation104_spill] sm:$0xff]  ;;  %v29814_v10 = vld [vmem:[#allocation119_spill] sm:$0xff] }
 0xb4c   : > { %v13028_v32 = vrot.slane %v13026_v46, 5  ;;  %v29813_v46 = vld [vmem:[#allocation115_spill] sm:$0xff] }
 0xb4e   : > { %v27695_v7 = vsel %vm23014_vm2, %v13024_v0, %v13028_v32  ;;  %v29810_v32 = vld [vmem:[#allocation13_spill] sm:$0xff]  ;;  %v29812_v0 = vld [vmem:[#allocation114_spill] sm:$0xff] }
 0xb4f   : > { %v27699_v42 = vcombine.low %v27575_v48, %v27695_v7  ;;  %v29811_v48 = vld [vmem:[#allocation121_spill] sm:$0xff] }
 0xb50   : > { %20427 = vmatmul.mubr.msk.bf16.gmra.mrb[16].mxu1 %vm908_vm3, %v29801_v53  ;;  %v29806_v53 = vld [vmem:[#allocation154_spill] sm:$0xff] }
 0xb51   : > { %20430 = vmatprep.mubr.msk.bf16.mxu1 %vm908_vm3, %v29802_v14  ;;  %v29807_v14 = vld [vmem:[#allocation155_spill] sm:$0xff] }
 0xb58   : > { %20431 = vmatmul.mubr.msk.bf16.gmra.mrb[20].mxu1 %vm908_vm3, %v29803_v34 }
 0xb59   : > { %20434 = vmatprep.mubr.msk.bf16.mxu1 %vm908_vm3, %v29804_v47 }
 0xb60   : > { %20435 = vmatmul.mubr.msk.bf16.gmra.mrb[24].mxu1 %vm908_vm3, %v29806_v53 }
 0xb61   : > { %20438 = vmatprep.mubr.msk.bf16.mxu1 %vm908_vm3, %v29807_v14 }
 0xb68   : > { %20439 = vmatmul.mubr.msk.bf16.gmra.mrb[28].mxu1 %vm908_vm3, %v27699_v42 }
 0xb69   : > { %20444 = vmatprep.mubr.msk.bf16.mxu1 %vm908_vm3, %v29808_v63  ;;  %v29815_v63 = vld [vmem:[#allocation125_spill] sm:$0xff] }
 0xb70   : > { %20445 = vmatmul.mubr.msk.bf16.vlgmr.msra.gmra.mrb[0].mxu1 %vm908_vm3, %v29809_v49  ;;  %v29817_v49 = vld [vmem:[#allocation123_spill] sm:$0xff] }
 0xb71   : > { %20477 = vmatpush3.bf16.msra.mxu1 %v22731_v61  ;;  %20448 = vmatprep.mubr.msk.bf16.mxu1 %vm908_vm3, %v29810_v32  ;;  %v29816_v61 = vld [vmem:[#allocation122_spill] sm:$0xff]  ;;  %v29818_v32 = vld [vmem:[#allocation124_spill] sm:$0xff] }
 0xb72   : > { %20510 = vmatprep.subr.bf16.mxu1 %v22732_v5 }
 0xb78   : > { %20449 = vmatmul.mubr.msk.bf16.gmra.mrb[4].mxu1 %vm908_vm3, %v29811_v48  ;;  %v29819_v48 = vld [vmem:[#allocation126_spill] sm:$0xff] }
 0xb79   : > { %20452 = vmatprep.mubr.msk.bf16.mxu1 %vm908_vm3, %v29812_v0  ;;  %v29820_v0 = vld [vmem:[#allocation156_spill] sm:$0xff] }
 0xb80   : > { %20453 = vmatmul.mubr.msk.bf16.gmra.mrb[8].mxu1 %vm908_vm3, %v29813_v46  ;;  %v29821_v46 = vld [vmem:[#allocation157_spill] sm:$0xff] }
 0xb81   : > { %20456 = vmatprep.mubr.msk.bf16.mxu1 %vm908_vm3, %v29814_v10  ;;  %v29822_v10 = vld [vmem:[#allocation158_spill] sm:$0xff] }
 0xb88   : > { %20457 = vmatmul.mubr.msk.bf16.gmra.mrb[12].mxu1 %vm908_vm3, %v29815_v63  ;;  %v29823_v63 = vld [vmem:[#allocation161_spill] sm:$0xff] }
 0xb89   : > { %20460 = vmatprep.mubr.msk.bf16.mxu1 %vm908_vm3, %v29816_v61 }
 0xb90   : > { %20461 = vmatmul.mubr.msk.bf16.gmra.mrb[16].mxu1 %vm908_vm3, %v29817_v49 }
 0xb91   : > { %20464 = vmatprep.mubr.msk.bf16.mxu1 %vm908_vm3, %v29818_v32  ;;  %v22734_v32 = vld [vmem:[%s28597_s4 + $0x88] sm:$0xff]  }
 0xb98   : > { %20465 = vmatmul.mubr.msk.bf16.gmra.mrb[20].mxu1 %vm908_vm3, %v29819_v48  ;;  %v27990_v48 = vld [vmem:[#allocation2 + $0x1cc] sm:$0x1] }
 0xb99   : > { %20468 = vmatprep.mubr.msk.bf16.mxu1 %vm908_vm3, %v29820_v0 }
 0xba0   : > { %20469 = vmatmul.mubr.msk.bf16.gmra.mrb[24].mxu1 %vm908_vm3, %v29821_v46  ;;  %v29824_v46 = vld [vmem:[#allocation85_spill] sm:$0xff] }
 0xba1   : > { %20472 = vmatprep.mubr.msk.bf16.mxu1 %vm908_vm3, %v29822_v10 }
 0xba8   : > { %20473 = vmatmul.mubr.msk.bf16.gmra.mrb[28].mxu1 %vm908_vm3, %v29823_v63 }
 0xba9   : > { %20478 = vmatprep.mubr.msk.bf16.mxu1 %vm908_vm3, %v29719_v44  ;;  %v29825_v44 = vld [vmem:[#allocation33_spill] sm:$0xff] }
 0xbb0   : > { %20479 = vmatmul.mubr.msk.bf16.vlgmr.msra.gmra.mrb[0].mxu1 %vm908_vm3, %v29720_v56  ;;  %v29827_v56 = vld [vmem:[#allocation159_spill] sm:$0xff] }
 0xbb1   : > { %20511 = vmatpush3.bf16.msra.mxu1 %v22732_v5  ;;  %20482 = vmatprep.mubr.msk.bf16.mxu1 %vm908_vm3, %v29721_v41  ;;  %v29826_v41 = vld [vmem:[#allocation10_spill] sm:$0xff]  ;;  %v27773_v5 = vcombine.low %v29790_v12, %v29827_v56  ;;  %v29829_v12 = vld [vmem:[#allocation15_spill] sm:$0xff] }
 0xbb2   : > { %20544 = vmatprep.subr.bf16.mxu1 %v22734_v32 }
 0xbb3   : > { %29828 = vst [vmem:[#allocation92_spill] sm:$0xff] %v27773_v5 }
 0xbb8   : > { %20483 = vmatmul.mubr.msk.bf16.gmra.mrb[4].mxu1 %vm908_vm3, %v29824_v46  ;;  %v22735_v46 = vld [vmem:[%s28597_s4 + $0x90] sm:$0xff]  }
 0xbb9   : > { %20486 = vmatprep.mubr.msk.bf16.mxu1 %vm908_vm3, %v29724_v58 }
 0xbc0   : > { %20487 = vmatmul.mubr.msk.bf16.gmra.mrb[8].mxu1 %vm908_vm3, %v29725_v57 }
 0xbc1   : > { %20490 = vmatprep.mubr.msk.bf16.mxu1 %vm908_vm3, %v29726_v17 }
 0xbc8   : > { %20491 = vmatmul.mubr.msk.bf16.gmra.mrb[12].mxu1 %vm908_vm3, %v29825_v44 }
 0xbc9   : > { %20494 = vmatprep.mubr.msk.bf16.mxu1 %vm908_vm3, %v29729_v21 }
 0xbd0   : > { %20495 = vmatmul.mubr.msk.bf16.gmra.mrb[16].mxu1 %vm908_vm3, %v29730_v59 }
 0xbd1   : > { %20498 = vmatprep.mubr.msk.bf16.mxu1 %vm908_vm3, %v29731_v16 }
 0xbd8   : > { %20499 = vmatmul.mubr.msk.bf16.gmra.mrb[20].mxu1 %vm908_vm3, %v29826_v41 }
 0xbd9   : > { %20502 = vmatprep.mubr.msk.bf16.mxu1 %vm908_vm3, %v27505_v25 }
 0xbe0   : > { %20503 = vmatmul.mubr.msk.bf16.gmra.mrb[24].mxu1 %vm908_vm3, %v27509_v55 }
 0xbe1   : > { %20506 = vmatprep.mubr.msk.bf16.mxu1 %vm908_vm3, %v27517_v62 }
 0xbe8   : > { %20507 = vmatmul.mubr.msk.bf16.gmra.mrb[28].mxu1 %vm908_vm3, %v27773_v5 }
 0xbe9   : > { %20512 = vmatprep.mubr.msk.bf16.mxu1 %vm908_vm3, %v29737_v6  ;;  %v13682_v6 = vshrl.u32 %v29827_v56, 16 }
 0xbf0   : > { %20513 = vmatmul.mubr.msk.bf16.vlgmr.msra.gmra.mrb[0].mxu1 %vm908_vm3, %v29739_v2  ;;  %v13685_v2 = vshll.u32 %v29827_v56, 16 }
 0xbf1   : > { %20545 = vmatpush3.bf16.msra.mxu1 %v22734_v32  ;;  %20516 = vmatprep.mubr.msk.bf16.mxu1 %vm908_vm3, %v29740_v27  ;;  %v13684_v27 = vrot.slane %v13682_v6, 4 }
 0xbf2   : > { %20578 = vmatprep.subr.bf16.mxu1 %v22735_v46  ;;  %v13687_v32 = vrot.slane %v13685_v2, 5  ;;  %v27911_v2 = vld [vmem:[#allocation2 + $0x1c8] sm:$0xf] }
 0xbf8   : > { %20517 = vmatmul.mubr.msk.bf16.gmra.mrb[4].mxu1 %vm908_vm3, %v29829_v12  ;;  %v13688_v12 = vor.u32 %v13687_v32, %v13684_v27  ;;  %v27924_v32 = vld [vmem:[%s28597_s4 + $0xa8] sm:$0xff]  }
 0xbf9   : > { %20520 = vmatprep.mubr.msk.bf16.mxu1 %vm908_vm3, %v29742_v20 }
 0xbfa   : > { %v13689_v41 = vrot.slane %v13688_v12, 4 }
 0xc00   : > { %20521 = vmatmul.mubr.msk.bf16.gmra.mrb[8].mxu1 %vm908_vm3, %v29744_v51 }
 0xc01   : > { %20524 = vmatprep.mubr.msk.bf16.mxu1 %vm908_vm3, %v29745_v40 }
 0xc08   : > { %20525 = vmatmul.mubr.msk.bf16.gmra.mrb[12].mxu1 %vm908_vm3, %v27413_v37  ;;  %v29830_v37 = vld [vmem:[#allocation160_spill] sm:$0xff] }
 0xc09   : > { %20528 = vmatprep.mubr.msk.bf16.mxu1 %vm908_vm3, %v29747_v31  ;;  %v13691_v5 = vshll.u32 %v29830_v37, 16  ;;  %v22736_v37 = vld [vmem:[%s28597_s4 + $0x98] sm:$0xff]  }
 0xc0b   : > { %v13693_v44 = vrot.slane %v13691_v5, 5 }
 0xc0d   : > { %v13694_v56 = vsel %vm23014_vm2, %v13689_v41, %v13693_v44  ;;  %v27895_v44 = vld [vmem:[#allocation2 + $0x1b8] sm:$0xf] }
 0xc0e   : > { %v27816_v6 = vcombine.low %v27695_v7, %v13694_v56  ;;  %v27893_v7 = vld [vmem:[#allocation2 + $0x1b0] sm:$0xf] }
 0xc0f   : > { %v27903_v5 = vcombine.low %v27893_v7, %v27895_v44 }
 0xc10   : > { %20529 = vmatmul.mubr.msk.bf16.gmra.mrb[16].mxu1 %vm908_vm3, %v29749_v50  ;;  %29831 = vst [vmem:[#allocation90_spill] sm:$0xff] %v27816_v6 }
 0xc11   : > { %20532 = vmatprep.mubr.msk.bf16.mxu1 %vm908_vm3, %v29750_v24  ;;  %29834 = vst [vmem:[#allocation41_spill] sm:$0xff] %v27903_v5 }
 0xc18   : > { %20533 = vmatmul.mubr.msk.bf16.gmra.mrb[20].mxu1 %vm908_vm3, %v27427_v1 }
 0xc19   : > { %20536 = vmatprep.mubr.msk.bf16.mxu1 %vm908_vm3, %v27562_v18 }
 0xc20   : > { %20537 = vmatmul.mubr.msk.bf16.gmra.mrb[24].mxu1 %vm908_vm3, %v27566_v36 }
 0xc21   : > { %20540 = vmatprep.mubr.msk.bf16.mxu1 %vm908_vm3, %v27579_v30 }
 0xc28   : > { %20541 = vmatmul.mubr.msk.bf16.gmra.mrb[28].mxu1 %vm908_vm3, %v27816_v6 }
 0xc29   : > { %20546 = vmatprep.mubr.msk.bf16.mxu1 %vm908_vm3, %v27028_v52  ;;  %v22741_v52 = vld [vmem:[%s28597_s4 + $0xa0] sm:$0xff]  }
 0xc30   : > { %20547 = vmatmul.mubr.msk.bf16.vlgmr.msra.gmra.mrb[0].mxu1 %vm908_vm3, %v27044_v9  ;;  %v29832_v9 = vld [vmem:[#allocation162_spill] sm:$0xff] }
 0xc31   : > { %20579 = vmatpush3.bf16.msra.mxu1 %v22735_v46  ;;  %20550 = vmatprep.mubr.msk.bf16.mxu1 %vm908_vm3, %v27065_v11  ;;  %v27880_v11 = vld [vmem:[#allocation2 + $0x190] sm:$0xf]  ;;  %v27909_v46 = vld [vmem:[#allocation2 + $0x1c0] sm:$0xf] }
 0xc32   : > { %20612 = vmatprep.subr.bf16.mxu1 %v22736_v37  ;;  %v27915_v27 = vcombine.low %v27909_v46, %v27911_v2  ;;  %v14352_v12 = vshll.u32 %v27880_v11, 16 }
 0xc34   : > { %29835 = vst [vmem:[#allocation93_spill] sm:$0xff] %v27915_v27 }
 0xc38   : > { %20551 = vmatmul.mubr.msk.bf16.gmra.mrb[4].mxu1 %vm908_vm3, %v29752_v19  ;;  %v27882_v19 = vld [vmem:[#allocation2 + $0x198] sm:$0xf] }
 0xc39   : > { %20554 = vmatprep.mubr.msk.bf16.mxu1 %vm908_vm3, %v26498_v3  ;;  %v14363_v56 = vshrl.u32 %v27882_v19, 16 }
 0xc40   : > { %20555 = vmatmul.mubr.msk.bf16.gmra.mrb[8].mxu1 %vm908_vm3, %v26526_v33 }
 0xc41   : > { %20558 = vmatprep.mubr.msk.bf16.mxu1 %vm908_vm3, %v29634_v38 }
 0xc48   : > { %20559 = vmatmul.mubr.msk.bf16.gmra.mrb[12].mxu1 %vm908_vm3, %v29753_v15 }
 0xc49   : > { %20562 = vmatprep.mubr.msk.bf16.mxu1 %vm908_vm3, %v29635_v26 }
 0xc50   : > { %20563 = vmatmul.mubr.msk.bf16.gmra.mrb[16].mxu1 %vm908_vm3, %v29636_v45 }
 0xc51   : > { %20566 = vmatprep.mubr.msk.bf16.mxu1 %vm908_vm3, %v26604_v4 }
 0xc58   : > { %20567 = vmatmul.mubr.msk.bf16.gmra.mrb[20].mxu1 %vm908_vm3, %v29754_v8  ;;  %v27945_v8 = vld [vmem:[#allocation2 + $0x19c] sm:$0x1] }
 0xc59   : > { %20570 = vmatprep.mubr.msk.bf16.mxu1 %vm908_vm3, %v29772_v23 }
 0xc60   : > { %20571 = vmatmul.mubr.msk.bf16.gmra.mrb[24].mxu1 %vm908_vm3, %v29773_v28 }
 0xc61   : > { %20574 = vmatprep.mubr.msk.bf16.mxu1 %vm908_vm3, %v29774_v60 }
 0xc68   : > { %20575 = vmatmul.mubr.msk.bf16.gmra.mrb[28].mxu1 %vm908_vm3, %v29832_v9  ;;  %v27943_v9 = vld [vmem:[#allocation2 + $0x194] sm:$0x1] }
 0xc69   : > { %20580 = vmatprep.mubr.msk.bf16.mxu1 %vm908_vm3, %v29756_v29  ;;  %v17884_v29 = vcombine.low %v27880_v11, %v27882_v19  ;;  %v14358_v1 = vshll.u32 %v27943_v9, 16 }
 0xc70   : > { %20581 = vmatmul.mubr.msk.bf16.vlgmr.msra.gmra.mrb[0].mxu1 %vm908_vm3, %v29724_v58 }
 0xc71   : > { %20613 = vmatpush3.bf16.msra.mxu1 %v22736_v37  ;;  %20584 = vmatprep.mubr.msk.bf16.mxu1 %vm908_vm3, %v29725_v57  ;;  %v14366_v37 = vshll.u32 %v27882_v19, 16 }
 0xc72   : > { %20646 = vmatprep.subr.bf16.mxu1 %v22741_v52 }
 0xc73   : > { %v14368_v15 = vrot.slane %v14366_v37, 5  ;;  %v14408_v37 = vshll.u32 %v27893_v7, 16 }
 0xc78   : > { %20585 = vmatmul.mubr.msk.bf16.gmra.mrb[4].mxu1 %vm908_vm3, %v29726_v17 }
 0xc79   : > { %20588 = vmatprep.mubr.msk.bf16.mxu1 %vm908_vm3, %v29757_v13  ;;  %v27889_v13 = vld [vmem:[#allocation2 + $0x1a0] sm:$0xf] }
 0xc80   : > { %20589 = vmatmul.mubr.msk.bf16.gmra.mrb[8].mxu1 %vm908_vm3, %v29729_v21 }
 0xc81   : > { %20592 = vmatprep.mubr.msk.bf16.mxu1 %vm908_vm3, %v29730_v59 }
 0xc88   : > { %20593 = vmatmul.mubr.msk.bf16.gmra.mrb[12].mxu1 %vm908_vm3, %v29731_v16  ;;  %v14410_v16 = vrot.slane %v14408_v37, 5  ;;  %v14450_v37 = vshll.u32 %v27911_v2, 16 }
 0xc89   : > { %20596 = vmatprep.mubr.msk.bf16.mxu1 %vm908_vm3, %v27497_v43  ;;  %v27891_v43 = vld [vmem:[#allocation2 + $0x1a8] sm:$0xf] }
 0xc8a   : > { %v27899_v41 = vcombine.low %v27889_v13, %v27891_v43  ;;  %v14452_v63 = vrot.slane %v14450_v37, 5 }
 0xc8c   : > { %29833 = vst [vmem:[#allocation113_spill] sm:$0xff] %v27899_v41 }
 0xc90   : > { %20597 = vmatmul.mubr.msk.bf16.gmra.mrb[16].mxu1 %vm908_vm3, %v27505_v25 }
 0xc91   : > { %20600 = vmatprep.mubr.msk.bf16.mxu1 %vm908_vm3, %v27509_v55 }
 0xc98   : > { %20601 = vmatmul.mubr.msk.bf16.gmra.mrb[20].mxu1 %vm908_vm3, %v27517_v62 }
 0xc99   : > { %20604 = vmatprep.mubr.msk.bf16.mxu1 %vm908_vm3, %v17884_v29  ;;  %v14354_v29 = vrot.slane %v14352_v12, 5  ;;  %v14391_v12 = vshrl.u32 %v27891_v43, 16 }
 0xc9b   : > { %v14393_v55 = vrot.slane %v14391_v12, 4  ;;  %v14436_v12 = vshll.u32 %v27909_v46, 16 }
 0xca0   : > { %20605 = vmatmul.mubr.msk.bf16.gmra.mrb[24].mxu1 %vm908_vm3, %v27899_v41  ;;  %v27963_v41 = vld [vmem:[#allocation2 + $0x1ac] sm:$0x1] }
 0xca1   : > { %20608 = vmatprep.mubr.msk.bf16.mxu1 %vm908_vm3, %v27903_v5  ;;  %v14400_v57 = vshll.u32 %v27963_v41, 16 }
 0xca8   : > { %20609 = vmatmul.mubr.msk.bf16.gmra.mrb[28].mxu1 %vm908_vm3, %v27915_v27 }
 0xca9   : > { %20614 = vmatprep.mubr.msk.bf16.mxu1 %vm908_vm3, %v29762_v22  ;;  %v14349_v22 = vshrl.u32 %v27880_v11, 16 }
 0xcb0   : > { %20615 = vmatmul.mubr.msk.bf16.vlgmr.msra.gmra.mrb[0].mxu1 %vm908_vm3, %v29742_v20 }
 0xcb1   : > { %20647 = vmatpush3.bf16.msra.mxu1 %v22741_v52  ;;  %20618 = vmatprep.mubr.msk.bf16.mxu1 %vm908_vm3, %v29744_v51  ;;  %v14351_v52 = vrot.slane %v14349_v22, 4  ;;  %v14380_v22 = vshll.u32 %v27889_v13, 16 }
 0xcb2   : > { %20680 = vmatprep.subr.bf16.mxu1 %v27924_v32 }
 0xcb3   : > { %v14355_v6 = vor.u32 %v14354_v29, %v14351_v52  ;;  %v14419_v52 = vshrl.u32 %v27895_v44, 16  ;;  %v14422_v29 = vshll.u32 %v27895_v44, 16  ;;  %v14382_v62 = vrot.slane %v14380_v22, 5 }
 0xcb4   : > { %v14433_v22 = vshrl.u32 %v27909_v46, 16 }
 0xcb5   : > { %v14356_v20 = vrot.slane %v14355_v6, 4  ;;  %v14421_v59 = vrot.slane %v14419_v52, 4  ;;  %v14424_v21 = vrot.slane %v14422_v29, 5  ;;  %v27967_v6 = vld [vmem:[#allocation2 + $0x1b4] sm:$0x1] }
 0xcb8   : > { %20619 = vmatmul.mubr.msk.bf16.gmra.mrb[4].mxu1 %vm908_vm3, %v29745_v40  ;;  %v14377_v40 = vshrl.u32 %v27889_v13, 16 }
 0xcb9   : > { %20622 = vmatprep.mubr.msk.bf16.mxu1 %vm908_vm3, %v29763_v35  ;;  %v14365_v35 = vrot.slane %v14363_v56, 4  ;;  %v14405_v56 = vshrl.u32 %v27893_v7, 16 }
 0xcba   : > { %v14379_v27 = vrot.slane %v14377_v40, 4 }
 0xcbb   : > { %v14369_v51 = vor.u32 %v14368_v15, %v14365_v35  ;;  %v27961_v35 = vld [vmem:[#allocation2 + $0x1a4] sm:$0x1]  ;;  %v14407_v25 = vrot.slane %v14405_v56, 4  ;;  %v14447_v56 = vshrl.u32 %v27911_v2, 16 }
 0xcbc   : > { %v14386_v17 = vshll.u32 %v27961_v35, 16 }
 0xcbd   : > { %v14370_v5 = vrot.slane %v14369_v51, 4  ;;  %v14411_v52 = vor.u32 %v14410_v16, %v14407_v25  ;;  %v14449_v58 = vrot.slane %v14447_v56, 4 }
 0xcbe   : > { %v14388_v29 = vrot.slane %v14386_v17, 5 }
 0xcbf   : > { %v14412_v10 = vrot.slane %v14411_v52, 4  ;;  %v29836_v52 = vld [vmem:[#allocation163_spill] sm:$0xff] }
 0xcc0   : > { %20623 = vmatmul.mubr.msk.bf16.gmra.mrb[8].mxu1 %vm908_vm3, %v29747_v31  ;;  %v14372_v31 = vshll.u32 %v27945_v8, 16 }
 0xcc1   : > { %20626 = vmatprep.mubr.msk.bf16.mxu1 %vm908_vm3, %v29749_v50  ;;  %v14394_v50 = vshll.u32 %v27891_v43, 16 }
 0xcc2   : > { %v14374_v15 = vrot.slane %v14372_v31, 5  ;;  %v27969_v31 = vld [vmem:[#allocation2 + $0x1bc] sm:$0x1] }
 0xcc4   : > { %v27977_v40 = vsel %vm23014_vm2, %v14370_v5, %v14374_v15  ;;  %v14428_v5 = vshll.u32 %v27969_v31, 16  ;;  %v14402_v15 = vrot.slane %v14400_v57, 5 }
 0xcc6   : > { %v14430_v25 = vrot.slane %v14428_v5, 5  ;;  %v17928_v5 = vrot.slane %v27880_v11, 9  ;;  %v17930_v11 = vrot.slane %v27889_v13, 9 }
 0xcc8   : > { %20627 = vmatmul.mubr.msk.bf16.gmra.mrb[12].mxu1 %vm908_vm3, %v29750_v24  ;;  %v14360_v24 = vrot.slane %v14358_v1, 5 }
 0xcc9   : > { %20630 = vmatprep.mubr.msk.bf16.mxu1 %vm908_vm3, %v27554_v39  ;;  %v14396_v39 = vrot.slane %v14394_v50, 5  ;;  %v14383_v50 = vor.u32 %v14382_v62, %v14379_v27 }
 0xcca   : > { %v14361_v51 = vsel %vm23014_vm2, %v14356_v20, %v14360_v24  ;;  %v14414_v20 = vshll.u32 %v27967_v6, 16  ;;  %v14425_v24 = vor.u32 %v14424_v21, %v14421_v59 }
 0xccb   : > { %v14397_v1 = vor.u32 %v14396_v39, %v14393_v55  ;;  %v17907_v55 = vcombine.low %v14361_v51, %v27977_v40  ;;  %v14384_v62 = vrot.slane %v14383_v50, 4  ;;  %v27988_v39 = vld [vmem:[#allocation2 + $0x1c4] sm:$0x1]  ;;  %v14453_v51 = vor.u32 %v14452_v63, %v14449_v58 }
 0xccc   : > { %v14416_v0 = vrot.slane %v14414_v20, 5  ;;  %v14426_v16 = vrot.slane %v14425_v24, 4  ;;  %v14442_v57 = vshll.u32 %v27988_v39, 16  ;;  %v14456_v50 = vshll.u32 %v27990_v48, 16  ;;  %v22743_v20 = vld [vmem:[%s28597_s4 + $0xb0] sm:$0xff]  }
 0xccd   : > { %v14398_v27 = vrot.slane %v14397_v1, 4  ;;  %v27996_v59 = vsel %vm23014_vm2, %v14384_v62, %v14388_v29  ;;  %v29837_v24 = vld [vmem:[#allocation164_spill] sm:$0xff]  ;;  %v14696_v29 = vrot.slane %v27943_v9, 5  ;;  %v14700_v62 = vrot.slane %v27945_v8, 5 }
 0xcce   : > { %v28007_v1 = vsel %vm23014_vm2, %v14412_v10, %v14416_v0  ;;  %v14444_v56 = vrot.slane %v14442_v57, 5  ;;  %v17931_v8 = vrot.slane %v27891_v43, 9  ;;  %v14708_v57 = vrot.slane %v27963_v41, 5 }
 0xccf   : > { %v28002_v17 = vsel %vm23014_vm2, %v14398_v27, %v14402_v15  ;;  %v14697_v15 = vsel %vm23501_vm6, %v17928_v5, %v14696_v29 }
 0xcd0   : > { %20631 = vmatmul.mubr.msk.bf16.gmra.mrb[16].mxu1 %vm908_vm3, %v27562_v18  ;;  %v14438_v18 = vrot.slane %v14436_v12, 5  ;;  %v28015_v12 = vcombine.low %v27996_v59, %v28002_v17  ;;  %v28093_v41 = vsel %vm23501_vm6, %v17931_v8, %v14708_v57  ;;  %v29846_v8 = vld [vmem:[#allocation65_spill] sm:$0xff]  ;;  %v29847_v57 = vld [vmem:[#allocation86_spill] sm:$0xff] }
 0xcd1   : > { %20634 = vmatprep.mubr.msk.bf16.mxu1 %vm908_vm3, %v27566_v36  ;;  %v14435_v36 = vrot.slane %v14433_v22, 4  ;;  %v28011_v22 = vsel %vm23014_vm2, %v14426_v16, %v14430_v25  ;;  %v14704_v25 = vrot.slane %v27961_v35, 5 }
 0xcd2   : > { %v28019_v37 = vcombine.low %v28007_v1, %v28011_v22 }
 0xcd3   : > { %v14439_v21 = vor.u32 %v14438_v18, %v14435_v36  ;;  %v14454_v18 = vrot.slane %v14453_v51, 4  ;;  %v14458_v36 = vrot.slane %v14456_v50, 5  ;;  %v14712_v51 = vrot.slane %v27967_v6, 5 }
 0xcd4   : > { %v17933_v50 = vrot.slane %v27895_v44, 9  ;;  %v28089_v35 = vsel %vm23501_vm6, %v17930_v11, %v14704_v25  ;;  %v29843_v11 = vld [vmem:[#allocation76_spill] sm:$0xff]  ;;  %v29845_v25 = vld [vmem:[#allocation62_spill] sm:$0xff] }
 0xcd5   : > { %v14440_v58 = vrot.slane %v14439_v21, 4  ;;  %v28031_v10 = vsel %vm23014_vm2, %v14454_v18, %v14458_v36  ;;  %v17932_v21 = vrot.slane %v27893_v7, 9  ;;  %v17934_v18 = vrot.slane %v27909_v46, 9 }
 0xcd7   : > { %v28027_v0 = vsel %vm23014_vm2, %v14440_v58, %v14444_v56  ;;  %v14716_v56 = vrot.slane %v27969_v31, 5  ;;  %v28097_v6 = vsel %vm23501_vm6, %v17932_v21, %v14712_v51  ;;  %v28105_v58 = vcombine.low %v28089_v35, %v28093_v41  ;;  %v29849_v21 = vld [vmem:[#allocation148_spill] sm:$0xff]  ;;  %v29850_v51 = vld [vmem:[#allocation149_spill] sm:$0xff] }
 0xcd8   : > { %20635 = vmatmul.mubr.msk.bf16.gmra.mrb[20].mxu1 %vm908_vm3, %v27579_v30  ;;  %v28035_v63 = vcombine.low %v28027_v0, %v28031_v10 }
 0xcd9   : > { %20638 = vmatprep.mubr.msk.bf16.mxu1 %vm908_vm3, %v17907_v55  ;;  %v17929_v55 = vrot.slane %v27882_v19, 9  ;;  %v28101_v31 = vsel %vm23501_vm6, %v17933_v50, %v14716_v56  ;;  %v17961_v50 = vcombine.low %v27882_v19, %v27889_v13  ;;  %v29851_v56 = vld [vmem:[#allocation18_spill] sm:$0xff] }
 0xcda   : > { %v28110_v36 = vcombine.low %v28097_v6, %v28101_v31  ;;  %v29852_v13 = vld [vmem:[#allocation102_spill] sm:$0xff] }
 0xcdb   : > { %v28073_v16 = vsel %vm23501_vm6, %v17929_v55, %v14700_v62  ;;  %v22748_v55 = vld [vmem:[%s28597_s4 + $0xb8] sm:$0xff]   ;;  %v29841_v62 = vld [vmem:[#allocation75_spill] sm:$0xff] }
 0xcdc   : > { %v17938_v9 = vcombine.low %v14697_v15, %v28073_v16  ;;  %v29842_v15 = vld [vmem:[#allocation21_spill] sm:$0xff] }
 0xce0   : > { %20639 = vmatmul.mubr.msk.bf16.gmra.mrb[24].mxu1 %vm908_vm3, %v28015_v12 }
 0xce1   : > { %20642 = vmatprep.mubr.msk.bf16.mxu1 %vm908_vm3, %v28019_v37 }
 0xce8   : > { %20643 = vmatmul.mubr.msk.bf16.gmra.mrb[28].mxu1 %vm908_vm3, %v28035_v63 }
 0xce9   : > { %20648 = vmatprep.mubr.msk.bf16.mxu1 %vm908_vm3, %v29836_v52  ;;  %v14720_v52 = vrot.slane %v27988_v39, 5 }
 0xceb   : > { %v28121_v5 = vsel %vm23501_vm6, %v17934_v18, %v14720_v52  ;;  %v17962_v18 = vcombine.low %v27891_v43, %v27893_v7  ;;  %v17963_v52 = vcombine.low %v27895_v44, %v27909_v46  ;;  %v22749_v43 = vld [vmem:[%s28597_s4 + $0xc0] sm:$0xff]   ;;  %v29853_v7 = vld [vmem:[#allocation69_spill] sm:$0xff]  ;;  %v29854_v44 = vld [vmem:[#allocation20_spill] sm:$0xff] }
 0xcec   : > { %v29855_v46 = vld [vmem:[#allocation29_spill] sm:$0xff] }
 0xcf0   : > { %20649 = vmatmul.mubr.msk.bf16.vlgmr.msra.gmra.mrb[0].mxu1 %vm908_vm3, %v26498_v3 }
 0xcf1   : > { %20681 = vmatpush3.bf16.msra.mxu1 %v27924_v32  ;;  %20652 = vmatprep.mubr.msk.bf16.mxu1 %vm908_vm3, %v26526_v33  ;;  %v29838_v32 = vld [vmem:[#allocation6_spill] sm:$0xff] }
 0xcf2   : > { %20714 = vmatprep.subr.bf16.mxu1 %v22743_v20 }
 0xcf8   : > { %20653 = vmatmul.mubr.msk.bf16.gmra.mrb[4].mxu1 %vm908_vm3, %v29634_v38 }
 0xcf9   : > { %20656 = vmatprep.mubr.msk.bf16.mxu1 %vm908_vm3, %v29837_v24  ;;  %v17935_v24 = vrot.slane %v27911_v2, 9 }
 0xd00   : > { %20657 = vmatmul.mubr.msk.bf16.gmra.mrb[8].mxu1 %vm908_vm3, %v29635_v26 }
 0xd01   : > { %20660 = vmatprep.mubr.msk.bf16.mxu1 %vm908_vm3, %v29636_v45 }
 0xd08   : > { %20661 = vmatmul.mubr.msk.bf16.gmra.mrb[12].mxu1 %vm908_vm3, %v26604_v4 }
 0xd09   : > { %20664 = vmatprep.mubr.msk.bf16.mxu1 %vm908_vm3, %v29838_v32  ;;  %v14724_v32 = vrot.slane %v27990_v48, 5  ;;  %v29840_v48 = vld [vmem:[#allocation72_spill] sm:$0xff] }
 0xd0b   : > { %v28125_v29 = vsel %vm23501_vm6, %v17935_v24, %v14724_v32  ;;  %v28169_v24 = vld [vmem:[#allocation2 + $0x1d0] sm:$0xf]  ;;  %v29857_v32 = vld [vmem:[#allocation97_spill] sm:$0xff] }
 0xd0c   : > { %v28129_v39 = vcombine.low %v28121_v5, %v28125_v29  ;;  %v17964_v19 = vcombine.low %v27911_v2, %v28169_v24  ;;  %v29856_v2 = vld [vmem:[#allocation109_spill] sm:$0xff] }
 0xd10   : > { %20665 = vmatmul.mubr.msk.bf16.gmra.mrb[16].mxu1 %vm908_vm3, %v29772_v23 }
 0xd11   : > { %20668 = vmatprep.mubr.msk.bf16.mxu1 %vm908_vm3, %v29773_v28 }
 0xd18   : > { %20669 = vmatmul.mubr.msk.bf16.gmra.mrb[20].mxu1 %vm908_vm3, %v29774_v60 }
 0xd19   : > { %20672 = vmatprep.mubr.msk.bf16.mxu1 %vm908_vm3, %v17938_v9  ;;  %v29844_v9 = vld [vmem:[#allocation16_spill] sm:$0xff] }
 0xd20   : > { %20673 = vmatmul.mubr.msk.bf16.gmra.mrb[24].mxu1 %vm908_vm3, %v28105_v58 }
 0xd21   : > { %20676 = vmatprep.mubr.msk.bf16.mxu1 %vm908_vm3, %v28110_v36 }
 0xd28   : > { %20677 = vmatmul.mubr.msk.bf16.gmra.mrb[28].mxu1 %vm908_vm3, %v28129_v39 }
 0xd29   : > { %20682 = vmatprep.mubr.msk.bf16.mxu1 %vm908_vm3, %v29840_v48  ;;  %v29858_v48 = vld [vmem:[#allocation12_spill] sm:$0xff] }
 0xd30   : > { %20683 = vmatmul.mubr.msk.bf16.vlgmr.msra.gmra.mrb[0].mxu1 %vm908_vm3, %v29841_v62  ;;  %v15176_v62 = vshll.u32 %v28169_v24, 16 }
 0xd31   : > { %20715 = vmatpush3.bf16.msra.mxu1 %v22743_v20  ;;  %20686 = vmatprep.mubr.msk.bf16.mxu1 %vm908_vm3, %v29842_v15  ;;  %v29848_v20 = vld [vmem:[#allocation147_spill] sm:$0xff]  ;;  %v17984_v15 = vcombine.low %v27977_v40, %v27996_v59  ;;  %v29859_v59 = vld [vmem:[#allocation114_spill] sm:$0xff] }
 0xd32   : > { %20748 = vmatprep.subr.bf16.mxu1 %v22748_v55 }
 0xd38   : > { %20687 = vmatmul.mubr.msk.bf16.gmra.mrb[4].mxu1 %vm908_vm3, %v29843_v11 }
 0xd39   : > { %20690 = vmatprep.mubr.msk.bf16.mxu1 %vm908_vm3, %v29844_v9  ;;  %v15178_v9 = vrot.slane %v15176_v62, 5  ;;  %v29882_v62 = vld [vmem:[#allocation41_spill] sm:$0xff] }
 0xd40   : > { %20691 = vmatmul.mubr.msk.bf16.gmra.mrb[8].mxu1 %vm908_vm3, %v29845_v25  ;;  %v8850_v25 = vld [vmem:[#allocation2 + $0x1d4] sm:$0x1] }
 0xd41   : > { %20694 = vmatprep.mubr.msk.bf16.mxu1 %vm908_vm3, %v29846_v8 }
 0xd48   : > { %20695 = vmatmul.mubr.msk.bf16.gmra.mrb[12].mxu1 %vm908_vm3, %v29847_v57 }
 0xd49   : > { %20698 = vmatprep.mubr.msk.bf16.mxu1 %vm908_vm3, %v29848_v20  ;;  %v29864_v20 = vld [vmem:[#allocation126_spill] sm:$0xff] }
 0xd50   : > { %20699 = vmatmul.mubr.msk.bf16.gmra.mrb[16].mxu1 %vm908_vm3, %v29849_v21  ;;  %v29865_v21 = vld [vmem:[#allocation156_spill] sm:$0xff] }
 0xd51   : > { %20702 = vmatprep.mubr.msk.bf16.mxu1 %vm908_vm3, %v29850_v51  ;;  %v29866_v51 = vld [vmem:[#allocation157_spill] sm:$0xff] }
 0xd58   : > { %20703 = vmatmul.mubr.msk.bf16.gmra.mrb[20].mxu1 %vm908_vm3, %v29851_v56  ;;  %v29868_v56 = vld [vmem:[#allocation161_spill] sm:$0xff] }
 0xd59   : > { %20706 = vmatprep.mubr.msk.bf16.mxu1 %vm908_vm3, %v17961_v50  ;;  %v29867_v50 = vld [vmem:[#allocation158_spill] sm:$0xff] }
 0xd60   : > { %20707 = vmatmul.mubr.msk.bf16.gmra.mrb[24].mxu1 %vm908_vm3, %v17962_v18  ;;  %v18010_v18 = vcombine.low %v28101_v31, %v28121_v5  ;;  %v29870_v31 = vld [vmem:[#allocation120_spill] sm:$0xff]  ;;  %v29871_v5 = vld [vmem:[#allocation7_spill] sm:$0xff] }
 0xd61   : > { %20710 = vmatprep.mubr.msk.bf16.mxu1 %vm908_vm3, %v17963_v52  ;;  %v18005_v52 = vrot.slane %v28169_v24, 9 }
 0xd68   : > { %20711 = vmatmul.mubr.msk.bf16.gmra.mrb[28].mxu1 %vm908_vm3, %v17964_v19  ;;  %v15408_v19 = vrot.slane %v8850_v25, 5 }
 0xd69   : > { %20716 = vmatprep.mubr.msk.bf16.mxu1 %vm908_vm3, %v29852_v13  ;;  %v29872_v13 = vld [vmem:[#allocation33_spill] sm:$0xff] }
 0xd70   : > { %20717 = vmatmul.mubr.msk.bf16.vlgmr.msra.gmra.mrb[0].mxu1 %vm908_vm3, %v29853_v7  ;;  %v29875_v7 = vld [vmem:[#allocation9_spill] sm:$0xff] }
 0xd71   : > { %20749 = vmatpush3.bf16.msra.mxu1 %v22748_v55  ;;  %20720 = vmatprep.mubr.msk.bf16.mxu1 %vm908_vm3, %v29854_v44  ;;  %v15173_v55 = vshrl.u32 %v28169_v24, 16  ;;  %v29876_v44 = vld [vmem:[#allocation10_spill] sm:$0xff] }
 0xd72   : > { %20782 = vmatprep.subr.bf16.mxu1 %v22749_v43 }
 0xd73   : > { %v15175_v11 = vrot.slane %v15173_v55, 4  ;;  %v29881_v55 = vld [vmem:[#allocation113_spill] sm:$0xff] }
 0xd78   : > { %20721 = vmatmul.mubr.msk.bf16.gmra.mrb[4].mxu1 %vm908_vm3, %v29855_v46  ;;  %v29877_v46 = vld [vmem:[#allocation98_spill] sm:$0xff] }
 0xd79   : > { %20724 = vmatprep.mubr.msk.bf16.mxu1 %vm908_vm3, %v29856_v2  ;;  %v29878_v2 = vld [vmem:[#allocation22_spill] sm:$0xff] }
 0xd80   : > { %20725 = vmatmul.mubr.msk.bf16.gmra.mrb[8].mxu1 %vm908_vm3, %v29857_v32  ;;  %v29879_v32 = vld [vmem:[#allocation55_spill] sm:$0xff] }
 0xd81   : > { %20728 = vmatprep.mubr.msk.bf16.mxu1 %vm908_vm3, %v29858_v48  ;;  %v29880_v48 = vld [vmem:[#allocation92_spill] sm:$0xff] }
 0xd88   : > { %20729 = vmatmul.mubr.msk.bf16.gmra.mrb[12].mxu1 %vm908_vm3, %v29803_v34  ;;  %v15179_v34 = vor.u32 %v15178_v9, %v15175_v11  ;;  %v8851_v11 = vld [vmem:[#allocation2 + $0x1d8] sm:$0xf] }
 0xd89   : > { %20732 = vmatprep.mubr.msk.bf16.mxu1 %vm908_vm3, %v29804_v47  ;;  %v15182_v47 = vshll.u32 %v8850_v25, 16  ;;  %v18031_v9 = vcombine.low %v28169_v24, %v8851_v11  ;;  %v29884_v25 = vld [vmem:[#allocation95_spill] sm:$0xff] }
 0xd8a   : > { %v15180_v8 = vrot.slane %v15179_v34, 4  ;;  %v29885_v34 = vld [vmem:[#allocation48_spill] sm:$0xff]  ;;  %v29890_v24 = vld [vmem:[#allocation79_spill] sm:$0xff] }
 0xd8b   : > { %v15184_v57 = vrot.slane %v15182_v47, 5  ;;  %v29886_v47 = vld [vmem:[#allocation100_spill] sm:$0xff] }
 0xd8d   : > { %v28214_v40 = vsel %vm23014_vm2, %v15180_v8, %v15184_v57  ;;  %v29889_v8 = vld [vmem:[#allocation106_spill] sm:$0xff]  ;;  %v29891_v57 = vld [vmem:[#allocation59_spill] sm:$0xff] }
 0xd90   : > { %20733 = vmatmul.mubr.msk.bf16.gmra.mrb[16].mxu1 %vm908_vm3, %v29806_v53  ;;  %v17985_v53 = vcombine.low %v28002_v17, %v28007_v1  ;;  %v22750_v17 = vld [vmem:[%s28597_s4 + $0xc8] sm:$0xff]  }
 0xd91   : > { %20736 = vmatprep.mubr.msk.bf16.mxu1 %vm908_vm3, %v29807_v14  ;;  %v17986_v14 = vcombine.low %v28011_v22, %v28027_v0  ;;  %v29860_v1 = vld [vmem:[#allocation115_spill] sm:$0xff]  ;;  %v29862_v0 = vld [vmem:[#allocation125_spill] sm:$0xff] }
 0xd92   : > { %v29861_v22 = vld [vmem:[#allocation119_spill] sm:$0xff] }
 0xd98   : > { %20737 = vmatmul.mubr.msk.bf16.gmra.mrb[20].mxu1 %vm908_vm3, %v27699_v42  ;;  %v17987_v42 = vcombine.low %v28031_v10, %v28214_v40  ;;  %v29863_v10 = vld [vmem:[#allocation124_spill] sm:$0xff] }
 0xd99   : > { %20740 = vmatprep.mubr.msk.bf16.mxu1 %vm908_vm3, %v17984_v15  ;;  %v29883_v15 = vld [vmem:[#allocation93_spill] sm:$0xff] }
 0xda0   : > { %20741 = vmatmul.mubr.msk.bf16.gmra.mrb[24].mxu1 %vm908_vm3, %v17985_v53  ;;  %v29887_v53 = vld [vmem:[#allocation54_spill] sm:$0xff] }
 0xda1   : > { %20744 = vmatprep.mubr.msk.bf16.mxu1 %vm908_vm3, %v17986_v14  ;;  %v29888_v14 = vld [vmem:[#allocation105_spill] sm:$0xff] }
 0xda8   : > { %20745 = vmatmul.mubr.msk.bf16.gmra.mrb[28].mxu1 %vm908_vm3, %v17987_v42  ;;  %v29892_v42 = vld [vmem:[#allocation11_spill] sm:$0xff] }
 0xda9   : > { %20750 = vmatprep.mubr.msk.bf16.mxu1 %vm908_vm3, %v29859_v59  ;;  %v29893_v59 = vld [vmem:[#allocation31_spill] sm:$0xff] }
 0xdb0   : > { %20751 = vmatmul.mubr.msk.bf16.vlgmr.msra.gmra.mrb[0].mxu1 %vm908_vm3, %v29860_v1  ;;  %v15841_v1 = vshll.u32 %v8851_v11, 16 }
 0xdb1   : > { %20783 = vmatpush3.bf16.msra.mxu1 %v22749_v43  ;;  %20754 = vmatprep.mubr.msk.bf16.mxu1 %vm908_vm3, %v29861_v22  ;;  %v29874_v43 = vld [vmem:[#allocation17_spill] sm:$0xff] }
 0xdb2   : > { %20816 = vmatprep.subr.bf16.mxu1 %v22750_v17 }
 0xdb8   : > { %20755 = vmatmul.mubr.msk.bf16.gmra.mrb[4].mxu1 %vm908_vm3, %v29862_v0  ;;  %v15843_v0 = vrot.slane %v15841_v1, 5 }
 0xdb9   : > { %20758 = vmatprep.mubr.msk.bf16.mxu1 %vm908_vm3, %v29816_v61  ;;  %v18008_v61 = vcombine.low %v28073_v16, %v28089_v35  ;;  %v28258_v16 = vsel %vm23501_vm6, %v18005_v52, %v15408_v19  ;;  %v29900_v52 = vld [vmem:[#allocation30_spill] sm:$0xff] }
 0xdba   : > { %v18011_v35 = vcombine.low %v28125_v29, %v28258_v16  ;;  %v29873_v29 = vld [vmem:[#allocation8_spill] sm:$0xff]  ;;  %v16351_v19 = vunpack.c.l.bf16 %v29900_v52 }
 0xdc0   : > { %20759 = vmatmul.mubr.msk.bf16.gmra.mrb[8].mxu1 %vm908_vm3, %v29817_v49  ;;  %v18009_v49 = vcombine.low %v28093_v41, %v28097_v6  ;;  %v29869_v41 = vld [vmem:[#allocation116_spill] sm:$0xff] }
 0xdc1   : > { %20762 = vmatprep.mubr.msk.bf16.mxu1 %vm908_vm3, %v29863_v10  ;;  %v22752_v6 = vld [vmem:[%s28597_s4 + $0xd0] sm:$0xff]   ;;  %v8852_v10 = vld [vmem:[#allocation2 + $0x1dc] sm:$0x1] }
 0xdc8   : > { %20763 = vmatmul.mubr.msk.bf16.gmra.mrb[12].mxu1 %vm908_vm3, %v29864_v20  ;;  %v29894_v20 = vld [vmem:[#allocation90_spill] sm:$0xff] }
 0xdc9   : > { %20766 = vmatprep.mubr.msk.bf16.mxu1 %vm908_vm3, %v29865_v21 }
 0xdd0   : > { %20767 = vmatmul.mubr.msk.bf16.gmra.mrb[16].mxu1 %vm908_vm3, %v29866_v51  ;;  %v15847_v51 = vshll.u32 %v8852_v10, 16 }
 0xdd1   : > { %20770 = vmatprep.mubr.msk.bf16.mxu1 %vm908_vm3, %v29867_v50 }
 0xdd8   : > { %20771 = vmatmul.mubr.msk.bf16.gmra.mrb[20].mxu1 %vm908_vm3, %v29868_v56 }
 0xdd9   : > { %20774 = vmatprep.mubr.msk.bf16.mxu1 %vm908_vm3, %v18008_v61  ;;  %v15849_v61 = vrot.slane %v15847_v51, 5 }
 0xde0   : > { %20775 = vmatmul.mubr.msk.bf16.gmra.mrb[24].mxu1 %vm908_vm3, %v18009_v49 }
 0xde1   : > { %20778 = vmatprep.mubr.msk.bf16.mxu1 %vm908_vm3, %v18010_v18 }
 0xde8   : > { %20779 = vmatmul.mubr.msk.bf16.gmra.mrb[28].mxu1 %vm908_vm3, %v18011_v35 }
 0xde9   : > { %20784 = vmatprep.mubr.msk.bf16.mxu1 %vm908_vm3, %v29869_v41 }
 0xdf0   : > { %20785 = vmatmul.mubr.msk.bf16.vlgmr.msra.gmra.mrb[0].mxu1 %vm908_vm3, %v29870_v31 }
 0xdf1   : > { %20817 = vmatpush3.bf16.msra.mxu1 %v22750_v17  ;;  %20788 = vmatprep.mubr.msk.bf16.mxu1 %vm908_vm3, %v29871_v5  ;;  %v15838_v17 = vshrl.u32 %v8851_v11, 16 }
 0xdf2   : > { %20850 = vmatprep.subr.bf16.mxu1 %v22752_v6 }
 0xdf3   : > { %v15840_v22 = vrot.slane %v15838_v17, 4 }
 0xdf5   : > { %v15844_v21 = vor.u32 %v15843_v0, %v15840_v22 }
 0xdf7   : > { %v15845_v50 = vrot.slane %v15844_v21, 4 }
 0xdf8   : > { %20789 = vmatmul.mubr.msk.bf16.gmra.mrb[4].mxu1 %vm908_vm3, %v29872_v13 }
 0xdf9   : > { %20792 = vmatprep.mubr.msk.bf16.mxu1 %vm908_vm3, %v29873_v29 }
 0xe00   : > { %20793 = vmatmul.mubr.msk.bf16.gmra.mrb[8].mxu1 %vm908_vm3, %v29874_v43 }
 0xe01   : > { %20796 = vmatprep.mubr.msk.bf16.mxu1 %vm908_vm3, %v29875_v7 }
 0xe08   : > { %20797 = vmatmul.mubr.msk.bf16.gmra.mrb[12].mxu1 %vm908_vm3, %v29876_v44 }
 0xe09   : > { %20800 = vmatprep.mubr.msk.bf16.mxu1 %vm908_vm3, %v29877_v46 }
 0xe10   : > { %20801 = vmatmul.mubr.msk.bf16.gmra.mrb[16].mxu1 %vm908_vm3, %v29878_v2 }
 0xe11   : > { %20804 = vmatprep.mubr.msk.bf16.mxu1 %vm908_vm3, %v29879_v32 }
 0xe18   : > { %20805 = vmatmul.mubr.msk.bf16.gmra.mrb[20].mxu1 %vm908_vm3, %v29880_v48 }
 0xe19   : > { %20808 = vmatprep.mubr.msk.bf16.mxu1 %vm908_vm3, %v29881_v55 }
 0xe20   : > { %20809 = vmatmul.mubr.msk.bf16.gmra.mrb[24].mxu1 %vm908_vm3, %v29882_v62 }
 0xe21   : > { %20812 = vmatprep.mubr.msk.bf16.mxu1 %vm908_vm3, %v29883_v15  ;;  %v29902_v15 = vld [vmem:[#allocation38_spill] sm:$0xff] }
 0xe28   : > { %20813 = vmatmul.mubr.msk.bf16.gmra.mrb[28].mxu1 %vm908_vm3, %v18031_v9 }
 0xe29   : > { %20818 = vmatprep.mubr.msk.bf16.mxu1 %vm908_vm3, %v29884_v25 }
 0xe30   : > { %20819 = vmatmul.mubr.msk.bf16.vlgmr.msra.gmra.mrb[0].mxu1 %vm908_vm3, %v29885_v34 }
 0xe31   : > { %20851 = vmatpush3.bf16.msra.mxu1 %v22752_v6  ;;  %20822 = vmatprep.mubr.msk.bf16.mxu1 %vm908_vm3, %v29886_v47  ;;  %v29901_v6 = vld [vmem:[#allocation26_spill] sm:$0xff] }
 0xe32   : > { %v16349_v31 = vunpack.c.l.bf16 %v29901_v6 }
 0xe38   : > { %20823 = vmatmul.mubr.msk.bf16.gmra.mrb[4].mxu1 %vm908_vm3, %v29887_v53  ;;  %v29903_v53 = vld [vmem:[#allocation32_spill] sm:$0xff] }
 0xe39   : > { %20826 = vmatprep.mubr.msk.bf16.mxu1 %vm908_vm3, %v29888_v14  ;;  %v16352_v14 = vunpack.c.l.bf16 %v29903_v53 }
 0xe40   : > { %20827 = vmatmul.mubr.msk.bf16.gmra.mrb[8].mxu1 %vm908_vm3, %v29889_v8 }
 0xe41   : > { %20830 = vmatprep.mubr.msk.bf16.mxu1 %vm908_vm3, %v29890_v24 }
 0xe48   : > { %20831 = vmatmul.mubr.msk.bf16.gmra.mrb[12].mxu1 %vm908_vm3, %v29891_v57 }
 0xe49   : > { %20834 = vmatprep.mubr.msk.bf16.mxu1 %vm908_vm3, %v29892_v42 }
 0xe50   : > { %20835 = vmatmul.mubr.msk.bf16.gmra.mrb[16].mxu1 %vm908_vm3, %v29893_v59  ;;  %v29904_v59 = vld [vmem:[#allocation14_spill] sm:$0xff] }
 0xe51   : > { %20838 = vmatprep.mubr.msk.bf16.mxu1 %vm908_vm3, %v27579_v30  ;;  %v15850_v30 = vsel %vm23014_vm2, %v15845_v50, %v15849_v61  ;;  %v16355_v17 = vunpack.c.l.bf16 %v29904_v59 }
 0xe52   : > { %v18051_v56 = vcombine.low %v28214_v40, %v15850_v30 }
 0xe58   : > { %20839 = vmatmul.mubr.msk.bf16.gmra.mrb[20].mxu1 %vm908_vm3, %v29894_v20  ;;  %v29905_v20 = vld [vmem:[#allocation35_spill] sm:$0xff] }
 0xe59   : > { %20842 = vmatprep.mubr.msk.bf16.mxu1 %vm908_vm3, %v28015_v12  ;;  %v29895_v12 = vld [vmem:[#allocation135_spill] sm:$0xff]  ;;  %v16353_v21 = vunpack.c.l.bf16 %v29905_v20 }
 0xe60   : > { %20843 = vmatmul.mubr.msk.bf16.gmra.mrb[24].mxu1 %vm908_vm3, %v28019_v37  ;;  %v29898_v37 = vld [vmem:[#allocation28_spill] sm:$0xff] }
 0xe61   : > { %20846 = vmatprep.mubr.msk.bf16.mxu1 %vm908_vm3, %v28035_v63  ;;  %v16350_v63 = vunpack.c.l.bf16 %v29898_v37 }
 0xe68   : > { %20847 = vmatmul.mubr.msk.bf16.gmra.mrb[28].mxu1 %vm908_vm3, %v18051_v56 }
 0xe69   : > { %20852 = vmatprep.mubr.msk.bf16.mxu1 %vm908_vm3, %v26498_v3  ;;  %v29897_v3 = vld [vmem:[#allocation162_spill] sm:$0xff] }
 0xe70   : > { %20853 = vmatmul.mubr.msk.bf16.vlgmr.msra.gmra.mrb[0].mxu1 %vm908_vm3, %v26526_v33  ;;  %v18069_v33 = vrot.slane %v8851_v11, 9  ;;  %v16354_v11 = vunpack.c.l.bf16 %v29902_v15 }
 0xe71   : > { %20856 = vmatprep.mubr.msk.bf16.mxu1 %vm908_vm3, %v29634_v38 }
 0xe78   : > { %20857 = vmatmul.mubr.msk.bf16.gmra.mrb[4].mxu1 %vm908_vm3, %v29895_v12 }
 0xe79   : > { %20860 = vmatprep.mubr.msk.bf16.mxu1 %vm908_vm3, %v29635_v26 }
 0xe80   : > { %20861 = vmatmul.mubr.msk.bf16.gmra.mrb[8].mxu1 %vm908_vm3, %v29636_v45  ;;  %v28369_v45 = vld [vmem:[%s28598_s5] ss:$0 sm:$0xff] }
 0xe81   : > { %20864 = vmatprep.mubr.msk.bf16.mxu1 %vm908_vm3, %v26604_v4  ;;  %v16061_v4 = vrot.slane %v8852_v10, 5 }
 0xe83   : > { %v16062_v38 = vsel %vm23501_vm6, %v18069_v33, %v16061_v4 }
 0xe84   : > { %v18072_v26 = vcombine.low %v28258_v16, %v16062_v38 }
 0xe88   : > { %20865 = vmatmul.mubr.msk.bf16.gmra.mrb[12].mxu1 %vm908_vm3, %v29896_v54 }
 0xe89   : > { %20868 = vmatprep.mubr.msk.bf16.mxu1 %vm908_vm3, %v29772_v23 }
 0xe90   : > { %20869 = vmatmul.mubr.msk.bf16.gmra.mrb[16].mxu1 %vm908_vm3, %v29773_v28  ;;  %v28374_v28 = vld [vmem:[%s28599_s6] ss:$0 sm:$0xff] }
 0xe91   : > { %20872 = vmatprep.mubr.msk.bf16.mxu1 %vm908_vm3, %v29774_v60 }
 0xe98   : > { %20873 = vmatmul.mubr.msk.bf16.gmra.mrb[20].mxu1 %vm908_vm3, %v29897_v3 }
 0xe99   : > { %20876 = vmatprep.mubr.msk.bf16.mxu1 %vm908_vm3, %v28105_v58 }
 0xea0   : > { %20877 = vmatmul.mubr.msk.bf16.gmra.mrb[24].mxu1 %vm908_vm3, %v28110_v36  ;;  %v29899_v36 = vld [vmem:[#allocation23_spill] sm:$0xff] }
 0xea1   : > { %20880 = vmatprep.mubr.msk.bf16.mxu1 %vm908_vm3, %v28129_v39  ;;  %v16348_v39 = vunpack.c.l.bf16 %v29899_v36  ;;  %v29907_v36 = vld [vmem:[#allocation42_spill] sm:$0xff] }
 0xea8   : > { %20881 = vmatmul.mubr.msk.bf16.gmra.mrb[28].mxu1 %vm908_vm3, %v18072_v26 }
 0xf43   : > { %v20854_v23 = vpop.f32.mrb[0].mxu1 }
 0xf44   : > { %v16279_v60 = vmul.f32 %v20854_v23, %v28369_v45  ;;  %v16111_v27 = vpop.f32.mrb[1].mxu1  ;;  %v29906_v23 = vld [vmem:[#allocation46_spill] sm:$0xff] }
 0xf45   : > { %v16277_v58 = vmul.f32 %v28369_v45, %v16111_v27  ;;  %v20855_v40 = vpop.f32.mrb[2].mxu1 }
 0xf46   : > { %v16318_v49 = vadd.f32 %v28374_v28, %v16279_v60  ;;  %v16280_v18 = vmul.f32 %v20855_v40, %v28369_v45  ;;  %v16114_v16 = vpop.f32.mrb[3].mxu1  ;;  %v16358_v60 = vunpack.c.l.bf16 %v29906_v23 }
 0xf47   : > { %v16316_v35 = vadd.f32 %v28374_v28, %v16277_v58  ;;  %v16278_v41 = vmul.f32 %v28369_v45, %v16114_v16 }
 0xf48   : > { %v16382_v5 = vadd.f32 %v16350_v63, %v16318_v49  ;;  %v16319_v13 = vadd.f32 %v28374_v28, %v16280_v18 }
 0xf49   : > { %v16380_v29 = vadd.f32 %v16348_v39, %v16316_v35  ;;  %v16317_v43 = vadd.f32 %v28374_v28, %v16278_v41  ;;  %v16356_v39 = vunpack.c.l.bf16 %v29907_v36 }
 0xf4a   : > { %v16414_v7 = vmax.f32 %v16382_v5, 0.0  ;;  %v16383_v44 = vadd.f32 %v16351_v19, %v16319_v13  ;;  %v29908_v19 = vld [vmem:[#allocation49_spill] sm:$0xff]  ;;  %v29909_v5 = vld [vmem:[#allocation44_spill] sm:$0xff] }
 0xf4b   : > { %v16412_v46 = vmax.f32 %v16380_v29, 0.0  ;;  %v16381_v2 = vadd.f32 %v16349_v31, %v16317_v43  ;;  %v20858_v32 = vpop.f32.mrb[4].mxu1  ;;  %v16359_v16 = vunpack.c.l.bf16 %v29908_v19  ;;  %v16357_v13 = vunpack.c.l.bf16 %v29909_v5 }
 0xf4c   : > { %v16446_v48 = vpack.c.bf16 %v16414_v7, %v16414_v7  ;;  %v16415_v55 = vmax.f32 %v16383_v44, 0.0  ;;  %v16283_v62 = vmul.f32 %v20858_v32, %v28369_v45  ;;  %v16127_v9 = vpop.f32.mrb[5].mxu1 }
 0xf4d   : > { %v16444_v25 = vpack.c.bf16 %v16412_v46, %v16412_v46  ;;  %v16413_v34 = vmax.f32 %v16381_v2, 0.0  ;;  %v16281_v47 = vmul.f32 %v28369_v45, %v16127_v9  ;;  %v20859_v8 = vpop.f32.mrb[6].mxu1  ;;  %v29910_v9 = vld [vmem:[#allocation56_spill] sm:$0xff] }
 0xf4e   : > { %16478 = vst.msk [vmem:[%s28395_s21 + $0x8] sm:$0xf] %vm7964_vm7, %v16446_v48  ;;  %v16447_v24 = vpack.c.bf16 %v16415_v55, %v16415_v55  ;;  %v16322_v57 = vadd.f32 %v28374_v28, %v16283_v62  ;;  %v16284_v42 = vmul.f32 %v20859_v8, %v28369_v45  ;;  %v16130_v1 = vpop.f32.mrb[7].mxu1  ;;  %v29911_v8 = vld [vmem:[#allocation51_spill] sm:$0xff] }
 0xf4f   : > { %16476 = vst.msk [vmem:[%s28395_s21] sm:$0xf] %vm7964_vm7, %v16444_v25  ;;  %v16445_v22 = vpack.c.bf16 %v16413_v34, %v16413_v34  ;;  %v16320_v0 = vadd.f32 %v28374_v28, %v16281_v47  ;;  %v16282_v10 = vmul.f32 %v28369_v45, %v16130_v1  ;;  %v16362_v25 = vunpack.c.l.bf16 %v29910_v9  ;;  %v29912_v1 = vld [vmem:[#allocation89_spill] sm:$0xff] }
 0xf50   : > { %16479 = vst.msk [vmem:[%s28395_s21 + $0xc] sm:$0xf] %vm7964_vm7, %v16447_v24  ;;  %v16386_v51 = vadd.f32 %v16354_v11, %v16322_v57  ;;  %v16323_v50 = vadd.f32 %v28374_v28, %v16284_v42  ;;  %v16360_v24 = vunpack.c.l.bf16 %v29911_v8 }
 0xf51   : > { %16477 = vst.msk [vmem:[%s28395_s21 + $0x4] sm:$0xf] %vm7964_vm7, %v16445_v22  ;;  %v16384_v61 = vadd.f32 %v16352_v14, %v16320_v0  ;;  %v16321_v30 = vadd.f32 %v28374_v28, %v16282_v10  ;;  %v16363_v22 = vunpack.c.l.bf16 %v29912_v1 }
 0xf52   : > { %v16418_v56 = vmax.f32 %v16386_v51, 0.0  ;;  %v16387_v12 = vadd.f32 %v16355_v17, %v16323_v50  ;;  %v29913_v51 = vld [vmem:[#allocation53_spill] sm:$0xff] }
 0xf53   : > { %v16416_v54 = vmax.f32 %v16384_v61, 0.0  ;;  %v16385_v3 = vadd.f32 %v16353_v21, %v16321_v30  ;;  %v20862_v33 = vpop.f32.mrb[8].mxu1  ;;  %v16361_v50 = vunpack.c.l.bf16 %v29913_v51 }
 0xf54   : > { %v16450_v4 = vpack.c.bf16 %v16418_v56, %v16418_v56  ;;  %v16419_v38 = vmax.f32 %v16387_v12, 0.0  ;;  %v16287_v26 = vmul.f32 %v20862_v33, %v28369_v45  ;;  %v16143_v37 = vpop.f32.mrb[9].mxu1 }
 0xf55   : > { %v16448_v63 = vpack.c.bf16 %v16416_v54, %v16416_v54  ;;  %v16417_v27 = vmax.f32 %v16385_v3, 0.0  ;;  %v16285_v58 = vmul.f32 %v28369_v45, %v16143_v37  ;;  %v20863_v40 = vpop.f32.mrb[10].mxu1  ;;  %v29914_v37 = vld [vmem:[#allocation61_spill] sm:$0xff] }
 0xf56   : > { %16482 = vst.msk [vmem:[%s28395_s21 + $0x18] sm:$0xf] %vm7964_vm7, %v16450_v4  ;;  %v16451_v49 = vpack.c.bf16 %v16419_v38, %v16419_v38  ;;  %v16326_v18 = vadd.f32 %v28374_v28, %v16287_v26  ;;  %v16288_v52 = vmul.f32 %v20863_v40, %v28369_v45  ;;  %v16146_v35 = vpop.f32.mrb[11].mxu1  ;;  %v29915_v40 = vld [vmem:[#allocation58_spill] sm:$0xff] }
 0xf57   : > { %16480 = vst.msk [vmem:[%s28395_s21 + $0x10] sm:$0xf] %vm7964_vm7, %v16448_v63  ;;  %v16449_v41 = vpack.c.bf16 %v16417_v27, %v16417_v27  ;;  %v16324_v6 = vadd.f32 %v28374_v28, %v16285_v58  ;;  %v16286_v31 = vmul.f32 %v28369_v45, %v16146_v35  ;;  %v16366_v63 = vunpack.c.l.bf16 %v29914_v37  ;;  %v29916_v35 = vld [vmem:[#allocation63_spill] sm:$0xff] }
 0xf58   : > { %16483 = vst.msk [vmem:[%s28395_s21 + $0x1c] sm:$0xf] %vm7964_vm7, %v16451_v49  ;;  %v16390_v29 = vadd.f32 %v16358_v60, %v16326_v18  ;;  %v16327_v43 = vadd.f32 %v28374_v28, %v16288_v52  ;;  %v16364_v49 = vunpack.c.l.bf16 %v29915_v40 }
 0xf59   : > { %16481 = vst.msk [vmem:[%s28395_s21 + $0x14] sm:$0xf] %vm7964_vm7, %v16449_v41  ;;  %v16388_v7 = vadd.f32 %v16356_v39, %v16324_v6  ;;  %v16325_v44 = vadd.f32 %v28374_v28, %v16286_v31  ;;  %v16367_v41 = vunpack.c.l.bf16 %v29916_v35 }
 0xf5a   : > { %v16422_v46 = vmax.f32 %v16390_v29, 0.0  ;;  %v16391_v2 = vadd.f32 %v16359_v16, %v16327_v43  ;;  %v29917_v29 = vld [vmem:[#allocation60_spill] sm:$0xff] }
 0xf5b   : > { %v16420_v32 = vmax.f32 %v16388_v7, 0.0  ;;  %v16389_v48 = vadd.f32 %v16357_v13, %v16325_v44  ;;  %v20866_v55 = vpop.f32.mrb[12].mxu1  ;;  %v16365_v43 = vunpack.c.l.bf16 %v29917_v29 }
 0xf5c   : > { %v16454_v62 = vpack.c.bf16 %v16422_v46, %v16422_v46  ;;  %v16423_v15 = vmax.f32 %v16391_v2, 0.0  ;;  %v16291_v11 = vmul.f32 %v20866_v55, %v28369_v45  ;;  %v16159_v34 = vpop.f32.mrb[13].mxu1 }
 0xf5d   : > { %v16452_v47 = vpack.c.bf16 %v16420_v32, %v16420_v32  ;;  %v16421_v53 = vmax.f32 %v16389_v48, 0.0  ;;  %v16289_v14 = vmul.f32 %v28369_v45, %v16159_v34  ;;  %v20867_v57 = vpop.f32.mrb[14].mxu1  ;;  %v29918_v34 = vld [vmem:[#allocation67_spill] sm:$0xff] }
 0xf5e   : > { %16486 = vst.msk [vmem:[%s28395_s21 + $0x28] sm:$0xf] %vm7964_vm7, %v16454_v62  ;;  %v16455_v42 = vpack.c.bf16 %v16423_v15, %v16423_v15  ;;  %v16330_v59 = vadd.f32 %v28374_v28, %v16291_v11  ;;  %v16292_v17 = vmul.f32 %v20867_v57, %v28369_v45  ;;  %v16162_v0 = vpop.f32.mrb[15].mxu1  ;;  %v29919_v57 = vld [vmem:[#allocation64_spill] sm:$0xff] }
 0xf5f   : > { %16484 = vst.msk [vmem:[%s28395_s21 + $0x20] sm:$0xf] %vm7964_vm7, %v16452_v47  ;;  %v16453_v10 = vpack.c.bf16 %v16421_v53, %v16421_v53  ;;  %v16328_v20 = vadd.f32 %v28374_v28, %v16289_v14  ;;  %v16290_v21 = vmul.f32 %v28369_v45, %v16162_v0  ;;  %v16370_v47 = vunpack.c.l.bf16 %v29918_v34  ;;  %v29920_v0 = vld [vmem:[#allocation94_spill] sm:$0xff] }
 0xf60   : > { %16487 = vst.msk [vmem:[%s28395_s21 + $0x2c] sm:$0xf] %vm7964_vm7, %v16455_v42  ;;  %v16394_v61 = vadd.f32 %v16362_v25, %v16330_v59  ;;  %v16331_v30 = vadd.f32 %v28374_v28, %v16292_v17  ;;  %v16368_v42 = vunpack.c.l.bf16 %v29919_v57 }
 0xf61   : > { %16485 = vst.msk [vmem:[%s28395_s21 + $0x24] sm:$0xf] %vm7964_vm7, %v16453_v10  ;;  %v16392_v56 = vadd.f32 %v16360_v24, %v16328_v20  ;;  %v16329_v12 = vadd.f32 %v28374_v28, %v16290_v21  ;;  %v16371_v10 = vunpack.c.l.bf16 %v29920_v0 }
 0xf62   : > { %v16426_v54 = vmax.f32 %v16394_v61, 0.0  ;;  %v16395_v3 = vadd.f32 %v16363_v22, %v16331_v30  ;;  %v29921_v61 = vld [vmem:[#allocation66_spill] sm:$0xff] }
 0xf63   : > { %v16424_v33 = vmax.f32 %v16392_v56, 0.0  ;;  %v16393_v4 = vadd.f32 %v16361_v50, %v16329_v12  ;;  %v20870_v38 = vpop.f32.mrb[16].mxu1  ;;  %v16369_v30 = vunpack.c.l.bf16 %v29921_v61 }
 0xf64   : > { %v16458_v26 = vpack.c.bf16 %v16426_v54, %v16426_v54  ;;  %v16427_v23 = vmax.f32 %v16395_v3, 0.0  ;;  %v16295_v60 = vmul.f32 %v20870_v38, %v28369_v45  ;;  %v16175_v27 = vpop.f32.mrb[17].mxu1 }
 0xf65   : > { %v16456_v58 = vpack.c.bf16 %v16424_v33, %v16424_v33  ;;  %v16425_v36 = vmax.f32 %v16393_v4, 0.0  ;;  %v16293_v39 = vmul.f32 %v28369_v45, %v16175_v27  ;;  %v20871_v18 = vpop.f32.mrb[18].mxu1  ;;  %v29922_v27 = vld [vmem:[#allocation73_spill] sm:$0xff] }
 0xf66   : > { %16490 = vst.msk [vmem:[%s28395_s21 + $0x38] sm:$0xf] %vm7964_vm7, %v16458_v26  ;;  %v16459_v52 = vpack.c.bf16 %v16427_v23, %v16427_v23  ;;  %v16334_v19 = vadd.f32 %v28374_v28, %v16295_v60  ;;  %v16296_v16 = vmul.f32 %v20871_v18, %v28369_v45  ;;  %v16178_v6 = vpop.f32.mrb[19].mxu1  ;;  %v29923_v18 = vld [vmem:[#allocation27_spill] sm:$0xff] }
 0xf67   : > { %16488 = vst.msk [vmem:[%s28395_s21 + $0x30] sm:$0xf] %vm7964_vm7, %v16456_v58  ;;  %v16457_v31 = vpack.c.bf16 %v16425_v36, %v16425_v36  ;;  %v16332_v5 = vadd.f32 %v28374_v28, %v16293_v39  ;;  %v16294_v13 = vmul.f32 %v28369_v45, %v16178_v6  ;;  %v16374_v58 = vunpack.c.l.bf16 %v29922_v27  ;;  %v29924_v6 = vld [vmem:[#allocation25_spill] sm:$0xff] }
 0xf68   : > { %16491 = vst.msk [vmem:[%s28395_s21 + $0x3c] sm:$0xf] %vm7964_vm7, %v16459_v52  ;;  %v16398_v7 = vadd.f32 %v16366_v63, %v16334_v19  ;;  %v16335_v44 = vadd.f32 %v28374_v28, %v16296_v16  ;;  %v16372_v52 = vunpack.c.l.bf16 %v29923_v18 }
 0xf69   : > { %16489 = vst.msk [vmem:[%s28395_s21 + $0x34] sm:$0xf] %vm7964_vm7, %v16457_v31  ;;  %v16396_v46 = vadd.f32 %v16364_v49, %v16332_v5  ;;  %v16333_v2 = vadd.f32 %v28374_v28, %v16294_v13  ;;  %v16375_v31 = vunpack.c.l.bf16 %v29924_v6 }
 0xf6a   : > { %v16430_v32 = vmax.f32 %v16398_v7, 0.0  ;;  %v16399_v48 = vadd.f32 %v16367_v41, %v16335_v44  ;;  %v29925_v7 = vld [vmem:[#allocation34_spill] sm:$0xff] }
 0xf6b   : > { %v16428_v55 = vmax.f32 %v16396_v46, 0.0  ;;  %v16397_v62 = vadd.f32 %v16365_v43, %v16333_v2  ;;  %v20874_v15 = vpop.f32.mrb[20].mxu1  ;;  %v16373_v44 = vunpack.c.l.bf16 %v29925_v7 }
 0xf6c   : > { %v16462_v11 = vpack.c.bf16 %v16430_v32, %v16430_v32  ;;  %v16431_v9 = vmax.f32 %v16399_v48, 0.0  ;;  %v16299_v25 = vmul.f32 %v20874_v15, %v28369_v45  ;;  %v16191_v53 = vpop.f32.mrb[21].mxu1 }
 0xf6d   : > { %v16460_v14 = vpack.c.bf16 %v16428_v55, %v16428_v55  ;;  %v16429_v8 = vmax.f32 %v16397_v62, 0.0  ;;  %v16297_v24 = vmul.f32 %v28369_v45, %v16191_v53  ;;  %v20875_v59 = vpop.f32.mrb[22].mxu1  ;;  %v29926_v53 = vld [vmem:[#allocation111_spill] sm:$0xff] }
 0xf6e   : > { %16494 = vst.msk [vmem:[%s28395_s21 + $0x48] sm:$0xf] %vm7964_vm7, %v16462_v11  ;;  %v16463_v17 = vpack.c.bf16 %v16431_v9, %v16431_v9  ;;  %v16338_v1 = vadd.f32 %v28374_v28, %v16299_v25  ;;  %v16300_v22 = vmul.f32 %v20875_v59, %v28369_v45  ;;  %v16194_v20 = vpop.f32.mrb[23].mxu1  ;;  %v29927_v59 = vld [vmem:[#allocation107_spill] sm:$0xff] }
 0xf6f   : > { %16492 = vst.msk [vmem:[%s28395_s21 + $0x40] sm:$0xf] %vm7964_vm7, %v16460_v14  ;;  %v16461_v21 = vpack.c.bf16 %v16429_v8, %v16429_v8  ;;  %v16336_v51 = vadd.f32 %v28374_v28, %v16297_v24  ;;  %v16298_v50 = vmul.f32 %v28369_v45, %v16194_v20  ;;  %v16378_v14 = vunpack.c.l.bf16 %v29926_v53  ;;  %v29928_v20 = vld [vmem:[#allocation45_spill] sm:$0xff] }
 0xf70   : > { %16495 = vst.msk [vmem:[%s28395_s21 + $0x4c] sm:$0xf] %vm7964_vm7, %v16463_v17  ;;  %v16402_v56 = vadd.f32 %v16370_v47, %v16338_v1  ;;  %v16339_v12 = vadd.f32 %v28374_v28, %v16300_v22  ;;  %v16376_v17 = vunpack.c.l.bf16 %v29927_v59 }
 0xf71   : > { %16493 = vst.msk [vmem:[%s28395_s21 + $0x44] sm:$0xf] %vm7964_vm7, %v16461_v21  ;;  %v16400_v54 = vadd.f32 %v16368_v42, %v16336_v51  ;;  %v16337_v3 = vadd.f32 %v28374_v28, %v16298_v50  ;;  %v16379_v21 = vunpack.c.l.bf16 %v29928_v20 }
 0xf72   : > { %v16434_v33 = vmax.f32 %v16402_v56, 0.0  ;;  %v16403_v4 = vadd.f32 %v16371_v10, %v16339_v12  ;;  %v29929_v56 = vld [vmem:[#allocation110_spill] sm:$0xff] }
 0xf73   : > { %v16432_v38 = vmax.f32 %v16400_v54, 0.0  ;;  %v16401_v26 = vadd.f32 %v16369_v30, %v16337_v3  ;;  %v20878_v23 = vpop.f32.mrb[24].mxu1  ;;  %v16377_v12 = vunpack.c.l.bf16 %v29929_v56 }
 0xf74   : > { %v16466_v60 = vpack.c.bf16 %v16434_v33, %v16434_v33  ;;  %v16435_v37 = vmax.f32 %v16403_v4, 0.0  ;;  %v16303_v63 = vmul.f32 %v20878_v23, %v28369_v45  ;;  %v16207_v36 = vpop.f32.mrb[25].mxu1 }
 0xf75   : > { %v16464_v39 = vpack.c.bf16 %v16432_v38, %v16432_v38  ;;  %v16433_v40 = vmax.f32 %v16401_v26, 0.0  ;;  %v16301_v49 = vmul.f32 %v28369_v45, %v16207_v36  ;;  %v20879_v19 = vpop.f32.mrb[26].mxu1 }
 0xf76   : > { %16498 = vst.msk [vmem:[%s28395_s21 + $0x58] sm:$0xf] %vm7964_vm7, %v16466_v60  ;;  %v16467_v16 = vpack.c.bf16 %v16435_v37, %v16435_v37  ;;  %v16342_v35 = vadd.f32 %v28374_v28, %v16303_v63  ;;  %v16304_v41 = vmul.f32 %v20879_v19, %v28369_v45  ;;  %v16210_v5 = vpop.f32.mrb[27].mxu1 }
 0xf77   : > { %16496 = vst.msk [vmem:[%s28395_s21 + $0x50] sm:$0xf] %vm7964_vm7, %v16464_v39  ;;  %v16465_v13 = vpack.c.bf16 %v16433_v40, %v16433_v40  ;;  %v16340_v29 = vadd.f32 %v28374_v28, %v16301_v49  ;;  %v16302_v43 = vmul.f32 %v28369_v45, %v16210_v5 }
 0xf78   : > { %16499 = vst.msk [vmem:[%s28395_s21 + $0x5c] sm:$0xf] %vm7964_vm7, %v16467_v16  ;;  %v16406_v46 = vadd.f32 %v16374_v58, %v16342_v35  ;;  %v16343_v2 = vadd.f32 %v28374_v28, %v16304_v41 }
 0xf79   : > { %16497 = vst.msk [vmem:[%s28395_s21 + $0x54] sm:$0xf] %vm7964_vm7, %v16465_v13  ;;  %v16404_v32 = vadd.f32 %v16372_v52, %v16340_v29  ;;  %v16341_v48 = vadd.f32 %v28374_v28, %v16302_v43 }
 0xf7a   : > { %v16438_v55 = vmax.f32 %v16406_v46, 0.0  ;;  %v16407_v62 = vadd.f32 %v16375_v31, %v16343_v2 }
 0xf7b   : > { %v16436_v15 = vmax.f32 %v16404_v32, 0.0  ;;  %v16405_v11 = vadd.f32 %v16373_v44, %v16341_v48  ;;  %v20882_v9 = vpop.f32.mrb[28].mxu1 }
 0xf7c   : > { %v16470_v25 = vpack.c.bf16 %v16438_v55, %v16438_v55  ;;  %v16439_v34 = vmax.f32 %v16407_v62, 0.0  ;;  %v16307_v47 = vmul.f32 %v20882_v9, %v28369_v45  ;;  %v16223_v8 = vpop.f32.mrb[29].mxu1 }
 0xf7d   : > { %v16468_v24 = vpack.c.bf16 %v16436_v15, %v16436_v15  ;;  %v16437_v57 = vmax.f32 %v16405_v11, 0.0  ;;  %v16305_v42 = vmul.f32 %v28369_v45, %v16223_v8  ;;  %v20883_v1 = vpop.f32.mrb[30].mxu1 }
 0xf7e   : > { %16502 = vst.msk [vmem:[%s28395_s21 + $0x68] sm:$0xf] %vm7964_vm7, %v16470_v25  ;;  %v16471_v22 = vpack.c.bf16 %v16439_v34, %v16439_v34  ;;  %v16346_v0 = vadd.f32 %v28374_v28, %v16307_v47  ;;  %v16308_v10 = vmul.f32 %v20883_v1, %v28369_v45  ;;  %v16226_v51 = vpop.f32.mrb[31].mxu1 }
 0xf7f   : > { %16500 = vst.msk [vmem:[%s28395_s21 + $0x60] sm:$0xf] %vm7964_vm7, %v16468_v24  ;;  %v16469_v50 = vpack.c.bf16 %v16437_v57, %v16437_v57  ;;  %v16344_v61 = vadd.f32 %v28374_v28, %v16305_v42  ;;  %v16306_v30 = vmul.f32 %v28369_v45, %v16226_v51 }
 0xf80   : > { %16503 = vst.msk [vmem:[%s28395_s21 + $0x6c] sm:$0xf] %vm7964_vm7, %v16471_v22  ;;  %v16410_v54 = vadd.f32 %v16378_v14, %v16346_v0  ;;  %v16347_v3 = vadd.f32 %v28374_v28, %v16308_v10 }
 0xf81   : > { %16501 = vst.msk [vmem:[%s28395_s21 + $0x64] sm:$0xf] %vm7964_vm7, %v16469_v50  ;;  %v16408_v33 = vadd.f32 %v16376_v17, %v16344_v61  ;;  %v16345_v4 = vadd.f32 %v28374_v28, %v16306_v30 }
 0xf82   : > { %v16442_v38 = vmax.f32 %v16410_v54, 0.0  ;;  %v16411_v26 = vadd.f32 %v16379_v21, %v16347_v3 }
 0xf83   : > { %v16440_v23 = vmax.f32 %v16408_v33, 0.0  ;;  %v16409_v45 = vadd.f32 %v16377_v12, %v16345_v4 }
 0xf84   : > { %v16474_v60 = vpack.c.bf16 %v16442_v38, %v16442_v38  ;;  %v16443_v37 = vmax.f32 %v16411_v26, 0.0 }
 0xf85   : > { %v16472_v63 = vpack.c.bf16 %v16440_v23, %v16440_v23  ;;  %v16441_v27 = vmax.f32 %v16409_v45, 0.0 }
 0xf86   : > { %16506 = vst.msk [vmem:[%s28395_s21 + $0x78] sm:$0xf] %vm7964_vm7, %v16474_v60  ;;  %v16475_v58 = vpack.c.bf16 %v16443_v37, %v16443_v37 }
 0xf87   : > { %16504 = vst.msk [vmem:[%s28395_s21 + $0x70] sm:$0xf] %vm7964_vm7, %v16472_v63  ;;  %v16473_v28 = vpack.c.bf16 %v16441_v27, %v16441_v27 }
 0xf88   : > { %16507 = vst.msk [vmem:[%s28395_s21 + $0x7c] sm:$0xf] %vm7964_vm7, %v16475_v58 }
 0xf89   : > { %16505 = vst.msk [vmem:[%s28395_s21 + $0x74] sm:$0xf] %vm7964_vm7, %v16473_v28 }
 0xf8a   : > { %22825 = shalt.err (!%p22822_p3)
}
 0xf8b   : > { %s22826_s15 = scalar_lea.hbm %s28540_s29, 2048  ;;  %s22830_s18 = scalar_lea.hbm %s28600_s7, 4096 }
 0xf8c   : > { %p22827_p4 = scmp.ne.s32.totalorder %s28540_s29, %s22826_s15  ;;  %p22831_p9 = scmp.lt.u32.totalorder %s28540_s29, %s28600_s7 }
 0xf8d   : > { %p22832_p10 = scmp.lt.u32.totalorder %s22830_s18, %s22826_s15  ;;  %p22834_p12 = scmp.lt.u32.totalorder %s22826_s15, %s28540_s29 }
 0xf8e   : > { %p22828_p7 = pnand %p22827_p4, %p22958_p5 }
 0xf8f   : > { %p22833_p11 = por %p22832_p10, %p22831_p9 }
 0xf90   : > { %p22829_p8 = pneg %p22828_p7 }
 0xf91   : > { %p22835_p13 = por %p22834_p12, %p22833_p11 }
 0xf93   : > { %p22836_p0 = pnand %p22835_p13, %p22829_p8 }
 0xf95   : > { %22839 = shalt.err (!%p22836_p0)
}
 0xf96   : > { %s22878_s22 = smov 64   ;;  %s22879_s23 = smov 4  }
 0xf97   : > { %22549 = dma.vmem_to_hbm [thread:$0]  (%p22958_p5), %s28542_s20, 2048, %s28540_s29, %s28552_s28, %s22878_s22, %s22878_s22, %s22879_s23  }
 0xf98 PF: > { %p22555_p1 = scmp.ge.s32.totalorder %s22874_s27, 2  ;;  %s16537_s8 = sand.u32 1, %s22862_s24  }
 0xf99   : > { %s16538_s9 = scalar_lea.sflag [#allocation4], %s16537_s8 }
 0xf9a   : > { %p22552_p2 = pnand %p22555_p1, %p22962_p6 }
 0xf9c   : > { %22857 = dma.done.wait (!%p22552_p2), %s16538_s9, 2048  }
 0xf9d   : > { %22859 = vsyncadd (!%p22552_p2), %s16538_s9, 4294965248  ;;  %p17_p3 = scmp.ge.s32.totalorder %s22945_s30, 4   ;;  %s29930_s24 = smov %s22866_s25 }
 0xf9e   : > { %s29931_s25 = smov %s22870_s26  ;;  %s29932_s26 = smov %s22956_s10 }
 0xf9f   : > { %s29933_s27 = smov %s22945_s30  ;;  %19 = sbr.rel (!%p17_p3) target bundleno = 3 (0x3), region = 136 }
 0xfa6   :  { %16543 = vsyncpa [#allocation4], 1 }
 0xfa7   :  { %16545 = vsyncpa [#allocation4 + $0x1], 1 }

</bundles_post_ra>
